<compile_context>
chip_gen: v7x
topology: tpu7x:2x2x1
jax: 0.10.0
libtpu: 0.0.40
codegen_flags: <defaults>
</compile_context>

<pallas_src>
import functools

import jax
import jax.numpy as jnp
from jax.experimental import pallas as pl
from jax.experimental.pallas import tpu as pltpu

CP = 128  # padded channel width = TPU lane width (all channel dims padded to this)


# ---------------------------------------------------------------------------
# Kernel 1: fused conv1+relu -> conv2+relu -> conv3+relu -> maxpool2x2 (per image)
# ---------------------------------------------------------------------------

def _make_conv_pool_kernel(H, W):
    Wp = W + 2                 # padded width
    HWW = H * Wp               # "wide" GEMM rows: one row per (h, padded-w) position
    HH, WW = H // 2, W // 2    # pooled spatial dims

    def kernel(x_ref, mask_ref, w1_ref, b1_ref, w2_ref, b2_ref, w3_ref, b3_ref,
               out_ref, act_ref):
        mask = mask_ref[...]   # zeros out the 2 fake columns of the wide output

        def conv(read, w_ref, b_ref):
            # 9-tap accumulation: each tap is a contiguous row-slice of the
            # flattened padded activation -> lane-dense (HWW,128)x(128,128) dot.
            acc = jnp.zeros((HWW, CP), jnp.float32)
            for t in range(9):
                off = (t // 3) * Wp + (t % 3)
                a = read(off).astype(jnp.bfloat16)
                acc = acc + jnp.dot(a, w_ref[t],
                                    preferred_element_type=jnp.float32)
            return acc + b_ref[...]

        read_x = lambda off: x_ref[pl.ds(off, HWW), :]
        read_act = lambda off: act_ref[pl.ds(off, HWW), :]

        # Zero the padded activation buffer once per image so the conv zero
        # padding (borders / extra rows) stays exact for conv2 and conv3.
        act_ref[...] = jnp.zeros_like(act_ref)

        # conv1 + relu   (dropout p=0.1 -> identity at inference)
        y1 = jnp.maximum(conv(read_x, w1_ref, b1_ref), 0.0) * mask
        act_ref[pl.ds(Wp + 1, HWW), :] = y1          # place into padded interior

        # conv2 + relu   (dropout p=0.2 -> identity)
        y2 = jnp.maximum(conv(read_act, w2_ref, b2_ref), 0.0) * mask
        act_ref[pl.ds(Wp + 1, HWW), :] = y2

        # conv3 + relu   (dropout p=0.4 -> identity); no re-padding needed
        y3 = jnp.maximum(conv(read_act, w3_ref, b3_ref), 0.0)
        act_ref[pl.ds(0, HWW), :] = y3

        # 2x2 max pool (stride 2) entirely in VMEM via strided row reads.
        # Output row s = i*WW + j  <-> pooled spatial position (i, j); fc1's
        # weights are pre-permuted to this (s, padded-channel) order.
        for i in range(HH):
            base = 2 * i * Wp
            a = act_ref[pl.ds(base, WW, stride=2), :]
            b = act_ref[pl.ds(base + 1, WW, stride=2), :]
            c = act_ref[pl.ds(base + Wp, WW, stride=2), :]
            d = act_ref[pl.ds(base + Wp + 1, WW, stride=2), :]
            out_ref[pl.ds(i * WW, WW), :] = jnp.maximum(jnp.maximum(a, b),
                                                        jnp.maximum(c, d))

    return kernel


# ---------------------------------------------------------------------------
# Kernel 2: fused fc1 + relu -> fc2 + relu (whole batch, one GEMM each)
# ---------------------------------------------------------------------------

def _fc_kernel(x_ref, w1_ref, b1_ref, w2_ref, b2_ref, o_ref):
    h = jnp.dot(x_ref[...].astype(jnp.bfloat16), w1_ref[...],
                preferred_element_type=jnp.float32)
    h = jnp.maximum(h + b1_ref[...], 0.0)             # fc1 + relu (dropout -> identity)
    o = jnp.dot(h.astype(jnp.bfloat16), w2_ref[...],
                preferred_element_type=jnp.float32)
    o_ref[...] = jnp.maximum(o + b2_ref[...], 0.0)    # fc2 + final relu


# ---------------------------------------------------------------------------
# Parameter creation / one-time packing (outside jit)
# ---------------------------------------------------------------------------

def init_params(key, s_input, fc_input, fc_output):
    """Deterministic synthetic parameters matching Method_CNN.__init__ shapes."""
    ks = jax.random.split(key, 10)
    scale = 0.05
    return {
        "conv1_w": scale * jax.random.normal(ks[0], (16, s_input, 3, 3), jnp.float32),
        "conv1_b": scale * jax.random.normal(ks[1], (16,), jnp.float32),
        "conv2_w": scale * jax.random.normal(ks[2], (48, 16, 3, 3), jnp.float32),
        "conv2_b": scale * jax.random.normal(ks[3], (48,), jnp.float32),
        "conv3_w": scale * jax.random.normal(ks[4], (64, 48, 3, 3), jnp.float32),
        "conv3_b": scale * jax.random.normal(ks[5], (64,), jnp.float32),
        "fc1_w": scale * jax.random.normal(ks[6], (128, fc_input), jnp.float32),  # (out, in)
        "fc1_b": scale * jax.random.normal(ks[7], (128,), jnp.float32),
        "fc2_w": scale * jax.random.normal(ks[8], (fc_output, 128), jnp.float32),
        "fc2_b": scale * jax.random.normal(ks[9], (fc_output,), jnp.float32),
    }


def pack_params(params, H, W):
    """One-time weight packing: channel padding to 128, bf16 MXU layouts, and the
    fc1 column permutation that matches the kernel's (spatial, padded-chan) flatten."""
    hh, ww = H // 2, W // 2

    def pack_conv(w, b):
        cout, cin = w.shape[0], w.shape[1]
        wt = jnp.transpose(w, (2, 3, 1, 0)).reshape(9, cin, cout)      # (tap, cin, cout)
        wp = jnp.zeros((9, CP, CP), jnp.float32).at[:, :cin, :cout].set(wt)
        bp = jnp.zeros((1, CP), jnp.float32).at[0, :cout].set(b)
        return wp.astype(jnp.bfloat16), bp

    def pack_fc1(w, b, c3):
        o = w.shape[0]
        assert o == CP, "Method_CNN fc1 output is 128"
        # torch.flatten order is (c, i, j); kernel-1 output order is (s=i*ww+j, c_pad)
        wr = w.reshape(o, c3, hh, ww)
        wr = jnp.transpose(wr, (2, 3, 1, 0)).reshape(hh * ww, c3, o)   # (s, c, o)
        wp = jnp.zeros((hh * ww, CP, o), jnp.float32).at[:, :c3, :].set(wr)
        return (wp.reshape(hh * ww * CP, o).astype(jnp.bfloat16),
                b.reshape(1, o).astype(jnp.float32))

    def pack_fc2(w, b):
        fo, fi = w.shape                                               # (fc_output, 128)
        wp = jnp.zeros((fi, CP), jnp.float32).at[:, :fo].set(w.T)
        bp = jnp.zeros((1, CP), jnp.float32).at[0, :fo].set(b)
        return wp.astype(jnp.bfloat16), bp

    c1w, c1b = pack_conv(params["conv1_w"], params["conv1_b"])
    c2w, c2b = pack_conv(params["conv2_w"], params["conv2_b"])
    c3w, c3b = pack_conv(params["conv3_w"], params["conv3_b"])
    f1w, f1b = pack_fc1(params["fc1_w"], params["fc1_b"], params["conv3_w"].shape[0])
    f2w, f2b = pack_fc2(params["fc2_w"], params["fc2_b"])
    return dict(c1w=c1w, c1b=c1b, c2w=c2w, c2b=c2b, c3w=c3w, c3b=c3b,
                f1w=f1w, f1b=f1b, f2w=f2w, f2b=f2b)


# ---------------------------------------------------------------------------
# Forward pass
# ---------------------------------------------------------------------------

@functools.partial(jax.jit, static_argnames=("fc_output",))
def method_cnn_forward(x_nchw, packed, fc_output):
    """Forward pass of Method_CNN (train=False). Input is NCHW like PyTorch."""
    N, cin, H, W = x_nchw.shape
    Hp, Wp = H + 2, W + 2
    HWW = H * Wp
    R = (Hp * Wp + 2 + 7) // 8 * 8          # padded-flat rows (+2 slack for tap reads)
    hh, ww = H // 2, W // 2
    S = hh * ww

    # Input prep (cheap, 1x): NCHW -> NHWC, spatial pad 1, channel pad to 128,
    # flatten spatial to rows.  This is the layout the conv kernel slices from.
    x = jnp.transpose(x_nchw.astype(jnp.float32), (0, 2, 3, 1))
    x = jnp.pad(x, ((0, 0), (1, 1), (1, 1), (0, CP - cin)))
    x = x.reshape(N, Hp * Wp, CP)
    x = jnp.pad(x, ((0, 0), (0, R - Hp * Wp), (0, 0)))

    # Mask that zeroes the two fake columns of the "wide" conv output.
    colmask = (jnp.arange(HWW, dtype=jnp.int32) % Wp) < W
    mask = jnp.broadcast_to(colmask.astype(jnp.float32)[:, None], (HWW, CP))

    wspec = pl.BlockSpec((9, CP, CP), lambda i: (0, 0, 0))
    bspec = pl.BlockSpec((1, CP), lambda i: (0, 0))

    conv_flops = int(N) * 3 * 9 * 2 * HWW * CP * CP
    conv_bytes = (N * R * CP * 4 + HWW * CP * 4 + 3 * 9 * CP * CP * 2
                  + 3 * CP * 4 + N * S * CP * 4)

    pooled = pl.pallas_call(
        _make_conv_pool_kernel(H, W),
        out_shape=jax.ShapeDtypeStruct((N, S, CP), jnp.float32),
        grid_spec=pltpu.PrefetchScalarGridSpec(
            num_scalar_prefetch=0,
            grid=(N,),
            in_specs=[
                pl.BlockSpec((None, R, CP), lambda i: (i, 0, 0)),   # per-image input
                pl.BlockSpec((HWW, CP), lambda i: (0, 0)),          # column mask
                wspec, bspec, wspec, bspec, wspec, bspec,           # resident weights
            ],
            out_specs=pl.BlockSpec((None, S, CP), lambda i: (i, 0, 0)),
            scratch_shapes=[pltpu.VMEM((R, CP), jnp.float32)],
        ),
        compiler_params=pltpu.CompilerParams(
            dimension_semantics=("parallel",),
            vmem_limit_bytes=32 * 1024 * 1024),
        cost_estimate=pl.CostEstimate(flops=conv_flops, transcendentals=0,
                                      bytes_accessed=conv_bytes),
    )(x, mask, packed["c1w"], packed["c1b"], packed["c2w"], packed["c2b"],
      packed["c3w"], packed["c3b"])

    # Flatten in the kernel's (spatial, padded-channel) order; fc1 weights were
    # pre-permuted to match, so this reshape is a free contiguous view.
    K1 = S * CP
    pooled2d = pooled.reshape(N, K1)

    fc_flops = int(N) * 2 * (K1 * CP + CP * CP)
    fc_bytes = N * K1 * 4 + K1 * CP * 2 + CP * CP * 2 + 2 * CP * 4 + N * CP * 4

    out = pl.pallas_call(
        _fc_kernel,
        out_shape=jax.ShapeDtypeStruct((N, CP), jnp.float32),
        grid_spec=pltpu.PrefetchScalarGridSpec(
            num_scalar_prefetch=0,
            grid=(1,),
            in_specs=[
                pl.BlockSpec((N, K1), lambda i: (0, 0)),
                pl.BlockSpec((K1, CP), lambda i: (0, 0)),
                pl.BlockSpec((1, CP), lambda i: (0, 0)),
                pl.BlockSpec((CP, CP), lambda i: (0, 0)),
                pl.BlockSpec((1, CP), lambda i: (0, 0)),
            ],
            out_specs=pl.BlockSpec((N, CP), lambda i: (0, 0)),
        ),
        compiler_params=pltpu.CompilerParams(
            dimension_semantics=("arbitrary",),
            vmem_limit_bytes=32 * 1024 * 1024),
        cost_estimate=pl.CostEstimate(flops=fc_flops, transcendentals=0,
                                      bytes_accessed=fc_bytes),
    )(pooled2d, packed["f1w"], packed["f1b"], packed["f2w"], packed["f2b"])

    return out[:, :fc_output]


if __name__ == "__main__":
    # Small shapes consistent with the module:
    #   sInput (input channels) = 4, spatial = 16x16, batch = 2
    #   fc_input = 64 * (16//2) * (16//2) = 4096, fc_output = 10
    batch, s_input, H, W = 2, 4, 16, 16
    fc_input = 64 * (H // 2) * (W // 2)
    fc_output = 10

    key = jax.random.PRNGKey(0)
    kx, kp = jax.random.split(key)
    x = jax.random.normal(kx, (batch, s_input, H, W), jnp.float32)   # NCHW, like PyTorch
    params = init_params(kp, s_input, fc_input, fc_output)
    packed = pack_params(params, H, W)   # one-time weight packing, outside jit

    out = method_cnn_forward(x, packed, fc_output=fc_output)
    out = jax.block_until_ready(out)
    assert out.shape == (batch, fc_output), out.shape
    assert bool(jnp.all(jnp.isfinite(out)))
    assert bool(jnp.all(out >= 0.0))     # final ReLU
    print("KERNEL_OK")
</pallas_src>

<mosaic_0001>
module attributes {stable_mosaic.version = 11 : i64} {
  func.func @kernel(%arg0: i32, %arg1: memref<1x328x128xf32, #tpu.memory_space<vmem>>, %arg2: memref<288x128xf32, #tpu.memory_space<vmem>>, %arg3: memref<9x128x128xbf16, #tpu.memory_space<vmem>>, %arg4: memref<1x128xf32, #tpu.memory_space<vmem>>, %arg5: memref<9x128x128xbf16, #tpu.memory_space<vmem>>, %arg6: memref<1x128xf32, #tpu.memory_space<vmem>>, %arg7: memref<9x128x128xbf16, #tpu.memory_space<vmem>>, %arg8: memref<1x128xf32, #tpu.memory_space<vmem>>, %arg9: memref<1x64x128xf32, #tpu.memory_space<vmem>>, %arg10: memref<328x128xf32, #tpu.memory_space<vmem>>) attributes {dimension_semantics = [#tpu.dimension_semantics<parallel>], iteration_bounds = array<i64: 2>, scalar_prefetch = 0 : i64, scratch_operands = 1 : i64, tpu.core_type = #tpu.core_type<tc>, window_params = [{transform_indices = @transform_0, window_bounds = array<i64: 1, 328, 128>}, {pipeline_mode = #tpu.pipeline_mode<synchronous>, transform_indices = @transform_1, window_bounds = array<i64: 288, 128>}, {pipeline_mode = #tpu.pipeline_mode<synchronous>, transform_indices = @transform_2, window_bounds = array<i64: 9, 128, 128>}, {pipeline_mode = #tpu.pipeline_mode<synchronous>, transform_indices = @transform_3, window_bounds = array<i64: 1, 128>}, {pipeline_mode = #tpu.pipeline_mode<synchronous>, transform_indices = @transform_4, window_bounds = array<i64: 9, 128, 128>}, {pipeline_mode = #tpu.pipeline_mode<synchronous>, transform_indices = @transform_5, window_bounds = array<i64: 1, 128>}, {pipeline_mode = #tpu.pipeline_mode<synchronous>, transform_indices = @transform_6, window_bounds = array<i64: 9, 128, 128>}, {pipeline_mode = #tpu.pipeline_mode<synchronous>, transform_indices = @transform_7, window_bounds = array<i64: 1, 128>}, {transform_indices = @transform_8, window_bounds = array<i64: 1, 64, 128>}]} {
    %c0 = arith.constant 0 : index
    %c0_0 = arith.constant 0 : index
    %0 = vector.load %arg2[%c0, %c0_0] : memref<288x128xf32, #tpu.memory_space<vmem>>, vector<288x128xf32>
    %cst = arith.constant 0.000000e+00 : f32
    %1 = vector.broadcast %cst : f32 to vector<328x128xf32>
    %c0_1 = arith.constant 0 : index
    %c0_2 = arith.constant 0 : index
    %2 = vector.load %arg10[%c0_1, %c0_2] : memref<328x128xf32, #tpu.memory_space<vmem>>, vector<328x128xf32>
    tpu.vector_store %arg10[%c0_1, %c0_2], %1 {strides = array<i32>} : memref<328x128xf32, #tpu.memory_space<vmem>>, vector<328x128xf32>,
    %cst_3 = arith.constant 0.000000e+00 : f32
    %3 = vector.broadcast %cst_3 : f32 to vector<288x128xf32>
    %c0_4 = arith.constant 0 : index
    %c0_5 = arith.constant 0 : index
    %c0_6 = arith.constant 0 : index
    %4 = vector.load %arg1[%c0_4, %c0_5, %c0_6] : memref<1x328x128xf32, #tpu.memory_space<vmem>>, vector<1x288x128xf32>
    %5 = vector.shape_cast %4 : vector<1x288x128xf32> to vector<288x128xf32>
    %6 = arith.truncf %5 : vector<288x128xf32> to vector<288x128xbf16>
    %c0_7 = arith.constant 0 : index
    %c0_8 = arith.constant 0 : index
    %c0_9 = arith.constant 0 : index
    %7 = vector.load %arg3[%c0_7, %c0_8, %c0_9] : memref<9x128x128xbf16, #tpu.memory_space<vmem>>, vector<1x128x128xbf16>
    %8 = vector.shape_cast %7 : vector<1x128x128xbf16> to vector<128x128xbf16>
    %cst_10 = arith.constant dense<0.000000e+00> : vector<288x128xf32>
    %9 = tpu.matmul %6, %8, %cst_10 {dimension_numbers = #tpu.dot_dimension_numbers<[1], [0], [0], [1], [0, 0, 1, 1], [], []>} : vector<288x128xbf16>, vector<128x128xbf16>, vector<288x128xf32> -> vector<288x128xf32>
    %10 = arith.addf %3, %9 : vector<288x128xf32>
    %c0_11 = arith.constant 0 : index
    %c1 = arith.constant 1 : index
    %c0_12 = arith.constant 0 : index
    %11 = vector.load %arg1[%c0_11, %c1, %c0_12] : memref<1x328x128xf32, #tpu.memory_space<vmem>>, vector<1x288x128xf32>
    %12 = vector.shape_cast %11 : vector<1x288x128xf32> to vector<288x128xf32>
    %13 = arith.truncf %12 : vector<288x128xf32> to vector<288x128xbf16>
    %c1_13 = arith.constant 1 : index
    %c0_14 = arith.constant 0 : index
    %c0_15 = arith.constant 0 : index
    %14 = vector.load %arg3[%c1_13, %c0_14, %c0_15] : memref<9x128x128xbf16, #tpu.memory_space<vmem>>, vector<1x128x128xbf16>
    %15 = vector.shape_cast %14 : vector<1x128x128xbf16> to vector<128x128xbf16>
    %cst_16 = arith.constant dense<0.000000e+00> : vector<288x128xf32>
    %16 = tpu.matmul %13, %15, %cst_16 {dimension_numbers = #tpu.dot_dimension_numbers<[1], [0], [0], [1], [0, 0, 1, 1], [], []>} : vector<288x128xbf16>, vector<128x128xbf16>, vector<288x128xf32> -> vector<288x128xf32>
    %17 = arith.addf %10, %16 : vector<288x128xf32>
    %c0_17 = arith.constant 0 : index
    %c2 = arith.constant 2 : index
    %c0_18 = arith.constant 0 : index
    %18 = vector.load %arg1[%c0_17, %c2, %c0_18] : memref<1x328x128xf32, #tpu.memory_space<vmem>>, vector<1x288x128xf32>
    %19 = vector.shape_cast %18 : vector<1x288x128xf32> to vector<288x128xf32>
    %20 = arith.truncf %19 : vector<288x128xf32> to vector<288x128xbf16>
    %c2_19 = arith.constant 2 : index
    %c0_20 = arith.constant 0 : index
    %c0_21 = arith.constant 0 : index
    %21 = vector.load %arg3[%c2_19, %c0_20, %c0_21] : memref<9x128x128xbf16, #tpu.memory_space<vmem>>, vector<1x128x128xbf16>
    %22 = vector.shape_cast %21 : vector<1x128x128xbf16> to vector<128x128xbf16>
    %cst_22 = arith.constant dense<0.000000e+00> : vector<288x128xf32>
    %23 = tpu.matmul %20, %22, %cst_22 {dimension_numbers = #tpu.dot_dimension_numbers<[1], [0], [0], [1], [0, 0, 1, 1], [], []>} : vector<288x128xbf16>, vector<128x128xbf16>, vector<288x128xf32> -> vector<288x128xf32>
    %24 = arith.addf %17, %23 : vector<288x128xf32>
    %c0_23 = arith.constant 0 : index
    %c18 = arith.constant 18 : index
    %c0_24 = arith.constant 0 : index
    %25 = vector.load %arg1[%c0_23, %c18, %c0_24] : memref<1x328x128xf32, #tpu.memory_space<vmem>>, vector<1x288x128xf32>
    %26 = vector.shape_cast %25 : vector<1x288x128xf32> to vector<288x128xf32>
    %27 = arith.truncf %26 : vector<288x128xf32> to vector<288x128xbf16>
    %c3 = arith.constant 3 : index
    %c0_25 = arith.constant 0 : index
    %c0_26 = arith.constant 0 : index
    %28 = vector.load %arg3[%c3, %c0_25, %c0_26] : memref<9x128x128xbf16, #tpu.memory_space<vmem>>, vector<1x128x128xbf16>
    %29 = vector.shape_cast %28 : vector<1x128x128xbf16> to vector<128x128xbf16>
    %cst_27 = arith.constant dense<0.000000e+00> : vector<288x128xf32>
    %30 = tpu.matmul %27, %29, %cst_27 {dimension_numbers = #tpu.dot_dimension_numbers<[1], [0], [0], [1], [0, 0, 1, 1], [], []>} : vector<288x128xbf16>, vector<128x128xbf16>, vector<288x128xf32> -> vector<288x128xf32>
    %31 = arith.addf %24, %30 : vector<288x128xf32>
    %c0_28 = arith.constant 0 : index
    %c19 = arith.constant 19 : index
    %c0_29 = arith.constant 0 : index
    %32 = vector.load %arg1[%c0_28, %c19, %c0_29] : memref<1x328x128xf32, #tpu.memory_space<vmem>>, vector<1x288x128xf32>
    %33 = vector.shape_cast %32 : vector<1x288x128xf32> to vector<288x128xf32>
    %34 = arith.truncf %33 : vector<288x128xf32> to vector<288x128xbf16>
    %c4 = arith.constant 4 : index
    %c0_30 = arith.constant 0 : index
    %c0_31 = arith.constant 0 : index
    %35 = vector.load %arg3[%c4, %c0_30, %c0_31] : memref<9x128x128xbf16, #tpu.memory_space<vmem>>, vector<1x128x128xbf16>
    %36 = vector.shape_cast %35 : vector<1x128x128xbf16> to vector<128x128xbf16>
    %cst_32 = arith.constant dense<0.000000e+00> : vector<288x128xf32>
    %37 = tpu.matmul %34, %36, %cst_32 {dimension_numbers = #tpu.dot_dimension_numbers<[1], [0], [0], [1], [0, 0, 1, 1], [], []>} : vector<288x128xbf16>, vector<128x128xbf16>, vector<288x128xf32> -> vector<288x128xf32>
    %38 = arith.addf %31, %37 : vector<288x128xf32>
    %c0_33 = arith.constant 0 : index
    %c20 = arith.constant 20 : index
    %c0_34 = arith.constant 0 : index
    %39 = vector.load %arg1[%c0_33, %c20, %c0_34] : memref<1x328x128xf32, #tpu.memory_space<vmem>>, vector<1x288x128xf32>
    %40 = vector.shape_cast %39 : vector<1x288x128xf32> to vector<288x128xf32>
    %41 = arith.truncf %40 : vector<288x128xf32> to vector<288x128xbf16>
    %c5 = arith.constant 5 : index
    %c0_35 = arith.constant 0 : index
    %c0_36 = arith.constant 0 : index
    %42 = vector.load %arg3[%c5, %c0_35, %c0_36] : memref<9x128x128xbf16, #tpu.memory_space<vmem>>, vector<1x128x128xbf16>
    %43 = vector.shape_cast %42 : vector<1x128x128xbf16> to vector<128x128xbf16>
    %cst_37 = arith.constant dense<0.000000e+00> : vector<288x128xf32>
    %44 = tpu.matmul %41, %43, %cst_37 {dimension_numbers = #tpu.dot_dimension_numbers<[1], [0], [0], [1], [0, 0, 1, 1], [], []>} : vector<288x128xbf16>, vector<128x128xbf16>, vector<288x128xf32> -> vector<288x128xf32>
    %45 = arith.addf %38, %44 : vector<288x128xf32>
    %c0_38 = arith.constant 0 : index
    %c36 = arith.constant 36 : index
    %c0_39 = arith.constant 0 : index
    %46 = vector.load %arg1[%c0_38, %c36, %c0_39] : memref<1x328x128xf32, #tpu.memory_space<vmem>>, vector<1x288x128xf32>
    %47 = vector.shape_cast %46 : vector<1x288x128xf32> to vector<288x128xf32>
    %48 = arith.truncf %47 : vector<288x128xf32> to vector<288x128xbf16>
    %c6 = arith.constant 6 : index
    %c0_40 = arith.constant 0 : index
    %c0_41 = arith.constant 0 : index
    %49 = vector.load %arg3[%c6, %c0_40, %c0_41] : memref<9x128x128xbf16, #tpu.memory_space<vmem>>, vector<1x128x128xbf16>
    %50 = vector.shape_cast %49 : vector<1x128x128xbf16> to vector<128x128xbf16>
    %cst_42 = arith.constant dense<0.000000e+00> : vector<288x128xf32>
    %51 = tpu.matmul %48, %50, %cst_42 {dimension_numbers = #tpu.dot_dimension_numbers<[1], [0], [0], [1], [0, 0, 1, 1], [], []>} : vector<288x128xbf16>, vector<128x128xbf16>, vector<288x128xf32> -> vector<288x128xf32>
    %52 = arith.addf %45, %51 : vector<288x128xf32>
    %c0_43 = arith.constant 0 : index
    %c37 = arith.constant 37 : index
    %c0_44 = arith.constant 0 : index
    %53 = vector.load %arg1[%c0_43, %c37, %c0_44] : memref<1x328x128xf32, #tpu.memory_space<vmem>>, vector<1x288x128xf32>
    %54 = vector.shape_cast %53 : vector<1x288x128xf32> to vector<288x128xf32>
    %55 = arith.truncf %54 : vector<288x128xf32> to vector<288x128xbf16>
    %c7 = arith.constant 7 : index
    %c0_45 = arith.constant 0 : index
    %c0_46 = arith.constant 0 : index
    %56 = vector.load %arg3[%c7, %c0_45, %c0_46] : memref<9x128x128xbf16, #tpu.memory_space<vmem>>, vector<1x128x128xbf16>
    %57 = vector.shape_cast %56 : vector<1x128x128xbf16> to vector<128x128xbf16>
    %cst_47 = arith.constant dense<0.000000e+00> : vector<288x128xf32>
    %58 = tpu.matmul %55, %57, %cst_47 {dimension_numbers = #tpu.dot_dimension_numbers<[1], [0], [0], [1], [0, 0, 1, 1], [], []>} : vector<288x128xbf16>, vector<128x128xbf16>, vector<288x128xf32> -> vector<288x128xf32>
    %59 = arith.addf %52, %58 : vector<288x128xf32>
    %c0_48 = arith.constant 0 : index
    %c38 = arith.constant 38 : index
    %c0_49 = arith.constant 0 : index
    %60 = vector.load %arg1[%c0_48, %c38, %c0_49] : memref<1x328x128xf32, #tpu.memory_space<vmem>>, vector<1x288x128xf32>
    %61 = vector.shape_cast %60 : vector<1x288x128xf32> to vector<288x128xf32>
    %62 = arith.truncf %61 : vector<288x128xf32> to vector<288x128xbf16>
    %c8 = arith.constant 8 : index
    %c0_50 = arith.constant 0 : index
    %c0_51 = arith.constant 0 : index
    %63 = vector.load %arg3[%c8, %c0_50, %c0_51] : memref<9x128x128xbf16, #tpu.memory_space<vmem>>, vector<1x128x128xbf16>
    %64 = vector.shape_cast %63 : vector<1x128x128xbf16> to vector<128x128xbf16>
    %cst_52 = arith.constant dense<0.000000e+00> : vector<288x128xf32>
    %65 = tpu.matmul %62, %64, %cst_52 {dimension_numbers = #tpu.dot_dimension_numbers<[1], [0], [0], [1], [0, 0, 1, 1], [], []>} : vector<288x128xbf16>, vector<128x128xbf16>, vector<288x128xf32> -> vector<288x128xf32>
    %66 = arith.addf %59, %65 : vector<288x128xf32>
    %c0_53 = arith.constant 0 : index
    %c0_54 = arith.constant 0 : index
    %67 = vector.load %arg4[%c0_53, %c0_54] : memref<1x128xf32, #tpu.memory_space<vmem>>, vector<1x128xf32>
    %68 = vector.broadcast %67 : vector<1x128xf32> to vector<288x128xf32>
    %69 = arith.addf %66, %68 : vector<288x128xf32>
    %cst_55 = arith.constant 0.000000e+00 : f32
    %70 = vector.broadcast %cst_55 : f32 to vector<288x128xf32>
    %71 = arith.maximumf %69, %70 : vector<288x128xf32>
    %72 = arith.mulf %71, %0 : vector<288x128xf32>
    %c19_56 = arith.constant 19 : index
    %c0_57 = arith.constant 0 : index
    %73 = vector.load %arg10[%c19_56, %c0_57] : memref<328x128xf32, #tpu.memory_space<vmem>>, vector<288x128xf32>
    tpu.vector_store %arg10[%c19_56, %c0_57], %72 {strides = array<i32>} : memref<328x128xf32, #tpu.memory_space<vmem>>, vector<288x128xf32>,
    %cst_58 = arith.constant 0.000000e+00 : f32
    %74 = vector.broadcast %cst_58 : f32 to vector<288x128xf32>
    %c0_59 = arith.constant 0 : index
    %c0_60 = arith.constant 0 : index
    %75 = vector.load %arg10[%c0_59, %c0_60] : memref<328x128xf32, #tpu.memory_space<vmem>>, vector<288x128xf32>
    %76 = arith.truncf %75 : vector<288x128xf32> to vector<288x128xbf16>
    %c0_61 = arith.constant 0 : index
    %c0_62 = arith.constant 0 : index
    %c0_63 = arith.constant 0 : index
    %77 = vector.load %arg5[%c0_61, %c0_62, %c0_63] : memref<9x128x128xbf16, #tpu.memory_space<vmem>>, vector<1x128x128xbf16>
    %78 = vector.shape_cast %77 : vector<1x128x128xbf16> to vector<128x128xbf16>
    %cst_64 = arith.constant dense<0.000000e+00> : vector<288x128xf32>
    %79 = tpu.matmul %76, %78, %cst_64 {dimension_numbers = #tpu.dot_dimension_numbers<[1], [0], [0], [1], [0, 0, 1, 1], [], []>} : vector<288x128xbf16>, vector<128x128xbf16>, vector<288x128xf32> -> vector<288x128xf32>
    %80 = arith.addf %74, %79 : vector<288x128xf32>
    %c1_65 = arith.constant 1 : index
    %c0_66 = arith.constant 0 : index
    %81 = vector.load %arg10[%c1_65, %c0_66] : memref<328x128xf32, #tpu.memory_space<vmem>>, vector<288x128xf32>
    %82 = arith.truncf %81 : vector<288x128xf32> to vector<288x128xbf16>
    %c1_67 = arith.constant 1 : index
    %c0_68 = arith.constant 0 : index
    %c0_69 = arith.constant 0 : index
    %83 = vector.load %arg5[%c1_67, %c0_68, %c0_69] : memref<9x128x128xbf16, #tpu.memory_space<vmem>>, vector<1x128x128xbf16>
    %84 = vector.shape_cast %83 : vector<1x128x128xbf16> to vector<128x128xbf16>
    %cst_70 = arith.constant dense<0.000000e+00> : vector<288x128xf32>
    %85 = tpu.matmul %82, %84, %cst_70 {dimension_numbers = #tpu.dot_dimension_numbers<[1], [0], [0], [1], [0, 0, 1, 1], [], []>} : vector<288x128xbf16>, vector<128x128xbf16>, vector<288x128xf32> -> vector<288x128xf32>
    %86 = arith.addf %80, %85 : vector<288x128xf32>
    %c2_71 = arith.constant 2 : index
    %c0_72 = arith.constant 0 : index
    %87 = vector.load %arg10[%c2_71, %c0_72] : memref<328x128xf32, #tpu.memory_space<vmem>>, vector<288x128xf32>
    %88 = arith.truncf %87 : vector<288x128xf32> to vector<288x128xbf16>
    %c2_73 = arith.constant 2 : index
    %c0_74 = arith.constant 0 : index
    %c0_75 = arith.constant 0 : index
    %89 = vector.load %arg5[%c2_73, %c0_74, %c0_75] : memref<9x128x128xbf16, #tpu.memory_space<vmem>>, vector<1x128x128xbf16>
    %90 = vector.shape_cast %89 : vector<1x128x128xbf16> to vector<128x128xbf16>
    %cst_76 = arith.constant dense<0.000000e+00> : vector<288x128xf32>
    %91 = tpu.matmul %88, %90, %cst_76 {dimension_numbers = #tpu.dot_dimension_numbers<[1], [0], [0], [1], [0, 0, 1, 1], [], []>} : vector<288x128xbf16>, vector<128x128xbf16>, vector<288x128xf32> -> vector<288x128xf32>
    %92 = arith.addf %86, %91 : vector<288x128xf32>
    %c18_77 = arith.constant 18 : index
    %c0_78 = arith.constant 0 : index
    %93 = vector.load %arg10[%c18_77, %c0_78] : memref<328x128xf32, #tpu.memory_space<vmem>>, vector<288x128xf32>
    %94 = arith.truncf %93 : vector<288x128xf32> to vector<288x128xbf16>
    %c3_79 = arith.constant 3 : index
    %c0_80 = arith.constant 0 : index
    %c0_81 = arith.constant 0 : index
    %95 = vector.load %arg5[%c3_79, %c0_80, %c0_81] : memref<9x128x128xbf16, #tpu.memory_space<vmem>>, vector<1x128x128xbf16>
    %96 = vector.shape_cast %95 : vector<1x128x128xbf16> to vector<128x128xbf16>
    %cst_82 = arith.constant dense<0.000000e+00> : vector<288x128xf32>
    %97 = tpu.matmul %94, %96, %cst_82 {dimension_numbers = #tpu.dot_dimension_numbers<[1], [0], [0], [1], [0, 0, 1, 1], [], []>} : vector<288x128xbf16>, vector<128x128xbf16>, vector<288x128xf32> -> vector<288x128xf32>
    %98 = arith.addf %92, %97 : vector<288x128xf32>
    %c19_83 = arith.constant 19 : index
    %c0_84 = arith.constant 0 : index
    %99 = vector.load %arg10[%c19_83, %c0_84] : memref<328x128xf32, #tpu.memory_space<vmem>>, vector<288x128xf32>
    %100 = arith.truncf %99 : vector<288x128xf32> to vector<288x128xbf16>
    %c4_85 = arith.constant 4 : index
    %c0_86 = arith.constant 0 : index
    %c0_87 = arith.constant 0 : index
    %101 = vector.load %arg5[%c4_85, %c0_86, %c0_87] : memref<9x128x128xbf16, #tpu.memory_space<vmem>>, vector<1x128x128xbf16>
    %102 = vector.shape_cast %101 : vector<1x128x128xbf16> to vector<128x128xbf16>
    %cst_88 = arith.constant dense<0.000000e+00> : vector<288x128xf32>
    %103 = tpu.matmul %100, %102, %cst_88 {dimension_numbers = #tpu.dot_dimension_numbers<[1], [0], [0], [1], [0, 0, 1, 1], [], []>} : vector<288x128xbf16>, vector<128x128xbf16>, vector<288x128xf32> -> vector<288x128xf32>
    %104 = arith.addf %98, %103 : vector<288x128xf32>
    %c20_89 = arith.constant 20 : index
    %c0_90 = arith.constant 0 : index
    %105 = vector.load %arg10[%c20_89, %c0_90] : memref<328x128xf32, #tpu.memory_space<vmem>>, vector<288x128xf32>
    %106 = arith.truncf %105 : vector<288x128xf32> to vector<288x128xbf16>
    %c5_91 = arith.constant 5 : index
    %c0_92 = arith.constant 0 : index
    %c0_93 = arith.constant 0 : index
    %107 = vector.load %arg5[%c5_91, %c0_92, %c0_93] : memref<9x128x128xbf16, #tpu.memory_space<vmem>>, vector<1x128x128xbf16>
    %108 = vector.shape_cast %107 : vector<1x128x128xbf16> to vector<128x128xbf16>
    %cst_94 = arith.constant dense<0.000000e+00> : vector<288x128xf32>
    %109 = tpu.matmul %106, %108, %cst_94 {dimension_numbers = #tpu.dot_dimension_numbers<[1], [0], [0], [1], [0, 0, 1, 1], [], []>} : vector<288x128xbf16>, vector<128x128xbf16>, vector<288x128xf32> -> vector<288x128xf32>
    %110 = arith.addf %104, %109 : vector<288x128xf32>
    %c36_95 = arith.constant 36 : index
    %c0_96 = arith.constant 0 : index
    %111 = vector.load %arg10[%c36_95, %c0_96] : memref<328x128xf32, #tpu.memory_space<vmem>>, vector<288x128xf32>
    %112 = arith.truncf %111 : vector<288x128xf32> to vector<288x128xbf16>
    %c6_97 = arith.constant 6 : index
    %c0_98 = arith.constant 0 : index
    %c0_99 = arith.constant 0 : index
    %113 = vector.load %arg5[%c6_97, %c0_98, %c0_99] : memref<9x128x128xbf16, #tpu.memory_space<vmem>>, vector<1x128x128xbf16>
    %114 = vector.shape_cast %113 : vector<1x128x128xbf16> to vector<128x128xbf16>
    %cst_100 = arith.constant dense<0.000000e+00> : vector<288x128xf32>
    %115 = tpu.matmul %112, %114, %cst_100 {dimension_numbers = #tpu.dot_dimension_numbers<[1], [0], [0], [1], [0, 0, 1, 1], [], []>} : vector<288x128xbf16>, vector<128x128xbf16>, vector<288x128xf32> -> vector<288x128xf32>
    %116 = arith.addf %110, %115 : vector<288x128xf32>
    %c37_101 = arith.constant 37 : index
    %c0_102 = arith.constant 0 : index
    %117 = vector.load %arg10[%c37_101, %c0_102] : memref<328x128xf32, #tpu.memory_space<vmem>>, vector<288x128xf32>
    %118 = arith.truncf %117 : vector<288x128xf32> to vector<288x128xbf16>
    %c7_103 = arith.constant 7 : index
    %c0_104 = arith.constant 0 : index
    %c0_105 = arith.constant 0 : index
    %119 = vector.load %arg5[%c7_103, %c0_104, %c0_105] : memref<9x128x128xbf16, #tpu.memory_space<vmem>>, vector<1x128x128xbf16>
    %120 = vector.shape_cast %119 : vector<1x128x128xbf16> to vector<128x128xbf16>
    %cst_106 = arith.constant dense<0.000000e+00> : vector<288x128xf32>
    %121 = tpu.matmul %118, %120, %cst_106 {dimension_numbers = #tpu.dot_dimension_numbers<[1], [0], [0], [1], [0, 0, 1, 1], [], []>} : vector<288x128xbf16>, vector<128x128xbf16>, vector<288x128xf32> -> vector<288x128xf32>
    %122 = arith.addf %116, %121 : vector<288x128xf32>
    %c38_107 = arith.constant 38 : index
    %c0_108 = arith.constant 0 : index
    %123 = vector.load %arg10[%c38_107, %c0_108] : memref<328x128xf32, #tpu.memory_space<vmem>>, vector<288x128xf32>
    %124 = arith.truncf %123 : vector<288x128xf32> to vector<288x128xbf16>
    %c8_109 = arith.constant 8 : index
    %c0_110 = arith.constant 0 : index
    %c0_111 = arith.constant 0 : index
    %125 = vector.load %arg5[%c8_109, %c0_110, %c0_111] : memref<9x128x128xbf16, #tpu.memory_space<vmem>>, vector<1x128x128xbf16>
    %126 = vector.shape_cast %125 : vector<1x128x128xbf16> to vector<128x128xbf16>
    %cst_112 = arith.constant dense<0.000000e+00> : vector<288x128xf32>
    %127 = tpu.matmul %124, %126, %cst_112 {dimension_numbers = #tpu.dot_dimension_numbers<[1], [0], [0], [1], [0, 0, 1, 1], [], []>} : vector<288x128xbf16>, vector<128x128xbf16>, vector<288x128xf32> -> vector<288x128xf32>
    %128 = arith.addf %122, %127 : vector<288x128xf32>
    %c0_113 = arith.constant 0 : index
    %c0_114 = arith.constant 0 : index
    %129 = vector.load %arg6[%c0_113, %c0_114] : memref<1x128xf32, #tpu.memory_space<vmem>>, vector<1x128xf32>
    %130 = vector.broadcast %129 : vector<1x128xf32> to vector<288x128xf32>
    %131 = arith.addf %128, %130 : vector<288x128xf32>
    %cst_115 = arith.constant 0.000000e+00 : f32
    %132 = vector.broadcast %cst_115 : f32 to vector<288x128xf32>
    %133 = arith.maximumf %131, %132 : vector<288x128xf32>
    %134 = arith.mulf %133, %0 : vector<288x128xf32>
    %c19_116 = arith.constant 19 : index
    %c0_117 = arith.constant 0 : index
    %135 = vector.load %arg10[%c19_116, %c0_117] : memref<328x128xf32, #tpu.memory_space<vmem>>, vector<288x128xf32>
    tpu.vector_store %arg10[%c19_116, %c0_117], %134 {strides = array<i32>} : memref<328x128xf32, #tpu.memory_space<vmem>>, vector<288x128xf32>,
    %cst_118 = arith.constant 0.000000e+00 : f32
    %136 = vector.broadcast %cst_118 : f32 to vector<288x128xf32>
    %c0_119 = arith.constant 0 : index
    %c0_120 = arith.constant 0 : index
    %137 = vector.load %arg10[%c0_119, %c0_120] : memref<328x128xf32, #tpu.memory_space<vmem>>, vector<288x128xf32>
    %138 = arith.truncf %137 : vector<288x128xf32> to vector<288x128xbf16>
    %c0_121 = arith.constant 0 : index
    %c0_122 = arith.constant 0 : index
    %c0_123 = arith.constant 0 : index
    %139 = vector.load %arg7[%c0_121, %c0_122, %c0_123] : memref<9x128x128xbf16, #tpu.memory_space<vmem>>, vector<1x128x128xbf16>
    %140 = vector.shape_cast %139 : vector<1x128x128xbf16> to vector<128x128xbf16>
    %cst_124 = arith.constant dense<0.000000e+00> : vector<288x128xf32>
    %141 = tpu.matmul %138, %140, %cst_124 {dimension_numbers = #tpu.dot_dimension_numbers<[1], [0], [0], [1], [0, 0, 1, 1], [], []>} : vector<288x128xbf16>, vector<128x128xbf16>, vector<288x128xf32> -> vector<288x128xf32>
    %142 = arith.addf %136, %141 : vector<288x128xf32>
    %c1_125 = arith.constant 1 : index
    %c0_126 = arith.constant 0 : index
    %143 = vector.load %arg10[%c1_125, %c0_126] : memref<328x128xf32, #tpu.memory_space<vmem>>, vector<288x128xf32>
    %144 = arith.truncf %143 : vector<288x128xf32> to vector<288x128xbf16>
    %c1_127 = arith.constant 1 : index
    %c0_128 = arith.constant 0 : index
    %c0_129 = arith.constant 0 : index
    %145 = vector.load %arg7[%c1_127, %c0_128, %c0_129] : memref<9x128x128xbf16, #tpu.memory_space<vmem>>, vector<1x128x128xbf16>
    %146 = vector.shape_cast %145 : vector<1x128x128xbf16> to vector<128x128xbf16>
    %cst_130 = arith.constant dense<0.000000e+00> : vector<288x128xf32>
    %147 = tpu.matmul %144, %146, %cst_130 {dimension_numbers = #tpu.dot_dimension_numbers<[1], [0], [0], [1], [0, 0, 1, 1], [], []>} : vector<288x128xbf16>, vector<128x128xbf16>, vector<288x128xf32> -> vector<288x128xf32>
    %148 = arith.addf %142, %147 : vector<288x128xf32>
    %c2_131 = arith.constant 2 : index
    %c0_132 = arith.constant 0 : index
    %149 = vector.load %arg10[%c2_131, %c0_132] : memref<328x128xf32, #tpu.memory_space<vmem>>, vector<288x128xf32>
    %150 = arith.truncf %149 : vector<288x128xf32> to vector<288x128xbf16>
    %c2_133 = arith.constant 2 : index
    %c0_134 = arith.constant 0 : index
    %c0_135 = arith.constant 0 : index
    %151 = vector.load %arg7[%c2_133, %c0_134, %c0_135] : memref<9x128x128xbf16, #tpu.memory_space<vmem>>, vector<1x128x128xbf16>
    %152 = vector.shape_cast %151 : vector<1x128x128xbf16> to vector<128x128xbf16>
    %cst_136 = arith.constant dense<0.000000e+00> : vector<288x128xf32>
    %153 = tpu.matmul %150, %152, %cst_136 {dimension_numbers = #tpu.dot_dimension_numbers<[1], [0], [0], [1], [0, 0, 1, 1], [], []>} : vector<288x128xbf16>, vector<128x128xbf16>, vector<288x128xf32> -> vector<288x128xf32>
    %154 = arith.addf %148, %153 : vector<288x128xf32>
    %c18_137 = arith.constant 18 : index
    %c0_138 = arith.constant 0 : index
    %155 = vector.load %arg10[%c18_137, %c0_138] : memref<328x128xf32, #tpu.memory_space<vmem>>, vector<288x128xf32>
    %156 = arith.truncf %155 : vector<288x128xf32> to vector<288x128xbf16>
    %c3_139 = arith.constant 3 : index
    %c0_140 = arith.constant 0 : index
    %c0_141 = arith.constant 0 : index
    %157 = vector.load %arg7[%c3_139, %c0_140, %c0_141] : memref<9x128x128xbf16, #tpu.memory_space<vmem>>, vector<1x128x128xbf16>
    %158 = vector.shape_cast %157 : vector<1x128x128xbf16> to vector<128x128xbf16>
    %cst_142 = arith.constant dense<0.000000e+00> : vector<288x128xf32>
    %159 = tpu.matmul %156, %158, %cst_142 {dimension_numbers = #tpu.dot_dimension_numbers<[1], [0], [0], [1], [0, 0, 1, 1], [], []>} : vector<288x128xbf16>, vector<128x128xbf16>, vector<288x128xf32> -> vector<288x128xf32>
    %160 = arith.addf %154, %159 : vector<288x128xf32>
    %c19_143 = arith.constant 19 : index
    %c0_144 = arith.constant 0 : index
    %161 = vector.load %arg10[%c19_143, %c0_144] : memref<328x128xf32, #tpu.memory_space<vmem>>, vector<288x128xf32>
    %162 = arith.truncf %161 : vector<288x128xf32> to vector<288x128xbf16>
    %c4_145 = arith.constant 4 : index
    %c0_146 = arith.constant 0 : index
    %c0_147 = arith.constant 0 : index
    %163 = vector.load %arg7[%c4_145, %c0_146, %c0_147] : memref<9x128x128xbf16, #tpu.memory_space<vmem>>, vector<1x128x128xbf16>
    %164 = vector.shape_cast %163 : vector<1x128x128xbf16> to vector<128x128xbf16>
    %cst_148 = arith.constant dense<0.000000e+00> : vector<288x128xf32>
    %165 = tpu.matmul %162, %164, %cst_148 {dimension_numbers = #tpu.dot_dimension_numbers<[1], [0], [0], [1], [0, 0, 1, 1], [], []>} : vector<288x128xbf16>, vector<128x128xbf16>, vector<288x128xf32> -> vector<288x128xf32>
    %166 = arith.addf %160, %165 : vector<288x128xf32>
    %c20_149 = arith.constant 20 : index
    %c0_150 = arith.constant 0 : index
    %167 = vector.load %arg10[%c20_149, %c0_150] : memref<328x128xf32, #tpu.memory_space<vmem>>, vector<288x128xf32>
    %168 = arith.truncf %167 : vector<288x128xf32> to vector<288x128xbf16>
    %c5_151 = arith.constant 5 : index
    %c0_152 = arith.constant 0 : index
    %c0_153 = arith.constant 0 : index
    %169 = vector.load %arg7[%c5_151, %c0_152, %c0_153] : memref<9x128x128xbf16, #tpu.memory_space<vmem>>, vector<1x128x128xbf16>
    %170 = vector.shape_cast %169 : vector<1x128x128xbf16> to vector<128x128xbf16>
    %cst_154 = arith.constant dense<0.000000e+00> : vector<288x128xf32>
    %171 = tpu.matmul %168, %170, %cst_154 {dimension_numbers = #tpu.dot_dimension_numbers<[1], [0], [0], [1], [0, 0, 1, 1], [], []>} : vector<288x128xbf16>, vector<128x128xbf16>, vector<288x128xf32> -> vector<288x128xf32>
    %172 = arith.addf %166, %171 : vector<288x128xf32>
    %c36_155 = arith.constant 36 : index
    %c0_156 = arith.constant 0 : index
    %173 = vector.load %arg10[%c36_155, %c0_156] : memref<328x128xf32, #tpu.memory_space<vmem>>, vector<288x128xf32>
    %174 = arith.truncf %173 : vector<288x128xf32> to vector<288x128xbf16>
    %c6_157 = arith.constant 6 : index
    %c0_158 = arith.constant 0 : index
    %c0_159 = arith.constant 0 : index
    %175 = vector.load %arg7[%c6_157, %c0_158, %c0_159] : memref<9x128x128xbf16, #tpu.memory_space<vmem>>, vector<1x128x128xbf16>
    %176 = vector.shape_cast %175 : vector<1x128x128xbf16> to vector<128x128xbf16>
    %cst_160 = arith.constant dense<0.000000e+00> : vector<288x128xf32>
    %177 = tpu.matmul %174, %176, %cst_160 {dimension_numbers = #tpu.dot_dimension_numbers<[1], [0], [0], [1], [0, 0, 1, 1], [], []>} : vector<288x128xbf16>, vector<128x128xbf16>, vector<288x128xf32> -> vector<288x128xf32>
    %178 = arith.addf %172, %177 : vector<288x128xf32>
    %c37_161 = arith.constant 37 : index
    %c0_162 = arith.constant 0 : index
    %179 = vector.load %arg10[%c37_161, %c0_162] : memref<328x128xf32, #tpu.memory_space<vmem>>, vector<288x128xf32>
    %180 = arith.truncf %179 : vector<288x128xf32> to vector<288x128xbf16>
    %c7_163 = arith.constant 7 : index
    %c0_164 = arith.constant 0 : index
    %c0_165 = arith.constant 0 : index
    %181 = vector.load %arg7[%c7_163, %c0_164, %c0_165] : memref<9x128x128xbf16, #tpu.memory_space<vmem>>, vector<1x128x128xbf16>
    %182 = vector.shape_cast %181 : vector<1x128x128xbf16> to vector<128x128xbf16>
    %cst_166 = arith.constant dense<0.000000e+00> : vector<288x128xf32>
    %183 = tpu.matmul %180, %182, %cst_166 {dimension_numbers = #tpu.dot_dimension_numbers<[1], [0], [0], [1], [0, 0, 1, 1], [], []>} : vector<288x128xbf16>, vector<128x128xbf16>, vector<288x128xf32> -> vector<288x128xf32>
    %184 = arith.addf %178, %183 : vector<288x128xf32>
    %c38_167 = arith.constant 38 : index
    %c0_168 = arith.constant 0 : index
    %185 = vector.load %arg10[%c38_167, %c0_168] : memref<328x128xf32, #tpu.memory_space<vmem>>, vector<288x128xf32>
    %186 = arith.truncf %185 : vector<288x128xf32> to vector<288x128xbf16>
    %c8_169 = arith.constant 8 : index
    %c0_170 = arith.constant 0 : index
    %c0_171 = arith.constant 0 : index
    %187 = vector.load %arg7[%c8_169, %c0_170, %c0_171] : memref<9x128x128xbf16, #tpu.memory_space<vmem>>, vector<1x128x128xbf16>
    %188 = vector.shape_cast %187 : vector<1x128x128xbf16> to vector<128x128xbf16>
    %cst_172 = arith.constant dense<0.000000e+00> : vector<288x128xf32>
    %189 = tpu.matmul %186, %188, %cst_172 {dimension_numbers = #tpu.dot_dimension_numbers<[1], [0], [0], [1], [0, 0, 1, 1], [], []>} : vector<288x128xbf16>, vector<128x128xbf16>, vector<288x128xf32> -> vector<288x128xf32>
    %190 = arith.addf %184, %189 : vector<288x128xf32>
    %c0_173 = arith.constant 0 : index
    %c0_174 = arith.constant 0 : index
    %191 = vector.load %arg8[%c0_173, %c0_174] : memref<1x128xf32, #tpu.memory_space<vmem>>, vector<1x128xf32>
    %192 = vector.broadcast %191 : vector<1x128xf32> to vector<288x128xf32>
    %193 = arith.addf %190, %192 : vector<288x128xf32>
    %cst_175 = arith.constant 0.000000e+00 : f32
    %194 = vector.broadcast %cst_175 : f32 to vector<288x128xf32>
    %195 = arith.maximumf %193, %194 : vector<288x128xf32>
    %c0_176 = arith.constant 0 : index
    %c0_177 = arith.constant 0 : index
    %196 = vector.load %arg10[%c0_176, %c0_177] : memref<328x128xf32, #tpu.memory_space<vmem>>, vector<288x128xf32>
    tpu.vector_store %arg10[%c0_176, %c0_177], %195 {strides = array<i32>} : memref<328x128xf32, #tpu.memory_space<vmem>>, vector<288x128xf32>,
    %c0_178 = arith.constant 0 : index
    %c0_179 = arith.constant 0 : index
    %197 = tpu.strided_load %arg10[%c0_178, %c0_179] {strides = array<i32: 2, 1>} : memref<328x128xf32, #tpu.memory_space<vmem>>, vector<8x128xf32>
    %c1_180 = arith.constant 1 : index
    %c0_181 = arith.constant 0 : index
    %198 = tpu.strided_load %arg10[%c1_180, %c0_181] {strides = array<i32: 2, 1>} : memref<328x128xf32, #tpu.memory_space<vmem>>, vector<8x128xf32>
    %c18_182 = arith.constant 18 : index
    %c0_183 = arith.constant 0 : index
    %199 = tpu.strided_load %arg10[%c18_182, %c0_183] {strides = array<i32: 2, 1>} : memref<328x128xf32, #tpu.memory_space<vmem>>, vector<8x128xf32>
    %c19_184 = arith.constant 19 : index
    %c0_185 = arith.constant 0 : index
    %200 = tpu.strided_load %arg10[%c19_184, %c0_185] {strides = array<i32: 2, 1>} : memref<328x128xf32, #tpu.memory_space<vmem>>, vector<8x128xf32>
    %201 = arith.maximumf %197, %198 : vector<8x128xf32>
    %202 = arith.maximumf %199, %200 : vector<8x128xf32>
    %203 = arith.maximumf %201, %202 : vector<8x128xf32>
    %c0_186 = arith.constant 0 : index
    %c0_187 = arith.constant 0 : index
    %c0_188 = arith.constant 0 : index
    %204 = vector.load %arg9[%c0_186, %c0_187, %c0_188] : memref<1x64x128xf32, #tpu.memory_space<vmem>>, vector<1x8x128xf32>
    %205 = vector.shape_cast %204 : vector<1x8x128xf32> to vector<8x128xf32>
    %206 = vector.shape_cast %203 : vector<8x128xf32> to vector<1x8x128xf32>
    tpu.vector_store %arg9[%c0_186, %c0_187, %c0_188], %206 {strides = array<i32>} : memref<1x64x128xf32, #tpu.memory_space<vmem>>, vector<1x8x128xf32>,
    %c36_189 = arith.constant 36 : index
    %c0_190 = arith.constant 0 : index
    %207 = tpu.strided_load %arg10[%c36_189, %c0_190] {strides = array<i32: 2, 1>} : memref<328x128xf32, #tpu.memory_space<vmem>>, vector<8x128xf32>
    %c37_191 = arith.constant 37 : index
    %c0_192 = arith.constant 0 : index
    %208 = tpu.strided_load %arg10[%c37_191, %c0_192] {strides = array<i32: 2, 1>} : memref<328x128xf32, #tpu.memory_space<vmem>>, vector<8x128xf32>
    %c54 = arith.constant 54 : index
    %c0_193 = arith.constant 0 : index
    %209 = tpu.strided_load %arg10[%c54, %c0_193] {strides = array<i32: 2, 1>} : memref<328x128xf32, #tpu.memory_space<vmem>>, vector<8x128xf32>
    %c55 = arith.constant 55 : index
    %c0_194 = arith.constant 0 : index
    %210 = tpu.strided_load %arg10[%c55, %c0_194] {strides = array<i32: 2, 1>} : memref<328x128xf32, #tpu.memory_space<vmem>>, vector<8x128xf32>
    %211 = arith.maximumf %207, %208 : vector<8x128xf32>
    %212 = arith.maximumf %209, %210 : vector<8x128xf32>
    %213 = arith.maximumf %211, %212 : vector<8x128xf32>
    %c0_195 = arith.constant 0 : index
    %c8_196 = arith.constant 8 : index
    %c0_197 = arith.constant 0 : index
    %214 = vector.load %arg9[%c0_195, %c8_196, %c0_197] : memref<1x64x128xf32, #tpu.memory_space<vmem>>, vector<1x8x128xf32>
    %215 = vector.shape_cast %214 : vector<1x8x128xf32> to vector<8x128xf32>
    %216 = vector.shape_cast %213 : vector<8x128xf32> to vector<1x8x128xf32>
    tpu.vector_store %arg9[%c0_195, %c8_196, %c0_197], %216 {strides = array<i32>} : memref<1x64x128xf32, #tpu.memory_space<vmem>>, vector<1x8x128xf32>,
    %c72 = arith.constant 72 : index
    %c0_198 = arith.constant 0 : index
    %217 = tpu.strided_load %arg10[%c72, %c0_198] {strides = array<i32: 2, 1>} : memref<328x128xf32, #tpu.memory_space<vmem>>, vector<8x128xf32>
    %c73 = arith.constant 73 : index
    %c0_199 = arith.constant 0 : index
    %218 = tpu.strided_load %arg10[%c73, %c0_199] {strides = array<i32: 2, 1>} : memref<328x128xf32, #tpu.memory_space<vmem>>, vector<8x128xf32>
    %c90 = arith.constant 90 : index
    %c0_200 = arith.constant 0 : index
    %219 = tpu.strided_load %arg10[%c90, %c0_200] {strides = array<i32: 2, 1>} : memref<328x128xf32, #tpu.memory_space<vmem>>, vector<8x128xf32>
    %c91 = arith.constant 91 : index
    %c0_201 = arith.constant 0 : index
    %220 = tpu.strided_load %arg10[%c91, %c0_201] {strides = array<i32: 2, 1>} : memref<328x128xf32, #tpu.memory_space<vmem>>, vector<8x128xf32>
    %221 = arith.maximumf %217, %218 : vector<8x128xf32>
    %222 = arith.maximumf %219, %220 : vector<8x128xf32>
    %223 = arith.maximumf %221, %222 : vector<8x128xf32>
    %c0_202 = arith.constant 0 : index
    %c16 = arith.constant 16 : index
    %c0_203 = arith.constant 0 : index
    %224 = vector.load %arg9[%c0_202, %c16, %c0_203] : memref<1x64x128xf32, #tpu.memory_space<vmem>>, vector<1x8x128xf32>
    %225 = vector.shape_cast %224 : vector<1x8x128xf32> to vector<8x128xf32>
    %226 = vector.shape_cast %223 : vector<8x128xf32> to vector<1x8x128xf32>
    tpu.vector_store %arg9[%c0_202, %c16, %c0_203], %226 {strides = array<i32>} : memref<1x64x128xf32, #tpu.memory_space<vmem>>, vector<1x8x128xf32>,
    %c108 = arith.constant 108 : index
    %c0_204 = arith.constant 0 : index
    %227 = tpu.strided_load %arg10[%c108, %c0_204] {strides = array<i32: 2, 1>} : memref<328x128xf32, #tpu.memory_space<vmem>>, vector<8x128xf32>
    %c109 = arith.constant 109 : index
    %c0_205 = arith.constant 0 : index
    %228 = tpu.strided_load %arg10[%c109, %c0_205] {strides = array<i32: 2, 1>} : memref<328x128xf32, #tpu.memory_space<vmem>>, vector<8x128xf32>
    %c126 = arith.constant 126 : index
    %c0_206 = arith.constant 0 : index
    %229 = tpu.strided_load %arg10[%c126, %c0_206] {strides = array<i32: 2, 1>} : memref<328x128xf32, #tpu.memory_space<vmem>>, vector<8x128xf32>
    %c127 = arith.constant 127 : index
    %c0_207 = arith.constant 0 : index
    %230 = tpu.strided_load %arg10[%c127, %c0_207] {strides = array<i32: 2, 1>} : memref<328x128xf32, #tpu.memory_space<vmem>>, vector<8x128xf32>
    %231 = arith.maximumf %227, %228 : vector<8x128xf32>
    %232 = arith.maximumf %229, %230 : vector<8x128xf32>
    %233 = arith.maximumf %231, %232 : vector<8x128xf32>
    %c0_208 = arith.constant 0 : index
    %c24 = arith.constant 24 : index
    %c0_209 = arith.constant 0 : index
    %234 = vector.load %arg9[%c0_208, %c24, %c0_209] : memref<1x64x128xf32, #tpu.memory_space<vmem>>, vector<1x8x128xf32>
    %235 = vector.shape_cast %234 : vector<1x8x128xf32> to vector<8x128xf32>
    %236 = vector.shape_cast %233 : vector<8x128xf32> to vector<1x8x128xf32>
    tpu.vector_store %arg9[%c0_208, %c24, %c0_209], %236 {strides = array<i32>} : memref<1x64x128xf32, #tpu.memory_space<vmem>>, vector<1x8x128xf32>,
    %c144 = arith.constant 144 : index
    %c0_210 = arith.constant 0 : index
    %237 = tpu.strided_load %arg10[%c144, %c0_210] {strides = array<i32: 2, 1>} : memref<328x128xf32, #tpu.memory_space<vmem>>, vector<8x128xf32>
    %c145 = arith.constant 145 : index
    %c0_211 = arith.constant 0 : index
    %238 = tpu.strided_load %arg10[%c145, %c0_211] {strides = array<i32: 2, 1>} : memref<328x128xf32, #tpu.memory_space<vmem>>, vector<8x128xf32>
    %c162 = arith.constant 162 : index
    %c0_212 = arith.constant 0 : index
    %239 = tpu.strided_load %arg10[%c162, %c0_212] {strides = array<i32: 2, 1>} : memref<328x128xf32, #tpu.memory_space<vmem>>, vector<8x128xf32>
    %c163 = arith.constant 163 : index
    %c0_213 = arith.constant 0 : index
    %240 = tpu.strided_load %arg10[%c163, %c0_213] {strides = array<i32: 2, 1>} : memref<328x128xf32, #tpu.memory_space<vmem>>, vector<8x128xf32>
    %241 = arith.maximumf %237, %238 : vector<8x128xf32>
    %242 = arith.maximumf %239, %240 : vector<8x128xf32>
    %243 = arith.maximumf %241, %242 : vector<8x128xf32>
    %c0_214 = arith.constant 0 : index
    %c32 = arith.constant 32 : index
    %c0_215 = arith.constant 0 : index
    %244 = vector.load %arg9[%c0_214, %c32, %c0_215] : memref<1x64x128xf32, #tpu.memory_space<vmem>>, vector<1x8x128xf32>
    %245 = vector.shape_cast %244 : vector<1x8x128xf32> to vector<8x128xf32>
    %246 = vector.shape_cast %243 : vector<8x128xf32> to vector<1x8x128xf32>
    tpu.vector_store %arg9[%c0_214, %c32, %c0_215], %246 {strides = array<i32>} : memref<1x64x128xf32, #tpu.memory_space<vmem>>, vector<1x8x128xf32>,
    %c180 = arith.constant 180 : index
    %c0_216 = arith.constant 0 : index
    %247 = tpu.strided_load %arg10[%c180, %c0_216] {strides = array<i32: 2, 1>} : memref<328x128xf32, #tpu.memory_space<vmem>>, vector<8x128xf32>
    %c181 = arith.constant 181 : index
    %c0_217 = arith.constant 0 : index
    %248 = tpu.strided_load %arg10[%c181, %c0_217] {strides = array<i32: 2, 1>} : memref<328x128xf32, #tpu.memory_space<vmem>>, vector<8x128xf32>
    %c198 = arith.constant 198 : index
    %c0_218 = arith.constant 0 : index
    %249 = tpu.strided_load %arg10[%c198, %c0_218] {strides = array<i32: 2, 1>} : memref<328x128xf32, #tpu.memory_space<vmem>>, vector<8x128xf32>
    %c199 = arith.constant 199 : index
    %c0_219 = arith.constant 0 : index
    %250 = tpu.strided_load %arg10[%c199, %c0_219] {strides = array<i32: 2, 1>} : memref<328x128xf32, #tpu.memory_space<vmem>>, vector<8x128xf32>
    %251 = arith.maximumf %247, %248 : vector<8x128xf32>
    %252 = arith.maximumf %249, %250 : vector<8x128xf32>
    %253 = arith.maximumf %251, %252 : vector<8x128xf32>
    %c0_220 = arith.constant 0 : index
    %c40 = arith.constant 40 : index
    %c0_221 = arith.constant 0 : index
    %254 = vector.load %arg9[%c0_220, %c40, %c0_221] : memref<1x64x128xf32, #tpu.memory_space<vmem>>, vector<1x8x128xf32>
    %255 = vector.shape_cast %254 : vector<1x8x128xf32> to vector<8x128xf32>
    %256 = vector.shape_cast %253 : vector<8x128xf32> to vector<1x8x128xf32>
    tpu.vector_store %arg9[%c0_220, %c40, %c0_221], %256 {strides = array<i32>} : memref<1x64x128xf32, #tpu.memory_space<vmem>>, vector<1x8x128xf32>,
    %c216 = arith.constant 216 : index
    %c0_222 = arith.constant 0 : index
    %257 = tpu.strided_load %arg10[%c216, %c0_222] {strides = array<i32: 2, 1>} : memref<328x128xf32, #tpu.memory_space<vmem>>, vector<8x128xf32>
    %c217 = arith.constant 217 : index
    %c0_223 = arith.constant 0 : index
    %258 = tpu.strided_load %arg10[%c217, %c0_223] {strides = array<i32: 2, 1>} : memref<328x128xf32, #tpu.memory_space<vmem>>, vector<8x128xf32>
    %c234 = arith.constant 234 : index
    %c0_224 = arith.constant 0 : index
    %259 = tpu.strided_load %arg10[%c234, %c0_224] {strides = array<i32: 2, 1>} : memref<328x128xf32, #tpu.memory_space<vmem>>, vector<8x128xf32>
    %c235 = arith.constant 235 : index
    %c0_225 = arith.constant 0 : index
    %260 = tpu.strided_load %arg10[%c235, %c0_225] {strides = array<i32: 2, 1>} : memref<328x128xf32, #tpu.memory_space<vmem>>, vector<8x128xf32>
    %261 = arith.maximumf %257, %258 : vector<8x128xf32>
    %262 = arith.maximumf %259, %260 : vector<8x128xf32>
    %263 = arith.maximumf %261, %262 : vector<8x128xf32>
    %c0_226 = arith.constant 0 : index
    %c48 = arith.constant 48 : index
    %c0_227 = arith.constant 0 : index
    %264 = vector.load %arg9[%c0_226, %c48, %c0_227] : memref<1x64x128xf32, #tpu.memory_space<vmem>>, vector<1x8x128xf32>
    %265 = vector.shape_cast %264 : vector<1x8x128xf32> to vector<8x128xf32>
    %266 = vector.shape_cast %263 : vector<8x128xf32> to vector<1x8x128xf32>
    tpu.vector_store %arg9[%c0_226, %c48, %c0_227], %266 {strides = array<i32>} : memref<1x64x128xf32, #tpu.memory_space<vmem>>, vector<1x8x128xf32>,
    %c252 = arith.constant 252 : index
    %c0_228 = arith.constant 0 : index
    %267 = tpu.strided_load %arg10[%c252, %c0_228] {strides = array<i32: 2, 1>} : memref<328x128xf32, #tpu.memory_space<vmem>>, vector<8x128xf32>
    %c253 = arith.constant 253 : index
    %c0_229 = arith.constant 0 : index
    %268 = tpu.strided_load %arg10[%c253, %c0_229] {strides = array<i32: 2, 1>} : memref<328x128xf32, #tpu.memory_space<vmem>>, vector<8x128xf32>
    %c270 = arith.constant 270 : index
    %c0_230 = arith.constant 0 : index
    %269 = tpu.strided_load %arg10[%c270, %c0_230] {strides = array<i32: 2, 1>} : memref<328x128xf32, #tpu.memory_space<vmem>>, vector<8x128xf32>
    %c271 = arith.constant 271 : index
    %c0_231 = arith.constant 0 : index
    %270 = tpu.strided_load %arg10[%c271, %c0_231] {strides = array<i32: 2, 1>} : memref<328x128xf32, #tpu.memory_space<vmem>>, vector<8x128xf32>
    %271 = arith.maximumf %267, %268 : vector<8x128xf32>
    %272 = arith.maximumf %269, %270 : vector<8x128xf32>
    %273 = arith.maximumf %271, %272 : vector<8x128xf32>
    %c0_232 = arith.constant 0 : index
    %c56 = arith.constant 56 : index
    %c0_233 = arith.constant 0 : index
    %274 = vector.load %arg9[%c0_232, %c56, %c0_233] : memref<1x64x128xf32, #tpu.memory_space<vmem>>, vector<1x8x128xf32>
    %275 = vector.shape_cast %274 : vector<1x8x128xf32> to vector<8x128xf32>
    %276 = vector.shape_cast %273 : vector<8x128xf32> to vector<1x8x128xf32>
    tpu.vector_store %arg9[%c0_232, %c56, %c0_233], %276 {strides = array<i32>} : memref<1x64x128xf32, #tpu.memory_space<vmem>>, vector<1x8x128xf32>,
    return
  }
  func.func @transform_0(%arg0: i32) -> (i32, i32, i32) {
    %c0_i32 = arith.constant 0 : i32
    %c0_i32_0 = arith.constant 0 : i32
    %c0_i32_1 = arith.constant 0 : i32
    return %arg0, %c0_i32, %c0_i32_0 : i32, i32, i32
  }
  func.func @transform_1(%arg0: i32) -> (i32, i32) {
    %c0_i32 = arith.constant 0 : i32
    %c0_i32_0 = arith.constant 0 : i32
    %c0_i32_1 = arith.constant 0 : i32
    return %c0_i32, %c0_i32_0 : i32, i32
  }
  func.func @transform_2(%arg0: i32) -> (i32, i32, i32) {
    %c0_i32 = arith.constant 0 : i32
    %c0_i32_0 = arith.constant 0 : i32
    %c0_i32_1 = arith.constant 0 : i32
    %c0_i32_2 = arith.constant 0 : i32
    return %c0_i32, %c0_i32_0, %c0_i32_1 : i32, i32, i32
  }
  func.func @transform_3(%arg0: i32) -> (i32, i32) {
    %c0_i32 = arith.constant 0 : i32
    %c0_i32_0 = arith.constant 0 : i32
    %c0_i32_1 = arith.constant 0 : i32
    return %c0_i32, %c0_i32_0 : i32, i32
  }
  func.func @transform_4(%arg0: i32) -> (i32, i32, i32) {
    %c0_i32 = arith.constant 0 : i32
    %c0_i32_0 = arith.constant 0 : i32
    %c0_i32_1 = arith.constant 0 : i32
    %c0_i32_2 = arith.constant 0 : i32
    return %c0_i32, %c0_i32_0, %c0_i32_1 : i32, i32, i32
  }
  func.func @transform_5(%arg0: i32) -> (i32, i32) {
    %c0_i32 = arith.constant 0 : i32
    %c0_i32_0 = arith.constant 0 : i32
    %c0_i32_1 = arith.constant 0 : i32
    return %c0_i32, %c0_i32_0 : i32, i32
  }
  func.func @transform_6(%arg0: i32) -> (i32, i32, i32) {
    %c0_i32 = arith.constant 0 : i32
    %c0_i32_0 = arith.constant 0 : i32
    %c0_i32_1 = arith.constant 0 : i32
    %c0_i32_2 = arith.constant 0 : i32
    return %c0_i32, %c0_i32_0, %c0_i32_1 : i32, i32, i32
  }
  func.func @transform_7(%arg0: i32) -> (i32, i32) {
    %c0_i32 = arith.constant 0 : i32
    %c0_i32_0 = arith.constant 0 : i32
    %c0_i32_1 = arith.constant 0 : i32
    return %c0_i32, %c0_i32_0 : i32, i32
  }
  func.func @transform_8(%arg0: i32) -> (i32, i32, i32) {
    %c0_i32 = arith.constant 0 : i32
    %c0_i32_0 = arith.constant 0 : i32
    %c0_i32_1 = arith.constant 0 : i32
    return %arg0, %c0_i32, %c0_i32_0 : i32, i32, i32
  }
}

module attributes {stable_mosaic.version = 11 : i64} {
  func.func @_fc_kernel(%arg0: i32, %arg1: memref<2x8192xf32, #tpu.memory_space<vmem>>, %arg2: memref<8192x128xbf16, #tpu.memory_space<vmem>>, %arg3: memref<1x128xf32, #tpu.memory_space<vmem>>, %arg4: memref<128x128xbf16, #tpu.memory_space<vmem>>, %arg5: memref<1x128xf32, #tpu.memory_space<vmem>>, %arg6: memref<2x128xf32, #tpu.memory_space<vmem>>) attributes {dimension_semantics = [#tpu.dimension_semantics<arbitrary>], iteration_bounds = array<i64: 1>, scalar_prefetch = 0 : i64, scratch_operands = 0 : i64, tpu.core_type = #tpu.core_type<tc>, window_params = [{pipeline_mode = #tpu.pipeline_mode<synchronous>, transform_indices = @transform_0, window_bounds = array<i64: 2, 8192>}, {pipeline_mode = #tpu.pipeline_mode<synchronous>, transform_indices = @transform_1, window_bounds = array<i64: 8192, 128>}, {pipeline_mode = #tpu.pipeline_mode<synchronous>, transform_indices = @transform_2, window_bounds = array<i64: 1, 128>}, {pipeline_mode = #tpu.pipeline_mode<synchronous>, transform_indices = @transform_3, window_bounds = array<i64: 128, 128>}, {pipeline_mode = #tpu.pipeline_mode<synchronous>, transform_indices = @transform_4, window_bounds = array<i64: 1, 128>}, {pipeline_mode = #tpu.pipeline_mode<synchronous>, transform_indices = @transform_5, window_bounds = array<i64: 2, 128>}]} {
    %c0 = arith.constant 0 : index
    %c0_0 = arith.constant 0 : index
    %0 = vector.load %arg1[%c0, %c0_0] : memref<2x8192xf32, #tpu.memory_space<vmem>>, vector<2x8192xf32>
    %1 = arith.truncf %0 : vector<2x8192xf32> to vector<2x8192xbf16>
    %c0_1 = arith.constant 0 : index
    %c0_2 = arith.constant 0 : index
    %2 = vector.load %arg2[%c0_1, %c0_2] : memref<8192x128xbf16, #tpu.memory_space<vmem>>, vector<8192x128xbf16>
    %cst = arith.constant dense<0.000000e+00> : vector<2x128xf32>
    %3 = tpu.matmul %1, %2, %cst {dimension_numbers = #tpu.dot_dimension_numbers<[1], [0], [0], [1], [0, 0, 1, 1], [], []>} : vector<2x8192xbf16>, vector<8192x128xbf16>, vector<2x128xf32> -> vector<2x128xf32>
    %c0_3 = arith.constant 0 : index
    %c0_4 = arith.constant 0 : index
    %4 = vector.load %arg3[%c0_3, %c0_4] : memref<1x128xf32, #tpu.memory_space<vmem>>, vector<1x128xf32>
    %5 = vector.broadcast %4 : vector<1x128xf32> to vector<2x128xf32>
    %6 = arith.addf %3, %5 : vector<2x128xf32>
    %cst_5 = arith.constant 0.000000e+00 : f32
    %7 = vector.broadcast %cst_5 : f32 to vector<2x128xf32>
    %8 = arith.maximumf %6, %7 : vector<2x128xf32>
    %9 = arith.truncf %8 : vector<2x128xf32> to vector<2x128xbf16>
    %c0_6 = arith.constant 0 : index
    %c0_7 = arith.constant 0 : index
    %10 = vector.load %arg4[%c0_6, %c0_7] : memref<128x128xbf16, #tpu.memory_space<vmem>>, vector<128x128xbf16>
    %cst_8 = arith.constant dense<0.000000e+00> : vector<2x128xf32>
    %11 = tpu.matmul %9, %10, %cst_8 {dimension_numbers = #tpu.dot_dimension_numbers<[1], [0], [0], [1], [0, 0, 1, 1], [], []>} : vector<2x128xbf16>, vector<128x128xbf16>, vector<2x128xf32> -> vector<2x128xf32>
    %c0_9 = arith.constant 0 : index
    %c0_10 = arith.constant 0 : index
    %12 = vector.load %arg5[%c0_9, %c0_10] : memref<1x128xf32, #tpu.memory_space<vmem>>, vector<1x128xf32>
    %13 = vector.broadcast %12 : vector<1x128xf32> to vector<2x128xf32>
    %14 = arith.addf %11, %13 : vector<2x128xf32>
    %cst_11 = arith.constant 0.000000e+00 : f32
    %15 = vector.broadcast %cst_11 : f32 to vector<2x128xf32>
    %16 = arith.maximumf %14, %15 : vector<2x128xf32>
    %c0_12 = arith.constant 0 : index
    %c0_13 = arith.constant 0 : index
    %17 = vector.load %arg6[%c0_12, %c0_13] : memref<2x128xf32, #tpu.memory_space<vmem>>, vector<2x128xf32>
    tpu.vector_store %arg6[%c0_12, %c0_13], %16 {strides = array<i32>} : memref<2x128xf32, #tpu.memory_space<vmem>>, vector<2x128xf32>,
    return
  }
  func.func @transform_0(%arg0: i32) -> (i32, i32) {
    %c0_i32 = arith.constant 0 : i32
    %c0_i32_0 = arith.constant 0 : i32
    %c0_i32_1 = arith.constant 0 : i32
    return %c0_i32, %c0_i32_0 : i32, i32
  }
  func.func @transform_1(%arg0: i32) -> (i32, i32) {
    %c0_i32 = arith.constant 0 : i32
    %c0_i32_0 = arith.constant 0 : i32
    %c0_i32_1 = arith.constant 0 : i32
    return %c0_i32, %c0_i32_0 : i32, i32
  }
  func.func @transform_2(%arg0: i32) -> (i32, i32) {
    %c0_i32 = arith.constant 0 : i32
    %c0_i32_0 = arith.constant 0 : i32
    %c0_i32_1 = arith.constant 0 : i32
    return %c0_i32, %c0_i32_0 : i32, i32
  }
  func.func @transform_3(%arg0: i32) -> (i32, i32) {
    %c0_i32 = arith.constant 0 : i32
    %c0_i32_0 = arith.constant 0 : i32
    %c0_i32_1 = arith.constant 0 : i32
    return %c0_i32, %c0_i32_0 : i32, i32
  }
  func.func @transform_4(%arg0: i32) -> (i32, i32) {
    %c0_i32 = arith.constant 0 : i32
    %c0_i32_0 = arith.constant 0 : i32
    %c0_i32_1 = arith.constant 0 : i32
    return %c0_i32, %c0_i32_0 : i32, i32
  }
  func.func @transform_5(%arg0: i32) -> (i32, i32) {
    %c0_i32 = arith.constant 0 : i32
    %c0_i32_0 = arith.constant 0 : i32
    %c0_i32_1 = arith.constant 0 : i32
    return %c0_i32, %c0_i32_0 : i32, i32
  }
}

</mosaic_0001>

<bundles_post_ra>
// kernel: method_cnn_forward.3
= control target key start
LH: loop header
LB: loop body
LE: loop exit
PB: predicated region body
PF: predicated region fallthrough
CT: control target
= control target key end

     0   :  { %v58_v28 = vlaneseq  ;;  %v7785_v36 = vmov 1983009808   ;;  %s9503_s0 = inlined_call_operand.vmem [shape: f32[2,8192], index: 0, kind: input, shape index: {}]   ;;  %s9504_s1 = inlined_call_operand.vmem [shape: bf16[8192,128], index: 1, kind: input, shape index: {}]   ;;  %s9505_s2 = inlined_call_operand.vmem [shape: f32[1,128], index: 2, kind: input, shape index: {}]   ;;  %s9506_s3 = inlined_call_operand.vmem [shape: bf16[128,128], index: 3, kind: input, shape index: {}]   ;;  %s9507_s4 = inlined_call_operand.vmem [shape: f32[1,128], index: 4, kind: input, shape index: {}]   ;;  %s9508_s5 = inlined_call_operand.hbm [shape: f32[2,128], index: 5, kind: output, shape index: {}]  }
   0x1   :  { %v7225_v0 = vld [vmem:[%s9504_s1 + $0x40] sm:$0xff]   ;;  %v7229_v4 = vld [vmem:[%s9504_s1 + $0x48] sm:$0xff]   ;;  %v7233_v8 = vld [vmem:[%s9504_s1 + $0x50] sm:$0xff]   ;;  %v56_v37 = vunpack.c.l.s4 %v7785_v36 }
   0x2   :  { %v7226_v1 = vld [vmem:[%s9504_s1 + $0xc0] sm:$0xff]   ;;  %6488 = vmatprep.subr.bf16.mxu0 %v7225_v0  ;;  %v7230_v5 = vld [vmem:[%s9504_s1 + $0xc8] sm:$0xff]   ;;  %v7234_v9 = vld [vmem:[%s9504_s1 + $0xd0] sm:$0xff]   ;;  %v59_v33 = vshrl.u32 %v58_v28, 7 }
   0x3   :  { %v7227_v2 = vld [vmem:[%s9504_s1] sm:$0xff]   ;;  %6510 = vmatprep.subr.bf16.mxu1 %v7226_v1  ;;  %v7231_v6 = vld [vmem:[%s9504_s1 + $0x8] sm:$0xff]   ;;  %v7235_v10 = vld [vmem:[%s9504_s1 + $0x10] sm:$0xff]   ;;  %v57_v39 = vunpack.c.0.s8 %v56_v37 }
   0x4   :  { %v7228_v3 = vld [vmem:[%s9504_s1 + $0x80] sm:$0xff]   ;;  %6489 = vmatpush3.bf16.msra.mxu0 %v7227_v2  ;;  %v7232_v7 = vld [vmem:[%s9504_s1 + $0x88] sm:$0xff]   ;;  %v7236_v11 = vld [vmem:[%s9504_s1 + $0x90] sm:$0xff]  }
   0x5   :  { %6511 = vmatpush3.bf16.msra.mxu1 %v7228_v3  ;;  %6490 = vmatprep.subr.bf16.mxu0 %v7229_v4  ;;  %v7237_v12 = vld [vmem:[%s9504_s1 + $0x58] sm:$0xff]   ;;  %v7241_v16 = vld [vmem:[%s9504_s1 + $0x60] sm:$0xff]   ;;  %v7245_v20 = vld [vmem:[%s9504_s1 + $0x68] sm:$0xff]   ;;  %v7924_v41 = vsub.s32 %v57_v39, %v59_v33 }
   0x6   :  { %6512 = vmatprep.subr.bf16.mxu1 %v7230_v5  ;;  %v7238_v13 = vld [vmem:[%s9504_s1 + $0xd8] sm:$0xff]   ;;  %v7242_v17 = vld [vmem:[%s9504_s1 + $0xe0] sm:$0xff]   ;;  %v7246_v21 = vld [vmem:[%s9504_s1 + $0xe8] sm:$0xff]  }
   0x7   :  { %v7239_v14 = vld [vmem:[%s9504_s1 + $0x18] sm:$0xff]   ;;  %v7243_v18 = vld [vmem:[%s9504_s1 + $0x20] sm:$0xff]   ;;  %v7247_v22 = vld [vmem:[%s9504_s1 + $0x28] sm:$0xff]  }
   0x8   :  { %6491 = vmatpush3.bf16.msra.mxu0 %v7231_v6  ;;  %v7240_v15 = vld [vmem:[%s9504_s1 + $0x98] sm:$0xff]   ;;  %v7244_v19 = vld [vmem:[%s9504_s1 + $0xa0] sm:$0xff]   ;;  %v7248_v23 = vld [vmem:[%s9504_s1 + $0xa8] sm:$0xff]  }
   0x9   :  { %6513 = vmatpush3.bf16.msra.mxu1 %v7232_v7  ;;  %6492 = vmatprep.subr.bf16.mxu0 %v7233_v8  ;;  %v7249_v24 = vld [vmem:[%s9504_s1 + $0x70] sm:$0xff]   ;;  %v7253_v29 = vld [vmem:[%s9504_s1 + $0x78] sm:$0xff]   ;;  %v22_v34 = vld [vmem:[%s9503_s0] sm:$0xff] }
   0xa   :  { %6514 = vmatprep.subr.bf16.mxu1 %v7234_v9  ;;  %v7250_v25 = vld [vmem:[%s9504_s1 + $0xf0] sm:$0xff]   ;;  %v7254_v30 = vld [vmem:[%s9504_s1 + $0xf8] sm:$0xff]   ;;  %v7258_v35 = vld [vmem:[%s9504_s1 + $0x140] sm:$0xff]   ;;  %v54_v40 = vcombine.high %v22_v34, %v22_v34  ;;  %v61_v42 = vrot.slane %v22_v34, %v7924_v41 }
   0xb   :  { %v7251_v26 = vld [vmem:[%s9504_s1 + $0x30] sm:$0xff]   ;;  %v7255_v31 = vld [vmem:[%s9504_s1 + $0x38] sm:$0xff]   ;;  %v7259_v38 = vld [vmem:[%s9504_s1 + $0x1c0] sm:$0xff]  }
   0xc   :  { %6493 = vmatpush3.bf16.msra.mxu0 %v7235_v10  ;;  %v7252_v27 = vld [vmem:[%s9504_s1 + $0xb0] sm:$0xff]   ;;  %v7256_v32 = vld [vmem:[%s9504_s1 + $0xb8] sm:$0xff]   ;;  %v68_v43 = vrot.slane %v54_v40, %v7924_v41  ;;  %v69_v44 = vcombine.high %v61_v42, %v61_v42  ;;  %v7260_v46 = vld [vmem:[%s9504_s1 + $0x100] sm:$0xff]   ;;  %v390_v47 = vpack.c.bf16 %v61_v42, %v61_v42 }
   0xd   :  { %6515 = vmatpush3.bf16.msra.mxu1 %v7236_v11  ;;  %6494 = vmatprep.subr.bf16.mxu0 %v7237_v12  ;;  %v7261_v49 = vld [vmem:[%s9504_s1 + $0x180] sm:$0xff]   ;;  %v7262_v52 = vld [vmem:[%s9504_s1 + $0x148] sm:$0xff]   ;;  %v7266_v56 = vld [vmem:[%s9504_s1 + $0x150] sm:$0xff]  }
   0xe   :  { %6516 = vmatprep.subr.bf16.mxu1 %v7238_v13  ;;  %v70_v45 = vcombine.high %v68_v43, %v68_v43  ;;  %v392_v48 = vpack.c.bf16 %v68_v43, %v68_v43  ;;  %v391_v50 = vpack.c.bf16 %v69_v44, %v69_v44  ;;  %v7263_v53 = vld [vmem:[%s9504_s1 + $0x1c8] sm:$0xff]   ;;  %v7267_v57 = vld [vmem:[%s9504_s1 + $0x1d0] sm:$0xff]   ;;  %v7270_v60 = vld [vmem:[%s9504_s1 + $0x158] sm:$0xff]  }
   0xf   :  { %v7264_v54 = vld [vmem:[%s9504_s1 + $0x108] sm:$0xff]   ;;  %v7268_v58 = vld [vmem:[%s9504_s1 + $0x110] sm:$0xff]   ;;  %v7271_v61 = vld [vmem:[%s9504_s1 + $0x1d8] sm:$0xff]  }
  0x10   :  { %6495 = vmatpush3.bf16.msra.mxu0 %v7239_v14  ;;  %v393_v51 = vpack.c.bf16 %v70_v45, %v70_v45  ;;  %4589 = vmatprep.mubr.bf16.mxu0 %v391_v50  ;;  %v7265_v55 = vld [vmem:[%s9504_s1 + $0x188] sm:$0xff]   ;;  %v7269_v59 = vld [vmem:[%s9504_s1 + $0x190] sm:$0xff]   ;;  %v7272_v62 = vld [vmem:[%s9504_s1 + $0x118] sm:$0xff]  }
  0x11   :  { %6517 = vmatpush3.bf16.msra.mxu1 %v7240_v15  ;;  %6496 = vmatprep.subr.bf16.mxu0 %v7241_v16  ;;  %v7273_v63 = vld [vmem:[%s9504_s1 + $0x198] sm:$0xff]   ;;  %v7274_v0 = vld [vmem:[%s9504_s1 + $0x160] sm:$0xff]   ;;  %v7278_v4 = vld [vmem:[%s9504_s1 + $0x168] sm:$0xff]  }
  0x12   :  { %6518 = vmatprep.subr.bf16.mxu1 %v7242_v17  ;;  %4629 = vmatprep.mubr.bf16.mxu1 %v393_v51  ;;  %v7275_v1 = vld [vmem:[%s9504_s1 + $0x1e0] sm:$0xff]   ;;  %v7279_v5 = vld [vmem:[%s9504_s1 + $0x1e8] sm:$0xff]   ;;  %v7282_v8 = vld [vmem:[%s9504_s1 + $0x170] sm:$0xff]  }
  0x13   :  { %v7276_v2 = vld [vmem:[%s9504_s1 + $0x120] sm:$0xff]   ;;  %v7280_v6 = vld [vmem:[%s9504_s1 + $0x128] sm:$0xff]   ;;  %v7283_v9 = vld [vmem:[%s9504_s1 + $0x1f0] sm:$0xff]  }
  0x14   :  { %6497 = vmatpush3.bf16.msra.mxu0 %v7243_v18  ;;  %v7277_v3 = vld [vmem:[%s9504_s1 + $0x1a0] sm:$0xff]   ;;  %v7281_v7 = vld [vmem:[%s9504_s1 + $0x1a8] sm:$0xff]   ;;  %v7284_v11 = vld [vmem:[%s9504_s1 + $0x130] sm:$0xff]  }
  0x15   :  { %6519 = vmatpush3.bf16.msra.mxu1 %v7244_v19  ;;  %6498 = vmatprep.subr.bf16.mxu0 %v7245_v20  ;;  %v23_v10 = vld [vmem:[%s9503_s0 + $0x8] sm:$0xff]  ;;  %v7285_v14 = vld [vmem:[%s9504_s1 + $0x1b0] sm:$0xff]   ;;  %v7286_v15 = vld [vmem:[%s9504_s1 + $0x178] sm:$0xff]  }
  0x16   :  { %6520 = vmatprep.subr.bf16.mxu1 %v7246_v21  ;;  %v78_v12 = vrot.slane %v23_v10, %v7924_v41  ;;  %v71_v13 = vcombine.high %v23_v10, %v23_v10  ;;  %v7287_v18 = vld [vmem:[%s9504_s1 + $0x1f8] sm:$0xff]   ;;  %v7298_v33 = vld [vmem:[%s9504_s1 + $0x288] sm:$0xff]   ;;  %v7299_v34 = vld [vmem:[%s9504_s1 + $0x250] sm:$0xff]  }
  0x17   :  { %v7288_v19 = vld [vmem:[%s9504_s1 + $0x138] sm:$0xff]   ;;  %v7301_v36 = vld [vmem:[%s9504_s1 + $0x210] sm:$0xff]   ;;  %v7307_v43 = vld [vmem:[%s9504_s1 + $0x260] sm:$0xff]  }
  0x18   :  { %6499 = vmatpush3.bf16.msra.mxu0 %v7247_v22  ;;  %v86_v16 = vcombine.high %v78_v12, %v78_v12  ;;  %v85_v17 = vrot.slane %v71_v13, %v7924_v41  ;;  %v7289_v22 = vld [vmem:[%s9504_s1 + $0x1b8] sm:$0xff]   ;;  %v7302_v37 = vld [vmem:[%s9504_s1 + $0x290] sm:$0xff]   ;;  %v7308_v44 = vld [vmem:[%s9504_s1 + $0x2e0] sm:$0xff]  }
  0x19   :  { %6521 = vmatpush3.bf16.msra.mxu1 %v7248_v23  ;;  %6500 = vmatprep.subr.bf16.mxu0 %v7249_v24  ;;  %v7291_v24 = vld [vmem:[%s9504_s1 + $0x240] sm:$0xff]   ;;  %v7304_v39 = vld [vmem:[%s9504_s1 + $0x2d8] sm:$0xff]   ;;  %v7314_v50 = vld [vmem:[%s9504_s1 + $0x2a8] sm:$0xff]  }
  0x1a   :  { %6522 = vmatprep.subr.bf16.mxu1 %v7250_v25  ;;  %v395_v20 = vpack.c.bf16 %v86_v16, %v86_v16  ;;  %v87_v21 = vcombine.high %v85_v17, %v85_v17  ;;  %v7292_v25 = vld [vmem:[%s9504_s1 + $0x2c0] sm:$0xff]   ;;  %v396_v28 = vpack.c.bf16 %v85_v17, %v85_v17  ;;  %v7305_v40 = vld [vmem:[%s9504_s1 + $0x218] sm:$0xff]   ;;  %v7315_v51 = vld [vmem:[%s9504_s1 + $0x270] sm:$0xff]  }
  0x1b   :  { %v7306_v42 = vld [vmem:[%s9504_s1 + $0x298] sm:$0xff]   ;;  %v7309_v45 = vld [vmem:[%s9504_s1 + $0x220] sm:$0xff]   ;;  %v7329_v10 = vld [vmem:[%s9504_s1 + $0x3c8] sm:$0xff]  }
  0x1c   :  { %6501 = vmatpush3.bf16.msra.mxu0 %v7251_v26  ;;  %v397_v23 = vpack.c.bf16 %v87_v21, %v87_v21  ;;  %v7293_v26 = vld [vmem:[%s9504_s1 + $0x200] sm:$0xff]   ;;  %v7332_v13 = vld [vmem:[%s9504_s1 + $0x350] sm:$0xff]   ;;  %v7336_v17 = vld [vmem:[%s9504_s1 + $0x358] sm:$0xff]  }
  0x1d   :  { %6523 = vmatpush3.bf16.msra.mxu1 %v7252_v27  ;;  %6502 = vmatprep.subr.bf16.mxu0 %v7253_v29  ;;  %v394_v27 = vpack.c.bf16 %v78_v12, %v78_v12  ;;  %v7294_v29 = vld [vmem:[%s9504_s1 + $0x280] sm:$0xff]   ;;  %v7331_v12 = vld [vmem:[%s9504_s1 + $0x388] sm:$0xff]   ;;  %v7335_v16 = vld [vmem:[%s9504_s1 + $0x390] sm:$0xff]  }
  0x1e   :  { %6524 = vmatprep.subr.bf16.mxu1 %v7254_v30  ;;  %v7295_v30 = vld [vmem:[%s9504_s1 + $0x248] sm:$0xff]   ;;  %v7340_v21 = vld [vmem:[%s9504_s1 + $0x360] sm:$0xff]  }
  0x20   :  { %6503 = vmatpush3.bf16.msra.mxu0 %v7255_v31  ;;  %v7296_v31 = vld [vmem:[%s9504_s1 + $0x2c8] sm:$0xff]  }
  0x21   :  { %6525 = vmatpush3.bf16.msra.mxu1 %v7256_v32  ;;  %6532 = vmatprep.subr.bf16.mxu0 %v7258_v35  ;;  %v7297_v32 = vld [vmem:[%s9504_s1 + $0x208] sm:$0xff]   ;;  %v7300_v35 = vld [vmem:[%s9504_s1 + $0x2d0] sm:$0xff]  }
  0x22   :  { %6554 = vmatprep.subr.bf16.mxu1 %v7259_v38  ;;  %v7303_v38 = vld [vmem:[%s9504_s1 + $0x258] sm:$0xff]  }
  0x23   :  { %4590 = vmatmul.mubr.bf16.vlgmr.msra.gmra.mrb[0].mxu0 %v390_v47  ;;  %v7311_v47 = vld [vmem:[%s9504_s1 + $0x268] sm:$0xff]  }
  0x24   :  { %4630 = vmatmul.mubr.bf16.vlgmr.msra.gmra.mrb[0].mxu1 %v392_v48  ;;  %6533 = vmatpush3.bf16.msra.mxu0 %v7260_v46  ;;  %v7310_v46 = vld [vmem:[%s9504_s1 + $0x2a0] sm:$0xff]   ;;  %v7312_v48 = vld [vmem:[%s9504_s1 + $0x2e8] sm:$0xff]  }
  0x25   :  { %6555 = vmatpush3.bf16.msra.mxu1 %v7261_v49  ;;  %6534 = vmatprep.subr.bf16.mxu0 %v7262_v52  ;;  %v7313_v49 = vld [vmem:[%s9504_s1 + $0x228] sm:$0xff]   ;;  %v7316_v52 = vld [vmem:[%s9504_s1 + $0x2f0] sm:$0xff]  }
  0x26   :  { %6556 = vmatprep.subr.bf16.mxu1 %v7263_v53  ;;  %4669 = vmatprep.mubr.bf16.mxu0 %v395_v20  ;;  %v24_v53 = vld [vmem:[%s9503_s0 + $0x10] sm:$0xff]  ;;  %v7339_v20 = vld [vmem:[%s9504_s1 + $0x398] sm:$0xff]  }
  0x27   :  { %4709 = vmatprep.mubr.bf16.mxu1 %v397_v23  ;;  %v7342_v23 = vld [vmem:[%s9504_s1 + $0x320] sm:$0xff]  }
  0x28   :  { %6535 = vmatpush3.bf16.msra.mxu0 %v7264_v54  ;;  %v7317_v54 = vld [vmem:[%s9504_s1 + $0x230] sm:$0xff]  }
  0x29   :  { %6557 = vmatpush3.bf16.msra.mxu1 %v7265_v55  ;;  %6536 = vmatprep.subr.bf16.mxu0 %v7266_v56  ;;  %v95_v55 = vrot.slane %v24_v53, %v7924_v41  ;;  %v88_v56 = vcombine.high %v24_v53, %v24_v53  ;;  %v7362_v53 = vld [vmem:[%s9504_s1 + $0x4c8] sm:$0xff]  }
  0x2a   :  { %6558 = vmatprep.subr.bf16.mxu1 %v7267_v57  ;;  %v7318_v57 = vld [vmem:[%s9504_s1 + $0x2b0] sm:$0xff]  }
  0x2c   :  { %6537 = vmatpush3.bf16.msra.mxu0 %v7268_v58  ;;  %v7319_v58 = vld [vmem:[%s9504_s1 + $0x278] sm:$0xff]  }
  0x2d   :  { %6559 = vmatpush3.bf16.msra.mxu1 %v7269_v59  ;;  %6538 = vmatprep.subr.bf16.mxu0 %v7270_v60  ;;  %v103_v59 = vcombine.high %v95_v55, %v95_v55  ;;  %v102_v60 = vrot.slane %v88_v56, %v7924_v41  ;;  %v7365_v56 = vld [vmem:[%s9504_s1 + $0x450] sm:$0xff]  }
  0x2e   :  { %6560 = vmatprep.subr.bf16.mxu1 %v7271_v61  ;;  %v7320_v61 = vld [vmem:[%s9504_s1 + $0x2f8] sm:$0xff]  }
  0x30   :  { %6539 = vmatpush3.bf16.msra.mxu0 %v7272_v62  ;;  %v7321_v62 = vld [vmem:[%s9504_s1 + $0x238] sm:$0xff]  }
  0x31   :  { %6561 = vmatpush3.bf16.msra.mxu1 %v7273_v63  ;;  %6540 = vmatprep.subr.bf16.mxu0 %v7274_v0  ;;  %v399_v63 = vpack.c.bf16 %v103_v59, %v103_v59  ;;  %v104_v0 = vcombine.high %v102_v60, %v102_v60  ;;  %v7368_v59 = vld [vmem:[%s9504_s1 + $0x490] sm:$0xff]  }
  0x32   :  { %6562 = vmatprep.subr.bf16.mxu1 %v7275_v1  ;;  %v7322_v1 = vld [vmem:[%s9504_s1 + $0x2b8] sm:$0xff]  }
  0x34   :  { %6541 = vmatpush3.bf16.msra.mxu0 %v7276_v2  ;;  %v401_v2 = vpack.c.bf16 %v104_v0, %v104_v0  ;;  %v7373_v0 = vld [vmem:[%s9504_s1 + $0x460] sm:$0xff]  }
  0x35   :  { %6563 = vmatpush3.bf16.msra.mxu1 %v7277_v3  ;;  %6542 = vmatprep.subr.bf16.mxu0 %v7278_v4  ;;  %v7324_v3 = vld [vmem:[%s9504_s1 + $0x340] sm:$0xff]  }
  0x36   :  { %6564 = vmatprep.subr.bf16.mxu1 %v7279_v5  ;;  %v7325_v4 = vld [vmem:[%s9504_s1 + $0x3c0] sm:$0xff]  }
  0x37   :  { %v7326_v5 = vld [vmem:[%s9504_s1 + $0x300] sm:$0xff]  }
  0x38   :  { %6543 = vmatpush3.bf16.msra.mxu0 %v7280_v6  ;;  %v398_v6 = vpack.c.bf16 %v95_v55, %v95_v55  ;;  %v7364_v55 = vld [vmem:[%s9504_s1 + $0x488] sm:$0xff]  }
  0x39   :  { %6565 = vmatpush3.bf16.msra.mxu1 %v7281_v7  ;;  %6544 = vmatprep.subr.bf16.mxu0 %v7282_v8  ;;  %v400_v7 = vpack.c.bf16 %v102_v60, %v102_v60  ;;  %v7327_v8 = vld [vmem:[%s9504_s1 + $0x380] sm:$0xff]   ;;  %v7369_v60 = vld [vmem:[%s9504_s1 + $0x458] sm:$0xff]  }
  0x3a   :  { %6566 = vmatprep.subr.bf16.mxu1 %v7283_v9  ;;  %v7328_v9 = vld [vmem:[%s9504_s1 + $0x348] sm:$0xff]  }
  0x3c   :  { %6545 = vmatpush3.bf16.msra.mxu0 %v7284_v11  ;;  %v7330_v11 = vld [vmem:[%s9504_s1 + $0x308] sm:$0xff]  }
  0x3d   :  { %6567 = vmatpush3.bf16.msra.mxu1 %v7285_v14  ;;  %6546 = vmatprep.subr.bf16.mxu0 %v7286_v15  ;;  %v7333_v14 = vld [vmem:[%s9504_s1 + $0x3d0] sm:$0xff]  }
  0x3e   :  { %6568 = vmatprep.subr.bf16.mxu1 %v7287_v18  ;;  %v7334_v15 = vld [vmem:[%s9504_s1 + $0x310] sm:$0xff]   ;;  %v7337_v18 = vld [vmem:[%s9504_s1 + $0x3d8] sm:$0xff]  }
  0x40   :  { %6547 = vmatpush3.bf16.msra.mxu0 %v7288_v19  ;;  %v7338_v19 = vld [vmem:[%s9504_s1 + $0x318] sm:$0xff]  }
  0x41   :  { %6569 = vmatpush3.bf16.msra.mxu1 %v7289_v22  ;;  %6576 = vmatprep.subr.bf16.mxu0 %v7291_v24  ;;  %v7341_v22 = vld [vmem:[%s9504_s1 + $0x3e0] sm:$0xff]  }
  0x42   :  { %6598 = vmatprep.subr.bf16.mxu1 %v7292_v25  ;;  %v7343_v24 = vld [vmem:[%s9504_s1 + $0x3a0] sm:$0xff]   ;;  %v7344_v25 = vld [vmem:[%s9504_s1 + $0x368] sm:$0xff]  }
  0x43   :  { %4670 = vmatmul.mubr.bf16.vlgmr.msra.gmra.mrb[4].mxu0 %v394_v27  ;;  %v7346_v27 = vld [vmem:[%s9504_s1 + $0x328] sm:$0xff]  }
  0x44   :  { %4710 = vmatmul.mubr.bf16.vlgmr.msra.gmra.mrb[4].mxu1 %v396_v28  ;;  %6577 = vmatpush3.bf16.msra.mxu0 %v7293_v26  ;;  %v7345_v26 = vld [vmem:[%s9504_s1 + $0x3e8] sm:$0xff]  }
  0x45   :  { %6599 = vmatpush3.bf16.msra.mxu1 %v7294_v29  ;;  %6578 = vmatprep.subr.bf16.mxu0 %v7295_v30  ;;  %v7347_v28 = vld [vmem:[%s9504_s1 + $0x3a8] sm:$0xff]   ;;  %v7348_v29 = vld [vmem:[%s9504_s1 + $0x370] sm:$0xff]  }
  0x46   :  { %6600 = vmatprep.subr.bf16.mxu1 %v7296_v31  ;;  %4749 = vmatprep.mubr.bf16.mxu0 %v399_v63  ;;  %v7349_v30 = vld [vmem:[%s9504_s1 + $0x3f0] sm:$0xff]   ;;  %v7372_v63 = vld [vmem:[%s9504_s1 + $0x498] sm:$0xff]  }
  0x47   :  { %4789 = vmatprep.mubr.bf16.mxu1 %v401_v2  ;;  %v7350_v31 = vld [vmem:[%s9504_s1 + $0x330] sm:$0xff]   ;;  %v7375_v2 = vld [vmem:[%s9504_s1 + $0x420] sm:$0xff]  }
  0x48   :  { %6579 = vmatpush3.bf16.msra.mxu0 %v7297_v32  ;;  %v25_v32 = vld [vmem:[%s9503_s0 + $0x18] sm:$0xff] }
  0x49   :  { %6601 = vmatpush3.bf16.msra.mxu1 %v7298_v33  ;;  %6580 = vmatprep.subr.bf16.mxu0 %v7299_v34  ;;  %v7351_v33 = vld [vmem:[%s9504_s1 + $0x3b0] sm:$0xff]   ;;  %v112_v34 = vrot.slane %v25_v32, %v7924_v41 }
  0x4a   :  { %6602 = vmatprep.subr.bf16.mxu1 %v7300_v35  ;;  %v105_v35 = vcombine.high %v25_v32, %v25_v32  ;;  %v7396_v32 = vld [vmem:[%s9504_s1 + $0x508] sm:$0xff]  }
  0x4c   :  { %6581 = vmatpush3.bf16.msra.mxu0 %v7301_v36  ;;  %v7352_v36 = vld [vmem:[%s9504_s1 + $0x378] sm:$0xff]  }
  0x4d   :  { %6603 = vmatpush3.bf16.msra.mxu1 %v7302_v37  ;;  %6582 = vmatprep.subr.bf16.mxu0 %v7303_v38  ;;  %v7353_v37 = vld [vmem:[%s9504_s1 + $0x3f8] sm:$0xff]   ;;  %v120_v38 = vcombine.high %v112_v34, %v112_v34 }
  0x4e   :  { %6604 = vmatprep.subr.bf16.mxu1 %v7304_v39  ;;  %v119_v39 = vrot.slane %v105_v35, %v7924_v41  ;;  %v7399_v35 = vld [vmem:[%s9504_s1 + $0x5d0] sm:$0xff]  }
  0x50   :  { %6583 = vmatpush3.bf16.msra.mxu0 %v7305_v40  ;;  %v7354_v40 = vld [vmem:[%s9504_s1 + $0x338] sm:$0xff]  }
  0x51   :  { %6605 = vmatpush3.bf16.msra.mxu1 %v7306_v42  ;;  %6584 = vmatprep.subr.bf16.mxu0 %v7307_v43  ;;  %v7355_v42 = vld [vmem:[%s9504_s1 + $0x3b8] sm:$0xff]   ;;  %v403_v43 = vpack.c.bf16 %v120_v38, %v120_v38 }
  0x52   :  { %6606 = vmatprep.subr.bf16.mxu1 %v7308_v44  ;;  %v121_v44 = vcombine.high %v119_v39, %v119_v39  ;;  %v7402_v38 = vld [vmem:[%s9504_s1 + $0x558] sm:$0xff]  }
  0x54   :  { %6585 = vmatpush3.bf16.msra.mxu0 %v7309_v45  ;;  %v7357_v45 = vld [vmem:[%s9504_s1 + $0x440] sm:$0xff]  }
  0x55   :  { %6607 = vmatpush3.bf16.msra.mxu1 %v7310_v46  ;;  %6586 = vmatprep.subr.bf16.mxu0 %v7311_v47  ;;  %v405_v46 = vpack.c.bf16 %v121_v44, %v121_v44  ;;  %v7358_v47 = vld [vmem:[%s9504_s1 + $0x4c0] sm:$0xff]  }
  0x56   :  { %6608 = vmatprep.subr.bf16.mxu1 %v7312_v48  ;;  %v7359_v48 = vld [vmem:[%s9504_s1 + $0x400] sm:$0xff]  }
  0x57   :  { %v7407_v44 = vld [vmem:[%s9504_s1 + $0x5e0] sm:$0xff]  }
  0x58   :  { %6587 = vmatpush3.bf16.msra.mxu0 %v7313_v49  ;;  %v402_v49 = vpack.c.bf16 %v112_v34, %v112_v34  ;;  %v7398_v34 = vld [vmem:[%s9504_s1 + $0x550] sm:$0xff]  }
  0x59   :  { %6609 = vmatpush3.bf16.msra.mxu1 %v7314_v50  ;;  %6588 = vmatprep.subr.bf16.mxu0 %v7315_v51  ;;  %v404_v50 = vpack.c.bf16 %v119_v39, %v119_v39  ;;  %v7360_v51 = vld [vmem:[%s9504_s1 + $0x480] sm:$0xff]   ;;  %v7403_v39 = vld [vmem:[%s9504_s1 + $0x5d8] sm:$0xff]  }
  0x5a   :  { %6610 = vmatprep.subr.bf16.mxu1 %v7316_v52  ;;  %v7361_v52 = vld [vmem:[%s9504_s1 + $0x448] sm:$0xff]  }
  0x5c   :  { %6589 = vmatpush3.bf16.msra.mxu0 %v7317_v54  ;;  %v7363_v54 = vld [vmem:[%s9504_s1 + $0x408] sm:$0xff]  }
  0x5d   :  { %6611 = vmatpush3.bf16.msra.mxu1 %v7318_v57  ;;  %6590 = vmatprep.subr.bf16.mxu0 %v7319_v58  ;;  %v7366_v57 = vld [vmem:[%s9504_s1 + $0x4d0] sm:$0xff]  }
  0x5e   :  { %6612 = vmatprep.subr.bf16.mxu1 %v7320_v61  ;;  %v7367_v58 = vld [vmem:[%s9504_s1 + $0x410] sm:$0xff]   ;;  %v7370_v61 = vld [vmem:[%s9504_s1 + $0x4d8] sm:$0xff]  }
  0x60   :  { %6591 = vmatpush3.bf16.msra.mxu0 %v7321_v62  ;;  %v7371_v62 = vld [vmem:[%s9504_s1 + $0x418] sm:$0xff]  }
  0x61   :  { %6613 = vmatpush3.bf16.msra.mxu1 %v7322_v1  ;;  %6620 = vmatprep.subr.bf16.mxu0 %v7324_v3  ;;  %v7374_v1 = vld [vmem:[%s9504_s1 + $0x4e0] sm:$0xff]  }
  0x62   :  { %6642 = vmatprep.subr.bf16.mxu1 %v7325_v4  ;;  %v7376_v3 = vld [vmem:[%s9504_s1 + $0x4a0] sm:$0xff]   ;;  %v7377_v4 = vld [vmem:[%s9504_s1 + $0x468] sm:$0xff]  }
  0x63   :  { %4750 = vmatmul.mubr.bf16.vlgmr.msra.gmra.mrb[8].mxu0 %v398_v6  ;;  %v7379_v6 = vld [vmem:[%s9504_s1 + $0x428] sm:$0xff]  }
  0x64   :  { %4790 = vmatmul.mubr.bf16.vlgmr.msra.gmra.mrb[8].mxu1 %v400_v7  ;;  %6621 = vmatpush3.bf16.msra.mxu0 %v7326_v5  ;;  %v7378_v5 = vld [vmem:[%s9504_s1 + $0x4e8] sm:$0xff]  }
  0x65   :  { %6643 = vmatpush3.bf16.msra.mxu1 %v7327_v8  ;;  %6622 = vmatprep.subr.bf16.mxu0 %v7328_v9  ;;  %v7380_v7 = vld [vmem:[%s9504_s1 + $0x4a8] sm:$0xff]   ;;  %v7381_v8 = vld [vmem:[%s9504_s1 + $0x470] sm:$0xff]  }
  0x66   :  { %6644 = vmatprep.subr.bf16.mxu1 %v7329_v10  ;;  %4829 = vmatprep.mubr.bf16.mxu0 %v403_v43  ;;  %v7382_v9 = vld [vmem:[%s9504_s1 + $0x4f0] sm:$0xff]   ;;  %v7406_v43 = vld [vmem:[%s9504_s1 + $0x560] sm:$0xff]  }
  0x67   :  { %4869 = vmatprep.mubr.bf16.mxu1 %v405_v46  ;;  %v7383_v10 = vld [vmem:[%s9504_s1 + $0x430] sm:$0xff]   ;;  %v7409_v46 = vld [vmem:[%s9504_s1 + $0x5a0] sm:$0xff]  }
  0x68   :  { %6623 = vmatpush3.bf16.msra.mxu0 %v7330_v11  ;;  %v26_v11 = vld [vmem:[%s9503_s0 + $0x20] sm:$0xff] }
  0x69   :  { %6645 = vmatpush3.bf16.msra.mxu1 %v7331_v12  ;;  %6624 = vmatprep.subr.bf16.mxu0 %v7332_v13  ;;  %v7384_v12 = vld [vmem:[%s9504_s1 + $0x4b0] sm:$0xff]   ;;  %v129_v13 = vrot.slane %v26_v11, %v7924_v41 }
  0x6a   :  { %6646 = vmatprep.subr.bf16.mxu1 %v7333_v14  ;;  %v122_v14 = vcombine.high %v26_v11, %v26_v11  ;;  %v7429_v11 = vld [vmem:[%s9504_s1 + $0x608] sm:$0xff]  }
  0x6c   :  { %6625 = vmatpush3.bf16.msra.mxu0 %v7334_v15  ;;  %v7385_v15 = vld [vmem:[%s9504_s1 + $0x478] sm:$0xff]  }
  0x6d   :  { %6647 = vmatpush3.bf16.msra.mxu1 %v7335_v16  ;;  %6626 = vmatprep.subr.bf16.mxu0 %v7336_v17  ;;  %v7386_v16 = vld [vmem:[%s9504_s1 + $0x4f8] sm:$0xff]   ;;  %v137_v17 = vcombine.high %v129_v13, %v129_v13 }
  0x6e   :  { %6648 = vmatprep.subr.bf16.mxu1 %v7337_v18  ;;  %v136_v18 = vrot.slane %v122_v14, %v7924_v41  ;;  %v7432_v14 = vld [vmem:[%s9504_s1 + $0x6d0] sm:$0xff]  }
  0x70   :  { %6627 = vmatpush3.bf16.msra.mxu0 %v7338_v19  ;;  %v7387_v19 = vld [vmem:[%s9504_s1 + $0x438] sm:$0xff]  }
  0x71   :  { %6649 = vmatpush3.bf16.msra.mxu1 %v7339_v20  ;;  %6628 = vmatprep.subr.bf16.mxu0 %v7340_v21  ;;  %v7388_v20 = vld [vmem:[%s9504_s1 + $0x4b8] sm:$0xff]   ;;  %v407_v21 = vpack.c.bf16 %v137_v17, %v137_v17 }
  0x72   :  { %6650 = vmatprep.subr.bf16.mxu1 %v7341_v22  ;;  %v138_v22 = vcombine.high %v136_v18, %v136_v18  ;;  %v7435_v17 = vld [vmem:[%s9504_s1 + $0x658] sm:$0xff]  }
  0x74   :  { %6629 = vmatpush3.bf16.msra.mxu0 %v7342_v23  ;;  %v7390_v23 = vld [vmem:[%s9504_s1 + $0x540] sm:$0xff]  }
  0x75   :  { %6651 = vmatpush3.bf16.msra.mxu1 %v7343_v24  ;;  %6630 = vmatprep.subr.bf16.mxu0 %v7344_v25  ;;  %v409_v24 = vpack.c.bf16 %v138_v22, %v138_v22  ;;  %v7391_v25 = vld [vmem:[%s9504_s1 + $0x5c0] sm:$0xff]  }
  0x76   :  { %6652 = vmatprep.subr.bf16.mxu1 %v7345_v26  ;;  %v7392_v26 = vld [vmem:[%s9504_s1 + $0x500] sm:$0xff]  }
  0x77   :  { %v7440_v22 = vld [vmem:[%s9504_s1 + $0x6e0] sm:$0xff]  }
  0x78   :  { %6631 = vmatpush3.bf16.msra.mxu0 %v7346_v27  ;;  %v406_v27 = vpack.c.bf16 %v129_v13, %v129_v13  ;;  %v7431_v13 = vld [vmem:[%s9504_s1 + $0x650] sm:$0xff]  }
  0x79   :  { %6653 = vmatpush3.bf16.msra.mxu1 %v7347_v28  ;;  %6632 = vmatprep.subr.bf16.mxu0 %v7348_v29  ;;  %v408_v28 = vpack.c.bf16 %v136_v18, %v136_v18  ;;  %v7393_v29 = vld [vmem:[%s9504_s1 + $0x580] sm:$0xff]   ;;  %v7436_v18 = vld [vmem:[%s9504_s1 + $0x6d8] sm:$0xff]  }
  0x7a   :  { %6654 = vmatprep.subr.bf16.mxu1 %v7349_v30  ;;  %v7394_v30 = vld [vmem:[%s9504_s1 + $0x548] sm:$0xff]  }
  0x7c   :  { %6633 = vmatpush3.bf16.msra.mxu0 %v7350_v31  ;;  %v7395_v31 = vld [vmem:[%s9504_s1 + $0x5c8] sm:$0xff]  }
  0x7d   :  { %6655 = vmatpush3.bf16.msra.mxu1 %v7351_v33  ;;  %6634 = vmatprep.subr.bf16.mxu0 %v7352_v36  ;;  %v7397_v33 = vld [vmem:[%s9504_s1 + $0x588] sm:$0xff]   ;;  %v7400_v36 = vld [vmem:[%s9504_s1 + $0x510] sm:$0xff]  }
  0x7e   :  { %6656 = vmatprep.subr.bf16.mxu1 %v7353_v37  ;;  %v7401_v37 = vld [vmem:[%s9504_s1 + $0x590] sm:$0xff]  }
  0x80   :  { %6635 = vmatpush3.bf16.msra.mxu0 %v7354_v40  ;;  %v7404_v40 = vld [vmem:[%s9504_s1 + $0x518] sm:$0xff]  }
  0x81   :  { %6657 = vmatpush3.bf16.msra.mxu1 %v7355_v42  ;;  %6664 = vmatprep.subr.bf16.mxu0 %v7357_v45  ;;  %v7405_v42 = vld [vmem:[%s9504_s1 + $0x598] sm:$0xff]   ;;  %v7408_v45 = vld [vmem:[%s9504_s1 + $0x520] sm:$0xff]  }
  0x82   :  { %6686 = vmatprep.subr.bf16.mxu1 %v7358_v47  ;;  %v7410_v47 = vld [vmem:[%s9504_s1 + $0x568] sm:$0xff]  }
  0x83   :  { %4830 = vmatmul.mubr.bf16.vlgmr.msra.gmra.mrb[12].mxu0 %v402_v49  ;;  %v7412_v49 = vld [vmem:[%s9504_s1 + $0x528] sm:$0xff]  }
  0x84   :  { %4870 = vmatmul.mubr.bf16.vlgmr.msra.gmra.mrb[12].mxu1 %v404_v50  ;;  %6665 = vmatpush3.bf16.msra.mxu0 %v7359_v48  ;;  %v7411_v48 = vld [vmem:[%s9504_s1 + $0x5e8] sm:$0xff]  }
  0x85   :  { %6687 = vmatpush3.bf16.msra.mxu1 %v7360_v51  ;;  %6666 = vmatprep.subr.bf16.mxu0 %v7361_v52  ;;  %v7413_v50 = vld [vmem:[%s9504_s1 + $0x5a8] sm:$0xff]   ;;  %v7414_v51 = vld [vmem:[%s9504_s1 + $0x570] sm:$0xff]  }
  0x86   :  { %6688 = vmatprep.subr.bf16.mxu1 %v7362_v53  ;;  %4909 = vmatprep.mubr.bf16.mxu0 %v407_v21  ;;  %v7415_v52 = vld [vmem:[%s9504_s1 + $0x5f0] sm:$0xff]   ;;  %v7439_v21 = vld [vmem:[%s9504_s1 + $0x660] sm:$0xff]  }
  0x87   :  { %4949 = vmatprep.mubr.bf16.mxu1 %v409_v24  ;;  %v7416_v53 = vld [vmem:[%s9504_s1 + $0x530] sm:$0xff]   ;;  %v7442_v24 = vld [vmem:[%s9504_s1 + $0x6a0] sm:$0xff]  }
  0x88   :  { %6667 = vmatpush3.bf16.msra.mxu0 %v7363_v54  ;;  %v27_v54 = vld [vmem:[%s9503_s0 + $0x28] sm:$0xff] }
  0x89   :  { %6689 = vmatpush3.bf16.msra.mxu1 %v7364_v55  ;;  %6668 = vmatprep.subr.bf16.mxu0 %v7365_v56  ;;  %v7417_v55 = vld [vmem:[%s9504_s1 + $0x5b0] sm:$0xff]   ;;  %v146_v56 = vrot.slane %v27_v54, %v7924_v41 }
  0x8a   :  { %6690 = vmatprep.subr.bf16.mxu1 %v7366_v57  ;;  %v139_v57 = vcombine.high %v27_v54, %v27_v54  ;;  %v7462_v54 = vld [vmem:[%s9504_s1 + $0x708] sm:$0xff]  }
  0x8c   :  { %6669 = vmatpush3.bf16.msra.mxu0 %v7367_v58  ;;  %v7418_v58 = vld [vmem:[%s9504_s1 + $0x578] sm:$0xff]  }
  0x8d   :  { %6691 = vmatpush3.bf16.msra.mxu1 %v7368_v59  ;;  %6670 = vmatprep.subr.bf16.mxu0 %v7369_v60  ;;  %v7419_v59 = vld [vmem:[%s9504_s1 + $0x5f8] sm:$0xff]   ;;  %v154_v60 = vcombine.high %v146_v56, %v146_v56 }
  0x8e   :  { %6692 = vmatprep.subr.bf16.mxu1 %v7370_v61  ;;  %v153_v61 = vrot.slane %v139_v57, %v7924_v41  ;;  %v7465_v57 = vld [vmem:[%s9504_s1 + $0x7d0] sm:$0xff]  }
  0x90   :  { %6671 = vmatpush3.bf16.msra.mxu0 %v7371_v62  ;;  %v7420_v62 = vld [vmem:[%s9504_s1 + $0x538] sm:$0xff]  }
  0x91   :  { %6693 = vmatpush3.bf16.msra.mxu1 %v7372_v63  ;;  %6672 = vmatprep.subr.bf16.mxu0 %v7373_v0  ;;  %v7421_v63 = vld [vmem:[%s9504_s1 + $0x5b8] sm:$0xff]   ;;  %v411_v0 = vpack.c.bf16 %v154_v60, %v154_v60 }
  0x92   :  { %6694 = vmatprep.subr.bf16.mxu1 %v7374_v1  ;;  %v155_v1 = vcombine.high %v153_v61, %v153_v61  ;;  %v7468_v60 = vld [vmem:[%s9504_s1 + $0x758] sm:$0xff]  }
  0x94   :  { %6673 = vmatpush3.bf16.msra.mxu0 %v7375_v2  ;;  %v7423_v2 = vld [vmem:[%s9504_s1 + $0x640] sm:$0xff]  }
  0x95   :  { %6695 = vmatpush3.bf16.msra.mxu1 %v7376_v3  ;;  %6674 = vmatprep.subr.bf16.mxu0 %v7377_v4  ;;  %v413_v3 = vpack.c.bf16 %v155_v1, %v155_v1  ;;  %v7424_v4 = vld [vmem:[%s9504_s1 + $0x6c0] sm:$0xff]  }
  0x96   :  { %6696 = vmatprep.subr.bf16.mxu1 %v7378_v5  ;;  %v7425_v5 = vld [vmem:[%s9504_s1 + $0x600] sm:$0xff]  }
  0x97   :  { %v7473_v1 = vld [vmem:[%s9504_s1 + $0x7e0] sm:$0xff]  }
  0x98   :  { %6675 = vmatpush3.bf16.msra.mxu0 %v7379_v6  ;;  %v410_v6 = vpack.c.bf16 %v146_v56, %v146_v56  ;;  %v7464_v56 = vld [vmem:[%s9504_s1 + $0x750] sm:$0xff]  }
  0x99   :  { %6697 = vmatpush3.bf16.msra.mxu1 %v7380_v7  ;;  %6676 = vmatprep.subr.bf16.mxu0 %v7381_v8  ;;  %v412_v7 = vpack.c.bf16 %v153_v61, %v153_v61  ;;  %v7426_v8 = vld [vmem:[%s9504_s1 + $0x680] sm:$0xff]   ;;  %v7469_v61 = vld [vmem:[%s9504_s1 + $0x7d8] sm:$0xff]  }
  0x9a   :  { %6698 = vmatprep.subr.bf16.mxu1 %v7382_v9  ;;  %v7427_v9 = vld [vmem:[%s9504_s1 + $0x648] sm:$0xff]  }
  0x9c   :  { %6677 = vmatpush3.bf16.msra.mxu0 %v7383_v10  ;;  %v7428_v10 = vld [vmem:[%s9504_s1 + $0x6c8] sm:$0xff]  }
  0x9d   :  { %6699 = vmatpush3.bf16.msra.mxu1 %v7384_v12  ;;  %6678 = vmatprep.subr.bf16.mxu0 %v7385_v15  ;;  %v7430_v12 = vld [vmem:[%s9504_s1 + $0x688] sm:$0xff]   ;;  %v7433_v15 = vld [vmem:[%s9504_s1 + $0x610] sm:$0xff]  }
  0x9e   :  { %6700 = vmatprep.subr.bf16.mxu1 %v7386_v16  ;;  %v7434_v16 = vld [vmem:[%s9504_s1 + $0x690] sm:$0xff]  }
  0xa0   :  { %6679 = vmatpush3.bf16.msra.mxu0 %v7387_v19  ;;  %v7437_v19 = vld [vmem:[%s9504_s1 + $0x618] sm:$0xff]  }
  0xa1   :  { %6701 = vmatpush3.bf16.msra.mxu1 %v7388_v20  ;;  %6708 = vmatprep.subr.bf16.mxu0 %v7390_v23  ;;  %v7438_v20 = vld [vmem:[%s9504_s1 + $0x698] sm:$0xff]   ;;  %v7441_v23 = vld [vmem:[%s9504_s1 + $0x620] sm:$0xff]  }
  0xa2   :  { %6730 = vmatprep.subr.bf16.mxu1 %v7391_v25  ;;  %v7443_v25 = vld [vmem:[%s9504_s1 + $0x668] sm:$0xff]  }
  0xa3   :  { %4910 = vmatmul.mubr.bf16.vlgmr.msra.gmra.mrb[16].mxu0 %v406_v27  ;;  %v7445_v27 = vld [vmem:[%s9504_s1 + $0x628] sm:$0xff]  }
  0xa4   :  { %4950 = vmatmul.mubr.bf16.vlgmr.msra.gmra.mrb[16].mxu1 %v408_v28  ;;  %6709 = vmatpush3.bf16.msra.mxu0 %v7392_v26  ;;  %v7444_v26 = vld [vmem:[%s9504_s1 + $0x6e8] sm:$0xff]  }
  0xa5   :  { %6731 = vmatpush3.bf16.msra.mxu1 %v7393_v29  ;;  %6710 = vmatprep.subr.bf16.mxu0 %v7394_v30  ;;  %v7446_v28 = vld [vmem:[%s9504_s1 + $0x6a8] sm:$0xff]   ;;  %v7447_v29 = vld [vmem:[%s9504_s1 + $0x670] sm:$0xff]  }
  0xa6   :  { %6732 = vmatprep.subr.bf16.mxu1 %v7395_v31  ;;  %4989 = vmatprep.mubr.bf16.mxu0 %v411_v0  ;;  %v7448_v30 = vld [vmem:[%s9504_s1 + $0x6f0] sm:$0xff]   ;;  %v7472_v0 = vld [vmem:[%s9504_s1 + $0x760] sm:$0xff]  }
  0xa7   :  { %5029 = vmatprep.mubr.bf16.mxu1 %v413_v3  ;;  %v7449_v31 = vld [vmem:[%s9504_s1 + $0x630] sm:$0xff]   ;;  %v7475_v3 = vld [vmem:[%s9504_s1 + $0x7a0] sm:$0xff]  }
  0xa8   :  { %6711 = vmatpush3.bf16.msra.mxu0 %v7396_v32  ;;  %v7450_v32 = vld [vmem:[%s9504_s1 + $0x6b0] sm:$0xff]  }
  0xa9   :  { %6733 = vmatpush3.bf16.msra.mxu1 %v7397_v33  ;;  %6712 = vmatprep.subr.bf16.mxu0 %v7398_v34  ;;  %v28_v33 = vld [vmem:[%s9503_s0 + $0x30] sm:$0xff]  ;;  %v7451_v34 = vld [vmem:[%s9504_s1 + $0x678] sm:$0xff]  }
  0xaa   :  { %6734 = vmatprep.subr.bf16.mxu1 %v7399_v35  ;;  %v163_v35 = vrot.slane %v28_v33, %v7924_v41 }
  0xac   :  { %6713 = vmatpush3.bf16.msra.mxu0 %v7400_v36  ;;  %v156_v36 = vcombine.high %v28_v33, %v28_v33 }
  0xad   :  { %6735 = vmatpush3.bf16.msra.mxu1 %v7401_v37  ;;  %6714 = vmatprep.subr.bf16.mxu0 %v7402_v38  ;;  %v7452_v37 = vld [vmem:[%s9504_s1 + $0x6f8] sm:$0xff]  }
  0xae   :  { %6736 = vmatprep.subr.bf16.mxu1 %v7403_v39  ;;  %v7453_v38 = vld [vmem:[%s9504_s1 + $0x638] sm:$0xff]   ;;  %v171_v39 = vcombine.high %v163_v35, %v163_v35 }
  0xb0   :  { %6715 = vmatpush3.bf16.msra.mxu0 %v7404_v40  ;;  %v170_v40 = vrot.slane %v156_v36, %v7924_v41 }
  0xb1   :  { %6737 = vmatpush3.bf16.msra.mxu1 %v7405_v42  ;;  %6716 = vmatprep.subr.bf16.mxu0 %v7406_v43  ;;  %v7454_v42 = vld [vmem:[%s9504_s1 + $0x6b8] sm:$0xff]   ;;  %v415_v43 = vpack.c.bf16 %v171_v39, %v171_v39 }
  0xb2   :  { %6738 = vmatprep.subr.bf16.mxu1 %v7407_v44  ;;  %v172_v44 = vcombine.high %v170_v40, %v170_v40 }
  0xb4   :  { %6717 = vmatpush3.bf16.msra.mxu0 %v7408_v45  ;;  %v7456_v45 = vld [vmem:[%s9504_s1 + $0x740] sm:$0xff]  }
  0xb5   :  { %6739 = vmatpush3.bf16.msra.mxu1 %v7409_v46  ;;  %6718 = vmatprep.subr.bf16.mxu0 %v7410_v47  ;;  %v7457_v46 = vld [vmem:[%s9504_s1 + $0x7c0] sm:$0xff]   ;;  %v417_v47 = vpack.c.bf16 %v172_v44, %v172_v44  ;;  %v7493_v44 = vld [vmem:[%s9504_s1 + $0x848] sm:$0xff]  }
  0xb6   :  { %6740 = vmatprep.subr.bf16.mxu1 %v7411_v48  ;;  %v7458_v48 = vld [vmem:[%s9504_s1 + $0x700] sm:$0xff]  }
  0xb8   :  { %6719 = vmatpush3.bf16.msra.mxu0 %v7412_v49  ;;  %v414_v49 = vpack.c.bf16 %v163_v35, %v163_v35 }
  0xb9   :  { %6741 = vmatpush3.bf16.msra.mxu1 %v7413_v50  ;;  %6720 = vmatprep.subr.bf16.mxu0 %v7414_v51  ;;  %v416_v50 = vpack.c.bf16 %v170_v40, %v170_v40  ;;  %v7459_v51 = vld [vmem:[%s9504_s1 + $0x780] sm:$0xff]  }
  0xba   :  { %6742 = vmatprep.subr.bf16.mxu1 %v7415_v52  ;;  %v7460_v52 = vld [vmem:[%s9504_s1 + $0x748] sm:$0xff]  }
  0xbc   :  { %6721 = vmatpush3.bf16.msra.mxu0 %v7416_v53  ;;  %v7461_v53 = vld [vmem:[%s9504_s1 + $0x7c8] sm:$0xff]  }
  0xbd   :  { %6743 = vmatpush3.bf16.msra.mxu1 %v7417_v55  ;;  %6722 = vmatprep.subr.bf16.mxu0 %v7418_v58  ;;  %v7463_v55 = vld [vmem:[%s9504_s1 + $0x788] sm:$0xff]   ;;  %v7466_v58 = vld [vmem:[%s9504_s1 + $0x710] sm:$0xff]  }
  0xbe   :  { %6744 = vmatprep.subr.bf16.mxu1 %v7419_v59  ;;  %v7467_v59 = vld [vmem:[%s9504_s1 + $0x790] sm:$0xff]  }
  0xc0   :  { %6723 = vmatpush3.bf16.msra.mxu0 %v7420_v62  ;;  %v7470_v62 = vld [vmem:[%s9504_s1 + $0x718] sm:$0xff]  }
  0xc1   :  { %6745 = vmatpush3.bf16.msra.mxu1 %v7421_v63  ;;  %6752 = vmatprep.subr.bf16.mxu0 %v7423_v2  ;;  %v7471_v63 = vld [vmem:[%s9504_s1 + $0x798] sm:$0xff]   ;;  %v7474_v2 = vld [vmem:[%s9504_s1 + $0x720] sm:$0xff]  }
  0xc2   :  { %6774 = vmatprep.subr.bf16.mxu1 %v7424_v4  ;;  %v7476_v4 = vld [vmem:[%s9504_s1 + $0x768] sm:$0xff]  }
  0xc3   :  { %4990 = vmatmul.mubr.bf16.vlgmr.msra.gmra.mrb[20].mxu0 %v410_v6  ;;  %v7478_v6 = vld [vmem:[%s9504_s1 + $0x728] sm:$0xff]  }
  0xc4   :  { %5030 = vmatmul.mubr.bf16.vlgmr.msra.gmra.mrb[20].mxu1 %v412_v7  ;;  %6753 = vmatpush3.bf16.msra.mxu0 %v7425_v5  ;;  %v7477_v5 = vld [vmem:[%s9504_s1 + $0x7e8] sm:$0xff]  }
  0xc5   :  { %6775 = vmatpush3.bf16.msra.mxu1 %v7426_v8  ;;  %6754 = vmatprep.subr.bf16.mxu0 %v7427_v9  ;;  %v7479_v7 = vld [vmem:[%s9504_s1 + $0x7a8] sm:$0xff]   ;;  %v7480_v8 = vld [vmem:[%s9504_s1 + $0x770] sm:$0xff]   ;;  %v5966_v9 = vld [vmem:[%s9505_s2] ss:$0 sm:$0xff] }
  0xc6   :  { %6776 = vmatprep.subr.bf16.mxu1 %v7428_v10  ;;  %5069 = vmatprep.mubr.bf16.mxu0 %v415_v43  ;;  %v7481_v10 = vld [vmem:[%s9504_s1 + $0x7f0] sm:$0xff]   ;;  %v7492_v43 = vld [vmem:[%s9504_s1 + $0x880] sm:$0xff]  }
  0xc7   :  { %5109 = vmatprep.mubr.bf16.mxu1 %v417_v47  ;;  %v7496_v47 = vld [vmem:[%s9504_s1 + $0x888] sm:$0xff]  }
  0xc8   :  { %6755 = vmatpush3.bf16.msra.mxu0 %v7429_v11 }
  0xc9   :  { %6777 = vmatpush3.bf16.msra.mxu1 %v7430_v12  ;;  %6756 = vmatprep.subr.bf16.mxu0 %v7431_v13  ;;  %v7482_v13 = vld [vmem:[%s9504_s1 + $0x730] sm:$0xff]  }
  0xca   :  { %6778 = vmatprep.subr.bf16.mxu1 %v7432_v14  ;;  %v7483_v14 = vld [vmem:[%s9504_s1 + $0x7b0] sm:$0xff]  }
  0xcc   :  { %6757 = vmatpush3.bf16.msra.mxu0 %v7433_v15 }
  0xcd   :  { %6779 = vmatpush3.bf16.msra.mxu1 %v7434_v16  ;;  %6758 = vmatprep.subr.bf16.mxu0 %v7435_v17  ;;  %v7484_v17 = vld [vmem:[%s9504_s1 + $0x778] sm:$0xff]  }
  0xce   :  { %6780 = vmatprep.subr.bf16.mxu1 %v7436_v18 }
  0xd0   :  { %6759 = vmatpush3.bf16.msra.mxu0 %v7437_v19 }
  0xd1   :  { %6781 = vmatpush3.bf16.msra.mxu1 %v7438_v20  ;;  %6760 = vmatprep.subr.bf16.mxu0 %v7439_v21 }
  0xd2   :  { %6782 = vmatprep.subr.bf16.mxu1 %v7440_v22  ;;  %v7485_v22 = vld [vmem:[%s9504_s1 + $0x7f8] sm:$0xff]  }
  0xd4   :  { %6761 = vmatpush3.bf16.msra.mxu0 %v7441_v23  ;;  %v29_v23 = vld [vmem:[%s9503_s0 + $0x38] sm:$0xff] }
  0xd5   :  { %6783 = vmatpush3.bf16.msra.mxu1 %v7442_v24  ;;  %6762 = vmatprep.subr.bf16.mxu0 %v7443_v25 }
  0xd6   :  { %6784 = vmatprep.subr.bf16.mxu1 %v7444_v26  ;;  %v180_v26 = vrot.slane %v29_v23, %v7924_v41 }
  0xd8   :  { %6763 = vmatpush3.bf16.msra.mxu0 %v7445_v27  ;;  %v173_v27 = vcombine.high %v29_v23, %v29_v23  ;;  %v418_v40 = vpack.c.bf16 %v180_v26, %v180_v26 }
  0xd9   :  { %6785 = vmatpush3.bf16.msra.mxu1 %v7446_v28  ;;  %6764 = vmatprep.subr.bf16.mxu0 %v7447_v29  ;;  %v7486_v29 = vld [vmem:[%s9504_s1 + $0x738] sm:$0xff]  }
  0xda   :  { %6786 = vmatprep.subr.bf16.mxu1 %v7448_v30  ;;  %v7487_v30 = vld [vmem:[%s9504_s1 + $0x7b8] sm:$0xff]  }
  0xdc   :  { %6765 = vmatpush3.bf16.msra.mxu0 %v7449_v31  ;;  %v188_v31 = vcombine.high %v180_v26, %v180_v26  ;;  %v7523_v26 = vld [vmem:[%s9504_s1 + $0x9c0] sm:$0xff]  }
  0xdd   :  { %6787 = vmatpush3.bf16.msra.mxu1 %v7450_v32  ;;  %6766 = vmatprep.subr.bf16.mxu0 %v7451_v34  ;;  %v187_v32 = vrot.slane %v173_v27, %v7924_v41  ;;  %v7489_v34 = vld [vmem:[%s9504_s1 + $0x840] sm:$0xff]  }
  0xde   :  { %6788 = vmatprep.subr.bf16.mxu1 %v7452_v37  ;;  %v419_v35 = vpack.c.bf16 %v188_v31, %v188_v31  ;;  %v7490_v37 = vld [vmem:[%s9504_s1 + $0x8c0] sm:$0xff]  }
  0xdf   :  { %v189_v36 = vcombine.high %v187_v32, %v187_v32 }
  0xe0   :  { %6767 = vmatpush3.bf16.msra.mxu0 %v7453_v38  ;;  %v7491_v38 = vld [vmem:[%s9504_s1 + $0x800] sm:$0xff]  }
  0xe1   :  { %6789 = vmatpush3.bf16.msra.mxu1 %v7454_v42  ;;  %6796 = vmatprep.subr.bf16.mxu0 %v7456_v45  ;;  %v421_v39 = vpack.c.bf16 %v189_v36, %v189_v36  ;;  %v420_v42 = vpack.c.bf16 %v187_v32, %v187_v32  ;;  %v7494_v45 = vld [vmem:[%s9504_s1 + $0x8c8] sm:$0xff]   ;;  %v7525_v32 = vld [vmem:[%s9504_s1 + $0x980] sm:$0xff]  }
  0xe2   :  { %6818 = vmatprep.subr.bf16.mxu1 %v7457_v46  ;;  %v7495_v46 = vld [vmem:[%s9504_s1 + $0x808] sm:$0xff]  }
  0xe3   :  { %5070 = vmatmul.mubr.bf16.vlgmr.msra.gmra.mrb[24].mxu0 %v414_v49  ;;  %v7498_v49 = vld [vmem:[%s9504_s1 + $0x8d0] sm:$0xff]   ;;  %v7528_v36 = vld [vmem:[%s9504_s1 + $0x908] sm:$0xff]  }
  0xe4   :  { %5110 = vmatmul.mubr.bf16.vlgmr.msra.gmra.mrb[24].mxu1 %v416_v50  ;;  %6797 = vmatpush3.bf16.msra.mxu0 %v7458_v48  ;;  %v7497_v48 = vld [vmem:[%s9504_s1 + $0x850] sm:$0xff]  }
  0xe5   :  { %6819 = vmatpush3.bf16.msra.mxu1 %v7459_v51  ;;  %6798 = vmatprep.subr.bf16.mxu0 %v7460_v52  ;;  %v7499_v50 = vld [vmem:[%s9504_s1 + $0x810] sm:$0xff]   ;;  %v7501_v52 = vld [vmem:[%s9504_s1 + $0x858] sm:$0xff]  }
  0xe6   :  { %6820 = vmatprep.subr.bf16.mxu1 %v7461_v53  ;;  %5149 = vmatprep.mubr.bf16.mxu0 %v419_v35  ;;  %v7500_v51 = vld [vmem:[%s9504_s1 + $0x890] sm:$0xff]   ;;  %v7502_v53 = vld [vmem:[%s9504_s1 + $0x8d8] sm:$0xff]   ;;  %v7527_v35 = vld [vmem:[%s9504_s1 + $0x9c8] sm:$0xff]  }
  0xe7   :  { %5189 = vmatprep.mubr.bf16.mxu1 %v421_v39  ;;  %v7531_v39 = vld [vmem:[%s9504_s1 + $0x9d0] sm:$0xff]  }
  0xe8   :  { %6799 = vmatpush3.bf16.msra.mxu0 %v7462_v54  ;;  %v7503_v54 = vld [vmem:[%s9504_s1 + $0x818] sm:$0xff]  }
  0xe9   :  { %6821 = vmatpush3.bf16.msra.mxu1 %v7463_v55  ;;  %6800 = vmatprep.subr.bf16.mxu0 %v7464_v56  ;;  %v7504_v55 = vld [vmem:[%s9504_s1 + $0x898] sm:$0xff]   ;;  %v7505_v56 = vld [vmem:[%s9504_s1 + $0x860] sm:$0xff]  }
  0xea   :  { %6822 = vmatprep.subr.bf16.mxu1 %v7465_v57  ;;  %v7506_v57 = vld [vmem:[%s9504_s1 + $0x8e0] sm:$0xff]  }
  0xec   :  { %6801 = vmatpush3.bf16.msra.mxu0 %v7466_v58  ;;  %v7507_v58 = vld [vmem:[%s9504_s1 + $0x820] sm:$0xff]  }
  0xed   :  { %6823 = vmatpush3.bf16.msra.mxu1 %v7467_v59  ;;  %6802 = vmatprep.subr.bf16.mxu0 %v7468_v60  ;;  %v7508_v59 = vld [vmem:[%s9504_s1 + $0x8a0] sm:$0xff]   ;;  %v7509_v60 = vld [vmem:[%s9504_s1 + $0x868] sm:$0xff]  }
  0xee   :  { %6824 = vmatprep.subr.bf16.mxu1 %v7469_v61  ;;  %v7510_v61 = vld [vmem:[%s9504_s1 + $0x8e8] sm:$0xff]  }
  0xf0   :  { %6803 = vmatpush3.bf16.msra.mxu0 %v7470_v62  ;;  %v7511_v62 = vld [vmem:[%s9504_s1 + $0x828] sm:$0xff]  }
  0xf1   :  { %6825 = vmatpush3.bf16.msra.mxu1 %v7471_v63  ;;  %6804 = vmatprep.subr.bf16.mxu0 %v7472_v0  ;;  %v7512_v63 = vld [vmem:[%s9504_s1 + $0x8a8] sm:$0xff]   ;;  %v7513_v0 = vld [vmem:[%s9504_s1 + $0x870] sm:$0xff]  }
  0xf2   :  { %6826 = vmatprep.subr.bf16.mxu1 %v7473_v1  ;;  %v7514_v1 = vld [vmem:[%s9504_s1 + $0x8f0] sm:$0xff]  }
  0xf4   :  { %6805 = vmatpush3.bf16.msra.mxu0 %v7474_v2 }
  0xf5   :  { %6827 = vmatpush3.bf16.msra.mxu1 %v7475_v3  ;;  %6806 = vmatprep.subr.bf16.mxu0 %v7476_v4  ;;  %v7515_v4 = vld [vmem:[%s9504_s1 + $0x830] sm:$0xff]  }
  0xf6   :  { %6828 = vmatprep.subr.bf16.mxu1 %v7477_v5  ;;  %v6504_v11 = vpop.f32.mrb[0].mxu0  ;;  %v7516_v5 = vld [vmem:[%s9504_s1 + $0x8b0] sm:$0xff]  }
  0xf7   :  { %v6526_v12 = vpop.f32.mrb[0].mxu1  ;;  %v6505_v15 = vpop.f32.mrb[1].mxu0 }
  0xf8   :  { %v6527_v16 = vpop.f32.mrb[1].mxu1  ;;  %v6506_v18 = vadd.f32 %v6505_v15, %v6504_v11  ;;  %v6507_v20 = vpop.f32.mrb[2].mxu0  ;;  %6807 = vmatpush3.bf16.msra.mxu0 %v7478_v6  ;;  %v7518_v15 = vld [vmem:[%s9504_s1 + $0x8f8] sm:$0xff]  }
  0xf9   :  { %v6528_v19 = vadd.f32 %v6527_v16, %v6526_v12  ;;  %v6529_v21 = vpop.f32.mrb[2].mxu1  ;;  %6829 = vmatpush3.bf16.msra.mxu1 %v7479_v7  ;;  %v6508_v24 = vpop.f32.mrb[3].mxu0  ;;  %6808 = vmatprep.subr.bf16.mxu0 %v7480_v8  ;;  %v7517_v8 = vld [vmem:[%s9504_s1 + $0x878] sm:$0xff]   ;;  %v30_v16 = vld [vmem:[%s9503_s0 + $0x40] sm:$0xff] }
  0xfa   :  { %v6530_v25 = vpop.f32.mrb[3].mxu1  ;;  %6830 = vmatprep.subr.bf16.mxu1 %v7481_v10  ;;  %v4592_v28 = vadd.f32 %v6506_v18, %v5966_v9  ;;  %v7519_v18 = vld [vmem:[%s9504_s1 + $0x838] sm:$0xff]   ;;  %v190_v20 = vcombine.high %v30_v16, %v30_v16 }
  0xfb   :  { %v7520_v21 = vld [vmem:[%s9504_s1 + $0x8b8] sm:$0xff]   ;;  %v7522_v25 = vld [vmem:[%s9504_s1 + $0x940] sm:$0xff]  }
  0xfc   :  { %v8632_v33 = vadd.f32 %v6528_v19, %v4592_v28  ;;  %6809 = vmatpush3.bf16.msra.mxu0 %v7482_v13  ;;  %v197_v19 = vrot.slane %v30_v16, %v7924_v41  ;;  %v204_v24 = vrot.slane %v190_v20, %v7924_v41  ;;  %v7555_v16 = vld [vmem:[%s9504_s1 + $0xa40] sm:$0xff]  }
  0xfd   :  { %6831 = vmatpush3.bf16.msra.mxu1 %v7483_v14  ;;  %6810 = vmatprep.subr.bf16.mxu0 %v7484_v17 }
  0xfe   :  { %6832 = vmatprep.subr.bf16.mxu1 %v7485_v22  ;;  %v205_v23 = vcombine.high %v197_v19, %v197_v19  ;;  %v206_v28 = vcombine.high %v204_v24, %v204_v24  ;;  %v424_v31 = vpack.c.bf16 %v204_v24, %v204_v24 }
 0x100   :  { %6811 = vmatpush3.bf16.msra.mxu0 %v7486_v29  ;;  %v423_v27 = vpack.c.bf16 %v205_v23, %v205_v23  ;;  %v7524_v29 = vld [vmem:[%s9504_s1 + $0x900] sm:$0xff]  }
 0x101   :  { %6833 = vmatpush3.bf16.msra.mxu1 %v7487_v30  ;;  %6840 = vmatprep.subr.bf16.mxu0 %v7489_v34  ;;  %v422_v30 = vpack.c.bf16 %v197_v19, %v197_v19  ;;  %v7526_v34 = vld [vmem:[%s9504_s1 + $0x948] sm:$0xff]   ;;  %v7558_v23 = vld [vmem:[%s9504_s1 + $0xa80] sm:$0xff]  }
 0x102   :  { %6862 = vmatprep.subr.bf16.mxu1 %v7490_v37  ;;  %v7529_v37 = vld [vmem:[%s9504_s1 + $0x988] sm:$0xff]  }
 0x103   :  { %5150 = vmatmul.mubr.bf16.vlgmr.msra.gmra.mrb[28].mxu0 %v418_v40  ;;  %v7532_v40 = vld [vmem:[%s9504_s1 + $0x910] sm:$0xff]  }
 0x104   :  { %5190 = vmatmul.mubr.bf16.vlgmr.msra.gmra.mrb[28].mxu1 %v420_v42  ;;  %6841 = vmatpush3.bf16.msra.mxu0 %v7491_v38  ;;  %v7530_v38 = vld [vmem:[%s9504_s1 + $0x950] sm:$0xff]  }
 0x105   :  { %6863 = vmatpush3.bf16.msra.mxu1 %v7492_v43  ;;  %6842 = vmatprep.subr.bf16.mxu0 %v7493_v44  ;;  %v7533_v42 = vld [vmem:[%s9504_s1 + $0x990] sm:$0xff]   ;;  %v7534_v43 = vld [vmem:[%s9504_s1 + $0x958] sm:$0xff]  }
 0x106   :  { %6864 = vmatprep.subr.bf16.mxu1 %v7494_v45  ;;  %5229 = vmatprep.mubr.bf16.mxu0 %v423_v27  ;;  %v7535_v44 = vld [vmem:[%s9504_s1 + $0x9d8] sm:$0xff]   ;;  %v7561_v27 = vld [vmem:[%s9504_s1 + $0xa08] sm:$0xff]  }
 0x107   :  { %v7536_v45 = vld [vmem:[%s9504_s1 + $0x918] sm:$0xff]  }
 0x108   :  { %6843 = vmatpush3.bf16.msra.mxu0 %v7495_v46  ;;  %v7537_v46 = vld [vmem:[%s9504_s1 + $0x998] sm:$0xff]  }
 0x109   :  { %6865 = vmatpush3.bf16.msra.mxu1 %v7496_v47  ;;  %6844 = vmatprep.subr.bf16.mxu0 %v7497_v48  ;;  %v7538_v47 = vld [vmem:[%s9504_s1 + $0x960] sm:$0xff]  }
 0x10a   :  { %6866 = vmatprep.subr.bf16.mxu1 %v7498_v49  ;;  %v7539_v48 = vld [vmem:[%s9504_s1 + $0x9e0] sm:$0xff]  }
 0x10b   :  { %v7540_v49 = vld [vmem:[%s9504_s1 + $0x920] sm:$0xff]  }
 0x10c   :  { %6845 = vmatpush3.bf16.msra.mxu0 %v7499_v50  ;;  %v7541_v50 = vld [vmem:[%s9504_s1 + $0x9a0] sm:$0xff]  }
 0x10d   :  { %6867 = vmatpush3.bf16.msra.mxu1 %v7500_v51  ;;  %6846 = vmatprep.subr.bf16.mxu0 %v7501_v52  ;;  %v7542_v51 = vld [vmem:[%s9504_s1 + $0x968] sm:$0xff]  }
 0x10e   :  { %6868 = vmatprep.subr.bf16.mxu1 %v7502_v53  ;;  %v7543_v52 = vld [vmem:[%s9504_s1 + $0x9e8] sm:$0xff]  }
 0x10f   :  { %v7544_v53 = vld [vmem:[%s9504_s1 + $0x928] sm:$0xff]  }
 0x110   :  { %6847 = vmatpush3.bf16.msra.mxu0 %v7503_v54  ;;  %v7545_v54 = vld [vmem:[%s9504_s1 + $0x9a8] sm:$0xff]  }
 0x111   :  { %6869 = vmatpush3.bf16.msra.mxu1 %v7504_v55  ;;  %6848 = vmatprep.subr.bf16.mxu0 %v7505_v56  ;;  %v7546_v55 = vld [vmem:[%s9504_s1 + $0x970] sm:$0xff]  }
 0x112   :  { %6870 = vmatprep.subr.bf16.mxu1 %v7506_v57  ;;  %v7547_v56 = vld [vmem:[%s9504_s1 + $0x9f0] sm:$0xff]  }
 0x114   :  { %6849 = vmatpush3.bf16.msra.mxu0 %v7507_v58 }
 0x115   :  { %6871 = vmatpush3.bf16.msra.mxu1 %v7508_v59  ;;  %6850 = vmatprep.subr.bf16.mxu0 %v7509_v60  ;;  %v7548_v59 = vld [vmem:[%s9504_s1 + $0x930] sm:$0xff]  }
 0x116   :  { %6872 = vmatprep.subr.bf16.mxu1 %v7510_v61  ;;  %v6548_v2 = vpop.f32.mrb[4].mxu0  ;;  %v7549_v60 = vld [vmem:[%s9504_s1 + $0x9b0] sm:$0xff]  }
 0x117   :  { %v6570_v3 = vpop.f32.mrb[4].mxu1  ;;  %v6549_v6 = vpop.f32.mrb[5].mxu0 }
 0x118   :  { %v6571_v7 = vpop.f32.mrb[5].mxu1  ;;  %v6550_v9 = vadd.f32 %v6549_v6, %v6548_v2  ;;  %v6551_v11 = vpop.f32.mrb[6].mxu0  ;;  %6851 = vmatpush3.bf16.msra.mxu0 %v7511_v62  ;;  %v7551_v6 = vld [vmem:[%s9504_s1 + $0x9f8] sm:$0xff]  }
 0x119   :  { %v6572_v10 = vadd.f32 %v6571_v7, %v6570_v3  ;;  %v6573_v12 = vpop.f32.mrb[6].mxu1  ;;  %6873 = vmatpush3.bf16.msra.mxu1 %v7512_v63  ;;  %v6552_v13 = vpop.f32.mrb[7].mxu0  ;;  %6852 = vmatprep.subr.bf16.mxu0 %v7513_v0 }
 0x11a   :  { %v6574_v14 = vpop.f32.mrb[7].mxu1  ;;  %6874 = vmatprep.subr.bf16.mxu1 %v7514_v1  ;;  %v4672_v17 = vadd.f32 %v6550_v9, %v8632_v33  ;;  %v425_v33 = vpack.c.bf16 %v206_v28, %v206_v28  ;;  %v7552_v9 = vld [vmem:[%s9504_s1 + $0x938] sm:$0xff]   ;;  %v7562_v28 = vld [vmem:[%s9504_s1 + $0xa88] sm:$0xff]  }
 0x11b   :  { %v7553_v13 = vld [vmem:[%s9504_s1 + $0x9b8] sm:$0xff]  }
 0x11c   :  { %v8735_v22 = vadd.f32 %v6572_v10, %v4672_v17  ;;  %6853 = vmatpush3.bf16.msra.mxu0 %v7515_v4  ;;  %5269 = vmatprep.mubr.bf16.mxu1 %v425_v33  ;;  %v7556_v17 = vld [vmem:[%s9504_s1 + $0xac0] sm:$0xff]   ;;  %v7567_v33 = vld [vmem:[%s9504_s1 + $0xa58] sm:$0xff]  }
 0x11d   :  { %6875 = vmatpush3.bf16.msra.mxu1 %v7516_v5  ;;  %6854 = vmatprep.subr.bf16.mxu0 %v7517_v8  ;;  %v7550_v5 = vld [vmem:[%s9504_s1 + $0x978] sm:$0xff]   ;;  %v31_v8 = vld [vmem:[%s9503_s0 + $0x48] sm:$0xff] }
 0x11e   :  { %6876 = vmatprep.subr.bf16.mxu1 %v7518_v15  ;;  %v214_v10 = vrot.slane %v31_v8, %v7924_v41  ;;  %v207_v11 = vcombine.high %v31_v8, %v31_v8  ;;  %v7589_v8 = vld [vmem:[%s9504_s1 + $0xbc0] sm:$0xff]  }
 0x120   :  { %6855 = vmatpush3.bf16.msra.mxu0 %v7519_v18  ;;  %v222_v14 = vcombine.high %v214_v10, %v214_v10  ;;  %v221_v15 = vrot.slane %v207_v11, %v7924_v41  ;;  %v426_v20 = vpack.c.bf16 %v214_v10, %v214_v10  ;;  %v7590_v10 = vld [vmem:[%s9504_s1 + $0xb00] sm:$0xff]  }
 0x121   :  { %6877 = vmatpush3.bf16.msra.mxu1 %v7520_v21  ;;  %6884 = vmatprep.subr.bf16.mxu0 %v7522_v25  ;;  %v7557_v21 = vld [vmem:[%s9504_s1 + $0xa00] sm:$0xff]   ;;  %v7559_v25 = vld [vmem:[%s9504_s1 + $0xa48] sm:$0xff]  }
 0x122   :  { %6906 = vmatprep.subr.bf16.mxu1 %v7523_v26  ;;  %v427_v18 = vpack.c.bf16 %v222_v14, %v222_v14  ;;  %v223_v19 = vcombine.high %v221_v15, %v221_v15  ;;  %v7560_v26 = vld [vmem:[%s9504_s1 + $0xac8] sm:$0xff]  }
 0x123   :  { %5230 = vmatmul.mubr.bf16.vlgmr.msra.gmra.mrb[32].mxu0 %v422_v30  ;;  %v7564_v30 = vld [vmem:[%s9504_s1 + $0xad0] sm:$0xff]  }
 0x124   :  { %5270 = vmatmul.mubr.bf16.vlgmr.msra.gmra.mrb[32].mxu1 %v424_v31  ;;  %6885 = vmatpush3.bf16.msra.mxu0 %v7524_v29  ;;  %v429_v24 = vpack.c.bf16 %v223_v19, %v223_v19  ;;  %v7563_v29 = vld [vmem:[%s9504_s1 + $0xa50] sm:$0xff]   ;;  %v7595_v19 = vld [vmem:[%s9504_s1 + $0xb88] sm:$0xff]  }
 0x125   :  { %6907 = vmatpush3.bf16.msra.mxu1 %v7525_v32  ;;  %6886 = vmatprep.subr.bf16.mxu0 %v7526_v34  ;;  %v7565_v31 = vld [vmem:[%s9504_s1 + $0xa10] sm:$0xff]   ;;  %v7568_v34 = vld [vmem:[%s9504_s1 + $0xad8] sm:$0xff]  }
 0x126   :  { %6908 = vmatprep.subr.bf16.mxu1 %v7527_v35  ;;  %5309 = vmatprep.mubr.bf16.mxu0 %v427_v18  ;;  %v7566_v32 = vld [vmem:[%s9504_s1 + $0xa90] sm:$0xff]   ;;  %v7569_v35 = vld [vmem:[%s9504_s1 + $0xa18] sm:$0xff]   ;;  %v7594_v18 = vld [vmem:[%s9504_s1 + $0xb08] sm:$0xff]  }
 0x127   :  { %5349 = vmatprep.mubr.bf16.mxu1 %v429_v24  ;;  %v7600_v24 = vld [vmem:[%s9504_s1 + $0xb58] sm:$0xff]  }
 0x128   :  { %6887 = vmatpush3.bf16.msra.mxu0 %v7528_v36  ;;  %v7570_v36 = vld [vmem:[%s9504_s1 + $0xa98] sm:$0xff]  }
 0x129   :  { %6909 = vmatpush3.bf16.msra.mxu1 %v7529_v37  ;;  %6888 = vmatprep.subr.bf16.mxu0 %v7530_v38  ;;  %v7571_v37 = vld [vmem:[%s9504_s1 + $0xa60] sm:$0xff]  }
 0x12a   :  { %6910 = vmatprep.subr.bf16.mxu1 %v7531_v39  ;;  %v7572_v38 = vld [vmem:[%s9504_s1 + $0xae0] sm:$0xff]  }
 0x12b   :  { %v7573_v39 = vld [vmem:[%s9504_s1 + $0xa20] sm:$0xff]  }
 0x12c   :  { %6889 = vmatpush3.bf16.msra.mxu0 %v7532_v40  ;;  %v7574_v40 = vld [vmem:[%s9504_s1 + $0xaa0] sm:$0xff]  }
 0x12d   :  { %6911 = vmatpush3.bf16.msra.mxu1 %v7533_v42  ;;  %6890 = vmatprep.subr.bf16.mxu0 %v7534_v43  ;;  %v7575_v42 = vld [vmem:[%s9504_s1 + $0xa68] sm:$0xff]  }
 0x12e   :  { %6912 = vmatprep.subr.bf16.mxu1 %v7535_v44  ;;  %v7576_v43 = vld [vmem:[%s9504_s1 + $0xae8] sm:$0xff]  }
 0x12f   :  { %v7577_v44 = vld [vmem:[%s9504_s1 + $0xa28] sm:$0xff]  }
 0x130   :  { %6891 = vmatpush3.bf16.msra.mxu0 %v7536_v45  ;;  %v7578_v45 = vld [vmem:[%s9504_s1 + $0xaa8] sm:$0xff]  }
 0x131   :  { %6913 = vmatpush3.bf16.msra.mxu1 %v7537_v46  ;;  %6892 = vmatprep.subr.bf16.mxu0 %v7538_v47  ;;  %v7579_v46 = vld [vmem:[%s9504_s1 + $0xa70] sm:$0xff]  }
 0x132   :  { %6914 = vmatprep.subr.bf16.mxu1 %v7539_v48 }
 0x134   :  { %6893 = vmatpush3.bf16.msra.mxu0 %v7540_v49  ;;  %v7580_v49 = vld [vmem:[%s9504_s1 + $0xaf0] sm:$0xff]  }
 0x135   :  { %6915 = vmatpush3.bf16.msra.mxu1 %v7541_v50  ;;  %6894 = vmatprep.subr.bf16.mxu0 %v7542_v51  ;;  %v7581_v50 = vld [vmem:[%s9504_s1 + $0xa30] sm:$0xff]  }
 0x136   :  { %6916 = vmatprep.subr.bf16.mxu1 %v7543_v52  ;;  %v6592_v57 = vpop.f32.mrb[8].mxu0 }
 0x137   :  { %v6614_v58 = vpop.f32.mrb[8].mxu1  ;;  %v6593_v61 = vpop.f32.mrb[9].mxu0 }
 0x138   :  { %v6615_v62 = vpop.f32.mrb[9].mxu1  ;;  %v6594_v63 = vadd.f32 %v6593_v61, %v6592_v57  ;;  %v6595_v1 = vpop.f32.mrb[10].mxu0  ;;  %6895 = vmatpush3.bf16.msra.mxu0 %v7544_v53  ;;  %v7582_v53 = vld [vmem:[%s9504_s1 + $0xab0] sm:$0xff]   ;;  %v7584_v61 = vld [vmem:[%s9504_s1 + $0xaf8] sm:$0xff]  }
 0x139   :  { %v6616_v0 = vadd.f32 %v6615_v62, %v6614_v58  ;;  %v6617_v2 = vpop.f32.mrb[10].mxu1  ;;  %6917 = vmatpush3.bf16.msra.mxu1 %v7545_v54  ;;  %v6596_v3 = vpop.f32.mrb[11].mxu0  ;;  %6896 = vmatprep.subr.bf16.mxu0 %v7546_v55 }
 0x13a   :  { %v6618_v4 = vpop.f32.mrb[11].mxu1  ;;  %6918 = vmatprep.subr.bf16.mxu1 %v7547_v56  ;;  %v4752_v7 = vadd.f32 %v6594_v63, %v8735_v22  ;;  %v428_v22 = vpack.c.bf16 %v221_v15, %v221_v15  ;;  %v7585_v63 = vld [vmem:[%s9504_s1 + $0xa38] sm:$0xff]   ;;  %v7592_v15 = vld [vmem:[%s9504_s1 + $0xb48] sm:$0xff]  }
 0x13b   :  { %v7586_v2 = vld [vmem:[%s9504_s1 + $0xab8] sm:$0xff]  }
 0x13c   :  { %v8836_v12 = vadd.f32 %v6616_v0, %v4752_v7  ;;  %6897 = vmatpush3.bf16.msra.mxu0 %v7548_v59  ;;  %v32_v0 = vld [vmem:[%s9503_s0 + $0x50] sm:$0xff] }
 0x13d   :  { %6919 = vmatpush3.bf16.msra.mxu1 %v7549_v60  ;;  %6898 = vmatprep.subr.bf16.mxu0 %v7550_v5  ;;  %v7583_v60 = vld [vmem:[%s9504_s1 + $0xa78] sm:$0xff]   ;;  %v231_v3 = vrot.slane %v32_v0, %v7924_v41  ;;  %v224_v4 = vcombine.high %v32_v0, %v32_v0  ;;  %v7588_v5 = vld [vmem:[%s9504_s1 + $0xb40] sm:$0xff]  }
 0x13e   :  { %6920 = vmatprep.subr.bf16.mxu1 %v7551_v6 }
 0x13f   :  { %v239_v6 = vcombine.high %v231_v3, %v231_v3  ;;  %v238_v7 = vrot.slane %v224_v4, %v7924_v41  ;;  %v7624_v4 = vld [vmem:[%s9504_s1 + $0xc80] sm:$0xff]  }
 0x140   :  { %6899 = vmatpush3.bf16.msra.mxu0 %v7552_v9  ;;  %v430_v9 = vpack.c.bf16 %v231_v3, %v231_v3 }
 0x141   :  { %6921 = vmatpush3.bf16.msra.mxu1 %v7553_v13  ;;  %6928 = vmatprep.subr.bf16.mxu0 %v7555_v16  ;;  %v431_v11 = vpack.c.bf16 %v239_v6, %v239_v6  ;;  %v7591_v13 = vld [vmem:[%s9504_s1 + $0xb80] sm:$0xff]   ;;  %v432_v14 = vpack.c.bf16 %v238_v7, %v238_v7  ;;  %v7625_v6 = vld [vmem:[%s9504_s1 + $0xc48] sm:$0xff]  }
 0x142   :  { %6950 = vmatprep.subr.bf16.mxu1 %v7556_v17  ;;  %v7593_v17 = vld [vmem:[%s9504_s1 + $0xbc8] sm:$0xff]  }
 0x143   :  { %5310 = vmatmul.mubr.bf16.vlgmr.msra.gmra.mrb[36].mxu0 %v426_v20  ;;  %v7596_v20 = vld [vmem:[%s9504_s1 + $0xb50] sm:$0xff]  }
 0x144   :  { %5350 = vmatmul.mubr.bf16.vlgmr.msra.gmra.mrb[36].mxu1 %v428_v22  ;;  %6929 = vmatpush3.bf16.msra.mxu0 %v7557_v21  ;;  %v7597_v21 = vld [vmem:[%s9504_s1 + $0xbd0] sm:$0xff]  }
 0x145   :  { %6951 = vmatpush3.bf16.msra.mxu1 %v7558_v23  ;;  %6930 = vmatprep.subr.bf16.mxu0 %v7559_v25  ;;  %v7598_v22 = vld [vmem:[%s9504_s1 + $0xb10] sm:$0xff]   ;;  %v7601_v25 = vld [vmem:[%s9504_s1 + $0xbd8] sm:$0xff]  }
 0x146   :  { %6952 = vmatprep.subr.bf16.mxu1 %v7560_v26  ;;  %5389 = vmatprep.mubr.bf16.mxu0 %v431_v11  ;;  %v7599_v23 = vld [vmem:[%s9504_s1 + $0xb90] sm:$0xff]   ;;  %v7602_v26 = vld [vmem:[%s9504_s1 + $0xb18] sm:$0xff]  }
 0x147   :  { %v7629_v11 = vld [vmem:[%s9504_s1 + $0xc50] sm:$0xff]  }
 0x148   :  { %6931 = vmatpush3.bf16.msra.mxu0 %v7561_v27  ;;  %v7603_v27 = vld [vmem:[%s9504_s1 + $0xb98] sm:$0xff]  }
 0x149   :  { %6953 = vmatpush3.bf16.msra.mxu1 %v7562_v28  ;;  %6932 = vmatprep.subr.bf16.mxu0 %v7563_v29  ;;  %v7604_v28 = vld [vmem:[%s9504_s1 + $0xb60] sm:$0xff]  }
 0x14a   :  { %6954 = vmatprep.subr.bf16.mxu1 %v7564_v30  ;;  %v7605_v29 = vld [vmem:[%s9504_s1 + $0xbe0] sm:$0xff]  }
 0x14b   :  { %v7606_v30 = vld [vmem:[%s9504_s1 + $0xb20] sm:$0xff]  }
 0x14c   :  { %6933 = vmatpush3.bf16.msra.mxu0 %v7565_v31  ;;  %v7607_v31 = vld [vmem:[%s9504_s1 + $0xba0] sm:$0xff]  }
 0x14d   :  { %6955 = vmatpush3.bf16.msra.mxu1 %v7566_v32  ;;  %6934 = vmatprep.subr.bf16.mxu0 %v7567_v33  ;;  %v7608_v32 = vld [vmem:[%s9504_s1 + $0xb68] sm:$0xff]  }
 0x14e   :  { %6956 = vmatprep.subr.bf16.mxu1 %v7568_v34  ;;  %v7609_v33 = vld [vmem:[%s9504_s1 + $0xbe8] sm:$0xff]  }
 0x14f   :  { %v7610_v34 = vld [vmem:[%s9504_s1 + $0xb28] sm:$0xff]  }
 0x150   :  { %6935 = vmatpush3.bf16.msra.mxu0 %v7569_v35  ;;  %v7611_v35 = vld [vmem:[%s9504_s1 + $0xba8] sm:$0xff]  }
 0x151   :  { %6957 = vmatpush3.bf16.msra.mxu1 %v7570_v36  ;;  %6936 = vmatprep.subr.bf16.mxu0 %v7571_v37  ;;  %v7612_v36 = vld [vmem:[%s9504_s1 + $0xb70] sm:$0xff]  }
 0x152   :  { %6958 = vmatprep.subr.bf16.mxu1 %v7572_v38 }
 0x154   :  { %6937 = vmatpush3.bf16.msra.mxu0 %v7573_v39  ;;  %v7613_v39 = vld [vmem:[%s9504_s1 + $0xbf0] sm:$0xff]  }
 0x155   :  { %6959 = vmatpush3.bf16.msra.mxu1 %v7574_v40  ;;  %6938 = vmatprep.subr.bf16.mxu0 %v7575_v42  ;;  %v7614_v40 = vld [vmem:[%s9504_s1 + $0xb30] sm:$0xff]  }
 0x156   :  { %v6636_v47 = vpop.f32.mrb[12].mxu0  ;;  %6960 = vmatprep.subr.bf16.mxu1 %v7576_v43 }
 0x157   :  { %v6658_v48 = vpop.f32.mrb[12].mxu1  ;;  %v6637_v51 = vpop.f32.mrb[13].mxu0 }
 0x158   :  { %v6659_v52 = vpop.f32.mrb[13].mxu1  ;;  %v6638_v54 = vadd.f32 %v6637_v51, %v6636_v47  ;;  %v6639_v56 = vpop.f32.mrb[14].mxu0  ;;  %6939 = vmatpush3.bf16.msra.mxu0 %v7577_v44  ;;  %v7616_v51 = vld [vmem:[%s9504_s1 + $0xb78] sm:$0xff]  }
 0x159   :  { %v6660_v55 = vadd.f32 %v6659_v52, %v6658_v48  ;;  %v6661_v57 = vpop.f32.mrb[14].mxu1  ;;  %6961 = vmatpush3.bf16.msra.mxu1 %v7578_v45  ;;  %v6640_v58 = vpop.f32.mrb[15].mxu0  ;;  %6940 = vmatprep.subr.bf16.mxu0 %v7579_v46  ;;  %v33_v56 = vld [vmem:[%s9503_s0 + $0x58] sm:$0xff] }
 0x15a   :  { %v6662_v59 = vpop.f32.mrb[15].mxu1  ;;  %v4832_v62 = vadd.f32 %v6638_v54, %v8836_v12  ;;  %6962 = vmatprep.subr.bf16.mxu1 %v7580_v49  ;;  %v240_v12 = vcombine.high %v238_v7, %v238_v7  ;;  %v248_v57 = vrot.slane %v33_v56, %v7924_v41  ;;  %v241_v58 = vcombine.high %v33_v56, %v33_v56  ;;  %v7656_v56 = vld [vmem:[%s9504_s1 + $0xd00] sm:$0xff]  }
 0x15b   :  { %v7621_v59 = vld [vmem:[%s9504_s1 + $0xc40] sm:$0xff]  }
 0x15c   :  { %v8939_v1 = vadd.f32 %v6660_v55, %v4832_v62  ;;  %6941 = vmatpush3.bf16.msra.mxu0 %v7581_v50  ;;  %v433_v16 = vpack.c.bf16 %v240_v12, %v240_v12  ;;  %v7615_v50 = vld [vmem:[%s9504_s1 + $0xbb0] sm:$0xff]   ;;  %v7618_v55 = vld [vmem:[%s9504_s1 + $0xb38] sm:$0xff]   ;;  %v255_v62 = vrot.slane %v241_v58, %v7924_v41  ;;  %v434_v0 = vpack.c.bf16 %v248_v57, %v248_v57 }
 0x15d   :  { %6963 = vmatpush3.bf16.msra.mxu1 %v7582_v53  ;;  %6942 = vmatprep.subr.bf16.mxu0 %v7583_v60  ;;  %v7617_v53 = vld [vmem:[%s9504_s1 + $0xbf8] sm:$0xff]   ;;  %v7630_v12 = vld [vmem:[%s9504_s1 + $0xcd0] sm:$0xff]  }
 0x15e   :  { %6964 = vmatprep.subr.bf16.mxu1 %v7584_v61  ;;  %5429 = vmatprep.mubr.bf16.mxu1 %v433_v16  ;;  %v7619_v60 = vld [vmem:[%s9504_s1 + $0xbb8] sm:$0xff]   ;;  %v256_v61 = vcombine.high %v248_v57, %v248_v57  ;;  %v257_v3 = vcombine.high %v255_v62, %v255_v62 }
 0x15f   :  { %v7634_v16 = vld [vmem:[%s9504_s1 + $0xcd8] sm:$0xff]  }
 0x160   :  { %6943 = vmatpush3.bf16.msra.mxu0 %v7585_v63  ;;  %v7622_v63 = vld [vmem:[%s9504_s1 + $0xcc0] sm:$0xff]   ;;  %v437_v7 = vpack.c.bf16 %v257_v3, %v257_v3  ;;  %v7663_v3 = vld [vmem:[%s9504_s1 + $0xdd0] sm:$0xff]  }
 0x161   :  { %6965 = vmatpush3.bf16.msra.mxu1 %v7586_v2  ;;  %6972 = vmatprep.subr.bf16.mxu0 %v7588_v5  ;;  %v435_v2 = vpack.c.bf16 %v256_v61, %v256_v61  ;;  %v436_v5 = vpack.c.bf16 %v255_v62, %v255_v62  ;;  %v7658_v61 = vld [vmem:[%s9504_s1 + $0xd48] sm:$0xff]  }
 0x162   :  { %6994 = vmatprep.subr.bf16.mxu1 %v7589_v8  ;;  %v7626_v8 = vld [vmem:[%s9504_s1 + $0xcc8] sm:$0xff]  }
 0x163   :  { %5390 = vmatmul.mubr.bf16.vlgmr.msra.gmra.mrb[40].mxu0 %v430_v9  ;;  %v7627_v9 = vld [vmem:[%s9504_s1 + $0xc08] sm:$0xff]  }
 0x164   :  { %6973 = vmatpush3.bf16.msra.mxu0 %v7590_v10  ;;  %5430 = vmatmul.mubr.bf16.vlgmr.msra.gmra.mrb[40].mxu1 %v432_v14  ;;  %v7628_v10 = vld [vmem:[%s9504_s1 + $0xc88] sm:$0xff]   ;;  %v7632_v14 = vld [vmem:[%s9504_s1 + $0xc90] sm:$0xff]  }
 0x165   :  { %6974 = vmatprep.subr.bf16.mxu0 %v7592_v15  ;;  %6995 = vmatpush3.bf16.msra.mxu1 %v7591_v13  ;;  %v7631_v13 = vld [vmem:[%s9504_s1 + $0xc10] sm:$0xff]   ;;  %v7633_v15 = vld [vmem:[%s9504_s1 + $0xc58] sm:$0xff]  }
 0x166   :  { %6996 = vmatprep.subr.bf16.mxu1 %v7593_v17  ;;  %5469 = vmatprep.mubr.bf16.mxu0 %v435_v2  ;;  %v7635_v17 = vld [vmem:[%s9504_s1 + $0xc18] sm:$0xff]   ;;  %v7662_v2 = vld [vmem:[%s9504_s1 + $0xd50] sm:$0xff]  }
 0x167   :  { %5509 = vmatprep.mubr.bf16.mxu1 %v437_v7  ;;  %v7667_v7 = vld [vmem:[%s9504_s1 + $0xdd8] sm:$0xff]  }
 0x168   :  { %6975 = vmatpush3.bf16.msra.mxu0 %v7594_v18  ;;  %v7636_v18 = vld [vmem:[%s9504_s1 + $0xc98] sm:$0xff]  }
 0x169   :  { %6976 = vmatprep.subr.bf16.mxu0 %v7596_v20  ;;  %6997 = vmatpush3.bf16.msra.mxu1 %v7595_v19  ;;  %v7637_v19 = vld [vmem:[%s9504_s1 + $0xc60] sm:$0xff]  }
 0x16a   :  { %6998 = vmatprep.subr.bf16.mxu1 %v7597_v21  ;;  %v7638_v20 = vld [vmem:[%s9504_s1 + $0xce0] sm:$0xff]  }
 0x16b   :  { %v7639_v21 = vld [vmem:[%s9504_s1 + $0xc20] sm:$0xff]  }
 0x16c   :  { %6977 = vmatpush3.bf16.msra.mxu0 %v7598_v22  ;;  %v7640_v22 = vld [vmem:[%s9504_s1 + $0xca0] sm:$0xff]  }
 0x16d   :  { %6978 = vmatprep.subr.bf16.mxu0 %v7600_v24  ;;  %6999 = vmatpush3.bf16.msra.mxu1 %v7599_v23  ;;  %v7641_v23 = vld [vmem:[%s9504_s1 + $0xc68] sm:$0xff]  }
 0x16e   :  { %7000 = vmatprep.subr.bf16.mxu1 %v7601_v25  ;;  %v7642_v24 = vld [vmem:[%s9504_s1 + $0xce8] sm:$0xff]  }
 0x16f   :  { %v7643_v25 = vld [vmem:[%s9504_s1 + $0xc28] sm:$0xff]  }
 0x170   :  { %6979 = vmatpush3.bf16.msra.mxu0 %v7602_v26  ;;  %v7644_v26 = vld [vmem:[%s9504_s1 + $0xca8] sm:$0xff]  }
 0x171   :  { %6980 = vmatprep.subr.bf16.mxu0 %v7604_v28  ;;  %7001 = vmatpush3.bf16.msra.mxu1 %v7603_v27 }
 0x172   :  { %7002 = vmatprep.subr.bf16.mxu1 %v7605_v29  ;;  %v7645_v29 = vld [vmem:[%s9504_s1 + $0xc70] sm:$0xff]  }
 0x174   :  { %6981 = vmatpush3.bf16.msra.mxu0 %v7606_v30  ;;  %v7646_v30 = vld [vmem:[%s9504_s1 + $0xcf0] sm:$0xff]  }
 0x175   :  { %6982 = vmatprep.subr.bf16.mxu0 %v7608_v32  ;;  %7003 = vmatpush3.bf16.msra.mxu1 %v7607_v31 }
 0x176   :  { %v6680_v37 = vpop.f32.mrb[16].mxu0  ;;  %7004 = vmatprep.subr.bf16.mxu1 %v7609_v33 }
 0x177   :  { %v6702_v38 = vpop.f32.mrb[16].mxu1  ;;  %v6681_v42 = vpop.f32.mrb[17].mxu0 }
 0x178   :  { %v6703_v43 = vpop.f32.mrb[17].mxu1  ;;  %v6682_v44 = vadd.f32 %v6681_v42, %v6680_v37  ;;  %v6683_v46 = vpop.f32.mrb[18].mxu0  ;;  %6983 = vmatpush3.bf16.msra.mxu0 %v7610_v34 }
 0x179   :  { %v6704_v45 = vadd.f32 %v6703_v43, %v6702_v38  ;;  %v6705_v47 = vpop.f32.mrb[18].mxu1  ;;  %v6684_v48 = vpop.f32.mrb[19].mxu0  ;;  %6984 = vmatprep.subr.bf16.mxu0 %v7612_v36  ;;  %7005 = vmatpush3.bf16.msra.mxu1 %v7611_v35  ;;  %v7648_v43 = vld [vmem:[%s9504_s1 + $0xcb0] sm:$0xff]   ;;  %v7651_v46 = vld [vmem:[%s9504_s1 + $0xc38] sm:$0xff]  }
 0x17a   :  { %v6706_v49 = vpop.f32.mrb[19].mxu1  ;;  %v4912_v52 = vadd.f32 %v6682_v44, %v8939_v1  ;;  %7006 = vmatprep.subr.bf16.mxu1 %v7613_v39  ;;  %v7623_v1 = vld [vmem:[%s9504_s1 + $0xc00] sm:$0xff]   ;;  %v7647_v39 = vld [vmem:[%s9504_s1 + $0xc30] sm:$0xff]  }
 0x17b   :  { %v34_v47 = vld [vmem:[%s9503_s0 + $0x60] sm:$0xff] }
 0x17c   :  { %v9037_v54 = vadd.f32 %v6704_v45, %v4912_v52  ;;  %6985 = vmatpush3.bf16.msra.mxu0 %v7614_v40  ;;  %v7649_v40 = vld [vmem:[%s9504_s1 + $0xc78] sm:$0xff]   ;;  %v265_v48 = vrot.slane %v34_v47, %v7924_v41  ;;  %v258_v49 = vcombine.high %v34_v47, %v34_v47  ;;  %v7689_v47 = vld [vmem:[%s9504_s1 + $0xe00] sm:$0xff]  }
 0x17d   :  { %6986 = vmatprep.subr.bf16.mxu0 %v7616_v51  ;;  %7007 = vmatpush3.bf16.msra.mxu1 %v7615_v50  ;;  %v7650_v45 = vld [vmem:[%s9504_s1 + $0xcf8] sm:$0xff]   ;;  %v7654_v50 = vld [vmem:[%s9504_s1 + $0xd40] sm:$0xff]  }
 0x17e   :  { %7008 = vmatprep.subr.bf16.mxu1 %v7617_v53  ;;  %v7652_v51 = vld [vmem:[%s9504_s1 + $0xcb8] sm:$0xff]   ;;  %v273_v52 = vcombine.high %v265_v48, %v265_v48  ;;  %v272_v53 = vrot.slane %v258_v49, %v7924_v41 }
 0x180   :  { %6987 = vmatpush3.bf16.msra.mxu0 %v7618_v55  ;;  %v438_v55 = vpack.c.bf16 %v265_v48, %v265_v48  ;;  %v439_v57 = vpack.c.bf16 %v273_v52, %v273_v52  ;;  %v274_v58 = vcombine.high %v272_v53, %v272_v53  ;;  %v7691_v52 = vld [vmem:[%s9504_s1 + $0xe48] sm:$0xff]  }
 0x181   :  { %7016 = vmatprep.subr.bf16.mxu0 %v7621_v59  ;;  %7009 = vmatpush3.bf16.msra.mxu1 %v7619_v60  ;;  %v7657_v59 = vld [vmem:[%s9504_s1 + $0xd80] sm:$0xff]   ;;  %v440_v60 = vpack.c.bf16 %v272_v53, %v272_v53 }
 0x182   :  { %7038 = vmatprep.subr.bf16.mxu1 %v7622_v63  ;;  %v441_v62 = vpack.c.bf16 %v274_v58, %v274_v58  ;;  %v7659_v63 = vld [vmem:[%s9504_s1 + $0xdc8] sm:$0xff]   ;;  %v7696_v58 = vld [vmem:[%s9504_s1 + $0xed0] sm:$0xff]  }
 0x183   :  { %5470 = vmatmul.mubr.bf16.vlgmr.msra.gmra.mrb[44].mxu0 %v434_v0  ;;  %v7660_v0 = vld [vmem:[%s9504_s1 + $0xd08] sm:$0xff]  }
 0x184   :  { %7017 = vmatpush3.bf16.msra.mxu0 %v7623_v1  ;;  %5510 = vmatmul.mubr.bf16.vlgmr.msra.gmra.mrb[44].mxu1 %v436_v5  ;;  %v7661_v1 = vld [vmem:[%s9504_s1 + $0xd88] sm:$0xff]   ;;  %v7665_v5 = vld [vmem:[%s9504_s1 + $0xd90] sm:$0xff]  }
 0x185   :  { %7018 = vmatprep.subr.bf16.mxu0 %v7625_v6  ;;  %7039 = vmatpush3.bf16.msra.mxu1 %v7624_v4  ;;  %v7664_v4 = vld [vmem:[%s9504_s1 + $0xd10] sm:$0xff]   ;;  %v7666_v6 = vld [vmem:[%s9504_s1 + $0xd58] sm:$0xff]  }
 0x186   :  { %7040 = vmatprep.subr.bf16.mxu1 %v7626_v8  ;;  %5549 = vmatprep.mubr.bf16.mxu0 %v439_v57  ;;  %v7668_v8 = vld [vmem:[%s9504_s1 + $0xd18] sm:$0xff]   ;;  %v7695_v57 = vld [vmem:[%s9504_s1 + $0xe50] sm:$0xff]  }
 0x187   :  { %5589 = vmatprep.mubr.bf16.mxu1 %v441_v62  ;;  %v7700_v62 = vld [vmem:[%s9504_s1 + $0xed8] sm:$0xff]  }
 0x188   :  { %7019 = vmatpush3.bf16.msra.mxu0 %v7627_v9  ;;  %v7669_v9 = vld [vmem:[%s9504_s1 + $0xd98] sm:$0xff]  }
 0x189   :  { %7020 = vmatprep.subr.bf16.mxu0 %v7629_v11  ;;  %7041 = vmatpush3.bf16.msra.mxu1 %v7628_v10  ;;  %v7670_v10 = vld [vmem:[%s9504_s1 + $0xd60] sm:$0xff]  }
 0x18a   :  { %7042 = vmatprep.subr.bf16.mxu1 %v7630_v12  ;;  %v7671_v11 = vld [vmem:[%s9504_s1 + $0xde0] sm:$0xff]  }
 0x18b   :  { %v7672_v12 = vld [vmem:[%s9504_s1 + $0xd20] sm:$0xff]  }
 0x18c   :  { %7021 = vmatpush3.bf16.msra.mxu0 %v7631_v13  ;;  %v7673_v13 = vld [vmem:[%s9504_s1 + $0xda0] sm:$0xff]  }
 0x18d   :  { %7022 = vmatprep.subr.bf16.mxu0 %v7633_v15  ;;  %7043 = vmatpush3.bf16.msra.mxu1 %v7632_v14  ;;  %v7674_v14 = vld [vmem:[%s9504_s1 + $0xd68] sm:$0xff]  }
 0x18e   :  { %7044 = vmatprep.subr.bf16.mxu1 %v7634_v16  ;;  %v7675_v15 = vld [vmem:[%s9504_s1 + $0xde8] sm:$0xff]  }
 0x18f   :  { %v7676_v16 = vld [vmem:[%s9504_s1 + $0xd28] sm:$0xff]  }
 0x190   :  { %7023 = vmatpush3.bf16.msra.mxu0 %v7635_v17 }
 0x191   :  { %7024 = vmatprep.subr.bf16.mxu0 %v7637_v19  ;;  %7045 = vmatpush3.bf16.msra.mxu1 %v7636_v18  ;;  %v7677_v19 = vld [vmem:[%s9504_s1 + $0xda8] sm:$0xff]  }
 0x192   :  { %7046 = vmatprep.subr.bf16.mxu1 %v7638_v20  ;;  %v7678_v20 = vld [vmem:[%s9504_s1 + $0xd70] sm:$0xff]  }
 0x194   :  { %7025 = vmatpush3.bf16.msra.mxu0 %v7639_v21 }
 0x195   :  { %7026 = vmatprep.subr.bf16.mxu0 %v7641_v23  ;;  %7047 = vmatpush3.bf16.msra.mxu1 %v7640_v22 }
 0x196   :  { %v6724_v27 = vpop.f32.mrb[20].mxu0  ;;  %7048 = vmatprep.subr.bf16.mxu1 %v7642_v24 }
 0x197   :  { %v6746_v28 = vpop.f32.mrb[20].mxu1  ;;  %v6725_v31 = vpop.f32.mrb[21].mxu0 }
 0x198   :  { %v6747_v32 = vpop.f32.mrb[21].mxu1  ;;  %v6726_v33 = vadd.f32 %v6725_v31, %v6724_v27  ;;  %v6727_v35 = vpop.f32.mrb[22].mxu0  ;;  %7027 = vmatpush3.bf16.msra.mxu0 %v7643_v25 }
 0x199   :  { %v6748_v34 = vadd.f32 %v6747_v32, %v6746_v28  ;;  %v6749_v36 = vpop.f32.mrb[22].mxu1  ;;  %v6728_v37 = vpop.f32.mrb[23].mxu0  ;;  %7028 = vmatprep.subr.bf16.mxu0 %v7645_v29  ;;  %7049 = vmatpush3.bf16.msra.mxu1 %v7644_v26  ;;  %v7679_v29 = vld [vmem:[%s9504_s1 + $0xdf0] sm:$0xff]   ;;  %v7682_v32 = vld [vmem:[%s9504_s1 + $0xd78] sm:$0xff]  }
 0x19a   :  { %v6750_v38 = vpop.f32.mrb[23].mxu1  ;;  %v4992_v42 = vadd.f32 %v6726_v33, %v9037_v54  ;;  %7050 = vmatprep.subr.bf16.mxu1 %v7646_v30  ;;  %v7655_v54 = vld [vmem:[%s9504_s1 + $0xdc0] sm:$0xff]   ;;  %v7680_v30 = vld [vmem:[%s9504_s1 + $0xd30] sm:$0xff]   ;;  %v7683_v35 = vld [vmem:[%s9504_s1 + $0xdf8] sm:$0xff]  }
 0x19b   :  { %v7684_v36 = vld [vmem:[%s9504_s1 + $0xd38] sm:$0xff]   ;;  %v35_v37 = vld [vmem:[%s9503_s0 + $0x68] sm:$0xff] }
 0x19c   :  { %v9138_v44 = vadd.f32 %v6748_v34, %v4992_v42  ;;  %7029 = vmatpush3.bf16.msra.mxu0 %v7647_v39  ;;  %v7681_v34 = vld [vmem:[%s9504_s1 + $0xdb0] sm:$0xff]   ;;  %v282_v38 = vrot.slane %v35_v37, %v7924_v41  ;;  %v275_v39 = vcombine.high %v35_v37, %v35_v37  ;;  %v7685_v42 = vld [vmem:[%s9504_s1 + $0xdb8] sm:$0xff]   ;;  %v7722_v37 = vld [vmem:[%s9504_s1 + $0xf00] sm:$0xff]  }
 0x19d   :  { %7030 = vmatprep.subr.bf16.mxu0 %v7649_v40  ;;  %7051 = vmatpush3.bf16.msra.mxu1 %v7648_v43  ;;  %v7687_v40 = vld [vmem:[%s9504_s1 + $0xe40] sm:$0xff]  }
 0x19e   :  { %7052 = vmatprep.subr.bf16.mxu1 %v7650_v45  ;;  %v290_v43 = vcombine.high %v282_v38, %v282_v38  ;;  %v7688_v45 = vld [vmem:[%s9504_s1 + $0xec0] sm:$0xff]  }
 0x1a0   :  { %7031 = vmatpush3.bf16.msra.mxu0 %v7651_v46  ;;  %v442_v46 = vpack.c.bf16 %v282_v38, %v282_v38  ;;  %v443_v48 = vpack.c.bf16 %v290_v43, %v290_v43  ;;  %v7724_v43 = vld [vmem:[%s9504_s1 + $0xf48] sm:$0xff]  }
 0x1a1   :  { %7060 = vmatprep.subr.bf16.mxu0 %v7654_v50  ;;  %7053 = vmatpush3.bf16.msra.mxu1 %v7652_v51  ;;  %v7690_v50 = vld [vmem:[%s9504_s1 + $0xe80] sm:$0xff]  }
 0x1a2   :  { %7082 = vmatprep.subr.bf16.mxu1 %v7655_v54  ;;  %v7692_v54 = vld [vmem:[%s9504_s1 + $0xec8] sm:$0xff]  }
 0x1a3   :  { %5550 = vmatmul.mubr.bf16.vlgmr.msra.gmra.mrb[48].mxu0 %v438_v55  ;;  %v7693_v55 = vld [vmem:[%s9504_s1 + $0xe08] sm:$0xff]  }
 0x1a4   :  { %7061 = vmatpush3.bf16.msra.mxu0 %v7656_v56  ;;  %5590 = vmatmul.mubr.bf16.vlgmr.msra.gmra.mrb[48].mxu1 %v440_v60  ;;  %v7694_v56 = vld [vmem:[%s9504_s1 + $0xe88] sm:$0xff]   ;;  %v7698_v60 = vld [vmem:[%s9504_s1 + $0xe90] sm:$0xff]  }
 0x1a5   :  { %7062 = vmatprep.subr.bf16.mxu0 %v7658_v61  ;;  %7083 = vmatpush3.bf16.msra.mxu1 %v7657_v59  ;;  %v7697_v59 = vld [vmem:[%s9504_s1 + $0xe10] sm:$0xff]   ;;  %v7699_v61 = vld [vmem:[%s9504_s1 + $0xe58] sm:$0xff]  }
 0x1a6   :  { %7084 = vmatprep.subr.bf16.mxu1 %v7659_v63  ;;  %5629 = vmatprep.mubr.bf16.mxu0 %v443_v48  ;;  %v7701_v63 = vld [vmem:[%s9504_s1 + $0xe18] sm:$0xff]   ;;  %v7728_v48 = vld [vmem:[%s9504_s1 + $0xf50] sm:$0xff]  }
 0x1a8   :  { %7063 = vmatpush3.bf16.msra.mxu0 %v7660_v0  ;;  %v7702_v0 = vld [vmem:[%s9504_s1 + $0xe98] sm:$0xff]  }
 0x1a9   :  { %7064 = vmatprep.subr.bf16.mxu0 %v7662_v2  ;;  %7085 = vmatpush3.bf16.msra.mxu1 %v7661_v1  ;;  %v7703_v1 = vld [vmem:[%s9504_s1 + $0xe60] sm:$0xff]  }
 0x1aa   :  { %7086 = vmatprep.subr.bf16.mxu1 %v7663_v3  ;;  %v7704_v2 = vld [vmem:[%s9504_s1 + $0xee0] sm:$0xff]  }
 0x1ab   :  { %v7705_v3 = vld [vmem:[%s9504_s1 + $0xe20] sm:$0xff]  }
 0x1ac   :  { %7065 = vmatpush3.bf16.msra.mxu0 %v7664_v4  ;;  %v7706_v4 = vld [vmem:[%s9504_s1 + $0xea0] sm:$0xff]  }
 0x1ad   :  { %7066 = vmatprep.subr.bf16.mxu0 %v7666_v6  ;;  %7087 = vmatpush3.bf16.msra.mxu1 %v7665_v5  ;;  %v7707_v5 = vld [vmem:[%s9504_s1 + $0xe68] sm:$0xff]  }
 0x1ae   :  { %7088 = vmatprep.subr.bf16.mxu1 %v7667_v7  ;;  %v7708_v6 = vld [vmem:[%s9504_s1 + $0xee8] sm:$0xff]  }
 0x1b0   :  { %7067 = vmatpush3.bf16.msra.mxu0 %v7668_v8 }
 0x1b1   :  { %7068 = vmatprep.subr.bf16.mxu0 %v7670_v10  ;;  %7089 = vmatpush3.bf16.msra.mxu1 %v7669_v9  ;;  %v7709_v9 = vld [vmem:[%s9504_s1 + $0xe28] sm:$0xff]   ;;  %v7711_v10 = vld [vmem:[%s9504_s1 + $0xe70] sm:$0xff]  }
 0x1b2   :  { %7090 = vmatprep.subr.bf16.mxu1 %v7671_v11 }
 0x1b4   :  { %7069 = vmatpush3.bf16.msra.mxu0 %v7672_v12 }
 0x1b5   :  { %7070 = vmatprep.subr.bf16.mxu0 %v7674_v14  ;;  %7091 = vmatpush3.bf16.msra.mxu1 %v7673_v13 }
 0x1b6   :  { %v6768_v17 = vpop.f32.mrb[24].mxu0  ;;  %7092 = vmatprep.subr.bf16.mxu1 %v7675_v15 }
 0x1b7   :  { %v6790_v18 = vpop.f32.mrb[24].mxu1  ;;  %v6769_v21 = vpop.f32.mrb[25].mxu0 }
 0x1b8   :  { %v6791_v22 = vpop.f32.mrb[25].mxu1  ;;  %v6770_v23 = vadd.f32 %v6769_v21, %v6768_v17  ;;  %v6771_v25 = vpop.f32.mrb[26].mxu0  ;;  %7071 = vmatpush3.bf16.msra.mxu0 %v7676_v16  ;;  %v7710_v17 = vld [vmem:[%s9504_s1 + $0xea8] sm:$0xff]  }
 0x1b9   :  { %v6792_v24 = vadd.f32 %v6791_v22, %v6790_v18  ;;  %v6793_v26 = vpop.f32.mrb[26].mxu1  ;;  %v6772_v27 = vpop.f32.mrb[27].mxu0  ;;  %7072 = vmatprep.subr.bf16.mxu0 %v7678_v20  ;;  %7093 = vmatpush3.bf16.msra.mxu1 %v7677_v19  ;;  %v7712_v20 = vld [vmem:[%s9504_s1 + $0xef0] sm:$0xff]  }
 0x1ba   :  { %v6794_v28 = vpop.f32.mrb[27].mxu1  ;;  %v5072_v31 = vadd.f32 %v6770_v23, %v9138_v44  ;;  %7094 = vmatprep.subr.bf16.mxu1 %v7679_v29  ;;  %v289_v44 = vrot.slane %v275_v39, %v7924_v41  ;;  %v7713_v22 = vld [vmem:[%s9504_s1 + $0xe30] sm:$0xff]   ;;  %v7716_v26 = vld [vmem:[%s9504_s1 + $0xef8] sm:$0xff]  }
 0x1bb   :  { %v7714_v25 = vld [vmem:[%s9504_s1 + $0xeb0] sm:$0xff]   ;;  %v7717_v27 = vld [vmem:[%s9504_s1 + $0xe38] sm:$0xff]  }
 0x1bc   :  { %v9239_v33 = vadd.f32 %v6792_v24, %v5072_v31  ;;  %7073 = vmatpush3.bf16.msra.mxu0 %v7680_v30  ;;  %v291_v49 = vcombine.high %v289_v44, %v289_v44  ;;  %v444_v51 = vpack.c.bf16 %v289_v44, %v289_v44  ;;  %v7715_v24 = vld [vmem:[%s9504_s1 + $0xe78] sm:$0xff]   ;;  %v36_v28 = vld [vmem:[%s9503_s0 + $0x70] sm:$0xff]  ;;  %v7720_v31 = vld [vmem:[%s9504_s1 + $0xf40] sm:$0xff]  }
 0x1bd   :  { %7074 = vmatprep.subr.bf16.mxu0 %v7682_v32  ;;  %7095 = vmatpush3.bf16.msra.mxu1 %v7681_v34  ;;  %v299_v29 = vrot.slane %v36_v28, %v7924_v41  ;;  %v292_v30 = vcombine.high %v36_v28, %v36_v28  ;;  %v7718_v32 = vld [vmem:[%s9504_s1 + $0xeb8] sm:$0xff]  }
 0x1be   :  { %7096 = vmatprep.subr.bf16.mxu1 %v7683_v35  ;;  %v445_v53 = vpack.c.bf16 %v291_v49, %v291_v49  ;;  %v7721_v35 = vld [vmem:[%s9504_s1 + $0xfc0] sm:$0xff]   ;;  %v7729_v49 = vld [vmem:[%s9504_s1 + $0xfd0] sm:$0xff]  }
 0x1bf   :  { %v306_v34 = vrot.slane %v292_v30, %v7924_v41 }
 0x1c0   :  { %7075 = vmatpush3.bf16.msra.mxu0 %v7684_v36  ;;  %5669 = vmatprep.mubr.bf16.mxu1 %v445_v53  ;;  %v446_v36 = vpack.c.bf16 %v299_v29, %v299_v29  ;;  %v7733_v53 = vld [vmem:[%s9504_s1 + $0xfd8] sm:$0xff]  }
 0x1c1   :  { %7104 = vmatprep.subr.bf16.mxu0 %v7687_v40  ;;  %7097 = vmatpush3.bf16.msra.mxu1 %v7685_v42  ;;  %v308_v39 = vcombine.high %v306_v34, %v306_v34  ;;  %v7723_v40 = vld [vmem:[%s9504_s1 + $0xf80] sm:$0xff]   ;;  %v448_v42 = vpack.c.bf16 %v306_v34, %v306_v34 }
 0x1c2   :  { %7126 = vmatprep.subr.bf16.mxu1 %v7688_v45  ;;  %v7725_v45 = vld [vmem:[%s9504_s1 + $0xfc8] sm:$0xff]  }
 0x1c3   :  { %5630 = vmatmul.mubr.bf16.vlgmr.msra.gmra.mrb[52].mxu0 %v442_v46  ;;  %v449_v44 = vpack.c.bf16 %v308_v39, %v308_v39  ;;  %v7726_v46 = vld [vmem:[%s9504_s1 + $0xf08] sm:$0xff]  }
 0x1c4   :  { %7105 = vmatpush3.bf16.msra.mxu0 %v7689_v47  ;;  %5670 = vmatmul.mubr.bf16.vlgmr.msra.gmra.mrb[52].mxu1 %v444_v51  ;;  %v7727_v47 = vld [vmem:[%s9504_s1 + $0xf88] sm:$0xff]   ;;  %v7731_v51 = vld [vmem:[%s9504_s1 + $0xf90] sm:$0xff]  }
 0x1c5   :  { %7106 = vmatprep.subr.bf16.mxu0 %v7691_v52  ;;  %7127 = vmatpush3.bf16.msra.mxu1 %v7690_v50  ;;  %v7730_v50 = vld [vmem:[%s9504_s1 + $0xf10] sm:$0xff]   ;;  %v7732_v52 = vld [vmem:[%s9504_s1 + $0xf58] sm:$0xff]  }
 0x1c6   :  { %7128 = vmatprep.subr.bf16.mxu1 %v7692_v54  ;;  %5749 = vmatprep.mubr.bf16.mxu1 %v449_v44  ;;  %v7734_v54 = vld [vmem:[%s9504_s1 + $0xf18] sm:$0xff]  }
 0x1c8   :  { %7107 = vmatpush3.bf16.msra.mxu0 %v7693_v55  ;;  %v7735_v55 = vld [vmem:[%s9504_s1 + $0xf98] sm:$0xff]  }
 0x1c9   :  { %7108 = vmatprep.subr.bf16.mxu0 %v7695_v57  ;;  %7129 = vmatpush3.bf16.msra.mxu1 %v7694_v56  ;;  %v7736_v56 = vld [vmem:[%s9504_s1 + $0xf60] sm:$0xff]  }
 0x1ca   :  { %7130 = vmatprep.subr.bf16.mxu1 %v7696_v58  ;;  %v7737_v57 = vld [vmem:[%s9504_s1 + $0xfe0] sm:$0xff]  }
 0x1cb   :  { %v7738_v58 = vld [vmem:[%s9504_s1 + $0xf20] sm:$0xff]  }
 0x1cc   :  { %7109 = vmatpush3.bf16.msra.mxu0 %v7697_v59  ;;  %v7739_v59 = vld [vmem:[%s9504_s1 + $0xfa0] sm:$0xff]  }
 0x1cd   :  { %7110 = vmatprep.subr.bf16.mxu0 %v7699_v61  ;;  %7131 = vmatpush3.bf16.msra.mxu1 %v7698_v60  ;;  %v7740_v60 = vld [vmem:[%s9504_s1 + $0xf68] sm:$0xff]  }
 0x1ce   :  { %7132 = vmatprep.subr.bf16.mxu1 %v7700_v62 }
 0x1d0   :  { %7111 = vmatpush3.bf16.msra.mxu0 %v7701_v63  ;;  %v7741_v63 = vld [vmem:[%s9504_s1 + $0xfe8] sm:$0xff]  }
 0x1d1   :  { %7112 = vmatprep.subr.bf16.mxu0 %v7703_v1  ;;  %7133 = vmatpush3.bf16.msra.mxu1 %v7702_v0  ;;  %v7742_v0 = vld [vmem:[%s9504_s1 + $0xf28] sm:$0xff]  }
 0x1d2   :  { %7134 = vmatprep.subr.bf16.mxu1 %v7704_v2 }
 0x1d4   :  { %7113 = vmatpush3.bf16.msra.mxu0 %v7705_v3 }
 0x1d5   :  { %7114 = vmatprep.subr.bf16.mxu0 %v7707_v5  ;;  %7135 = vmatpush3.bf16.msra.mxu1 %v7706_v4 }
 0x1d6   :  { %v6812_v7 = vpop.f32.mrb[28].mxu0  ;;  %7136 = vmatprep.subr.bf16.mxu1 %v7708_v6 }
 0x1d7   :  { %v6834_v8 = vpop.f32.mrb[28].mxu1  ;;  %v6813_v11 = vpop.f32.mrb[29].mxu0 }
 0x1d8   :  { %v6835_v12 = vpop.f32.mrb[29].mxu1  ;;  %v6814_v13 = vadd.f32 %v6813_v11, %v6812_v7  ;;  %v6815_v15 = vpop.f32.mrb[30].mxu0  ;;  %7115 = vmatpush3.bf16.msra.mxu0 %v7709_v9  ;;  %v7743_v7 = vld [vmem:[%s9504_s1 + $0xfa8] sm:$0xff]   ;;  %v7745_v11 = vld [vmem:[%s9504_s1 + $0xff0] sm:$0xff]  }
 0x1d9   :  { %v6836_v14 = vadd.f32 %v6835_v12, %v6834_v8  ;;  %v6837_v16 = vpop.f32.mrb[30].mxu1  ;;  %v6816_v18 = vpop.f32.mrb[31].mxu0  ;;  %7116 = vmatprep.subr.bf16.mxu0 %v7711_v10  ;;  %7137 = vmatpush3.bf16.msra.mxu1 %v7710_v17  ;;  %v7744_v10 = vld [vmem:[%s9504_s1 + $0xf70] sm:$0xff]   ;;  %v7749_v17 = vld [vmem:[%s9504_s1 + $0xff8] sm:$0xff]  }
 0x1da   :  { %v6838_v19 = vpop.f32.mrb[31].mxu1  ;;  %v5152_v21 = vadd.f32 %v6814_v13, %v9239_v33  ;;  %7138 = vmatprep.subr.bf16.mxu1 %v7712_v20  ;;  %v307_v33 = vcombine.high %v299_v29, %v299_v29  ;;  %v7746_v13 = vld [vmem:[%s9504_s1 + $0xf30] sm:$0xff]   ;;  %v7748_v16 = vld [vmem:[%s9504_s1 + $0xf78] sm:$0xff]  }
 0x1db   :  { %v7747_v15 = vld [vmem:[%s9504_s1 + $0xfb0] sm:$0xff]   ;;  %v7750_v18 = vld [vmem:[%s9504_s1 + $0xf38] sm:$0xff]  }
 0x1dc   :  { %v9340_v23 = vadd.f32 %v6836_v14, %v5152_v21  ;;  %7117 = vmatpush3.bf16.msra.mxu0 %v7713_v22  ;;  %v447_v38 = vpack.c.bf16 %v307_v33, %v307_v33  ;;  %v7751_v19 = vld [vmem:[%s9504_s1 + $0xfb8] sm:$0xff]  }
 0x1dd   :  { %7118 = vmatprep.subr.bf16.mxu0 %v7715_v24  ;;  %7139 = vmatpush3.bf16.msra.mxu1 %v7714_v25  ;;  %v37_v20 = vld [vmem:[%s9503_s0 + $0x78] sm:$0xff] }
 0x1de   :  { %7140 = vmatprep.subr.bf16.mxu1 %v7716_v26  ;;  %5709 = vmatprep.mubr.bf16.mxu0 %v447_v38  ;;  %v316_v21 = vrot.slane %v37_v20, %v7924_v41  ;;  %v309_v22 = vcombine.high %v37_v20, %v37_v20 }
 0x1e0   :  { %7119 = vmatpush3.bf16.msra.mxu0 %v7717_v27  ;;  %v323_v24 = vrot.slane %v309_v22, %v7924_v41  ;;  %v450_v25 = vpack.c.bf16 %v316_v21, %v316_v21 }
 0x1e1   :  { %7148 = vmatprep.subr.bf16.mxu0 %v7720_v31  ;;  %7141 = vmatpush3.bf16.msra.mxu1 %v7718_v32 }
 0x1e2   :  { %7170 = vmatprep.subr.bf16.mxu1 %v7721_v35  ;;  %v325_v27 = vcombine.high %v323_v24, %v323_v24  ;;  %v452_v28 = vpack.c.bf16 %v323_v24, %v323_v24 }
 0x1e3   :  { %5710 = vmatmul.mubr.bf16.vlgmr.msra.gmra.mrb[56].mxu0 %v446_v36 }
 0x1e4   :  { %7149 = vmatpush3.bf16.msra.mxu0 %v7722_v37  ;;  %5750 = vmatmul.mubr.bf16.vlgmr.msra.gmra.mrb[56].mxu1 %v448_v42 }
 0x1e5   :  { %7150 = vmatprep.subr.bf16.mxu0 %v7724_v43  ;;  %7171 = vmatpush3.bf16.msra.mxu1 %v7723_v40 }
 0x1e6   :  { %7172 = vmatprep.subr.bf16.mxu1 %v7725_v45 }
 0x1e8   :  { %7151 = vmatpush3.bf16.msra.mxu0 %v7726_v46 }
 0x1e9   :  { %7152 = vmatprep.subr.bf16.mxu0 %v7728_v48  ;;  %7173 = vmatpush3.bf16.msra.mxu1 %v7727_v47 }
 0x1ea   :  { %7174 = vmatprep.subr.bf16.mxu1 %v7729_v49 }
 0x1ec   :  { %7153 = vmatpush3.bf16.msra.mxu0 %v7730_v50 }
 0x1ed   :  { %7154 = vmatprep.subr.bf16.mxu0 %v7732_v52  ;;  %7175 = vmatpush3.bf16.msra.mxu1 %v7731_v51 }
 0x1ee   :  { %7176 = vmatprep.subr.bf16.mxu1 %v7733_v53 }
 0x1f0   :  { %7155 = vmatpush3.bf16.msra.mxu0 %v7734_v54 }
 0x1f1   :  { %7156 = vmatprep.subr.bf16.mxu0 %v7736_v56  ;;  %7177 = vmatpush3.bf16.msra.mxu1 %v7735_v55 }
 0x1f2   :  { %7178 = vmatprep.subr.bf16.mxu1 %v7737_v57 }
 0x1f4   :  { %7157 = vmatpush3.bf16.msra.mxu0 %v7738_v58 }
 0x1f5   :  { %7158 = vmatprep.subr.bf16.mxu0 %v7740_v60  ;;  %7179 = vmatpush3.bf16.msra.mxu1 %v7739_v59 }
 0x1f6   :  { %v6856_v61 = vpop.f32.mrb[32].mxu0  ;;  %7180 = vmatprep.subr.bf16.mxu1 %v7741_v63 }
 0x1f7   :  { %v6878_v62 = vpop.f32.mrb[32].mxu1  ;;  %v6857_v1 = vpop.f32.mrb[33].mxu0 }
 0x1f8   :  { %v6879_v2 = vpop.f32.mrb[33].mxu1  ;;  %v6858_v3 = vadd.f32 %v6857_v1, %v6856_v61  ;;  %v6859_v5 = vpop.f32.mrb[34].mxu0  ;;  %7159 = vmatpush3.bf16.msra.mxu0 %v7742_v0 }
 0x1f9   :  { %v6880_v4 = vadd.f32 %v6879_v2, %v6878_v62  ;;  %v6881_v6 = vpop.f32.mrb[34].mxu1  ;;  %v6860_v8 = vpop.f32.mrb[35].mxu0  ;;  %7160 = vmatprep.subr.bf16.mxu0 %v7744_v10  ;;  %7181 = vmatpush3.bf16.msra.mxu1 %v7743_v7 }
 0x1fa   :  { %v6882_v9 = vpop.f32.mrb[35].mxu1  ;;  %v5232_v12 = vadd.f32 %v6858_v3, %v9340_v23  ;;  %7182 = vmatprep.subr.bf16.mxu1 %v7745_v11  ;;  %v324_v23 = vcombine.high %v316_v21, %v316_v21 }
 0x1fc   :  { %v5272_v14 = vadd.f32 %v6880_v4, %v5232_v12  ;;  %7161 = vmatpush3.bf16.msra.mxu0 %v7746_v13  ;;  %v451_v26 = vpack.c.bf16 %v324_v23, %v324_v23 }
 0x1fd   :  { %7162 = vmatprep.subr.bf16.mxu0 %v7748_v16  ;;  %7183 = vmatpush3.bf16.msra.mxu1 %v7747_v15 }
 0x1fe   :  { %7184 = vmatprep.subr.bf16.mxu1 %v7749_v17 }
 0x200   :  { %7163 = vmatpush3.bf16.msra.mxu0 %v7750_v18 }
 0x201   :  { %7185 = vmatpush3.bf16.msra.mxu1 %v7751_v19 }
 0x202   :  { %10 = vsyncpa [#allocation3], 0  ;;  %5789 = vmatprep.mubr.bf16.mxu0 %v451_v26  ;;  %v453_v29 = vpack.c.bf16 %v325_v27, %v325_v27  ;;  %v7753_v54 = vld [vmem:[%s9506_s3] sm:$0xff]   ;;  %v7786_v55 = vmov 0.0   ;;  %v7754_v56 = vld [vmem:[%s9506_s3 + $0x8] sm:$0xff]   ;;  %vm7787_vm0 = vmmov 0  }
 0x203   :  { %5790 = vmatmul.mubr.bf16.vlgmr.msra.gmra.mrb[60].mxu0 %v450_v25  ;;  %7201 = vmatprep.subr.bf16.mxu0 %v7786_v55  ;;  %v7755_v57 = vld [vmem:[%s9506_s3 + $0x10] sm:$0xff]   ;;  %v7756_v58 = vld [vmem:[%s9506_s3 + $0x18] sm:$0xff]   ;;  %v7757_v59 = vld [vmem:[%s9506_s3 + $0x20] sm:$0xff]   ;;  %s7788_s19 = smov [#allocation2]  }
 0x204   :  { %5829 = vmatprep.mubr.bf16.mxu1 %v453_v29  ;;  %7202 = vmatpush3.bf16.msra.mxu0 %v7753_v54  ;;  %v7758_v7 = vld [vmem:[%s9506_s3 + $0x28] sm:$0xff]   ;;  %v7759_v9 = vld [vmem:[%s9506_s3 + $0x30] sm:$0xff]   ;;  %v7760_v10 = vld [vmem:[%s9506_s3 + $0x38] sm:$0xff]   ;;  %s5958_s20 = sshll.u32 %s7788_s19, 4  ;;  %s5959_s20 = int_to_ptr.vmem [resolvable:$true] %s5958_s20 }
 0x205   :  { %5830 = vmatmul.mubr.bf16.vlgmr.msra.gmra.mrb[60].mxu1 %v452_v28  ;;  %7203 = vmatprep.subr.bf16.mxu0 %v7786_v55  ;;  %s7761_s21 = scalar_lea.vmem %s5959_s20, 32  ;;  %p7766_p1 = scmp.lt.s32.totalorder %s5959_s20, %s5959_s20 }
 0x206   :  { %7217 = vmatprep.mubr.msk.bf16.mxu0 %vm7787_vm0, %v7786_v55  ;;  %p7762_p0 = scmp.ne.s32.totalorder %s5959_s20, %s7761_s21  ;;  %p7767_p2 = scmp.lt.s32.totalorder %s7761_s21, %s7761_s21 }
 0x208   :  { %7204 = vmatpush3.bf16.msra.mxu0 %v7754_v56  ;;  %p7768_p3 = por %p7767_p2, %p7766_p1 }
 0x209   :  { %7205 = vmatprep.subr.bf16.mxu0 %v7786_v55 }
 0x20a   :  { %p7769_p4 = pnand %p7768_p3, %p7762_p0 }
 0x20c   :  { %7206 = vmatpush3.bf16.msra.mxu0 %v7755_v57 }
 0x20d   :  { %7207 = vmatprep.subr.bf16.mxu0 %v7786_v55 }
 0x210   :  { %7208 = vmatpush3.bf16.msra.mxu0 %v7756_v58 }
 0x211   :  { %7209 = vmatprep.subr.bf16.mxu0 %v7786_v55 }
 0x214   :  { %7210 = vmatpush3.bf16.msra.mxu0 %v7757_v59 }
 0x215   :  { %7211 = vmatprep.subr.bf16.mxu0 %v7786_v55 }
 0x216   :  { %v6900_v30 = vpop.f32.mrb[36].mxu0 }
 0x217   :  { %v6922_v31 = vpop.f32.mrb[36].mxu1  ;;  %v6901_v32 = vpop.f32.mrb[37].mxu0 }
 0x218   :  { %v6902_v33 = vadd.f32 %v6901_v32, %v6900_v30  ;;  %v6923_v34 = vpop.f32.mrb[37].mxu1  ;;  %v6903_v35 = vpop.f32.mrb[38].mxu0  ;;  %7212 = vmatpush3.bf16.msra.mxu0 %v7758_v7 }
 0x219   :  { %v6924_v36 = vadd.f32 %v6923_v34, %v6922_v31  ;;  %v6925_v41 = vpop.f32.mrb[38].mxu1  ;;  %v6904_v37 = vpop.f32.mrb[39].mxu0  ;;  %7213 = vmatprep.subr.bf16.mxu0 %v7786_v55 }
 0x21a   :  { %v5312_v38 = vadd.f32 %v6902_v33, %v5272_v14  ;;  %v6926_v39 = vpop.f32.mrb[39].mxu1 }
 0x21c   :  { %v5352_v40 = vadd.f32 %v6924_v36, %v5312_v38  ;;  %7214 = vmatpush3.bf16.msra.mxu0 %v7759_v9 }
 0x21d   :  { %7215 = vmatprep.subr.bf16.mxu0 %v7786_v55 }
 0x220   :  { %7216 = vmatpush3.bf16.msra.mxu0 %v7760_v10 }
 0x236   :  { %v6944_v42 = vpop.f32.mrb[40].mxu0 }
 0x237   :  { %v6945_v43 = vpop.f32.mrb[41].mxu0  ;;  %v6966_v44 = vpop.f32.mrb[40].mxu1 }
 0x238   :  { %v6946_v45 = vadd.f32 %v6945_v43, %v6944_v42  ;;  %v6947_v46 = vpop.f32.mrb[42].mxu0  ;;  %v6967_v47 = vpop.f32.mrb[41].mxu1 }
 0x239   :  { %v6948_v48 = vpop.f32.mrb[43].mxu0  ;;  %v6968_v50 = vadd.f32 %v6967_v47, %v6966_v44  ;;  %v6969_v51 = vpop.f32.mrb[42].mxu1 }
 0x23a   :  { %v5392_v49 = vadd.f32 %v6946_v45, %v5352_v40  ;;  %v6970_v52 = vpop.f32.mrb[43].mxu1 }
 0x23c   :  { %v5432_v53 = vadd.f32 %v6968_v50, %v5392_v49 }
 0x256   :  { %v6988_v60 = vpop.f32.mrb[44].mxu0 }
 0x257   :  { %v6989_v61 = vpop.f32.mrb[45].mxu0  ;;  %v7010_v62 = vpop.f32.mrb[44].mxu1 }
 0x258   :  { %v6990_v63 = vadd.f32 %v6989_v61, %v6988_v60  ;;  %v6991_v0 = vpop.f32.mrb[46].mxu0  ;;  %v7011_v1 = vpop.f32.mrb[45].mxu1  ;;  %v6479_v61 = vld [vmem:[%s9507_s4] ss:$0 sm:$0xff] }
 0x259   :  { %v6992_v2 = vpop.f32.mrb[47].mxu0  ;;  %v7012_v4 = vadd.f32 %v7011_v1, %v7010_v62  ;;  %v7013_v5 = vpop.f32.mrb[46].mxu1 }
 0x25a   :  { %v5472_v3 = vadd.f32 %v6990_v63, %v5432_v53  ;;  %v7014_v6 = vpop.f32.mrb[47].mxu1 }
 0x25c   :  { %v5512_v8 = vadd.f32 %v7012_v4, %v5472_v3 }
 0x276   :  { %v7032_v11 = vpop.f32.mrb[48].mxu0 }
 0x277   :  { %v7033_v12 = vpop.f32.mrb[49].mxu0  ;;  %v7054_v13 = vpop.f32.mrb[48].mxu1 }
 0x278   :  { %v7034_v14 = vadd.f32 %v7033_v12, %v7032_v11  ;;  %v7035_v15 = vpop.f32.mrb[50].mxu0  ;;  %v7055_v16 = vpop.f32.mrb[49].mxu1 }
 0x279   :  { %v7036_v17 = vpop.f32.mrb[51].mxu0  ;;  %v7056_v19 = vadd.f32 %v7055_v16, %v7054_v13  ;;  %v7057_v20 = vpop.f32.mrb[50].mxu1 }
 0x27a   :  { %v5552_v18 = vadd.f32 %v7034_v14, %v5512_v8  ;;  %v7058_v21 = vpop.f32.mrb[51].mxu1 }
 0x27c   :  { %v5592_v22 = vadd.f32 %v7056_v19, %v5552_v18 }
 0x296   :  { %v7076_v23 = vpop.f32.mrb[52].mxu0 }
 0x297   :  { %v7077_v24 = vpop.f32.mrb[53].mxu0  ;;  %v7098_v25 = vpop.f32.mrb[52].mxu1 }
 0x298   :  { %v7078_v26 = vadd.f32 %v7077_v24, %v7076_v23  ;;  %v7079_v27 = vpop.f32.mrb[54].mxu0  ;;  %v7099_v28 = vpop.f32.mrb[53].mxu1 }
 0x299   :  { %v7080_v29 = vpop.f32.mrb[55].mxu0  ;;  %v7100_v31 = vadd.f32 %v7099_v28, %v7098_v25  ;;  %v7101_v32 = vpop.f32.mrb[54].mxu1 }
 0x29a   :  { %v5632_v30 = vadd.f32 %v7078_v26, %v5592_v22  ;;  %v7102_v33 = vpop.f32.mrb[55].mxu1 }
 0x29c   :  { %v5672_v34 = vadd.f32 %v7100_v31, %v5632_v30 }
 0x2b6   :  { %v7120_v35 = vpop.f32.mrb[56].mxu0 }
 0x2b7   :  { %v7121_v36 = vpop.f32.mrb[57].mxu0  ;;  %v7142_v41 = vpop.f32.mrb[56].mxu1 }
 0x2b8   :  { %v7122_v37 = vadd.f32 %v7121_v36, %v7120_v35  ;;  %v7123_v38 = vpop.f32.mrb[58].mxu0  ;;  %v7143_v39 = vpop.f32.mrb[57].mxu1 }
 0x2b9   :  { %v7124_v40 = vpop.f32.mrb[59].mxu0  ;;  %v7144_v43 = vadd.f32 %v7143_v39, %v7142_v41  ;;  %v7145_v44 = vpop.f32.mrb[58].mxu1 }
 0x2ba   :  { %v5712_v42 = vadd.f32 %v7122_v37, %v5672_v34  ;;  %v7146_v45 = vpop.f32.mrb[59].mxu1 }
 0x2bc   :  { %v5752_v46 = vadd.f32 %v7144_v43, %v5712_v42 }
 0x2d6   :  { %v7164_v47 = vpop.f32.mrb[60].mxu0 }
 0x2d7   :  { %v7165_v48 = vpop.f32.mrb[61].mxu0 }
 0x2d8   :  { %v7186_v49 = vpop.f32.mrb[60].mxu1  ;;  %v7166_v50 = vadd.f32 %v7165_v48, %v7164_v47  ;;  %v7167_v51 = vpop.f32.mrb[62].mxu0 }
 0x2d9   :  { %v7187_v52 = vpop.f32.mrb[61].mxu1  ;;  %v7168_v53 = vpop.f32.mrb[63].mxu0 }
 0x2da   :  { %v5792_v54 = vadd.f32 %v7166_v50, %v5752_v46  ;;  %v7188_v55 = vadd.f32 %v7187_v52, %v7186_v49  ;;  %v7189_v56 = vpop.f32.mrb[62].mxu1 }
 0x2db   :  { %v7190_v57 = vpop.f32.mrb[63].mxu1 }
 0x2dc   :  { %v5832_v58 = vadd.f32 %v7188_v55, %v5792_v54 }
 0x2de   :  { %v5837_v59 = vmax.f32 %v5832_v58, 0.0 }
 0x2e0   :  { %v5838_v60 = vpack.c.bf16 %v5837_v59, %v5837_v59 }
 0x2e2   :  { %7218 = vmatmul.mubr.bf16.vlgmr.msra.gmra.mrb[64].mxu0 %v5838_v60 }
 0x3b5   :  { %v5944_v62 = vpop.f32.mrb[64].mxu0 }
 0x3b6   :  { %v5945_v63 = vadd.f32 %v6479_v61, %v5944_v62  ;;  %v7219_v0 = vpop.f32.mrb[65].mxu0 }
 0x3b7   :  { %v5947_v1 = vpop.f32.mrb[66].mxu0 }
 0x3b8   :  { %v5950_v2 = vmax.f32 %v5945_v63, 0.0  ;;  %v7220_v3 = vpop.f32.mrb[67].mxu0 }
 0x3ba   :  { %5951 = vst [vmem:[#allocation2] sm:$0x3] %v5950_v2 }
 0x3bb   :  { %7772 = shalt.err (!%p7769_p4)
}
 0x3bc   :  { %s7773_s4 = scalar_lea.hbm %s9508_s5, 32 }
 0x3bd   :  { %p7774_p5 = scmp.ne.s32.totalorder %s9508_s5, %s7773_s4  ;;  %p7777_p6 = scmp.lt.u32.totalorder %s7773_s4, %s9508_s5 }
 0x3bf   :  { %p7779_p7 = pnand %p7777_p6, %p7774_p5 }
 0x3c1   :  { %7782 = shalt.err (!%p7779_p7)
}
 0x3c2   :  { %5961 = dma.vmem_to_hbm [thread:$0]  %s5959_s20, 32, %s9508_s5, [#allocation3]  }
 0x3c3   :  { %7783 = dma.done.wait [#allocation3], 32  }
 0x3c4   :  { %7784 = vsyncadd [#allocation3], 4294967264 }
 0x3c5   :  { %5965 = vsyncpa [#allocation3], 1 }

// kernel: method_cnn_forward.2
= control target key start
LH: loop header
LB: loop body
LE: loop exit
PB: predicated region body
PF: predicated region fallthrough
CT: control target
= control target key end

     0   :  { %s13622_s27 = smov 0   ;;  %s15326_s0 = inlined_call_operand.vmem [shape: f32[2,328,128], index: 0, kind: input, shape index: {}]   ;;  %s15327_s1 = inlined_call_operand.vmem [shape: f32[288,128], index: 1, kind: input, shape index: {}]   ;;  %s15328_s2 = inlined_call_operand.vmem [shape: bf16[9,128,128], index: 2, kind: input, shape index: {}]   ;;  %s15329_s3 = inlined_call_operand.vmem [shape: f32[1,128], index: 3, kind: input, shape index: {}]   ;;  %s15330_s4 = inlined_call_operand.vmem [shape: bf16[9,128,128], index: 4, kind: input, shape index: {}]   ;;  %s15331_s5 = inlined_call_operand.vmem [shape: f32[1,128], index: 5, kind: input, shape index: {}]   ;;  %s15332_s6 = inlined_call_operand.vmem [shape: bf16[9,128,128], index: 6, kind: input, shape index: {}]   ;;  %s15333_s7 = inlined_call_operand.vmem [shape: f32[1,128], index: 7, kind: input, shape index: {}]   ;;  %s15334_s8 = inlined_call_operand.vmem [shape: f32[2,64,128], index: 8, kind: output, shape index: {}]  }
   0x1 LB: > { %s9696_s28 = sadd.s32 4294967295, %s13573_s27   ;;  %p9700_p0 = scmp.ge.s32.totalorder %s13573_s27, 1  ;;  %s13573_s27 = sphi %s13622_s27, %s18_s27  }
   0x2   : > { %p262_p1 = scmp.lt.s32.totalorder %s13573_s27, 3 }
   0x4   : > { %p263_p2 = pnand %p9700_p0, %p262_p1 }
   0x5   : > { %v13306_v0 = vld [vmem:[%s15328_s2 + $0x40] sm:$0xff] (!%p263_p2)   ;;  %p296_p3 = scmp.lt.s32.totalorder (!%p263_p2), %s9696_s28, 1  ;;  %v13308_v2 = vld [vmem:[%s15328_s2 + $0x48] sm:$0xff] (!%p263_p2)   ;;  %v13310_v4 = vld [vmem:[%s15328_s2 + $0x50] sm:$0xff] (!%p263_p2)  }
   0x6   : > { %266 = sbr.rel (%p263_p2) target bundleno = 2207 (0x89f), region = 52  ;;  %v13307_v1 = vld [vmem:[%s15328_s2 + $0x100] sm:$0xff] (!%p263_p2)   ;;  %11012 = vmatprep.subr.bf16.mxu1 (!%p263_p2), %v13306_v0  ;;  %v13309_v3 = vld [vmem:[%s15328_s2 + $0x108] sm:$0xff] (!%p263_p2)   ;;  %v13311_v5 = vld [vmem:[%s15328_s2 + $0x110] sm:$0xff] (!%p263_p2)  }
   0x7   : > { %11220 = vmatprep.subr.bf16.mxu0 (!%p263_p2), %v13307_v1  ;;  %11013 = vmatpush3.bf16.msra.mxu1 (!%p263_p2), %v13306_v0  ;;  %v13312_v6 = vld [vmem:[%s15328_s2 + $0x58] sm:$0xff] (!%p263_p2)   ;;  %v13314_v8 = vld [vmem:[%s15328_s2 + $0x60] sm:$0xff] (!%p263_p2)   ;;  %v13316_v10 = vld [vmem:[%s15328_s2 + $0x68] sm:$0xff] (!%p263_p2)  }
   0x8   : > { %11221 = vmatpush3.bf16.msra.mxu0 (!%p263_p2), %v13307_v1  ;;  %11014 = vmatprep.subr.bf16.mxu1 (!%p263_p2), %v13308_v2  ;;  %v13313_v7 = vld [vmem:[%s15328_s2 + $0x118] sm:$0xff] (!%p263_p2)   ;;  %v13315_v9 = vld [vmem:[%s15328_s2 + $0x120] sm:$0xff] (!%p263_p2)   ;;  %v13317_v14 = vld [vmem:[%s15328_s2 + $0x128] sm:$0xff] (!%p263_p2)  }
   0x9   : > { %11222 = vmatprep.subr.bf16.mxu0 (!%p263_p2), %v13309_v3  ;;  %v13318_v18 = vld [vmem:[%s15328_s2 + $0x70] sm:$0xff] (!%p263_p2)   ;;  %v13320_v20 = vld [vmem:[%s15328_s2 + $0x78] sm:$0xff] (!%p263_p2)   ;;  %v13322_v24 = vld [vmem:[%s15328_s2] sm:$0xff] (!%p263_p2)  }
   0xa   : > { %v13319_v19 = vld [vmem:[%s15328_s2 + $0x130] sm:$0xff] (!%p263_p2)   ;;  %v13321_v21 = vld [vmem:[%s15328_s2 + $0x138] sm:$0xff] (!%p263_p2)   ;;  %v13323_v27 = vld [vmem:[%s15328_s2 + $0x140] sm:$0xff] (!%p263_p2)  }
   0xb   : > { %11015 = vmatpush3.bf16.msra.mxu1 (!%p263_p2), %v13308_v2  ;;  %v13324_v35 = vld [vmem:[%s15328_s2 + $0x148] sm:$0xff] (!%p263_p2)   ;;  %v13325_v43 = vld [vmem:[%s15328_s2 + $0x150] sm:$0xff] (!%p263_p2)   ;;  %v13327_v52 = vld [vmem:[%s15328_s2 + $0x158] sm:$0xff] (!%p263_p2)  }
   0xc   : > { %11223 = vmatpush3.bf16.msra.mxu0 (!%p263_p2), %v13309_v3  ;;  %11016 = vmatprep.subr.bf16.mxu1 (!%p263_p2), %v13310_v4  ;;  %v13326_v41 = vld [vmem:[%s15328_s2 + $0x8] sm:$0xff] (!%p263_p2)   ;;  %v13329_v46 = vld [vmem:[%s15328_s2 + $0x10] sm:$0xff] (!%p263_p2)   ;;  %v13332_v55 = vld [vmem:[%s15328_s2 + $0x18] sm:$0xff] (!%p263_p2)  }
   0xd   : > { %s15336_s28 = smov (!%p296_p3, %s9696_s28), 1  ;;  %11224 = vmatprep.subr.bf16.mxu0 %v13311_v5  ;;  %v13328_v58 = vld [vmem:[%s15328_s2 + $0x160] sm:$0xff]  }
   0xe   : > { %s13296_s23 = smul.u32 328, %s15336_s28  ;;  %v13334_v0 = vld [vmem:[%s15328_s2 + $0x20] sm:$0xff]   ;;  %s10309_s16 = sshll.u32 %s15336_s28, 6 }
   0xf   : > { %11017 = vmatpush3.bf16.msra.mxu1 %v13310_v4  ;;  %v13330_v4 = vld [vmem:[%s15328_s2 + $0x168] sm:$0xff]   ;;  %s15289_s19 = scalar_lea.vmem %s15334_s8, %s10309_s16 }
  0x10   : > { %11225 = vmatpush3.bf16.msra.mxu0 %v13311_v5  ;;  %11018 = vmatprep.subr.bf16.mxu1 %v13312_v6  ;;  %s13666_s10 = scalar_lea.vmem %s15326_s0, %s13296_s23 }
  0x11   : > { %11226 = vmatprep.subr.bf16.mxu0 %v13313_v7  ;;  %v454_v11 = vld [vmem:[%s13666_s10 + $0x1] sm:$0xff]  ;;  %v455_v12 = vld [vmem:[%s13666_s10 + $0x9] sm:$0xff]  ;;  %v1639_v13 = vld [vmem:[%s13666_s10 + $0x13] sm:$0xff] }
  0x12   : > { %v490_v15 = vpack.c.bf16 %v455_v12, %v454_v11  ;;  %v1640_v16 = vld [vmem:[%s13666_s10 + $0x1b] sm:$0xff]  ;;  %v456_v22 = vld [vmem:[%s13666_s10 + $0x11] sm:$0xff]  ;;  %v1641_v25 = vld [vmem:[%s13666_s10 + $0x23] sm:$0xff] }
  0x13   : > { %11019 = vmatpush3.bf16.msra.mxu1 %v13312_v6  ;;  %v1675_v17 = vpack.c.bf16 %v1640_v16, %v1639_v13  ;;  %v457_v23 = vld [vmem:[%s13666_s10 + $0x19] sm:$0xff]  ;;  %v1642_v26 = vld [vmem:[%s13666_s10 + $0x2b] sm:$0xff]  ;;  %v458_v28 = vld [vmem:[%s13666_s10 + $0x21] sm:$0xff] }
  0x14   : > { %11227 = vmatpush3.bf16.msra.mxu0 %v13313_v7  ;;  %11020 = vmatprep.subr.bf16.mxu1 %v13314_v8  ;;  %v459_v29 = vld [vmem:[%s13666_s10 + $0x29] sm:$0xff]  ;;  %v1643_v30 = vld [vmem:[%s13666_s10 + $0x33] sm:$0xff]  ;;  %v491_v31 = vpack.c.bf16 %v457_v23, %v456_v22  ;;  %v1644_v32 = vld [vmem:[%s13666_s10 + $0x3b] sm:$0xff]  ;;  %v1676_v33 = vpack.c.bf16 %v1642_v26, %v1641_v25 }
  0x15   : > { %11228 = vmatprep.subr.bf16.mxu0 %v13315_v9  ;;  %11028 = vmatprep.mubr.bf16.mxu1 %v490_v15  ;;  %v492_v34 = vpack.c.bf16 %v459_v29, %v458_v28  ;;  %v1677_v36 = vpack.c.bf16 %v1644_v32, %v1643_v30  ;;  %v460_v37 = vld [vmem:[%s13666_s10 + $0x31] sm:$0xff]  ;;  %v461_v38 = vld [vmem:[%s13666_s10 + $0x39] sm:$0xff]  ;;  %v1645_v39 = vld [vmem:[%s13666_s10 + $0x43] sm:$0xff] }
  0x16   : > { %11236 = vmatprep.mubr.bf16.mxu0 %v1675_v17  ;;  %v1646_v40 = vld [vmem:[%s13666_s10 + $0x4b] sm:$0xff]  ;;  %v462_v42 = vld [vmem:[%s13666_s10 + $0x41] sm:$0xff]  ;;  %v1647_v45 = vld [vmem:[%s13666_s10 + $0x53] sm:$0xff]  ;;  %v493_v48 = vpack.c.bf16 %v461_v38, %v460_v37 }
  0x17   : > { %11021 = vmatpush3.bf16.msra.mxu1 %v13314_v8  ;;  %v463_v44 = vld [vmem:[%s13666_s10 + $0x49] sm:$0xff]  ;;  %v1648_v47 = vld [vmem:[%s13666_s10 + $0x5b] sm:$0xff]  ;;  %v1678_v49 = vpack.c.bf16 %v1646_v40, %v1645_v39  ;;  %v464_v53 = vld [vmem:[%s13666_s10 + $0x51] sm:$0xff] }
  0x18   : > { %11229 = vmatpush3.bf16.msra.mxu0 %v13315_v9  ;;  %11022 = vmatprep.subr.bf16.mxu1 %v13316_v10  ;;  %v494_v50 = vpack.c.bf16 %v463_v44, %v462_v42  ;;  %v1679_v51 = vpack.c.bf16 %v1648_v47, %v1647_v45  ;;  %v465_v54 = vld [vmem:[%s13666_s10 + $0x59] sm:$0xff]  ;;  %v1649_v56 = vld [vmem:[%s13666_s10 + $0x63] sm:$0xff]  ;;  %v1650_v57 = vld [vmem:[%s13666_s10 + $0x6b] sm:$0xff] }
  0x19   : > { %11230 = vmatprep.subr.bf16.mxu0 %v13317_v14  ;;  %v466_v59 = vld [vmem:[%s13666_s10 + $0x61] sm:$0xff]  ;;  %v467_v60 = vld [vmem:[%s13666_s10 + $0x69] sm:$0xff]  ;;  %v1651_v61 = vld [vmem:[%s13666_s10 + $0x73] sm:$0xff]  ;;  %v495_v63 = vpack.c.bf16 %v465_v54, %v464_v53  ;;  %v1680_v1 = vpack.c.bf16 %v1650_v57, %v1649_v56 }
  0x1a   : > { %v1652_v62 = vld [vmem:[%s13666_s10 + $0x7b] sm:$0xff]  ;;  %v496_v2 = vpack.c.bf16 %v467_v60, %v466_v59  ;;  %v468_v5 = vld [vmem:[%s13666_s10 + $0x71] sm:$0xff]  ;;  %v13336_v6 = vld [vmem:[%s15328_s2 + $0x28] sm:$0xff]  }
  0x1b   : > { %11023 = vmatpush3.bf16.msra.mxu1 %v13316_v10  ;;  %v1681_v3 = vpack.c.bf16 %v1652_v62, %v1651_v61  ;;  %v469_v7 = vld [vmem:[%s13666_s10 + $0x79] sm:$0xff]  ;;  %v1653_v8 = vld [vmem:[%s13666_s10 + $0x83] sm:$0xff]  ;;  %v1654_v9 = vld [vmem:[%s13666_s10 + $0x8b] sm:$0xff] }
  0x1c   : > { %11231 = vmatpush3.bf16.msra.mxu0 %v13317_v14  ;;  %11024 = vmatprep.subr.bf16.mxu1 %v13318_v18  ;;  %v470_v10 = vld [vmem:[%s13666_s10 + $0x81] sm:$0xff]  ;;  %v471_v11 = vld [vmem:[%s13666_s10 + $0x89] sm:$0xff]  ;;  %v1971_v13 = vld [vmem:[%s13666_s10 + $0x14] sm:$0xff]  ;;  %v497_v15 = vpack.c.bf16 %v469_v7, %v468_v5  ;;  %v1682_v17 = vpack.c.bf16 %v1654_v9, %v1653_v8 }
  0x1d   : > { %11232 = vmatprep.subr.bf16.mxu0 %v13319_v19  ;;  %v13331_v12 = vld [vmem:[%s15328_s2 + $0x170] sm:$0xff]   ;;  %v1972_v14 = vld [vmem:[%s13666_s10 + $0x1c] sm:$0xff]  ;;  %v13337_v37 = vld [vmem:[%s15328_s2 + $0x188] sm:$0xff]  }
  0x1e   : > { %v13338_v16 = vld [vmem:[%s15328_s2 + $0x30] sm:$0xff]   ;;  %v473_v22 = vld [vmem:[%s13666_s10 + $0x99] sm:$0xff]  ;;  %v474_v26 = vld [vmem:[%s13666_s10 + $0xa1] sm:$0xff] }
  0x1f   : > { %11025 = vmatpush3.bf16.msra.mxu1 %v13318_v18  ;;  %v498_v18 = vpack.c.bf16 %v471_v11, %v470_v10  ;;  %v13340_v23 = vld [vmem:[%s15328_s2 + $0x38] sm:$0xff]   ;;  %v1974_v25 = vld [vmem:[%s13666_s10 + $0x2c] sm:$0xff]  ;;  %v13335_v30 = vld [vmem:[%s15328_s2 + $0x180] sm:$0xff]  }
  0x20   : > { %11233 = vmatpush3.bf16.msra.mxu0 %v13319_v19  ;;  %11026 = vmatprep.subr.bf16.mxu1 %v13320_v20  ;;  %v2007_v19 = vpack.c.bf16 %v1972_v14, %v1971_v13  ;;  %v1975_v28 = vld [vmem:[%s13666_s10 + $0x34] sm:$0xff]  ;;  %v1976_v29 = vld [vmem:[%s13666_s10 + $0x3c] sm:$0xff]  ;;  %v1977_v39 = vld [vmem:[%s13666_s10 + $0x44] sm:$0xff] }
  0x21   : > { %11234 = vmatprep.subr.bf16.mxu0 %v13321_v21  ;;  %v13784_v32 = vld [vmem:[%s15328_s2 + $0x80] sm:$0xff]   ;;  %v1978_v40 = vld [vmem:[%s13666_s10 + $0x4c] sm:$0xff]  ;;  %v1983_v57 = vld [vmem:[%s13666_s10 + $0x74] sm:$0xff] }
  0x22   : > { %v477_v38 = vld [vmem:[%s13666_s10 + $0xb9] sm:$0xff]  ;;  %v479_v42 = vld [vmem:[%s13666_s10 + $0xc9] sm:$0xff]  ;;  %v13807_v47 = vpack.c.bf16 %v1978_v40, %v1977_v39  ;;  %v486_v5 = vld [vmem:[%s13666_s10 + $0x101] sm:$0xff] }
  0x23   : > { %11027 = vmatpush3.bf16.msra.mxu1 %v13320_v20  ;;  %v13333_v20 = vld [vmem:[%s15328_s2 + $0x178] sm:$0xff]   ;;  %v13339_v45 = vld [vmem:[%s15328_s2 + $0x190] sm:$0xff]   ;;  %v1981_v53 = vld [vmem:[%s13666_s10 + $0x64] sm:$0xff] }
  0x24   : > { %11235 = vmatpush3.bf16.msra.mxu0 %v13321_v21  ;;  %11064 = vmatprep.subr.bf16.mxu1 %v13322_v24  ;;  %v472_v21 = vld [vmem:[%s13666_s10 + $0x91] sm:$0xff]  ;;  %v1980_v44 = vld [vmem:[%s13666_s10 + $0x5c] sm:$0xff]  ;;  %v483_v56 = vld [vmem:[%s13666_s10 + $0xe9] sm:$0xff] }
  0x25   : > { %11272 = vmatprep.subr.bf16.mxu0 %v13323_v27  ;;  %v1982_v54 = vld [vmem:[%s13666_s10 + $0x6c] sm:$0xff]  ;;  %v13343_v59 = vld [vmem:[%s15328_s2 + $0x1a0] sm:$0xff]   ;;  %v1987_v7 = vld [vmem:[%s13666_s10 + $0x94] sm:$0xff] }
  0x26   : > { %11029 = vmatmul.mubr.bf16.vlgmr.msra.gmra.mrb[0].mxu1 %v491_v31  ;;  %v499_v31 = vpack.c.bf16 %v473_v22, %v472_v21  ;;  %v13827_v61 = vpack.c.bf16 %v1982_v54, %v1981_v53  ;;  %v1988_v8 = vld [vmem:[%s13666_s10 + $0x9c] sm:$0xff]  ;;  %v13347_v9 = vld [vmem:[%s15328_s2 + $0x1b0] sm:$0xff]  }
  0x27   : > { %11237 = vmatmul.mubr.bf16.vlgmr.msra.gmra.mrb[0].mxu0 %v1676_v33  ;;  %11065 = vmatpush3.bf16.msra.mxu1 %v13322_v24  ;;  %v1973_v24 = vld [vmem:[%s13666_s10 + $0x24] sm:$0xff]  ;;  %v13849_v13 = vpack.c.bf16 %v1988_v8, %v1987_v7  ;;  %v488_v14 = vld [vmem:[%s13666_s10 + $0x111] sm:$0xff]  ;;  %v1992_v22 = vld [vmem:[%s13666_s10 + $0xbc] sm:$0xff] }
  0x28   : > { %11273 = vmatpush3.bf16.msra.mxu0 %v13323_v27  ;;  %11032 = vmatprep.mubr.bf16.mxu1 %v492_v34  ;;  %v475_v27 = vld [vmem:[%s13666_s10 + $0xa9] sm:$0xff]  ;;  %v13786_v33 = vpack.c.bf16 %v1974_v25, %v1973_v24  ;;  %v1991_v21 = vld [vmem:[%s13666_s10 + $0xb4] sm:$0xff]  ;;  %v2000_v54 = vld [vmem:[%s13666_s10 + $0xfc] sm:$0xff] }
  0x29   : > { %11274 = vmatprep.subr.bf16.mxu0 %v13324_v35  ;;  %11240 = vmatprep.mubr.bf16.mxu0 %v1677_v36  ;;  %v500_v34 = vpack.c.bf16 %v475_v27, %v474_v26  ;;  %v476_v36 = vld [vmem:[%s13666_s10 + $0xb1] sm:$0xff]  ;;  %v13871_v27 = vpack.c.bf16 %v1992_v22, %v1991_v21 }
  0x2a   : > { %11066 = vmatprep.subr.bf16.mxu1 %v13326_v41  ;;  %v1999_v53 = vld [vmem:[%s13666_s10 + $0xf4] sm:$0xff] }
  0x2b   : > { %11067 = vmatpush3.bf16.msra.mxu1 %v13326_v41  ;;  %v478_v41 = vld [vmem:[%s13666_s10 + $0xc1] sm:$0xff] }
  0x2c   : > { %11275 = vmatpush3.bf16.msra.mxu0 %v13324_v35  ;;  %11068 = vmatprep.subr.bf16.mxu1 %v13329_v46  ;;  %v13788_v35 = vpack.c.bf16 %v1976_v29, %v1975_v28  ;;  %v386_v28 = vld [vmem:[%s13666_s10 + $0x10] sm:$0xff]  ;;  %v387_v29 = vld [vmem:[%s13666_s10 + $0x18] sm:$0xff] }
  0x2d   : > { %11276 = vmatprep.subr.bf16.mxu0 %v13325_v43  ;;  %v421_v39 = vpack.c.bf16 %v387_v29, %v386_v28  ;;  %v403_v28 = vld [vmem:[%s13666_s10 + $0x98] sm:$0xff]  ;;  %v404_v29 = vld [vmem:[%s13666_s10 + $0xa0] sm:$0xff] }
  0x2e   : > { %11033 = vmatmul.mubr.bf16.gmra.mrb[4].mxu1 %v493_v48  ;;  %v502_v48 = vpack.c.bf16 %v479_v42, %v478_v41 }
  0x2f   : > { %11241 = vmatmul.mubr.bf16.gmra.mrb[4].mxu0 %v1678_v49  ;;  %11036 = vmatprep.mubr.bf16.mxu1 %v494_v50  ;;  %v13341_v50 = vld [vmem:[%s15328_s2 + $0x198] sm:$0xff]  }
  0x30   : > { %11277 = vmatpush3.bf16.msra.mxu0 %v13325_v43  ;;  %11244 = vmatprep.mubr.bf16.mxu0 %v1679_v51  ;;  %v1979_v43 = vld [vmem:[%s13666_s10 + $0x54] sm:$0xff] }
  0x31   : > { %11278 = vmatprep.subr.bf16.mxu0 %v13327_v52  ;;  %11069 = vmatpush3.bf16.msra.mxu1 %v13329_v46  ;;  %v501_v46 = vpack.c.bf16 %v477_v38, %v476_v36  ;;  %v13809_v49 = vpack.c.bf16 %v1980_v44, %v1979_v43  ;;  %v480_v51 = vld [vmem:[%s13666_s10 + $0xd1] sm:$0xff]  ;;  %v389_v36 = vld [vmem:[%s13666_s10 + $0x28] sm:$0xff]  ;;  %v1996_v38 = vld [vmem:[%s13666_s10 + $0xdc] sm:$0xff] }
  0x32   : > { %11070 = vmatprep.subr.bf16.mxu1 %v13332_v55  ;;  %v13344_v43 = vld [vmem:[%s15328_s2 + $0x88] sm:$0xff]   ;;  %v390_v44 = vld [vmem:[%s13666_s10 + $0x30] sm:$0xff] }
  0x34   : > { %11279 = vmatpush3.bf16.msra.mxu0 %v13327_v52  ;;  %v481_v52 = vld [vmem:[%s13666_s10 + $0xd9] sm:$0xff] }
  0x35   : > { %11280 = vmatprep.subr.bf16.mxu0 %v13328_v58  ;;  %11071 = vmatpush3.bf16.msra.mxu1 %v13332_v55  ;;  %v482_v55 = vld [vmem:[%s13666_s10 + $0xe1] sm:$0xff]  ;;  %v503_v60 = vpack.c.bf16 %v481_v52, %v480_v51  ;;  %v13346_v52 = vld [vmem:[%s15328_s2 + $0x90] sm:$0xff]  }
  0x36   : > { %11037 = vmatmul.mubr.bf16.gmra.mrb[8].mxu1 %v495_v63  ;;  %11072 = vmatprep.subr.bf16.mxu1 %v13334_v0  ;;  %v504_v62 = vpack.c.bf16 %v483_v56, %v482_v55  ;;  %v393_v51 = vld [vmem:[%s13666_s10 + $0x48] sm:$0xff] }
  0x37   : > { %11245 = vmatmul.mubr.bf16.gmra.mrb[8].mxu0 %v1680_v1  ;;  %11040 = vmatprep.mubr.bf16.mxu1 %v496_v2  ;;  %v485_v1 = vld [vmem:[%s13666_s10 + $0xf9] sm:$0xff]  ;;  %v13345_v2 = vld [vmem:[%s15328_s2 + $0x1a8] sm:$0xff]  }
  0x38   : > { %11281 = vmatpush3.bf16.msra.mxu0 %v13328_v58  ;;  %11248 = vmatprep.mubr.bf16.mxu0 %v1681_v3  ;;  %v1984_v58 = vld [vmem:[%s13666_s10 + $0x7c] sm:$0xff]  ;;  %v1985_v3 = vld [vmem:[%s13666_s10 + $0x84] sm:$0xff] }
  0x39   : > { %11282 = vmatprep.subr.bf16.mxu0 %v13330_v4  ;;  %11073 = vmatpush3.bf16.msra.mxu1 %v13334_v0  ;;  %v13829_v63 = vpack.c.bf16 %v1984_v58, %v1983_v57  ;;  %v484_v0 = vld [vmem:[%s13666_s10 + $0xf1] sm:$0xff]  ;;  %v13907_v57 = vpack.c.bf16 %v2000_v54, %v1999_v53 }
  0x3a   : > { %11074 = vmatprep.subr.bf16.mxu1 %v13336_v6  ;;  %v505_v10 = vpack.c.bf16 %v485_v1, %v484_v0  ;;  %v13348_v58 = vld [vmem:[%s15328_s2 + $0x98] sm:$0xff]   ;;  %v2002_v0 = vld [vmem:[%s13666_s10 + $0x10c] sm:$0xff]  ;;  %v396_v1 = vld [vmem:[%s13666_s10 + $0x60] sm:$0xff] }
  0x3b   : > { %v414_v53 = vld [vmem:[%s13666_s10 + $0xf0] sm:$0xff]  ;;  %v415_v54 = vld [vmem:[%s13666_s10 + $0xf8] sm:$0xff] }
  0x3c   : > { %11283 = vmatpush3.bf16.msra.mxu0 %v13330_v4  ;;  %v1986_v4 = vld [vmem:[%s13666_s10 + $0x8c] sm:$0xff] }
  0x3d   : > { %11284 = vmatprep.subr.bf16.mxu0 %v13331_v12  ;;  %11075 = vmatpush3.bf16.msra.mxu1 %v13336_v6  ;;  %v487_v6 = vld [vmem:[%s13666_s10 + $0x109] sm:$0xff]  ;;  %v13847_v11 = vpack.c.bf16 %v1986_v4, %v1985_v3  ;;  %v2003_v3 = vld [vmem:[%s13666_s10 + $0x114] sm:$0xff]  ;;  %v2004_v4 = vld [vmem:[%s13666_s10 + $0x11c] sm:$0xff] }
  0x3e   : > { %11041 = vmatmul.mubr.bf16.gmra.mrb[12].mxu1 %v497_v15  ;;  %11076 = vmatprep.subr.bf16.mxu1 %v13338_v16  ;;  %v13349_v15 = vld [vmem:[%s15328_s2 + $0x1b8] sm:$0xff]  }
  0x3f   : > { %11249 = vmatmul.mubr.bf16.gmra.mrb[12].mxu0 %v1682_v17  ;;  %11044 = vmatprep.mubr.bf16.mxu1 %v498_v18  ;;  %v1989_v17 = vld [vmem:[%s13666_s10 + $0xa4] sm:$0xff]  ;;  %v1990_v18 = vld [vmem:[%s13666_s10 + $0xac] sm:$0xff] }
  0x40   : > { %11285 = vmatpush3.bf16.msra.mxu0 %v13331_v12  ;;  %11288 = vmatprep.mubr.bf16.mxu0 %v2007_v19  ;;  %v506_v12 = vpack.c.bf16 %v487_v6, %v486_v5  ;;  %v384_v19 = vld [vmem:[%s13666_s10] sm:$0xff]  ;;  %v13869_v25 = vpack.c.bf16 %v1990_v18, %v1989_v17  ;;  %v401_v18 = vld [vmem:[%s13666_s10 + $0x88] sm:$0xff] }
  0x41   : > { %11286 = vmatprep.subr.bf16.mxu0 %v13333_v20  ;;  %11077 = vmatpush3.bf16.msra.mxu1 %v13338_v16  ;;  %v489_v16 = vld [vmem:[%s13666_s10 + $0x119] sm:$0xff] }
  0x42   : > { %11078 = vmatprep.subr.bf16.mxu1 %v13340_v23  ;;  %v507_v24 = vpack.c.bf16 %v489_v16, %v488_v14  ;;  %v13350_v5 = vld [vmem:[%s15328_s2 + $0xa0] sm:$0xff]   ;;  %v399_v14 = vld [vmem:[%s13666_s10 + $0x78] sm:$0xff]  ;;  %v2006_v16 = vld [vmem:[%s13666_s10 + $0x12c] sm:$0xff] }
  0x43   : > { %v400_v17 = vld [vmem:[%s13666_s10 + $0x80] sm:$0xff] }
  0x44   : > { %11287 = vmatpush3.bf16.msra.mxu0 %v13333_v20  ;;  %v385_v20 = vld [vmem:[%s13666_s10 + $0x8] sm:$0xff]  ;;  %v428_v22 = vpack.c.bf16 %v401_v18, %v400_v17  ;;  %v13364_v17 = vld [vmem:[%s15328_s2 + $0xd8] sm:$0xff]  }
  0x45   : > { %11324 = vmatprep.subr.bf16.mxu0 %v13335_v30  ;;  %11079 = vmatpush3.bf16.msra.mxu1 %v13340_v23  ;;  %v13867_v23 = vld [vmem:[%s15328_s2 + $0x1c0] sm:$0xff]   ;;  %v420_v26 = vpack.c.bf16 %v385_v20, %v384_v19  ;;  %v13354_v19 = vld [vmem:[%s15328_s2 + $0xb0] sm:$0xff]  }
  0x46   : > { %11045 = vmatmul.mubr.bf16.gmra.mrb[16].mxu1 %v499_v31  ;;  %11116 = vmatprep.subr.bf16.mxu1 %v13784_v32  ;;  %v1994_v31 = vld [vmem:[%s13666_s10 + $0xcc] sm:$0xff]  ;;  %v986_v18 = vld [vmem:[%s13666_s10 + $0x5a] sm:$0xff] }
  0x47   : > { %11289 = vmatmul.mubr.bf16.vlgmr.msra.gmra.mrb[0].mxu0 %v13786_v33  ;;  %11048 = vmatprep.mubr.bf16.mxu1 %v500_v34  ;;  %v388_v34 = vld [vmem:[%s13666_s10 + $0x20] sm:$0xff] }
  0x48   : > { %11292 = vmatprep.mubr.bf16.mxu0 %v13788_v35  ;;  %11325 = vmatpush3.bf16.msra.mxu0 %v13335_v30  ;;  %v1993_v30 = vld [vmem:[%s13666_s10 + $0xc4] sm:$0xff]  ;;  %v422_v41 = vpack.c.bf16 %v389_v36, %v388_v34 }
  0x49   : > { %11326 = vmatprep.subr.bf16.mxu0 %v13337_v37  ;;  %v13884_v40 = vpack.c.bf16 %v1994_v31, %v1993_v30  ;;  %v405_v30 = vld [vmem:[%s13666_s10 + $0xa8] sm:$0xff]  ;;  %v13957_v31 = vld [vmem:[%s15328_s2 + $0xc0] sm:$0xff]  }
  0x4a   : > { %v430_v36 = vpack.c.bf16 %v405_v30, %v404_v29  ;;  %v2337_v29 = vld [vmem:[%s13666_s10 + $0x134] sm:$0xff]  ;;  %v2338_v30 = vld [vmem:[%s13666_s10 + $0x13c] sm:$0xff] }
  0x4c   : > { %11327 = vmatpush3.bf16.msra.mxu0 %v13337_v37  ;;  %v1995_v37 = vld [vmem:[%s13666_s10 + $0xd4] sm:$0xff] }
  0x4d   : > { %11328 = vmatprep.subr.bf16.mxu0 %v13339_v45  ;;  %v13886_v42 = vpack.c.bf16 %v1996_v38, %v1995_v37  ;;  %v13353_v37 = vld [vmem:[%s15328_s2 + $0x1c8] sm:$0xff]   ;;  %v406_v38 = vld [vmem:[%s13666_s10 + $0xb0] sm:$0xff] }
  0x4e   : > { %11049 = vmatmul.mubr.bf16.gmra.mrb[20].mxu1 %v501_v46  ;;  %v1997_v46 = vld [vmem:[%s13666_s10 + $0xe4] sm:$0xff] }
  0x4f   : > { %11293 = vmatmul.mubr.bf16.gmra.mrb[4].mxu0 %v13807_v47  ;;  %11052 = vmatprep.mubr.bf16.mxu1 %v502_v48  ;;  %v1998_v48 = vld [vmem:[%s13666_s10 + $0xec] sm:$0xff] }
  0x50   : > { %11296 = vmatprep.mubr.bf16.mxu0 %v13809_v49  ;;  %11329 = vmatpush3.bf16.msra.mxu0 %v13339_v45  ;;  %v391_v45 = vld [vmem:[%s13666_s10 + $0x38] sm:$0xff]  ;;  %v13905_v55 = vpack.c.bf16 %v1998_v48, %v1997_v46  ;;  %v410_v46 = vld [vmem:[%s13666_s10 + $0xd0] sm:$0xff] }
  0x51   : > { %11330 = vmatprep.subr.bf16.mxu0 %v13341_v50  ;;  %v411_v48 = vld [vmem:[%s13666_s10 + $0xd8] sm:$0xff] }
  0x54   : > { %11331 = vmatpush3.bf16.msra.mxu0 %v13341_v50  ;;  %v392_v50 = vld [vmem:[%s13666_s10 + $0x40] sm:$0xff] }
  0x55   : > { %11332 = vmatprep.subr.bf16.mxu0 %v13343_v59  ;;  %v424_v56 = vpack.c.bf16 %v393_v51, %v392_v50  ;;  %v13359_v50 = vld [vmem:[%s15328_s2 + $0x1e0] sm:$0xff]   ;;  %v433_v51 = vpack.c.bf16 %v411_v48, %v410_v46  ;;  %v996_v48 = vld [vmem:[%s13666_s10 + $0xaa] sm:$0xff] }
  0x56   : > { %11053 = vmatmul.mubr.bf16.gmra.mrb[24].mxu1 %v503_v60  ;;  %v395_v60 = vld [vmem:[%s13666_s10 + $0x58] sm:$0xff]  ;;  %v995_v46 = vld [vmem:[%s13666_s10 + $0xa2] sm:$0xff] }
  0x57   : > { %11297 = vmatmul.mubr.bf16.gmra.mrb[8].mxu0 %v13827_v61  ;;  %11056 = vmatprep.mubr.bf16.mxu1 %v504_v62  ;;  %v2001_v62 = vld [vmem:[%s13666_s10 + $0x104] sm:$0xff] }
  0x58   : > { %11300 = vmatprep.mubr.bf16.mxu0 %v13829_v63  ;;  %11333 = vmatpush3.bf16.msra.mxu0 %v13343_v59  ;;  %v394_v59 = vld [vmem:[%s13666_s10 + $0x50] sm:$0xff]  ;;  %v13925_v7 = vpack.c.bf16 %v2002_v0, %v2001_v62  ;;  %v419_v62 = vld [vmem:[%s13666_s10 + $0x118] sm:$0xff]  ;;  %v975_v0 = vld [vmem:[%s13666_s10 + $0x2] sm:$0xff] }
  0x59   : > { %11334 = vmatprep.subr.bf16.mxu0 %v13345_v2  ;;  %v425_v6 = vpack.c.bf16 %v395_v60, %v394_v59  ;;  %v13365_v60 = vld [vmem:[%s15328_s2 + $0x1f8] sm:$0xff]  }
  0x5c   : > { %11335 = vmatpush3.bf16.msra.mxu0 %v13345_v2  ;;  %v397_v2 = vld [vmem:[%s13666_s10 + $0x68] sm:$0xff] }
  0x5d   : > { %11336 = vmatprep.subr.bf16.mxu0 %v13347_v9  ;;  %v426_v8 = vpack.c.bf16 %v397_v2, %v396_v1  ;;  %v14008_v1 = vld [vmem:[%s15328_s2 + $0x200] sm:$0xff]  }
  0x5e   : > { %11057 = vmatmul.mubr.bf16.gmra.mrb[28].mxu1 %v505_v10  ;;  %v13352_v10 = vld [vmem:[%s15328_s2 + $0xa8] sm:$0xff]  }
  0x5f   : > { %11301 = vmatmul.mubr.bf16.gmra.mrb[12].mxu0 %v13847_v11  ;;  %11060 = vmatprep.mubr.bf16.mxu1 %v506_v12  ;;  %v398_v12 = vld [vmem:[%s13666_s10 + $0x70] sm:$0xff] }
  0x60   : > { %11304 = vmatprep.mubr.bf16.mxu0 %v13849_v13  ;;  %11337 = vmatpush3.bf16.msra.mxu0 %v13347_v9  ;;  %v13927_v9 = vpack.c.bf16 %v2004_v4, %v2003_v3  ;;  %v427_v20 = vpack.c.bf16 %v399_v14, %v398_v12  ;;  %v977_v4 = vld [vmem:[%s13666_s10 + $0x12] sm:$0xff]  ;;  %v983_v14 = vld [vmem:[%s13666_s10 + $0x42] sm:$0xff] }
  0x61   : > { %11338 = vmatprep.subr.bf16.mxu0 %v13349_v15  ;;  %v981_v12 = vld [vmem:[%s13666_s10 + $0x32] sm:$0xff] }
  0x64   : > { %11339 = vmatpush3.bf16.msra.mxu0 %v13349_v15  ;;  %v2005_v15 = vld [vmem:[%s13666_s10 + $0x124] sm:$0xff] }
  0x65   : > { %11376 = vmatprep.subr.bf16.mxu0 %v13867_v23  ;;  %v13943_v21 = vpack.c.bf16 %v2006_v16, %v2005_v15  ;;  %v13362_v15 = vld [vmem:[%s15328_s2 + $0xd0] sm:$0xff]  }
  0x66   : > { %11061 = vmatmul.mubr.bf16.gmra.mrb[32].mxu1 %v507_v24  ;;  %v13356_v24 = vld [vmem:[%s15328_s2 + $0xb8] sm:$0xff]  }
  0x67   : > { %11305 = vmatmul.mubr.bf16.gmra.mrb[16].mxu0 %v13869_v25  ;;  %11080 = vmatprep.mubr.bf16.mxu1 %v420_v26  ;;  %v402_v26 = vld [vmem:[%s13666_s10 + $0x90] sm:$0xff] }
  0x68   : > { %11308 = vmatprep.mubr.bf16.mxu0 %v13871_v27  ;;  %v429_v34 = vpack.c.bf16 %v403_v28, %v402_v26  ;;  %v989_v26 = vld [vmem:[%s13666_s10 + $0x72] sm:$0xff]  ;;  %v990_v28 = vld [vmem:[%s13666_s10 + $0x7a] sm:$0xff] }
  0x6e   : > { %11081 = vmatmul.mubr.bf16.vlgmr.msra.gmra.mrb[0].mxu1 %v421_v39  ;;  %v407_v39 = vld [vmem:[%s13666_s10 + $0xb8] sm:$0xff] }
  0x6f   : > { %11309 = vmatmul.mubr.bf16.gmra.mrb[20].mxu0 %v13884_v40  ;;  %11117 = vmatpush3.bf16.msra.mxu1 %v13784_v32  ;;  %v423_v32 = vpack.c.bf16 %v391_v45, %v390_v44  ;;  %v431_v44 = vpack.c.bf16 %v407_v39, %v406_v38  ;;  %v13370_v38 = vld [vmem:[%s15328_s2 + $0xf0] sm:$0xff]   ;;  %v2356_v39 = vpack.c.bf16 %v2338_v30, %v2337_v29  ;;  %v1007_v29 = vld [vmem:[%s13666_s10 + $0x102] sm:$0xff] }
  0x70   : > { %11084 = vmatprep.mubr.bf16.mxu1 %v422_v41  ;;  %11312 = vmatprep.mubr.bf16.mxu0 %v13886_v42  ;;  %v409_v41 = vld [vmem:[%s13666_s10 + $0xc8] sm:$0xff] }
  0x71   : > { %11118 = vmatprep.subr.bf16.mxu1 %v13344_v43  ;;  %v1008_v30 = vld [vmem:[%s13666_s10 + $0x10a] sm:$0xff] }
  0x73   : > { %11119 = vmatpush3.bf16.msra.mxu1 %v13344_v43  ;;  %v13355_v43 = vld [vmem:[%s15328_s2 + $0x1d0] sm:$0xff]  }
  0x74   : > { %11120 = vmatprep.subr.bf16.mxu1 %v13346_v52 }
  0x76   : > { %11085 = vmatmul.mubr.bf16.gmra.mrb[4].mxu1 %v423_v32  ;;  %v416_v32 = vld [vmem:[%s13666_s10 + $0x100] sm:$0xff] }
  0x77   : > { %11313 = vmatmul.mubr.bf16.gmra.mrb[24].mxu0 %v13905_v55  ;;  %11088 = vmatprep.mubr.bf16.mxu1 %v424_v56  ;;  %v13363_v56 = vld [vmem:[%s15328_s2 + $0x1f0] sm:$0xff]  }
  0x78   : > { %11316 = vmatprep.mubr.bf16.mxu0 %v13907_v57  ;;  %11121 = vmatpush3.bf16.msra.mxu1 %v13346_v52 }
  0x79   : > { %11122 = vmatprep.subr.bf16.mxu1 %v13348_v58 }
  0x7c   : > { %11123 = vmatpush3.bf16.msra.mxu1 %v13348_v58  ;;  %v435_v58 = vpack.c.bf16 %v415_v54, %v414_v53  ;;  %v13369_v53 = vld [vmem:[%s15328_s2 + $0x208] sm:$0xff]   ;;  %v997_v54 = vld [vmem:[%s13666_s10 + $0xb2] sm:$0xff] }
  0x7d   : > { %11124 = vmatprep.subr.bf16.mxu1 %v13350_v5 }
  0x7e   : > { %11089 = vmatmul.mubr.bf16.gmra.mrb[8].mxu1 %v425_v6  ;;  %v980_v6 = vld [vmem:[%s13666_s10 + $0x2a] sm:$0xff] }
  0x7f   : > { %11317 = vmatmul.mubr.bf16.gmra.mrb[28].mxu0 %v13925_v7  ;;  %11092 = vmatprep.mubr.bf16.mxu1 %v426_v8 }
  0x80   : > { %11320 = vmatprep.mubr.bf16.mxu0 %v13927_v9  ;;  %11125 = vmatpush3.bf16.msra.mxu1 %v13350_v5  ;;  %v979_v5 = vld [vmem:[%s13666_s10 + $0x22] sm:$0xff] }
  0x81   : > { %11126 = vmatprep.subr.bf16.mxu1 %v13352_v10  ;;  %v14020_v8 = vpack.c.bf16 %v980_v6, %v979_v5  ;;  %v1002_v5 = vld [vmem:[%s13666_s10 + $0xda] sm:$0xff] }
  0x82   : > { %v2645_v6 = vld [vmem:[%s13666_s10 + $0x75] sm:$0xff] }
  0x84   : > { %11127 = vmatpush3.bf16.msra.mxu1 %v13352_v10  ;;  %v13360_v10 = vld [vmem:[%s15328_s2 + $0xc8] sm:$0xff]  }
  0x85   : > { %11128 = vmatprep.subr.bf16.mxu1 %v13354_v19 }
  0x86   : > { %11093 = vmatmul.mubr.bf16.gmra.mrb[12].mxu1 %v427_v20  ;;  %v988_v20 = vld [vmem:[%s13666_s10 + $0x6a] sm:$0xff] }
  0x87   : > { %11321 = vmatmul.mubr.bf16.gmra.mrb[32].mxu0 %v13943_v21  ;;  %11096 = vmatprep.mubr.bf16.mxu1 %v428_v22  ;;  %v13366_v22 = vld [vmem:[%s15328_s2 + $0xe0] sm:$0xff]  }
  0x88   : > { %11340 = vmatprep.mubr.bf16.mxu0 %v13786_v33  ;;  %11129 = vmatpush3.bf16.msra.mxu1 %v13354_v19  ;;  %v408_v33 = vld [vmem:[%s13666_s10 + $0xc0] sm:$0xff] }
  0x89   : > { %11130 = vmatprep.subr.bf16.mxu1 %v13356_v24  ;;  %v432_v45 = vpack.c.bf16 %v409_v41, %v408_v33  ;;  %v987_v19 = vld [vmem:[%s13666_s10 + $0x62] sm:$0xff]  ;;  %v13372_v41 = vld [vmem:[%s15328_s2 + $0xf8] sm:$0xff]  }
  0x8c   : > { %11131 = vmatpush3.bf16.msra.mxu1 %v13356_v24  ;;  %v14057_v24 = vpack.c.bf16 %v988_v20, %v987_v19  ;;  %v13375_v19 = vld [vmem:[%s15328_s2 + $0x228] sm:$0xff]  }
  0x8d   : > { %11168 = vmatprep.subr.bf16.mxu1 %v13957_v31 }
  0x8e   : > { %11097 = vmatmul.mubr.bf16.gmra.mrb[16].mxu1 %v429_v34  ;;  %v992_v34 = vld [vmem:[%s13666_s10 + $0x8a] sm:$0xff] }
  0x8f   : > { %11341 = vmatmul.mubr.bf16.vlgmr.msra.gmra.mrb[0].mxu0 %v13788_v35  ;;  %11100 = vmatprep.mubr.bf16.mxu1 %v430_v36  ;;  %v13357_v35 = vld [vmem:[%s15328_s2 + $0x1d8] sm:$0xff]   ;;  %v2635_v36 = vld [vmem:[%s13666_s10 + $0x25] sm:$0xff] }
  0x90   : > { %11344 = vmatprep.mubr.bf16.mxu0 %v13807_v47  ;;  %11377 = vmatpush3.bf16.msra.mxu0 %v13867_v23  ;;  %v412_v47 = vld [vmem:[%s13666_s10 + $0xe0] sm:$0xff]  ;;  %v413_v23 = vld [vmem:[%s13666_s10 + $0xe8] sm:$0xff] }
  0x91   : > { %11378 = vmatprep.subr.bf16.mxu0 %v13353_v37  ;;  %v434_v52 = vpack.c.bf16 %v413_v23, %v412_v47  ;;  %v2639_v47 = vld [vmem:[%s13666_s10 + $0x45] sm:$0xff]  ;;  %v2640_v23 = vld [vmem:[%s13666_s10 + $0x4d] sm:$0xff] }
  0x94   : > { %11379 = vmatpush3.bf16.msra.mxu0 %v13353_v37  ;;  %v2636_v37 = vld [vmem:[%s13666_s10 + $0x2d] sm:$0xff] }
  0x95   : > { %11380 = vmatprep.subr.bf16.mxu0 %v13355_v43 }
  0x96   : > { %11101 = vmatmul.mubr.bf16.gmra.mrb[20].mxu1 %v431_v44  ;;  %v994_v44 = vld [vmem:[%s13666_s10 + $0x9a] sm:$0xff] }
  0x97   : > { %11345 = vmatmul.mubr.bf16.gmra.mrb[4].mxu0 %v13809_v49  ;;  %11104 = vmatprep.mubr.bf16.mxu1 %v432_v45  ;;  %v13361_v49 = vld [vmem:[%s15328_s2 + $0x1e8] sm:$0xff]   ;;  %v2637_v45 = vld [vmem:[%s13666_s10 + $0x35] sm:$0xff] }
  0x98   : > { %11348 = vmatprep.mubr.bf16.mxu0 %v13827_v61  ;;  %11381 = vmatpush3.bf16.msra.mxu0 %v13355_v43  ;;  %v417_v61 = vld [vmem:[%s13666_s10 + $0x108] sm:$0xff]  ;;  %v993_v43 = vld [vmem:[%s13666_s10 + $0x92] sm:$0xff] }
  0x99   : > { %11382 = vmatprep.subr.bf16.mxu0 %v13357_v35  ;;  %v436_v59 = vpack.c.bf16 %v417_v61, %v416_v32  ;;  %v998_v32 = vld [vmem:[%s13666_s10 + $0xba] sm:$0xff] }
  0x9a   : > { %v14106_v61 = vld [vmem:[%s15328_s2 + $0x100] sm:$0xff]  }
  0x9c   : > { %11383 = vmatpush3.bf16.msra.mxu0 %v13357_v35  ;;  %v2638_v35 = vld [vmem:[%s13666_s10 + $0x3d] sm:$0xff] }
  0x9d   : > { %11384 = vmatprep.subr.bf16.mxu0 %v13359_v50 }
  0x9e   : > { %11105 = vmatmul.mubr.bf16.gmra.mrb[24].mxu1 %v433_v51  ;;  %v2672_v51 = vpack.c.bf16 %v2638_v35, %v2637_v45  ;;  %v2653_v45 = vld [vmem:[%s13666_s10 + $0xb5] sm:$0xff]  ;;  %v2654_v35 = vld [vmem:[%s13666_s10 + $0xbd] sm:$0xff] }
  0x9f   : > { %11349 = vmatmul.mubr.bf16.gmra.mrb[8].mxu0 %v13829_v63  ;;  %11108 = vmatprep.mubr.bf16.mxu1 %v434_v52  ;;  %v418_v63 = vld [vmem:[%s13666_s10 + $0x110] sm:$0xff]  ;;  %v14096_v52 = vpack.c.bf16 %v996_v48, %v995_v46  ;;  %v2655_v46 = vld [vmem:[%s13666_s10 + $0xc5] sm:$0xff] }
  0xa0   : > { %11352 = vmatprep.mubr.bf16.mxu0 %v13847_v11  ;;  %11385 = vmatpush3.bf16.msra.mxu0 %v13359_v50  ;;  %v976_v11 = vld [vmem:[%s13666_s10 + $0xa] sm:$0xff]  ;;  %v437_v2 = vpack.c.bf16 %v419_v62, %v418_v63  ;;  %v14094_v50 = vpack.c.bf16 %v994_v44, %v993_v43  ;;  %v1009_v43 = vld [vmem:[%s13666_s10 + $0x112] sm:$0xff]  ;;  %v1010_v44 = vld [vmem:[%s13666_s10 + $0x11a] sm:$0xff] }
  0xa1   : > { %11386 = vmatprep.subr.bf16.mxu0 %v13361_v49  ;;  %v1011_v3 = vpack.c.bf16 %v976_v11, %v975_v0  ;;  %v2643_v63 = vld [vmem:[%s13666_s10 + $0x65] sm:$0xff]  ;;  %v2644_v62 = vld [vmem:[%s13666_s10 + $0x6d] sm:$0xff]  ;;  %v14121_v11 = vpack.c.bf16 %v998_v32, %v997_v54 }
  0xa2   : > { %v13371_v0 = vld [vmem:[%s15328_s2 + $0x210] sm:$0xff]   ;;  %v2659_v54 = vld [vmem:[%s13666_s10 + $0xe5] sm:$0xff] }
  0xa3   : > { %v2656_v48 = vld [vmem:[%s13666_s10 + $0xcd] sm:$0xff] }
  0xa4   : > { %11387 = vmatpush3.bf16.msra.mxu0 %v13361_v49  ;;  %v2673_v49 = vpack.c.bf16 %v2640_v23, %v2639_v47  ;;  %v14176_v47 = vpack.c.bf16 %v1010_v44, %v1009_v43  ;;  %v2680_v23 = vpack.c.bf16 %v2654_v35, %v2653_v45  ;;  %v2660_v32 = vld [vmem:[%s13666_s10 + $0xed] sm:$0xff] }
  0xa5   : > { %11388 = vmatprep.subr.bf16.mxu0 %v13363_v56  ;;  %v2984_v43 = vld [vmem:[%s13666_s10 + $0xae] sm:$0xff] }
  0xa6   : > { %11109 = vmatmul.mubr.bf16.gmra.mrb[28].mxu1 %v435_v58  ;;  %v2642_v58 = vld [vmem:[%s13666_s10 + $0x5d] sm:$0xff]  ;;  %v1342_v35 = vld [vmem:[%s13666_s10 + $0x12a] sm:$0xff] }
  0xa7   : > { %11353 = vmatmul.mubr.bf16.gmra.mrb[12].mxu0 %v13849_v13  ;;  %11112 = vmatprep.mubr.bf16.mxu1 %v436_v59  ;;  %v978_v13 = vld [vmem:[%s13666_s10 + $0x1a] sm:$0xff]  ;;  %v999_v59 = vld [vmem:[%s13666_s10 + $0xc2] sm:$0xff] }
  0xa8   : > { %11356 = vmatprep.mubr.bf16.mxu0 %v13869_v25  ;;  %11389 = vmatpush3.bf16.msra.mxu0 %v13363_v56  ;;  %v14018_v25 = vpack.c.bf16 %v978_v13, %v977_v4  ;;  %v2641_v56 = vld [vmem:[%s13666_s10 + $0x55] sm:$0xff]  ;;  %v2675_v4 = vpack.c.bf16 %v2644_v62, %v2643_v63  ;;  %v2663_v63 = vld [vmem:[%s13666_s10 + $0x105] sm:$0xff]  ;;  %v2664_v62 = vld [vmem:[%s13666_s10 + $0x10d] sm:$0xff] }
  0xa9   : > { %11390 = vmatprep.subr.bf16.mxu0 %v13365_v60  ;;  %v1001_v13 = vld [vmem:[%s13666_s10 + $0xd2] sm:$0xff] }
  0xac   : > { %11391 = vmatpush3.bf16.msra.mxu0 %v13365_v60  ;;  %v1000_v60 = vld [vmem:[%s13666_s10 + $0xca] sm:$0xff] }
  0xad   : > { %11428 = vmatprep.subr.bf16.mxu0 %v14008_v1 }
  0xae   : > { %11113 = vmatmul.mubr.bf16.gmra.mrb[32].mxu1 %v437_v2  ;;  %v2674_v2 = vpack.c.bf16 %v2642_v58, %v2641_v56  ;;  %v2683_v58 = vpack.c.bf16 %v2660_v32, %v2659_v54  ;;  %v1657_v32 = vld [vmem:[%s13666_s10 + $0xa3] sm:$0xff] }
  0xaf   : > { %11357 = vmatmul.mubr.bf16.gmra.mrb[16].mxu0 %v13871_v27  ;;  %11132 = vmatprep.mubr.bf16.mxu1 %v1011_v3  ;;  %v982_v27 = vld [vmem:[%s13666_s10 + $0x3a] sm:$0xff]  ;;  %v14123_v3 = vpack.c.bf16 %v1000_v60, %v999_v59 }
  0xb0   : > { %11360 = vmatprep.mubr.bf16.mxu0 %v13884_v40  ;;  %v984_v40 = vld [vmem:[%s13666_s10 + $0x4a] sm:$0xff]  ;;  %v14037_v16 = vpack.c.bf16 %v982_v27, %v981_v12  ;;  %v1003_v12 = vld [vmem:[%s13666_s10 + $0xe2] sm:$0xff]  ;;  %v2661_v59 = vld [vmem:[%s13666_s10 + $0xf5] sm:$0xff] }
  0xb1   : > { %v1004_v27 = vld [vmem:[%s13666_s10 + $0xea] sm:$0xff]  ;;  %v2662_v60 = vld [vmem:[%s13666_s10 + $0xfd] sm:$0xff] }
  0xb6   : > { %11133 = vmatmul.mubr.bf16.vlgmr.msra.gmra.mrb[0].mxu1 %v14018_v25 }
  0xb7   : > { %11361 = vmatmul.mubr.bf16.gmra.mrb[20].mxu0 %v13886_v42  ;;  %11169 = vmatpush3.bf16.msra.mxu1 %v13957_v31  ;;  %v14039_v42 = vpack.c.bf16 %v984_v40, %v983_v14  ;;  %v991_v31 = vld [vmem:[%s13666_s10 + $0x82] sm:$0xff]  ;;  %v2648_v40 = vld [vmem:[%s13666_s10 + $0x8d] sm:$0xff] }
  0xb8   : > { %11136 = vmatprep.mubr.bf16.mxu1 %v14020_v8  ;;  %11364 = vmatprep.mubr.bf16.mxu0 %v13905_v55  ;;  %v985_v55 = vld [vmem:[%s13666_s10 + $0x52] sm:$0xff]  ;;  %v14079_v33 = vpack.c.bf16 %v992_v34, %v991_v31  ;;  %v2647_v14 = vld [vmem:[%s13666_s10 + $0x85] sm:$0xff] }
  0xb9   : > { %11170 = vmatprep.subr.bf16.mxu1 %v13360_v10  ;;  %v2677_v20 = vpack.c.bf16 %v2648_v40, %v2647_v14  ;;  %v2651_v31 = vld [vmem:[%s13666_s10 + $0xa5] sm:$0xff]  ;;  %v2652_v34 = vld [vmem:[%s13666_s10 + $0xad] sm:$0xff] }
  0xba   : > { %v13527_v14 = vld [vmem:[%s15328_s2 + $0x128] sm:$0xff]  }
  0xbb   : > { %11171 = vmatpush3.bf16.msra.mxu1 %v13360_v10  ;;  %v2646_v10 = vld [vmem:[%s13666_s10 + $0x7d] sm:$0xff] }
  0xbc   : > { %11172 = vmatprep.subr.bf16.mxu1 %v13362_v15 }
  0xbe   : > { %11137 = vmatmul.mubr.bf16.gmra.mrb[4].mxu1 %v14037_v16 }
  0xbf   : > { %11365 = vmatmul.mubr.bf16.gmra.mrb[24].mxu0 %v13907_v57  ;;  %11140 = vmatprep.mubr.bf16.mxu1 %v14039_v42  ;;  %v14055_v57 = vpack.c.bf16 %v986_v18, %v985_v55  ;;  %v2676_v55 = vpack.c.bf16 %v2646_v10, %v2645_v6  ;;  %v14143_v18 = vpack.c.bf16 %v1004_v27, %v1003_v12  ;;  %v2669_v6 = vld [vmem:[%s13666_s10 + $0x135] sm:$0xff]  ;;  %v2670_v10 = vld [vmem:[%s13666_s10 + $0x13d] sm:$0xff]  ;;  %v2967_v12 = vld [vmem:[%s13666_s10 + $0x26] sm:$0xff] }
  0xc0   : > { %11368 = vmatprep.mubr.bf16.mxu0 %v13925_v7  ;;  %11173 = vmatpush3.bf16.msra.mxu1 %v13362_v15  ;;  %v13368_v7 = vld [vmem:[%s15328_s2 + $0xe8] sm:$0xff]   ;;  %v13374_v15 = vld [vmem:[%s15328_s2 + $0x220] sm:$0xff]   ;;  %v2688_v40 = vpack.c.bf16 %v2670_v10, %v2669_v6 }
  0xc1   : > { %11174 = vmatprep.subr.bf16.mxu1 %v13364_v17  ;;  %v2968_v27 = vld [vmem:[%s13666_s10 + $0x2e] sm:$0xff] }
  0xc2   : > { %v2996_v6 = vld [vmem:[%s13666_s10 + $0x10e] sm:$0xff] }
  0xc4   : > { %11175 = vmatpush3.bf16.msra.mxu1 %v13364_v17  ;;  %v14141_v17 = vpack.c.bf16 %v1002_v5, %v1001_v13  ;;  %v13525_v13 = vld [vmem:[%s15328_s2 + $0x118] sm:$0xff]  }
  0xc5   : > { %11176 = vmatprep.subr.bf16.mxu1 %v13366_v22 }
  0xc6   : > { %11141 = vmatmul.mubr.bf16.gmra.mrb[8].mxu1 %v14055_v57 }
  0xc7   : > { %11369 = vmatmul.mubr.bf16.gmra.mrb[28].mxu0 %v13927_v9  ;;  %11144 = vmatprep.mubr.bf16.mxu1 %v14057_v24  ;;  %v14077_v9 = vpack.c.bf16 %v990_v28, %v989_v26  ;;  %v2649_v26 = vld [vmem:[%s13666_s10 + $0x95] sm:$0xff]  ;;  %v2650_v28 = vld [vmem:[%s13666_s10 + $0x9d] sm:$0xff] }
  0xc8   : > { %11372 = vmatprep.mubr.bf16.mxu0 %v13943_v21  ;;  %11177 = vmatpush3.bf16.msra.mxu1 %v13366_v22  ;;  %v2671_v21 = vpack.c.bf16 %v2636_v37, %v2635_v36  ;;  %v1005_v22 = vld [vmem:[%s13666_s10 + $0xf2] sm:$0xff] }
  0xc9   : > { %11178 = vmatprep.subr.bf16.mxu1 %v13368_v7  ;;  %v13376_v36 = vld [vmem:[%s15328_s2 + $0x230] sm:$0xff]  }
  0xcc   : > { %11179 = vmatpush3.bf16.msra.mxu1 %v13368_v7  ;;  %v1006_v7 = vld [vmem:[%s13666_s10 + $0xfa] sm:$0xff] }
  0xcd   : > { %11180 = vmatprep.subr.bf16.mxu1 %v13370_v38  ;;  %v14161_v37 = vpack.c.bf16 %v1006_v7, %v1005_v22  ;;  %v13529_v22 = vld [vmem:[%s15328_s2 + $0x138] sm:$0xff]  }
  0xce   : > { %11145 = vmatmul.mubr.bf16.gmra.mrb[12].mxu1 %v14077_v9 }
  0xcf   : > { %11373 = vmatmul.mubr.bf16.gmra.mrb[32].mxu0 %v2356_v39  ;;  %11148 = vmatprep.mubr.bf16.mxu1 %v14079_v33  ;;  %v14163_v39 = vpack.c.bf16 %v1008_v30, %v1007_v29  ;;  %v2976_v29 = vld [vmem:[%s13666_s10 + $0x6e] sm:$0xff] }
  0xd0   : > { %11392 = vmatprep.mubr.bf16.mxu0 %v2671_v21  ;;  %11181 = vmatpush3.bf16.msra.mxu1 %v13370_v38  ;;  %v2678_v38 = vpack.c.bf16 %v2650_v28, %v2649_v26  ;;  %v13377_v21 = vld [vmem:[%s15328_s2 + $0x238] sm:$0xff]   ;;  %v2975_v28 = vld [vmem:[%s13666_s10 + $0x66] sm:$0xff] }
  0xd1   : > { %11182 = vmatprep.subr.bf16.mxu1 %v13372_v41  ;;  %v2974_v26 = vld [vmem:[%s13666_s10 + $0x5e] sm:$0xff] }
  0xd4   : > { %11183 = vmatpush3.bf16.msra.mxu1 %v13372_v41  ;;  %v2679_v41 = vpack.c.bf16 %v2652_v34, %v2651_v31  ;;  %v3007_v31 = vpack.c.bf16 %v2976_v29, %v2975_v28  ;;  %v2978_v34 = vld [vmem:[%s13666_s10 + $0x7e] sm:$0xff]  ;;  %v1670_v29 = vld [vmem:[%s13666_s10 + $0x10b] sm:$0xff] }
  0xd5   : > { %12416 = vmatprep.subr.bf16.mxu1 %v14106_v61  ;;  %v1669_v28 = vld [vmem:[%s13666_s10 + $0x103] sm:$0xff] }
  0xd6   : > { %11149 = vmatmul.mubr.bf16.gmra.mrb[16].mxu1 %v14094_v50 }
  0xd7   : > { %11393 = vmatmul.mubr.bf16.vlgmr.msra.gmra.mrb[0].mxu0 %v2672_v51  ;;  %11152 = vmatprep.mubr.bf16.mxu1 %v14096_v52  ;;  %v2681_v51 = vpack.c.bf16 %v2656_v48, %v2655_v46  ;;  %v2986_v46 = vld [vmem:[%s13666_s10 + $0xbe] sm:$0xff]  ;;  %v1655_v48 = vld [vmem:[%s13666_s10 + $0x93] sm:$0xff] }
  0xd8   : > { %11396 = vmatprep.mubr.bf16.mxu0 %v2673_v49  ;;  %11429 = vmatpush3.bf16.msra.mxu0 %v14008_v1  ;;  %v13373_v1 = vld [vmem:[%s15328_s2 + $0x218] sm:$0xff]  }
  0xd9   : > { %11430 = vmatprep.subr.bf16.mxu0 %v13369_v53  ;;  %v2657_v49 = vld [vmem:[%s13666_s10 + $0xd5] sm:$0xff] }
  0xdc   : > { %11431 = vmatpush3.bf16.msra.mxu0 %v13369_v53  ;;  %v2658_v53 = vld [vmem:[%s13666_s10 + $0xdd] sm:$0xff] }
  0xdd   : > { %11432 = vmatprep.subr.bf16.mxu0 %v13371_v0  ;;  %v2682_v56 = vpack.c.bf16 %v2658_v53, %v2657_v49  ;;  %v2988_v49 = vld [vmem:[%s13666_s10 + $0xce] sm:$0xff] }
  0xde   : > { %11153 = vmatmul.mubr.bf16.gmra.mrb[20].mxu1 %v14121_v11 }
  0xdf   : > { %11397 = vmatmul.mubr.bf16.gmra.mrb[4].mxu0 %v2674_v2  ;;  %11156 = vmatprep.mubr.bf16.mxu1 %v14123_v3  ;;  %v2666_v2 = vld [vmem:[%s13666_s10 + $0x11d] sm:$0xff] }
  0xe0   : > { %11400 = vmatprep.mubr.bf16.mxu0 %v2675_v4  ;;  %11433 = vmatpush3.bf16.msra.mxu0 %v13371_v0  ;;  %v2685_v0 = vpack.c.bf16 %v2664_v62, %v2663_v63  ;;  %v2667_v4 = vld [vmem:[%s13666_s10 + $0x125] sm:$0xff]  ;;  %v2992_v62 = vld [vmem:[%s13666_s10 + $0xee] sm:$0xff] }
  0xe1   : > { %11434 = vmatprep.subr.bf16.mxu0 %v13373_v1  ;;  %v2991_v63 = vld [vmem:[%s13666_s10 + $0xe6] sm:$0xff] }
  0xe4   : > { %11435 = vmatpush3.bf16.msra.mxu0 %v13373_v1  ;;  %v2668_v1 = vld [vmem:[%s13666_s10 + $0x12d] sm:$0xff] }
  0xe5   : > { %11436 = vmatprep.subr.bf16.mxu0 %v13374_v15 }
  0xe6   : > { %11157 = vmatmul.mubr.bf16.gmra.mrb[24].mxu1 %v14141_v17 }
  0xe7   : > { %11401 = vmatmul.mubr.bf16.gmra.mrb[8].mxu0 %v2676_v55  ;;  %11160 = vmatprep.mubr.bf16.mxu1 %v14143_v18  ;;  %v2970_v55 = vld [vmem:[%s13666_s10 + $0x3e] sm:$0xff] }
  0xe8   : > { %11404 = vmatprep.mubr.bf16.mxu0 %v2677_v20  ;;  %11437 = vmatpush3.bf16.msra.mxu0 %v13374_v15  ;;  %v2969_v15 = vld [vmem:[%s13666_s10 + $0x36] sm:$0xff]  ;;  %v2972_v20 = vld [vmem:[%s13666_s10 + $0x4e] sm:$0xff] }
  0xe9   : > { %11438 = vmatprep.subr.bf16.mxu0 %v13375_v19  ;;  %v3004_v7 = vpack.c.bf16 %v2970_v55, %v2969_v15  ;;  %v2998_v15 = vld [vmem:[%s13666_s10 + $0x11e] sm:$0xff]  ;;  %v1667_v55 = vld [vmem:[%s13666_s10 + $0xf3] sm:$0xff] }
  0xec   : > { %11439 = vmatpush3.bf16.msra.mxu0 %v13375_v19  ;;  %v2971_v19 = vld [vmem:[%s13666_s10 + $0x46] sm:$0xff] }
  0xed   : > { %11440 = vmatprep.subr.bf16.mxu0 %v13376_v36 }
  0xee   : > { %11161 = vmatmul.mubr.bf16.gmra.mrb[28].mxu1 %v14161_v37 }
  0xef   : > { %11405 = vmatmul.mubr.bf16.gmra.mrb[12].mxu0 %v2678_v38  ;;  %11164 = vmatprep.mubr.bf16.mxu1 %v14163_v39 }
  0xf0   : > { %11408 = vmatprep.mubr.bf16.mxu0 %v2679_v41  ;;  %11441 = vmatpush3.bf16.msra.mxu0 %v13376_v36  ;;  %v2980_v36 = vld [vmem:[%s13666_s10 + $0x8e] sm:$0xff]  ;;  %v2983_v41 = vld [vmem:[%s13666_s10 + $0xa6] sm:$0xff] }
  0xf1   : > { %11442 = vmatprep.subr.bf16.mxu0 %v13377_v21  ;;  %v3011_v45 = vpack.c.bf16 %v2984_v43, %v2983_v41  ;;  %v13378_v41 = vld [vmem:[%s15330_s4 + $0x40] sm:$0xff]   ;;  %v13379_v43 = vld [vmem:[%s15330_s4 + $0x48] sm:$0xff]  }
  0xf4   : > { %11443 = vmatpush3.bf16.msra.mxu0 %v13377_v21 }
  0xf6   : > { %11165 = vmatmul.mubr.bf16.gmra.mrb[32].mxu1 %v14176_v47 }
  0xf7   : > { %11409 = vmatmul.mubr.bf16.gmra.mrb[16].mxu0 %v2680_v23  ;;  %11184 = vmatprep.mubr.bf16.mxu1 %v14018_v25  ;;  %v13523_v25 = vld [vmem:[%s15328_s2 + $0x108] sm:$0xff]   ;;  %v1656_v23 = vld [vmem:[%s13666_s10 + $0x9b] sm:$0xff] }
  0xf8   : > { %11412 = vmatprep.mubr.bf16.mxu0 %v2681_v51  ;;  %v2987_v51 = vld [vmem:[%s13666_s10 + $0xc6] sm:$0xff] }
  0xf9   : > { %v3013_v54 = vpack.c.bf16 %v2988_v49, %v2987_v51 }
  0xfe   : > { %11185 = vmatmul.mubr.bf16.vlgmr.msra.gmra.mrb[0].mxu1 %v14020_v8  ;;  %v2684_v8 = vpack.c.bf16 %v2662_v60, %v2661_v59  ;;  %v2990_v59 = vld [vmem:[%s13666_s10 + $0xde] sm:$0xff]  ;;  %v1659_v60 = vld [vmem:[%s13666_s10 + $0xb3] sm:$0xff] }
  0xff   : > { %11413 = vmatmul.mubr.bf16.gmra.mrb[20].mxu0 %v2682_v56  ;;  %12424 = vmatpush3.bf16.msra.mxu1 %v14106_v61  ;;  %v13524_v61 = vld [vmem:[%s15328_s2 + $0x110] sm:$0xff]  }
 0x100   : > { %11188 = vmatprep.mubr.bf16.mxu1 %v14037_v16  ;;  %11416 = vmatprep.mubr.bf16.mxu0 %v2683_v58  ;;  %v2665_v16 = vld [vmem:[%s13666_s10 + $0x115] sm:$0xff]  ;;  %v1658_v56 = vld [vmem:[%s13666_s10 + $0xab] sm:$0xff] }
 0x101   : > { %12417 = vmatprep.subr.bf16.mxu1 %v13523_v25  ;;  %v2686_v5 = vpack.c.bf16 %v2666_v2, %v2665_v16  ;;  %v2989_v58 = vld [vmem:[%s13666_s10 + $0xd6] sm:$0xff]  ;;  %v3015_v16 = vpack.c.bf16 %v2992_v62, %v2991_v63  ;;  %v1661_v2 = vld [vmem:[%s13666_s10 + $0xc3] sm:$0xff] }
 0x103   : > { %12425 = vmatpush3.bf16.msra.mxu1 %v13523_v25  ;;  %v1660_v25 = vld [vmem:[%s13666_s10 + $0xbb] sm:$0xff] }
 0x104   : > { %12418 = vmatprep.subr.bf16.mxu1 %v13524_v61 }
 0x106   : > { %11189 = vmatmul.mubr.bf16.gmra.mrb[4].mxu1 %v14039_v42  ;;  %v2687_v42 = vpack.c.bf16 %v2668_v1, %v2667_v4  ;;  %v1662_v4 = vld [vmem:[%s13666_s10 + $0xcb] sm:$0xff]  ;;  %v2993_v1 = vld [vmem:[%s13666_s10 + $0xf6] sm:$0xff] }
 0x107   : > { %11417 = vmatmul.mubr.bf16.gmra.mrb[24].mxu0 %v2684_v8  ;;  %11192 = vmatprep.mubr.bf16.mxu1 %v14055_v57  ;;  %v13526_v57 = vld [vmem:[%s15328_s2 + $0x120] sm:$0xff]   ;;  %v1684_v8 = vpack.c.bf16 %v1658_v56, %v1657_v32  ;;  %v1686_v10 = vpack.c.bf16 %v1662_v4, %v1661_v2 }
 0x108   : > { %11420 = vmatprep.mubr.bf16.mxu0 %v2685_v0  ;;  %12426 = vmatpush3.bf16.msra.mxu1 %v13524_v61  ;;  %v3014_v0 = vpack.c.bf16 %v2990_v59, %v2989_v58  ;;  %v1685_v61 = vpack.c.bf16 %v1660_v25, %v1659_v60 }
 0x109   : > { %12419 = vmatprep.subr.bf16.mxu1 %v13525_v13 }
 0x10c   : > { %12427 = vmatpush3.bf16.msra.mxu1 %v13525_v13  ;;  %v2994_v13 = vld [vmem:[%s13666_s10 + $0xfe] sm:$0xff] }
 0x10d   : > { %12420 = vmatprep.subr.bf16.mxu1 %v13526_v57 }
 0x10e   : > { %11193 = vmatmul.mubr.bf16.gmra.mrb[8].mxu1 %v14057_v24  ;;  %v3003_v24 = vpack.c.bf16 %v2968_v27, %v2967_v12  ;;  %v3016_v12 = vpack.c.bf16 %v2994_v13, %v2993_v1  ;;  %v14337_v1 = vld [vmem:[%s15329_s3] ss:$0 sm:$0xff] }
 0x10f   : > { %11421 = vmatmul.mubr.bf16.gmra.mrb[28].mxu0 %v2686_v5  ;;  %11196 = vmatprep.mubr.bf16.mxu1 %v14077_v9  ;;  %v13528_v9 = vld [vmem:[%s15328_s2 + $0x130] sm:$0xff]  }
 0x110   : > { %11424 = vmatprep.mubr.bf16.mxu0 %v2687_v42  ;;  %12428 = vmatpush3.bf16.msra.mxu1 %v13526_v57  ;;  %v1663_v5 = vld [vmem:[%s13666_s10 + $0xd3] sm:$0xff]  ;;  %v1664_v42 = vld [vmem:[%s13666_s10 + $0xdb] sm:$0xff]  ;;  %v2995_v57 = vld [vmem:[%s13666_s10 + $0x106] sm:$0xff] }
 0x111   : > { %12421 = vmatprep.subr.bf16.mxu1 %v13527_v14  ;;  %v1687_v27 = vpack.c.bf16 %v1664_v42, %v1663_v5 }
 0x114   : > { %12429 = vmatpush3.bf16.msra.mxu1 %v13527_v14  ;;  %v3017_v14 = vpack.c.bf16 %v2996_v6, %v2995_v57 }
 0x115   : > { %12422 = vmatprep.subr.bf16.mxu1 %v13528_v9 }
 0x116   : > { %11197 = vmatmul.mubr.bf16.gmra.mrb[12].mxu1 %v14079_v33  ;;  %v3005_v33 = vpack.c.bf16 %v2972_v20, %v2971_v19  ;;  %v1668_v19 = vld [vmem:[%s13666_s10 + $0xfb] sm:$0xff]  ;;  %v2999_v20 = vld [vmem:[%s13666_s10 + $0x126] sm:$0xff] }
 0x117   : > { %11425 = vmatmul.mubr.bf16.gmra.mrb[32].mxu0 %v2688_v40  ;;  %11200 = vmatprep.mubr.bf16.mxu1 %v14094_v50  ;;  %v2973_v50 = vld [vmem:[%s13666_s10 + $0x56] sm:$0xff]  ;;  %v1665_v40 = vld [vmem:[%s13666_s10 + $0xe3] sm:$0xff] }
 0x118   : > { %11444 = vmatprep.mubr.bf16.mxu0 %v3003_v24  ;;  %12430 = vmatpush3.bf16.msra.mxu1 %v13528_v9  ;;  %v3006_v30 = vpack.c.bf16 %v2974_v26, %v2973_v50  ;;  %v1666_v24 = vld [vmem:[%s13666_s10 + $0xeb] sm:$0xff]  ;;  %v2997_v9 = vld [vmem:[%s13666_s10 + $0x116] sm:$0xff]  ;;  %v1689_v50 = vpack.c.bf16 %v1668_v19, %v1667_v55 }
 0x119   : > { %12423 = vmatprep.subr.bf16.mxu1 %v13529_v22  ;;  %v310_v19 = vld [vmem:[%s15327_s1 + $0x18] sm:$0xff] }
 0x11c   : > { %12431 = vmatpush3.bf16.msra.mxu1 %v13529_v22  ;;  %v3000_v22 = vld [vmem:[%s13666_s10 + $0x12e] sm:$0xff] }
 0x11d   : > { %v3019_v26 = vpack.c.bf16 %v3000_v22, %v2999_v20  ;;  %11480 = vmatprep.subr.bf16.mxu1 %v13378_v41 }
 0x11e   : > { %11201 = vmatmul.mubr.bf16.gmra.mrb[16].mxu1 %v14096_v52  ;;  %v2977_v52 = vld [vmem:[%s13666_s10 + $0x76] sm:$0xff] }
 0x11f   : > { %11445 = vmatmul.mubr.bf16.vlgmr.msra.gmra.mrb[0].mxu0 %v3004_v7  ;;  %11204 = vmatprep.mubr.bf16.mxu1 %v14121_v11  ;;  %v2979_v11 = vld [vmem:[%s13666_s10 + $0x86] sm:$0xff]  ;;  %v3008_v38 = vpack.c.bf16 %v2978_v34, %v2977_v52  ;;  %v1688_v7 = vpack.c.bf16 %v1666_v24, %v1665_v40  ;;  %v1671_v52 = vld [vmem:[%s13666_s10 + $0x113] sm:$0xff]  ;;  %v1672_v34 = vld [vmem:[%s13666_s10 + $0x11b] sm:$0xff] }
 0x120   : > { %11448 = vmatprep.mubr.bf16.mxu0 %v3005_v33  ;;  %v3009_v21 = vpack.c.bf16 %v2980_v36, %v2979_v11  ;;  %v3018_v33 = vpack.c.bf16 %v2998_v15, %v2997_v9  ;;  %v1690_v11 = vpack.c.bf16 %v1670_v29, %v1669_v28  ;;  %v307_v9 = vld [vmem:[%s15327_s1] sm:$0xff] }
 0x126   : > { %11205 = vmatmul.mubr.bf16.gmra.mrb[20].mxu1 %v14123_v3  ;;  %v2981_v3 = vld [vmem:[%s13666_s10 + $0x96] sm:$0xff] }
 0x127   : > { %11449 = vmatmul.mubr.bf16.gmra.mrb[4].mxu0 %v3006_v30  ;;  %11208 = vmatprep.mubr.bf16.mxu1 %v14141_v17  ;;  %v2982_v17 = vld [vmem:[%s13666_s10 + $0x9e] sm:$0xff]  ;;  %v3001_v30 = vld [vmem:[%s13666_s10 + $0x136] sm:$0xff] }
 0x128   : > { %11452 = vmatprep.mubr.bf16.mxu0 %v3007_v31  ;;  %v3010_v44 = vpack.c.bf16 %v2982_v17, %v2981_v3  ;;  %v3002_v31 = vld [vmem:[%s13666_s10 + $0x13e] sm:$0xff]  ;;  %v1674_v3 = vld [vmem:[%s13666_s10 + $0x12b] sm:$0xff] }
 0x129   : > { %v3020_v36 = vpack.c.bf16 %v3002_v31, %v3001_v30 }
 0x12e   : > { %11209 = vmatmul.mubr.bf16.gmra.mrb[24].mxu1 %v14143_v18  ;;  %v1341_v18 = vld [vmem:[%s13666_s10 + $0x122] sm:$0xff] }
 0x12f   : > { %11453 = vmatmul.mubr.bf16.gmra.mrb[8].mxu0 %v3008_v38  ;;  %11212 = vmatprep.mubr.bf16.mxu1 %v14161_v37  ;;  %v2985_v37 = vld [vmem:[%s13666_s10 + $0xb6] sm:$0xff]  ;;  %v1691_v38 = vpack.c.bf16 %v1672_v34, %v1671_v52 }
 0x130   : > { %11456 = vmatprep.mubr.bf16.mxu0 %v3009_v21  ;;  %v3012_v53 = vpack.c.bf16 %v2986_v46, %v2985_v37  ;;  %v1673_v21 = vld [vmem:[%s13666_s10 + $0x123] sm:$0xff]  ;;  %v13384_v46 = vld [vmem:[%s15330_s4 + $0x70] sm:$0xff]  }
 0x131   : > { %v1692_v17 = vpack.c.bf16 %v1674_v3, %v1673_v21  ;;  %v13383_v37 = vld [vmem:[%s15330_s4 + $0x68] sm:$0xff]   ;;  %v313_v3 = vld [vmem:[%s15327_s1 + $0x30] sm:$0xff] }
 0x136   : > { %11213 = vmatmul.mubr.bf16.gmra.mrb[28].mxu1 %v14163_v39  ;;  %v1360_v39 = vpack.c.bf16 %v1342_v35, %v1341_v18  ;;  %v13381_v18 = vld [vmem:[%s15330_s4 + $0x58] sm:$0xff]   ;;  %v13382_v35 = vld [vmem:[%s15330_s4 + $0x60] sm:$0xff]  }
 0x137   : > { %11457 = vmatmul.mubr.bf16.gmra.mrb[12].mxu0 %v3010_v44  ;;  %11216 = vmatprep.mubr.bf16.mxu1 %v14176_v47  ;;  %v1683_v47 = vpack.c.bf16 %v1656_v23, %v1655_v48  ;;  %v13380_v44 = vld [vmem:[%s15330_s4 + $0x50] sm:$0xff]   ;;  %v13385_v48 = vld [vmem:[%s15330_s4 + $0x78] sm:$0xff]  }
 0x138   : > { %11460 = vmatprep.mubr.bf16.mxu0 %v3011_v45  ;;  %v13575_v45 = vmov 0.0  }
 0x139   : > { %347 = vst [vmem:[#allocation2 + $0x20] sm:$0xff] %v13575_v45  ;;  %348 = vst [vmem:[#allocation2 + $0x28] sm:$0xff] %v13575_v45 }
 0x13a   : > { %343 = vst [vmem:[#allocation2] sm:$0xff] %v13575_v45  ;;  %344 = vst [vmem:[#allocation2 + $0x8] sm:$0xff] %v13575_v45 }
 0x13b   : > { %345 = vst [vmem:[#allocation2 + $0x10] sm:$0xff] %v13575_v45  ;;  %346 = vst [vmem:[#allocation2 + $0x18] sm:$0xff] %v13575_v45 }
 0x13c   : > { %349 = vst [vmem:[#allocation2 + $0x30] sm:$0xff] %v13575_v45  ;;  %350 = vst [vmem:[#allocation2 + $0x38] sm:$0xff] %v13575_v45 }
 0x13d   : > { %351 = vst [vmem:[#allocation2 + $0x40] sm:$0xff] %v13575_v45  ;;  %352 = vst [vmem:[#allocation2 + $0x48] sm:$0xff] %v13575_v45 }
 0x13e   : > { %11217 = vmatmul.mubr.bf16.gmra.mrb[32].mxu1 %v1360_v39  ;;  %353 = vst [vmem:[#allocation2 + $0x50] sm:$0xff] %v13575_v45  ;;  %354 = vst [vmem:[#allocation2 + $0x58] sm:$0xff] %v13575_v45  ;;  %v14317_v39 = vld [vmem:[%s15330_s4] sm:$0xff]  }
 0x13f   : > { %11461 = vmatmul.mubr.bf16.gmra.mrb[16].mxu0 %v3012_v53  ;;  %11252 = vmatprep.mubr.bf16.mxu1 %v1683_v47  ;;  %355 = vst [vmem:[#allocation2 + $0x60] sm:$0xff] %v13575_v45  ;;  %356 = vst [vmem:[#allocation2 + $0x68] sm:$0xff] %v13575_v45 }
 0x140   : > { %11464 = vmatprep.mubr.bf16.mxu0 %v3013_v54  ;;  %357 = vst [vmem:[#allocation2 + $0x70] sm:$0xff] %v13575_v45  ;;  %358 = vst [vmem:[#allocation2 + $0x78] sm:$0xff] %v13575_v45 }
 0x141   : > { %359 = vst [vmem:[#allocation2 + $0x80] sm:$0xff] %v13575_v45  ;;  %360 = vst [vmem:[#allocation2 + $0x88] sm:$0xff] %v13575_v45  ;;  %v3520_v23 = vld [vmem:[#allocation2 + $0x1] sm:$0xff] }
 0x142   : > { %361 = vst [vmem:[#allocation2 + $0x90] sm:$0xff] %v13575_v45  ;;  %362 = vst [vmem:[#allocation2 + $0x98] sm:$0xff] %v13575_v45  ;;  %v3521_v51 = vld [vmem:[#allocation2 + $0x9] sm:$0xff] }
 0x143   : > { %363 = vst [vmem:[#allocation2 + $0xa0] sm:$0xff] %v13575_v45  ;;  %364 = vst [vmem:[#allocation2 + $0xa8] sm:$0xff] %v13575_v45  ;;  %v3556_v49 = vpack.c.bf16 %v3521_v51, %v3520_v23  ;;  %v312_v23 = vld [vmem:[%s15327_s1 + $0x28] sm:$0xff] }
 0x144   : > { %365 = vst [vmem:[#allocation2 + $0xb0] sm:$0xff] %v13575_v45  ;;  %366 = vst [vmem:[#allocation2 + $0xb8] sm:$0xff] %v13575_v45 }
 0x145   : > { %367 = vst [vmem:[#allocation2 + $0xc0] sm:$0xff] %v13575_v45  ;;  %368 = vst [vmem:[#allocation2 + $0xc8] sm:$0xff] %v13575_v45 }
 0x146   : > { %11253 = vmatmul.mubr.bf16.vlgmr.msra.gmra.mrb[16].mxu1 %v1684_v8  ;;  %369 = vst [vmem:[#allocation2 + $0xd0] sm:$0xff] %v13575_v45  ;;  %370 = vst [vmem:[#allocation2 + $0xd8] sm:$0xff] %v13575_v45 }
 0x147   : > { %11465 = vmatmul.mubr.bf16.gmra.mrb[20].mxu0 %v3014_v0  ;;  %11256 = vmatprep.mubr.bf16.mxu1 %v1685_v61  ;;  %371 = vst [vmem:[#allocation2 + $0xe0] sm:$0xff] %v13575_v45  ;;  %372 = vst [vmem:[#allocation2 + $0xe8] sm:$0xff] %v13575_v45 }
 0x148   : > { %11468 = vmatprep.mubr.bf16.mxu0 %v3015_v16  ;;  %11481 = vmatpush3.bf16.msra.mxu1 %v13378_v41  ;;  %373 = vst [vmem:[#allocation2 + $0xf0] sm:$0xff] %v13575_v45  ;;  %374 = vst [vmem:[#allocation2 + $0xf8] sm:$0xff] %v13575_v45 }
 0x149   : > { %11482 = vmatprep.subr.bf16.mxu1 %v13379_v43  ;;  %375 = vst [vmem:[#allocation2 + $0x100] sm:$0xff] %v13575_v45  ;;  %376 = vst [vmem:[#allocation2 + $0x108] sm:$0xff] %v13575_v45 }
 0x14a   : > { %377 = vst [vmem:[#allocation2 + $0x110] sm:$0xff] %v13575_v45  ;;  %378 = vst [vmem:[#allocation2 + $0x118] sm:$0xff] %v13575_v45 }
 0x14b   : > { %379 = vst [vmem:[#allocation2 + $0x120] sm:$0xff] %v13575_v45  ;;  %380 = vst [vmem:[#allocation2 + $0x128] sm:$0xff] %v13575_v45 }
 0x14c   : > { %11483 = vmatpush3.bf16.msra.mxu1 %v13379_v43  ;;  %381 = vst [vmem:[#allocation2 + $0x130] sm:$0xff] %v13575_v45  ;;  %382 = vst [vmem:[#allocation2 + $0x138] sm:$0xff] %v13575_v45 }
 0x14d   : > { %383 = vst [vmem:[#allocation2 + $0x140] sm:$0xff] %v13575_v45  ;;  %11484 = vmatprep.subr.bf16.mxu1 %v13380_v44 }
 0x14e   : > { %11257 = vmatmul.mubr.bf16.gmra.mrb[20].mxu1 %v1686_v10 }
 0x14f   : > { %11469 = vmatmul.mubr.bf16.gmra.mrb[24].mxu0 %v3016_v12  ;;  %11260 = vmatprep.mubr.bf16.mxu1 %v1687_v27  ;;  %v309_v27 = vld [vmem:[%s15327_s1 + $0x10] sm:$0xff] }
 0x150   : > { %11472 = vmatprep.mubr.bf16.mxu0 %v3017_v14  ;;  %11485 = vmatpush3.bf16.msra.mxu1 %v13380_v44  ;;  %v311_v44 = vld [vmem:[%s15327_s1 + $0x20] sm:$0xff] }
 0x151   : > { %11486 = vmatprep.subr.bf16.mxu1 %v13381_v18 }
 0x154   : > { %11487 = vmatpush3.bf16.msra.mxu1 %v13381_v18 }
 0x155   : > { %11488 = vmatprep.subr.bf16.mxu1 %v13382_v35 }
 0x156   : > { %11261 = vmatmul.mubr.bf16.gmra.mrb[24].mxu1 %v1688_v7 }
 0x157   : > { %11473 = vmatmul.mubr.bf16.gmra.mrb[28].mxu0 %v3018_v33  ;;  %11264 = vmatprep.mubr.bf16.mxu1 %v1689_v50  ;;  %v308_v33 = vld [vmem:[%s15327_s1 + $0x8] sm:$0xff] }
 0x158   : > { %11476 = vmatprep.mubr.bf16.mxu0 %v3019_v26  ;;  %11489 = vmatpush3.bf16.msra.mxu1 %v13382_v35  ;;  %v314_v35 = vld [vmem:[%s15327_s1 + $0x38] sm:$0xff] }
 0x159   : > { %11490 = vmatprep.subr.bf16.mxu1 %v13383_v37 }
 0x15c   : > { %11491 = vmatpush3.bf16.msra.mxu1 %v13383_v37 }
 0x15d   : > { %11492 = vmatprep.subr.bf16.mxu1 %v13384_v46 }
 0x15e   : > { %11265 = vmatmul.mubr.bf16.gmra.mrb[28].mxu1 %v1690_v11 }
 0x15f   : > { %11477 = vmatmul.mubr.bf16.gmra.mrb[32].mxu0 %v3020_v36  ;;  %11268 = vmatprep.mubr.bf16.mxu1 %v1691_v38 }
 0x160   : > { %11493 = vmatpush3.bf16.msra.mxu1 %v13384_v46 }
 0x161   : > { %11494 = vmatprep.subr.bf16.mxu1 %v13385_v48 }
 0x164   : > { %11495 = vmatpush3.bf16.msra.mxu1 %v13385_v48 }
 0x165   : > { %11532 = vmatprep.subr.bf16.mxu1 %v14317_v39 }
 0x166   : > { %11269 = vmatmul.mubr.bf16.gmra.mrb[32].mxu1 %v1692_v17 }
 0x167   : > { %11496 = vmatprep.mubr.bf16.mxu1 %v3556_v49 }
 0x1d1   : > { %v11186_v53 = vpop.f32.mrb[0].mxu1 }
 0x1d2   : > { %v1460_v47 = vpop.f32.mrb[1].mxu1 }
 0x1d3   : > { %v11187_v54 = vpop.f32.mrb[2].mxu1 }
 0x1d4   : > { %v1463_v32 = vpop.f32.mrb[3].mxu1 }
 0x1d9   : > { %v11190_v56 = vpop.f32.mrb[4].mxu1 }
 0x1da   : > { %v1476_v58 = vpop.f32.mrb[5].mxu1 }
 0x1db   : > { %v11191_v59 = vpop.f32.mrb[6].mxu1 }
 0x1dc   : > { %v1479_v60 = vpop.f32.mrb[7].mxu1 }
 0x1e1   : > { %v11194_v25 = vpop.f32.mrb[8].mxu1 }
 0x1e2   : > { %v14320_v63 = vpop.f32.mrb[9].mxu1 }
 0x1e3   : > { %v14322_v62 = vpop.f32.mrb[10].mxu1 }
 0x1e4   : > { %v14324_v8 = vpop.f32.mrb[11].mxu1 }
 0x1e9   : > { %v14326_v0 = vpop.f32.mrb[12].mxu1 }
 0x1ea   : > { %v14328_v61 = vpop.f32.mrb[13].mxu1 }
 0x1eb   : > { %v14330_v16 = vpop.f32.mrb[14].mxu1 }
 0x1ec   : > { %v14332_v2 = vpop.f32.mrb[15].mxu1 }
 0x1f2   : > { %v11446_v4 = vpop.f32.mrb[0].mxu0 }
 0x1f3   : > { %v12432_v13 = vadd.f32 %v11446_v4, %v11186_v53  ;;  %v3120_v5 = vpop.f32.mrb[1].mxu0 }
 0x1f4   : > { %v12433_v42 = vadd.f32 %v3120_v5, %v1460_v47  ;;  %v11447_v57 = vpop.f32.mrb[2].mxu0 }
 0x1f5   : > { %v3308_v6 = vadd.f32 %v12432_v13, %v14337_v1  ;;  %v12434_v10 = vadd.f32 %v11447_v57, %v11187_v54  ;;  %v3123_v12 = vpop.f32.mrb[3].mxu0 }
 0x1f6   : > { %v3306_v14 = vadd.f32 %v12433_v42, %v14337_v1  ;;  %v12435_v40 = vadd.f32 %v3123_v12, %v1463_v32 }
 0x1f7   : > { %v3344_v24 = vmax.f32 %v3308_v6, 0.0  ;;  %v3309_v15 = vadd.f32 %v12434_v10, %v14337_v1 }
 0x1f8   : > { %v3342_v55 = vmax.f32 %v3306_v14, 0.0  ;;  %v3307_v20 = vadd.f32 %v12435_v40, %v14337_v1  ;;  %v13387_v14 = vld [vmem:[%s15330_s4 + $0x8] sm:$0xff]   ;;  %v315_v40 = vld [vmem:[%s15327_s1 + $0x40] sm:$0xff] }
 0x1f9   : > { %v3380_v22 = vmul.f32 %v3344_v24, %v309_v27  ;;  %v3345_v7 = vmax.f32 %v3309_v15, 0.0  ;;  %v318_v15 = vld [vmem:[%s15327_s1 + $0x58] sm:$0xff] }
 0x1fa   : > { %v3378_v50 = vmul.f32 %v3342_v55, %v307_v9  ;;  %v3343_v26 = vmax.f32 %v3307_v20, 0.0  ;;  %v11450_v28 = vpop.f32.mrb[4].mxu0  ;;  %v316_v20 = vld [vmem:[%s15327_s1 + $0x48] sm:$0xff] }
 0x1fb   : > { %3416 = vst [vmem:[#allocation2 + $0x23] sm:$0xff] %v3380_v22  ;;  %v3381_v29 = vmul.f32 %v3345_v7, %v310_v19  ;;  %v12436_v30 = vadd.f32 %v11450_v28, %v11190_v56  ;;  %v3136_v31 = vpop.f32.mrb[5].mxu0 }
 0x1fc   : > { %3414 = vst [vmem:[#allocation2 + $0x13] sm:$0xff] %v3378_v50  ;;  %v3379_v52 = vmul.f32 %v3343_v26, %v308_v33  ;;  %v12437_v34 = vadd.f32 %v3136_v31, %v1476_v58  ;;  %v11451_v11 = vpop.f32.mrb[6].mxu0  ;;  %v13388_v50 = vld [vmem:[%s15330_s4 + $0x10] sm:$0xff]  }
 0x1fd   : > { %3417 = vst [vmem:[#allocation2 + $0x2b] sm:$0xff] %v3381_v29  ;;  %v3312_v36 = vadd.f32 %v12436_v30, %v14337_v1  ;;  %v12438_v38 = vadd.f32 %v11451_v11, %v11191_v59  ;;  %v3139_v21 = vpop.f32.mrb[7].mxu0 }
 0x1fe   : > { %3415 = vst [vmem:[#allocation2 + $0x1b] sm:$0xff] %v3379_v52  ;;  %v3310_v17 = vadd.f32 %v12437_v34, %v14337_v1  ;;  %v12439_v41 = vadd.f32 %v3139_v21, %v1479_v60 }
 0x1ff   : > { %v3348_v43 = vmax.f32 %v3312_v36, 0.0  ;;  %v3313_v45 = vadd.f32 %v12438_v38, %v14337_v1 }
 0x200   : > { %v3346_v18 = vmax.f32 %v3310_v17, 0.0  ;;  %v3311_v37 = vadd.f32 %v12439_v41, %v14337_v1 }
 0x201   : > { %v3384_v46 = vmul.f32 %v3348_v43, %v313_v3  ;;  %v3349_v48 = vmax.f32 %v3313_v45, 0.0  ;;  %v319_v45 = vld [vmem:[%s15327_s1 + $0x60] sm:$0xff] }
 0x202   : > { %v3382_v51 = vmul.f32 %v3346_v18, %v311_v44  ;;  %v3347_v49 = vmax.f32 %v3311_v37, 0.0  ;;  %v11454_v53 = vpop.f32.mrb[8].mxu0  ;;  %v322_v37 = vld [vmem:[%s15327_s1 + $0x78] sm:$0xff] }
 0x203   : > { %3420 = vst [vmem:[#allocation2 + $0x43] sm:$0xff] %v3384_v46  ;;  %v3385_v47 = vmul.f32 %v3349_v48, %v314_v35  ;;  %v12440_v54 = vadd.f32 %v11454_v53, %v11194_v25  ;;  %v3152_v32 = vpop.f32.mrb[9].mxu0  ;;  %v3522_v42 = vld [vmem:[#allocation2 + $0x11] sm:$0xff] }
 0x204   : > { %3418 = vst [vmem:[#allocation2 + $0x33] sm:$0xff] %v3382_v51  ;;  %v3383_v56 = vmul.f32 %v3347_v49, %v312_v23  ;;  %v12441_v58 = vadd.f32 %v3152_v32, %v14320_v63  ;;  %v11455_v59 = vpop.f32.mrb[10].mxu0  ;;  %v3525_v60 = vld [vmem:[#allocation2 + $0x29] sm:$0xff] }
 0x205   : > { %3421 = vst [vmem:[#allocation2 + $0x4b] sm:$0xff] %v3385_v47  ;;  %v3316_v4 = vadd.f32 %v12440_v54, %v14337_v1  ;;  %v12442_v13 = vadd.f32 %v11455_v59, %v14322_v62  ;;  %v3155_v5 = vpop.f32.mrb[11].mxu0  ;;  %v3523_v57 = vld [vmem:[#allocation2 + $0x19] sm:$0xff]  ;;  %v3524_v6 = vld [vmem:[#allocation2 + $0x21] sm:$0xff]  ;;  %v317_v25 = vld [vmem:[%s15327_s1 + $0x50] sm:$0xff] }
 0x206   : > { %3419 = vst [vmem:[#allocation2 + $0x3b] sm:$0xff] %v3383_v56  ;;  %v3314_v10 = vadd.f32 %v12441_v58, %v14337_v1  ;;  %v12443_v63 = vadd.f32 %v3155_v5, %v14324_v8  ;;  %v3557_v12 = vpack.c.bf16 %v3523_v57, %v3522_v42  ;;  %v3558_v27 = vpack.c.bf16 %v3525_v60, %v3524_v6  ;;  %v320_v23 = vld [vmem:[%s15327_s1 + $0x68] sm:$0xff]  ;;  %v13390_v47 = vld [vmem:[%s15330_s4 + $0x20] sm:$0xff]  }
 0x207   : > { %v3352_v62 = vmax.f32 %v3316_v4, 0.0  ;;  %v3317_v24 = vadd.f32 %v12442_v13, %v14337_v1  ;;  %v13391_v6 = vld [vmem:[%s15330_s4 + $0x28] sm:$0xff]  }
 0x208   : > { %v3350_v9 = vmax.f32 %v3314_v10, 0.0  ;;  %v3315_v8 = vadd.f32 %v12443_v63, %v14337_v1  ;;  %11497 = vmatmul.mubr.bf16.vlgmr.msra.gmra.mrb[36].mxu1 %v3557_v12 }
 0x209   : > { %v3388_v55 = vmul.f32 %v3352_v62, %v317_v25  ;;  %v3353_v19 = vmax.f32 %v3317_v24, 0.0  ;;  %11500 = vmatprep.mubr.bf16.mxu1 %v3558_v27  ;;  %11533 = vmatpush3.bf16.msra.mxu1 %v14317_v39  ;;  %v13392_v27 = vld [vmem:[%s15330_s4 + $0x30] sm:$0xff]  }
 0x20a   : > { %v3386_v22 = vmul.f32 %v3350_v9, %v315_v40  ;;  %v3351_v7 = vmax.f32 %v3315_v8, 0.0  ;;  %v11458_v33 = vpop.f32.mrb[12].mxu0  ;;  %11534 = vmatprep.subr.bf16.mxu1 %v13387_v14  ;;  %v325_v24 = vld [vmem:[%s15327_s1 + $0x90] sm:$0xff] }
 0x20b   : > { %3424 = vst [vmem:[#allocation2 + $0x63] sm:$0xff] %v3388_v55  ;;  %v3389_v26 = vmul.f32 %v3353_v19, %v318_v15  ;;  %v12444_v28 = vadd.f32 %v11458_v33, %v14326_v0  ;;  %v3168_v29 = vpop.f32.mrb[13].mxu0  ;;  %v3526_v38 = vld [vmem:[#allocation2 + $0x31] sm:$0xff] }
 0x20c   : > { %3422 = vst [vmem:[#allocation2 + $0x53] sm:$0xff] %v3386_v22  ;;  %v3387_v30 = vmul.f32 %v3351_v7, %v316_v20  ;;  %v12445_v31 = vadd.f32 %v3168_v29, %v14328_v61  ;;  %v11459_v52 = vpop.f32.mrb[14].mxu0  ;;  %v3529_v34 = vld [vmem:[#allocation2 + $0x49] sm:$0xff]  ;;  %v323_v29 = vld [vmem:[%s15327_s1 + $0x80] sm:$0xff] }
 0x20d   : > { %3425 = vst [vmem:[#allocation2 + $0x6b] sm:$0xff] %v3389_v26  ;;  %v3320_v39 = vadd.f32 %v12444_v28, %v14337_v1  ;;  %v12446_v11 = vadd.f32 %v11459_v52, %v14330_v16  ;;  %v3171_v36 = vpop.f32.mrb[15].mxu0  ;;  %v3527_v21 = vld [vmem:[#allocation2 + $0x39] sm:$0xff]  ;;  %v3528_v3 = vld [vmem:[#allocation2 + $0x41] sm:$0xff]  ;;  %11535 = vmatpush3.bf16.msra.mxu1 %v13387_v14  ;;  %v321_v0 = vld [vmem:[%s15327_s1 + $0x70] sm:$0xff] }
 0x20e   : > { %3423 = vst [vmem:[#allocation2 + $0x5b] sm:$0xff] %v3387_v30  ;;  %v3318_v17 = vadd.f32 %v12445_v31, %v14337_v1  ;;  %v12447_v61 = vadd.f32 %v3171_v36, %v14332_v2  ;;  %v3559_v41 = vpack.c.bf16 %v3527_v21, %v3526_v38  ;;  %v3560_v43 = vpack.c.bf16 %v3529_v34, %v3528_v3  ;;  %v13389_v16 = vld [vmem:[%s15330_s4 + $0x18] sm:$0xff]   ;;  %v324_v3 = vld [vmem:[%s15327_s1 + $0x88] sm:$0xff] }
 0x20f   : > { %11536 = vmatprep.subr.bf16.mxu1 %v13388_v50  ;;  %v3356_v44 = vmax.f32 %v3320_v39, 0.0  ;;  %v3321_v18 = vadd.f32 %v12446_v11, %v14337_v1  ;;  %v13393_v34 = vld [vmem:[%s15330_s4 + $0x38] sm:$0xff]  }
 0x210   : > { %v3354_v35 = vmax.f32 %v3318_v17, 0.0  ;;  %v3319_v2 = vadd.f32 %v12447_v61, %v14337_v1  ;;  %11501 = vmatmul.mubr.bf16.gmra.mrb[40].mxu1 %v3559_v41  ;;  %v326_v11 = vld [vmem:[%s15327_s1 + $0x98] sm:$0xff] }
 0x211   : > { %v3392_v46 = vmul.f32 %v3356_v44, %v321_v0  ;;  %v3357_v48 = vmax.f32 %v3321_v18, 0.0  ;;  %11504 = vmatprep.mubr.bf16.mxu1 %v3560_v43  ;;  %11537 = vmatpush3.bf16.msra.mxu1 %v13388_v50 }
 0x212   : > { %v3390_v51 = vmul.f32 %v3354_v35, %v319_v45  ;;  %v3355_v49 = vmax.f32 %v3319_v2, 0.0  ;;  %v11462_v53 = vpop.f32.mrb[16].mxu0  ;;  %11538 = vmatprep.subr.bf16.mxu1 %v13389_v16  ;;  %v14451_v45 = vld [vmem:[%s15330_s4 + $0x80] sm:$0xff]  }
 0x213   : > { %3428 = vst [vmem:[#allocation2 + $0x83] sm:$0xff] %v3392_v46  ;;  %v3393_v54 = vmul.f32 %v3357_v48, %v322_v37  ;;  %v3184_v32 = vpop.f32.mrb[17].mxu0  ;;  %v3530_v4 = vld [vmem:[#allocation2 + $0x51] sm:$0xff] }
 0x214   : > { %3426 = vst [vmem:[#allocation2 + $0x73] sm:$0xff] %v3390_v51  ;;  %v3391_v56 = vmul.f32 %v3355_v49, %v320_v23  ;;  %v11463_v58 = vpop.f32.mrb[18].mxu0  ;;  %v3533_v59 = vld [vmem:[#allocation2 + $0x69] sm:$0xff] }
 0x215   : > { %3429 = vst [vmem:[#allocation2 + $0x8b] sm:$0xff] %v3393_v54  ;;  %v3187_v60 = vpop.f32.mrb[19].mxu0  ;;  %v3531_v13 = vld [vmem:[#allocation2 + $0x59] sm:$0xff]  ;;  %v3532_v5 = vld [vmem:[#allocation2 + $0x61] sm:$0xff]  ;;  %11539 = vmatpush3.bf16.msra.mxu1 %v13389_v16  ;;  %v329_v49 = vld [vmem:[%s15327_s1 + $0xb0] sm:$0xff] }
 0x216   : > { %3427 = vst [vmem:[#allocation2 + $0x7b] sm:$0xff] %v3391_v56  ;;  %v3561_v42 = vpack.c.bf16 %v3531_v13, %v3530_v4  ;;  %v3562_v57 = vpack.c.bf16 %v3533_v59, %v3532_v5  ;;  %11540 = vmatprep.subr.bf16.mxu1 %v13390_v47  ;;  %v327_v56 = vld [vmem:[%s15327_s1 + $0xa0] sm:$0xff] }
 0x218   : > { %11505 = vmatmul.mubr.bf16.gmra.mrb[44].mxu1 %v3561_v42  ;;  %v328_v42 = vld [vmem:[%s15327_s1 + $0xa8] sm:$0xff] }
 0x219   : > { %11508 = vmatprep.mubr.bf16.mxu1 %v3562_v57  ;;  %v11254_v25 = vpop.f32.mrb[16].mxu1  ;;  %11541 = vmatpush3.bf16.msra.mxu1 %v13390_v47 }
 0x21a   : > { %v12448_v10 = vadd.f32 %v11462_v53, %v11254_v25  ;;  %v11466_v63 = vpop.f32.mrb[20].mxu0  ;;  %v1856_v12 = vpop.f32.mrb[17].mxu1  ;;  %11542 = vmatprep.subr.bf16.mxu1 %v13391_v6 }
 0x21b   : > { %v12449_v14 = vadd.f32 %v3184_v32, %v1856_v12  ;;  %v3200_v62 = vpop.f32.mrb[21].mxu0  ;;  %v11255_v40 = vpop.f32.mrb[18].mxu1  ;;  %v3534_v33 = vld [vmem:[#allocation2 + $0x71] sm:$0xff] }
 0x21c   : > { %v3324_v9 = vadd.f32 %v12448_v10, %v14337_v1  ;;  %v12450_v15 = vadd.f32 %v11463_v58, %v11255_v40  ;;  %v11467_v8 = vpop.f32.mrb[22].mxu0  ;;  %v1859_v55 = vpop.f32.mrb[19].mxu1  ;;  %v3537_v19 = vld [vmem:[#allocation2 + $0x89] sm:$0xff] }
 0x21d   : > { %v3322_v20 = vadd.f32 %v12449_v14, %v14337_v1  ;;  %v12451_v22 = vadd.f32 %v3187_v60, %v1859_v55  ;;  %v3203_v7 = vpop.f32.mrb[23].mxu0  ;;  %v3535_v50 = vld [vmem:[#allocation2 + $0x79] sm:$0xff]  ;;  %v3536_v26 = vld [vmem:[#allocation2 + $0x81] sm:$0xff]  ;;  %11543 = vmatpush3.bf16.msra.mxu1 %v13391_v6 }
 0x21e   : > { %v3360_v28 = vmax.f32 %v3324_v9, 0.0  ;;  %v3325_v30 = vadd.f32 %v12450_v15, %v14337_v1  ;;  %v3563_v31 = vpack.c.bf16 %v3535_v50, %v3534_v33  ;;  %v3564_v52 = vpack.c.bf16 %v3537_v19, %v3536_v26  ;;  %11544 = vmatprep.subr.bf16.mxu1 %v13392_v27  ;;  %v330_v60 = vld [vmem:[%s15327_s1 + $0xb8] sm:$0xff]  ;;  %v333_v33 = vld [vmem:[%s15327_s1 + $0xd0] sm:$0xff] }
 0x21f   : > { %v3358_v39 = vmax.f32 %v3322_v20, 0.0  ;;  %v3323_v36 = vadd.f32 %v12451_v22, %v14337_v1 }
 0x220   : > { %v3396_v38 = vmul.f32 %v3360_v28, %v325_v24  ;;  %v3361_v21 = vmax.f32 %v3325_v30, 0.0  ;;  %11509 = vmatmul.mubr.bf16.gmra.mrb[48].mxu1 %v3563_v31 }
 0x221   : > { %v3394_v0 = vmul.f32 %v3358_v39, %v323_v29  ;;  %v3359_v17 = vmax.f32 %v3323_v36, 0.0  ;;  %11512 = vmatprep.mubr.bf16.mxu1 %v3564_v52  ;;  %v11258_v61 = vpop.f32.mrb[20].mxu1  ;;  %11545 = vmatpush3.bf16.msra.mxu1 %v13392_v27  ;;  %v331_v52 = vld [vmem:[%s15327_s1 + $0xc0] sm:$0xff] }
 0x222   : > { %3432 = vst [vmem:[#allocation2 + $0xa3] sm:$0xff] %v3396_v38  ;;  %v3397_v41 = vmul.f32 %v3361_v21, %v326_v11  ;;  %v12452_v43 = vadd.f32 %v11466_v63, %v11258_v61  ;;  %v11470_v16 = vpop.f32.mrb[24].mxu0  ;;  %v1872_v44 = vpop.f32.mrb[21].mxu1  ;;  %11546 = vmatprep.subr.bf16.mxu1 %v13393_v34  ;;  %v334_v11 = vld [vmem:[%s15327_s1 + $0xd8] sm:$0xff] }
 0x223   : > { %3430 = vst [vmem:[#allocation2 + $0x93] sm:$0xff] %v3394_v0  ;;  %v3395_v18 = vmul.f32 %v3359_v17, %v324_v3  ;;  %v12453_v35 = vadd.f32 %v3200_v62, %v1872_v44  ;;  %v3216_v37 = vpop.f32.mrb[25].mxu0  ;;  %v11259_v2 = vpop.f32.mrb[22].mxu1  ;;  %v332_v3 = vld [vmem:[%s15327_s1 + $0xc8] sm:$0xff] }
 0x224   : > { %3433 = vst [vmem:[#allocation2 + $0xab] sm:$0xff] %v3397_v41  ;;  %v3328_v46 = vadd.f32 %v12452_v43, %v14337_v1  ;;  %v12454_v48 = vadd.f32 %v11467_v8, %v11259_v2  ;;  %v11471_v23 = vpop.f32.mrb[26].mxu0  ;;  %v1875_v51 = vpop.f32.mrb[23].mxu1 }
 0x225   : > { %3431 = vst [vmem:[#allocation2 + $0x9b] sm:$0xff] %v3395_v18  ;;  %v3326_v53 = vadd.f32 %v12453_v35, %v14337_v1  ;;  %v12455_v47 = vadd.f32 %v3203_v7, %v1875_v51  ;;  %v3219_v54 = vpop.f32.mrb[27].mxu0  ;;  %11547 = vmatpush3.bf16.msra.mxu1 %v13393_v34 }
 0x226   : > { %v3364_v32 = vmax.f32 %v3328_v46, 0.0  ;;  %v3329_v58 = vadd.f32 %v12454_v48, %v14337_v1  ;;  %11584 = vmatprep.subr.bf16.mxu1 %v14451_v45 }
 0x227   : > { %v3362_v59 = vmax.f32 %v3326_v53, 0.0  ;;  %v3327_v4 = vadd.f32 %v12455_v47, %v14337_v1 }
 0x228   : > { %v3400_v13 = vmul.f32 %v3364_v32, %v329_v49  ;;  %v3365_v5 = vmax.f32 %v3329_v58, 0.0  ;;  %v337_v32 = vld [vmem:[%s15327_s1 + $0xf0] sm:$0xff] }
 0x229   : > { %v3398_v57 = vmul.f32 %v3362_v59, %v327_v56  ;;  %v3363_v6 = vmax.f32 %v3327_v4, 0.0  ;;  %v11262_v25 = vpop.f32.mrb[24].mxu1 }
 0x22a   : > { %3436 = vst [vmem:[#allocation2 + $0xc3] sm:$0xff] %v3400_v13  ;;  %v3401_v10 = vmul.f32 %v3365_v5, %v330_v60  ;;  %v12456_v63 = vadd.f32 %v11470_v16, %v11262_v25  ;;  %v11474_v12 = vpop.f32.mrb[28].mxu0  ;;  %v1888_v27 = vpop.f32.mrb[25].mxu1  ;;  %v3538_v20 = vld [vmem:[#allocation2 + $0x91] sm:$0xff]  ;;  %v335_v5 = vld [vmem:[%s15327_s1 + $0xe0] sm:$0xff] }
 0x22b   : > { %3434 = vst [vmem:[#allocation2 + $0xb3] sm:$0xff] %v3398_v57  ;;  %v3399_v14 = vmul.f32 %v3363_v6, %v328_v42  ;;  %v12457_v62 = vadd.f32 %v3216_v37, %v1888_v27  ;;  %v3232_v40 = vpop.f32.mrb[29].mxu0  ;;  %v11263_v24 = vpop.f32.mrb[26].mxu1  ;;  %v3541_v9 = vld [vmem:[#allocation2 + $0xa9] sm:$0xff]  ;;  %v338_v6 = vld [vmem:[%s15327_s1 + $0xf8] sm:$0xff] }
 0x22c   : > { %3437 = vst [vmem:[#allocation2 + $0xcb] sm:$0xff] %v3401_v10  ;;  %v3332_v15 = vadd.f32 %v12456_v63, %v14337_v1  ;;  %v12458_v8 = vadd.f32 %v11471_v23, %v11263_v24  ;;  %v11475_v55 = vpop.f32.mrb[30].mxu0  ;;  %v1891_v19 = vpop.f32.mrb[27].mxu1  ;;  %v3539_v22 = vld [vmem:[#allocation2 + $0x99] sm:$0xff]  ;;  %v3540_v7 = vld [vmem:[#allocation2 + $0xa1] sm:$0xff] }
 0x22d   : > { %3435 = vst [vmem:[#allocation2 + $0xbb] sm:$0xff] %v3399_v14  ;;  %v3330_v50 = vadd.f32 %v12457_v62, %v14337_v1  ;;  %v12459_v26 = vadd.f32 %v3219_v54, %v1891_v19  ;;  %v3235_v28 = vpop.f32.mrb[31].mxu0  ;;  %v3565_v29 = vpack.c.bf16 %v3539_v22, %v3538_v20  ;;  %v3566_v30 = vpack.c.bf16 %v3541_v9, %v3540_v7 }
 0x22e   : > { %v3368_v31 = vmax.f32 %v3332_v15, 0.0  ;;  %v3333_v34 = vadd.f32 %v12458_v8, %v14337_v1 }
 0x22f   : > { %v3366_v39 = vmax.f32 %v3330_v50, 0.0  ;;  %v3331_v36 = vadd.f32 %v12459_v26, %v14337_v1  ;;  %11513 = vmatmul.mubr.bf16.gmra.mrb[52].mxu1 %v3565_v29 }
 0x230   : > { %v3404_v38 = vmul.f32 %v3368_v31, %v333_v33  ;;  %v3369_v21 = vmax.f32 %v3333_v34, 0.0  ;;  %11516 = vmatprep.mubr.bf16.mxu1 %v3566_v30 }
 0x231   : > { %v3402_v0 = vmul.f32 %v3366_v39, %v331_v52  ;;  %v3367_v17 = vmax.f32 %v3331_v36, 0.0  ;;  %v11266_v61 = vpop.f32.mrb[28].mxu1  ;;  %v339_v39 = vld [vmem:[%s15327_s1 + $0x100] sm:$0xff] }
 0x232   : > { %3440 = vst [vmem:[#allocation2 + $0xe3] sm:$0xff] %v3404_v38  ;;  %v3405_v41 = vmul.f32 %v3369_v21, %v334_v11  ;;  %v12460_v43 = vadd.f32 %v11474_v12, %v11266_v61  ;;  %v11478_v16 = vpop.f32.mrb[32].mxu0  ;;  %v1904_v44 = vpop.f32.mrb[29].mxu1  ;;  %v3542_v53 = vld [vmem:[#allocation2 + $0xb1] sm:$0xff]  ;;  %v336_v12 = vld [vmem:[%s15327_s1 + $0xe8] sm:$0xff] }
 0x233   : > { %3438 = vst [vmem:[#allocation2 + $0xd3] sm:$0xff] %v3402_v0  ;;  %v3403_v18 = vmul.f32 %v3367_v17, %v332_v3  ;;  %v12461_v35 = vadd.f32 %v3232_v40, %v1904_v44  ;;  %v3248_v37 = vpop.f32.mrb[33].mxu0  ;;  %v11267_v2 = vpop.f32.mrb[30].mxu1  ;;  %v3545_v46 = vld [vmem:[#allocation2 + $0xc9] sm:$0xff]  ;;  %v342_v38 = vld [vmem:[%s15327_s1 + $0x118] sm:$0xff] }
 0x234   : > { %3441 = vst [vmem:[#allocation2 + $0xeb] sm:$0xff] %v3405_v41  ;;  %v3336_v48 = vadd.f32 %v12460_v43, %v14337_v1  ;;  %v12462_v23 = vadd.f32 %v11475_v55, %v11267_v2  ;;  %v11479_v51 = vpop.f32.mrb[34].mxu0  ;;  %v1907_v49 = vpop.f32.mrb[31].mxu1  ;;  %v3543_v47 = vld [vmem:[#allocation2 + $0xb9] sm:$0xff]  ;;  %v3544_v54 = vld [vmem:[#allocation2 + $0xc1] sm:$0xff] }
 0x235   : > { %3439 = vst [vmem:[#allocation2 + $0xdb] sm:$0xff] %v3403_v18  ;;  %v3334_v56 = vadd.f32 %v12461_v35, %v14337_v1  ;;  %v12463_v58 = vadd.f32 %v3235_v28, %v1907_v49  ;;  %v3251_v59 = vpop.f32.mrb[35].mxu0  ;;  %v3567_v60 = vpack.c.bf16 %v3543_v47, %v3542_v53  ;;  %v3568_v4 = vpack.c.bf16 %v3545_v46, %v3544_v54  ;;  %v341_v28 = vld [vmem:[%s15327_s1 + $0x110] sm:$0xff]  ;;  %v340_v17 = vld [vmem:[%s15327_s1 + $0x108] sm:$0xff]  ;;  %v3453_v47 = vld [vmem:[#allocation2 + $0x18] sm:$0xff] }
 0x236   : > { %v3372_v13 = vmax.f32 %v3336_v48, 0.0  ;;  %v3337_v42 = vadd.f32 %v12462_v23, %v14337_v1  ;;  %v13576_v53 = vmov 0.0|0.0   ;;  %v3454_v54 = vld [vmem:[#allocation2 + $0x20] sm:$0xff] }
 0x237   : > { %v3370_v57 = vmax.f32 %v3334_v56, 0.0  ;;  %v3335_v25 = vadd.f32 %v12463_v58, %v14337_v1  ;;  %11517 = vmatmul.mubr.bf16.gmra.mrb[56].mxu1 %v3567_v60  ;;  %v3452_v56 = vld [vmem:[#allocation2 + $0x10] sm:$0xff] }
 0x238   : > { %v3408_v10 = vmul.f32 %v3372_v13, %v337_v32  ;;  %v3373_v63 = vmax.f32 %v3337_v42, 0.0  ;;  %11520 = vmatprep.mubr.bf16.mxu1 %v3568_v4  ;;  %v3455_v32 = vld [vmem:[#allocation2 + $0x28] sm:$0xff]  ;;  %v3487_v58 = vpack.c.bf16 %v3453_v47, %v3452_v56  ;;  %v13396_v4 = vld [vmem:[%s15330_s4 + $0x90] sm:$0xff]   ;;  %v3457_v13 = vld [vmem:[#allocation2 + $0x38] sm:$0xff] }
 0x239   : > { %v3406_v27 = vmul.f32 %v3370_v57, %v335_v5  ;;  %v3371_v14 = vmax.f32 %v3335_v25, 0.0  ;;  %v11270_v62 = vpop.f32.mrb[32].mxu1  ;;  %v3488_v60 = vpack.c.bf16 %v3455_v32, %v3454_v54  ;;  %v3458_v5 = vld [vmem:[#allocation2 + $0x40] sm:$0xff]  ;;  %v3459_v42 = vld [vmem:[#allocation2 + $0x48] sm:$0xff]  ;;  %v3456_v57 = vld [vmem:[#allocation2 + $0x30] sm:$0xff] }
 0x23a   : > { %3444 = vst [vmem:[#allocation2 + $0x103] sm:$0xff] %v3408_v10  ;;  %v3409_v40 = vmul.f32 %v3373_v63, %v338_v6  ;;  %v12464_v24 = vadd.f32 %v11478_v16, %v11270_v62  ;;  %v1920_v9 = vpop.f32.mrb[33].mxu1  ;;  %v3546_v33 = vld [vmem:[#allocation2 + $0xd1] sm:$0xff]  ;;  %v3489_v6 = vpack.c.bf16 %v3457_v13, %v3456_v57  ;;  %v3490_v10 = vpack.c.bf16 %v3459_v42, %v3458_v5  ;;  %v13403_v42 = vld [vmem:[%s15330_s4 + $0xc8] sm:$0xff]  }
 0x23b   : > { %3442 = vst [vmem:[#allocation2 + $0xf3] sm:$0xff] %v3406_v27  ;;  %v14502_v15 = vmul.f32 %v3371_v14, %v336_v12  ;;  %v12465_v8 = vadd.f32 %v3248_v37, %v1920_v9  ;;  %v11271_v55 = vpop.f32.mrb[34].mxu1  ;;  %v3549_v19 = vld [vmem:[#allocation2 + $0xe9] sm:$0xff]  ;;  %v13397_v25 = vld [vmem:[%s15330_s4 + $0x98] sm:$0xff]   ;;  %v3462_v12 = vld [vmem:[#allocation2 + $0x60] sm:$0xff] }
 0x23c   : > { %3445 = vst [vmem:[#allocation2 + $0x10b] sm:$0xff] %v3409_v40  ;;  %v3340_v20 = vadd.f32 %v12464_v24, %v14337_v1  ;;  %v12466_v22 = vadd.f32 %v11479_v51, %v11271_v55  ;;  %v1923_v7 = vpop.f32.mrb[35].mxu1  ;;  %v3547_v50 = vld [vmem:[#allocation2 + $0xd9] sm:$0xff]  ;;  %v3548_v26 = vld [vmem:[#allocation2 + $0xe1] sm:$0xff]  ;;  %v3460_v14 = vld [vmem:[#allocation2 + $0x50] sm:$0xff] }
 0x23d   : > { %3443 = vst [vmem:[#allocation2 + $0xfb] sm:$0xff] %v14502_v15  ;;  %v3338_v29 = vadd.f32 %v12465_v8, %v14337_v1  ;;  %v12467_v30 = vadd.f32 %v3251_v59, %v1923_v7  ;;  %v3569_v31 = vpack.c.bf16 %v3547_v50, %v3546_v33  ;;  %v3570_v52 = vpack.c.bf16 %v3549_v19, %v3548_v26  ;;  %v13395_v59 = vld [vmem:[%s15330_s4 + $0x88] sm:$0xff]   ;;  %v3461_v63 = vld [vmem:[#allocation2 + $0x58] sm:$0xff]  ;;  %v13400_v9 = vld [vmem:[%s15330_s4 + $0xb0] sm:$0xff]  }
 0x23e   : > { %v3376_v34 = vmax.f32 %v3340_v20, 0.0  ;;  %v3341_v11 = vadd.f32 %v12466_v22, %v14337_v1  ;;  %v3463_v27 = vld [vmem:[#allocation2 + $0x68] sm:$0xff]  ;;  %v3491_v62 = vpack.c.bf16 %v3461_v63, %v3460_v14  ;;  %v3465_v8 = vld [vmem:[#allocation2 + $0x78] sm:$0xff]  ;;  %v3466_v55 = vld [vmem:[#allocation2 + $0x80] sm:$0xff] }
 0x23f   : > { %v3374_v36 = vmax.f32 %v3338_v29, 0.0  ;;  %v3339_v21 = vadd.f32 %v12467_v30, %v14337_v1  ;;  %11521 = vmatmul.mubr.bf16.gmra.mrb[60].mxu1 %v3569_v31  ;;  %v13399_v40 = vld [vmem:[%s15330_s4 + $0xa8] sm:$0xff]   ;;  %v3492_v24 = vpack.c.bf16 %v3463_v27, %v3462_v12  ;;  %v3464_v20 = vld [vmem:[#allocation2 + $0x70] sm:$0xff]  ;;  %v13401_v7 = vld [vmem:[%s15330_s4 + $0xb8] sm:$0xff]  }
 0x240   : > { %v14518_v3 = vmul.f32 %v3376_v34, %v341_v28  ;;  %v3377_v0 = vmax.f32 %v3341_v11, 0.0  ;;  %11524 = vmatprep.mubr.bf16.mxu1 %v3570_v52  ;;  %v3467_v19 = vld [vmem:[#allocation2 + $0x88] sm:$0xff]  ;;  %v3493_v22 = vpack.c.bf16 %v3465_v8, %v3464_v20  ;;  %v13402_v50 = vld [vmem:[%s15330_s4 + $0xc0] sm:$0xff]   ;;  %v3469_v26 = vld [vmem:[#allocation2 + $0x98] sm:$0xff] }
 0x241   : > { %v14523_v61 = vmul.f32 %v3374_v36, %v339_v39  ;;  %v3375_v41 = vmax.f32 %v3339_v21, 0.0  ;;  %v3494_v33 = vpack.c.bf16 %v3467_v19, %v3466_v55  ;;  %v3470_v28 = vld [vmem:[#allocation2 + $0xa0] sm:$0xff]  ;;  %v3471_v29 = vld [vmem:[#allocation2 + $0xa8] sm:$0xff]  ;;  %v3468_v30 = vld [vmem:[#allocation2 + $0x90] sm:$0xff] }
 0x242   : > { %3448 = vst [vmem:[#allocation2 + $0x123] sm:$0xff] %v14518_v3  ;;  %v14526_v43 = vmul.f32 %v3377_v0, %v342_v38  ;;  %v3550_v44 = vld [vmem:[#allocation2 + $0xf1] sm:$0xff]  ;;  %v3495_v31 = vpack.c.bf16 %v3469_v26, %v3468_v30  ;;  %v3496_v52 = vpack.c.bf16 %v3471_v29, %v3470_v28  ;;  %v3474_v39 = vld [vmem:[#allocation2 + $0xc0] sm:$0xff]  ;;  %v3475_v11 = vld [vmem:[#allocation2 + $0xc8] sm:$0xff] }
 0x243   : > { %3446 = vst [vmem:[#allocation2 + $0x113] sm:$0xff] %v14523_v61  ;;  %v14529_v16 = vmul.f32 %v3375_v41, %v340_v17  ;;  %v3553_v1 = vld [vmem:[#allocation2 + $0x109] sm:$0xff]  ;;  %v3473_v34 = vld [vmem:[#allocation2 + $0xb8] sm:$0xff]  ;;  %v3498_v21 = vpack.c.bf16 %v3475_v11, %v3474_v39  ;;  %v3478_v17 = vld [vmem:[#allocation2 + $0xe0] sm:$0xff] }
 0x244   : > { %3449 = vst [vmem:[#allocation2 + $0x12b] sm:$0xff] %v14526_v43  ;;  %v3551_v18 = vld [vmem:[#allocation2 + $0xf9] sm:$0xff]  ;;  %v3552_v35 = vld [vmem:[#allocation2 + $0x101] sm:$0xff]  ;;  %v4758_v37 = vpack.c.bf16 %v14526_v43, %v14518_v3  ;;  %v3472_v36 = vld [vmem:[#allocation2 + $0xb0] sm:$0xff] }
 0x245   : > { %3447 = vst [vmem:[#allocation2 + $0x11b] sm:$0xff] %v14529_v16  ;;  %v3571_v2 = vpack.c.bf16 %v3551_v18, %v3550_v44  ;;  %v3572_v46 = vpack.c.bf16 %v3553_v1, %v3552_v35  ;;  %v4757_v48 = vpack.c.bf16 %v14529_v16, %v14523_v61  ;;  %v3497_v38 = vpack.c.bf16 %v3473_v34, %v3472_v36  ;;  %v3477_v0 = vld [vmem:[#allocation2 + $0xd8] sm:$0xff]  ;;  %v3479_v41 = vld [vmem:[#allocation2 + $0xe8] sm:$0xff]  ;;  %v3476_v1 = vld [vmem:[#allocation2 + $0xd0] sm:$0xff] }
 0x246   : > { %v3499_v44 = vpack.c.bf16 %v3477_v0, %v3476_v1  ;;  %v3500_v18 = vpack.c.bf16 %v3479_v41, %v3478_v17  ;;  %v3481_v35 = vld [vmem:[#allocation2 + $0xf8] sm:$0xff]  ;;  %v4042_v47 = vld [vmem:[#allocation2 + $0xa] sm:$0xff]  ;;  %v4061_v34 = vld [vmem:[#allocation2 + $0xa2] sm:$0xff] }
 0x247   : > { %11525 = vmatmul.mubr.bf16.gmra.mrb[64].mxu1 %v3571_v2  ;;  %v3482_v2 = vld [vmem:[#allocation2 + $0x100] sm:$0xff]  ;;  %v4043_v13 = vld [vmem:[#allocation2 + $0x12] sm:$0xff]  ;;  %v13407_v19 = vld [vmem:[%s15330_s4 + $0xe8] sm:$0xff]  }
 0x248   : > { %11528 = vmatprep.mubr.bf16.mxu1 %v3572_v46  ;;  %v3483_v46 = vld [vmem:[#allocation2 + $0x108] sm:$0xff]  ;;  %v4047_v63 = vld [vmem:[#allocation2 + $0x32] sm:$0xff] }
 0x249   : > { %v13405_v27 = vld [vmem:[%s15330_s4 + $0xd8] sm:$0xff]   ;;  %v4062_v39 = vld [vmem:[#allocation2 + $0xaa] sm:$0xff]  ;;  %v4065_v0 = vld [vmem:[#allocation2 + $0xc2] sm:$0xff] }
 0x24a   : > { %v3554_v23 = vld [vmem:[#allocation2 + $0x111] sm:$0xff] }
 0x24b   : > { %v3484_v32 = vld [vmem:[#allocation2 + $0x110] sm:$0xff]  ;;  %v13409_v29 = vld [vmem:[%s15330_s4 + $0xf8] sm:$0xff]  }
 0x24c   : > { %v3555_v51 = vld [vmem:[#allocation2 + $0x119] sm:$0xff]  ;;  %v4066_v17 = vld [vmem:[#allocation2 + $0xca] sm:$0xff] }
 0x24d   : > { %v3573_v49 = vpack.c.bf16 %v3555_v51, %v3554_v23  ;;  %v3480_v23 = vld [vmem:[#allocation2 + $0xf0] sm:$0xff]  ;;  %v3485_v54 = vld [vmem:[#allocation2 + $0x118] sm:$0xff] }
 0x24e   : > { %v3501_v51 = vpack.c.bf16 %v3481_v35, %v3480_v23  ;;  %v4051_v8 = vld [vmem:[#allocation2 + $0x52] sm:$0xff]  ;;  %v4069_v35 = vld [vmem:[#allocation2 + $0xe2] sm:$0xff] }
 0x24f   : > { %11529 = vmatmul.mubr.bf16.gmra.mrb[68].mxu1 %v3573_v49  ;;  %v3502_v49 = vpack.c.bf16 %v3483_v46, %v3482_v2  ;;  %v4055_v26 = vld [vmem:[#allocation2 + $0x72] sm:$0xff]  ;;  %v4070_v2 = vld [vmem:[#allocation2 + $0xea] sm:$0xff] }
 0x250   : > { %11548 = vmatprep.mubr.bf16.mxu1 %v13576_v53  ;;  %v4041_v53 = vld [vmem:[#allocation2 + $0x2] sm:$0xff]  ;;  %v4059_v11 = vld [vmem:[#allocation2 + $0x92] sm:$0xff] }
 0x251   : > { %v4077_v56 = vpack.c.bf16 %v4042_v47, %v4041_v53  ;;  %v4063_v41 = vld [vmem:[#allocation2 + $0xb2] sm:$0xff]  ;;  %v4073_v53 = vld [vmem:[#allocation2 + $0x102] sm:$0xff]  ;;  %v4074_v47 = vld [vmem:[#allocation2 + $0x10a] sm:$0xff] }
 0x252   : > { %v4067_v46 = vld [vmem:[#allocation2 + $0xd2] sm:$0xff] }
 0x253   : > { %v13428_v3 = vld [vmem:[%s15330_s4 + $0x190] sm:$0xff]  }
 0x254   : > { %v5044_v43 = vld [vmem:[#allocation2 + $0x4c] sm:$0xff]  ;;  %v5045_v16 = vld [vmem:[#allocation2 + $0x54] sm:$0xff] }
 0x257   : > { %11549 = vmatmul.mubr.bf16.vlgmr.msra.gmra.mrb[36].mxu1 %v3487_v58  ;;  %v3503_v58 = vpack.c.bf16 %v3485_v54, %v3484_v32  ;;  %v4071_v54 = vld [vmem:[#allocation2 + $0xf2] sm:$0xff] }
 0x258   : > { %11552 = vmatprep.mubr.bf16.mxu1 %v3488_v60  ;;  %11585 = vmatpush3.bf16.msra.mxu1 %v14451_v45  ;;  %v13398_v45 = vld [vmem:[%s15330_s4 + $0xa0] sm:$0xff]  }
 0x259   : > { %11586 = vmatprep.subr.bf16.mxu1 %v13395_v59  ;;  %v4045_v60 = vld [vmem:[#allocation2 + $0x22] sm:$0xff] }
 0x25c   : > { %11587 = vmatpush3.bf16.msra.mxu1 %v13395_v59  ;;  %v4044_v59 = vld [vmem:[#allocation2 + $0x1a] sm:$0xff] }
 0x25d   : > { %11588 = vmatprep.subr.bf16.mxu1 %v13396_v4  ;;  %v14562_v5 = vpack.c.bf16 %v4044_v59, %v4043_v13  ;;  %v4075_v59 = vld [vmem:[#allocation2 + $0x112] sm:$0xff] }
 0x25e   : > { %v13412_v13 = vld [vmem:[%s15330_s4 + $0x110] sm:$0xff]  }
 0x25f   : > { %11553 = vmatmul.mubr.bf16.gmra.mrb[40].mxu1 %v3489_v6  ;;  %v13404_v6 = vld [vmem:[%s15330_s4 + $0xd0] sm:$0xff]  }
 0x260   : > { %11556 = vmatprep.mubr.bf16.mxu1 %v3490_v10  ;;  %11589 = vmatpush3.bf16.msra.mxu1 %v13396_v4  ;;  %v4046_v4 = vld [vmem:[#allocation2 + $0x2a] sm:$0xff]  ;;  %v4049_v10 = vld [vmem:[#allocation2 + $0x42] sm:$0xff] }
 0x261   : > { %11590 = vmatprep.subr.bf16.mxu1 %v13397_v25  ;;  %v14567_v57 = vpack.c.bf16 %v4046_v4, %v4045_v60  ;;  %v13411_v4 = vld [vmem:[%s15330_s4 + $0x108] sm:$0xff]  }
 0x264   : > { %11591 = vmatpush3.bf16.msra.mxu1 %v13397_v25  ;;  %v4048_v25 = vld [vmem:[#allocation2 + $0x3a] sm:$0xff] }
 0x265   : > { %11592 = vmatprep.subr.bf16.mxu1 %v13398_v45  ;;  %v14574_v12 = vpack.c.bf16 %v4048_v25, %v4047_v63  ;;  %v13417_v25 = vld [vmem:[%s15330_s4 + $0x138] sm:$0xff]   ;;  %v4408_v63 = vld [vmem:[#allocation2 + $0x12a] sm:$0xff] }
 0x267   : > { %11557 = vmatmul.mubr.bf16.gmra.mrb[44].mxu1 %v3491_v62  ;;  %v13406_v62 = vld [vmem:[%s15330_s4 + $0xe0] sm:$0xff]  }
 0x268   : > { %11560 = vmatprep.mubr.bf16.mxu1 %v3492_v24  ;;  %11593 = vmatpush3.bf16.msra.mxu1 %v13398_v45  ;;  %v4050_v45 = vld [vmem:[#allocation2 + $0x4a] sm:$0xff]  ;;  %v4053_v24 = vld [vmem:[#allocation2 + $0x62] sm:$0xff] }
 0x269   : > { %11594 = vmatprep.subr.bf16.mxu1 %v13399_v40  ;;  %v14579_v14 = vpack.c.bf16 %v4050_v45, %v4049_v10  ;;  %v13418_v10 = vld [vmem:[%s15330_s4 + $0x140] sm:$0xff]  }
 0x26a   : > { %v4407_v45 = vld [vmem:[#allocation2 + $0x122] sm:$0xff] }
 0x26c   : > { %11595 = vmatpush3.bf16.msra.mxu1 %v13399_v40  ;;  %v4052_v40 = vld [vmem:[#allocation2 + $0x5a] sm:$0xff] }
 0x26d   : > { %11596 = vmatprep.subr.bf16.mxu1 %v13400_v9  ;;  %v14586_v55 = vpack.c.bf16 %v4052_v40, %v4051_v8  ;;  %v4708_v40 = vld [vmem:[#allocation2 + $0x2b] sm:$0xff] }
 0x26f   : > { %11561 = vmatmul.mubr.bf16.gmra.mrb[48].mxu1 %v3493_v22  ;;  %v13408_v22 = vld [vmem:[%s15330_s4 + $0xf0] sm:$0xff]  }
 0x270   : > { %11564 = vmatprep.mubr.bf16.mxu1 %v3494_v33  ;;  %11597 = vmatpush3.bf16.msra.mxu1 %v13400_v9  ;;  %v4054_v9 = vld [vmem:[#allocation2 + $0x6a] sm:$0xff]  ;;  %v4057_v33 = vld [vmem:[#allocation2 + $0x82] sm:$0xff] }
 0x271   : > { %11598 = vmatprep.subr.bf16.mxu1 %v13401_v7  ;;  %v14591_v20 = vpack.c.bf16 %v4054_v9, %v4053_v24  ;;  %v4710_v24 = vld [vmem:[#allocation2 + $0x3b] sm:$0xff]  ;;  %v4707_v9 = vld [vmem:[#allocation2 + $0x23] sm:$0xff] }
 0x272   : > { %v4742_v8 = vpack.c.bf16 %v4708_v40, %v4707_v9  ;;  %v5039_v40 = vld [vmem:[#allocation2 + $0x24] sm:$0xff] }
 0x273   : > { %v13427_v9 = vld [vmem:[%s15330_s4 + $0x188] sm:$0xff]  }
 0x274   : > { %11599 = vmatpush3.bf16.msra.mxu1 %v13401_v7  ;;  %v4056_v7 = vld [vmem:[#allocation2 + $0x7a] sm:$0xff] }
 0x275   : > { %11636 = vmatprep.subr.bf16.mxu1 %v13402_v50  ;;  %v14598_v28 = vpack.c.bf16 %v4056_v7, %v4055_v26  ;;  %v4712_v7 = vld [vmem:[#allocation2 + $0x4b] sm:$0xff] }
 0x277   : > { %11565 = vmatmul.mubr.bf16.gmra.mrb[52].mxu1 %v3495_v31  ;;  %v13410_v31 = vld [vmem:[%s15330_s4 + $0x100] sm:$0xff]  }
 0x278   : > { %11568 = vmatprep.mubr.bf16.mxu1 %v3496_v52  ;;  %v4060_v52 = vld [vmem:[#allocation2 + $0x9a] sm:$0xff] }
 0x279   : > { %v4086_v36 = vpack.c.bf16 %v4060_v52, %v4059_v11  ;;  %v4716_v52 = vld [vmem:[#allocation2 + $0x6b] sm:$0xff] }
 0x27f   : > { %11569 = vmatmul.mubr.bf16.gmra.mrb[56].mxu1 %v3497_v38  ;;  %v14610_v38 = vpack.c.bf16 %v4062_v39, %v4061_v34  ;;  %v4718_v34 = vld [vmem:[#allocation2 + $0x7b] sm:$0xff]  ;;  %v4715_v39 = vld [vmem:[#allocation2 + $0x63] sm:$0xff] }
 0x280   : > { %11572 = vmatprep.mubr.bf16.mxu1 %v3498_v21  ;;  %v4064_v21 = vld [vmem:[#allocation2 + $0xba] sm:$0xff]  ;;  %v4746_v11 = vpack.c.bf16 %v4716_v52, %v4715_v39  ;;  %v5051_v39 = vld [vmem:[#allocation2 + $0x84] sm:$0xff] }
 0x281   : > { %v4088_v1 = vpack.c.bf16 %v4064_v21, %v4063_v41  ;;  %v4722_v41 = vld [vmem:[#allocation2 + $0x9b] sm:$0xff] }
 0x282   : > { %v5053_v52 = vld [vmem:[#allocation2 + $0x94] sm:$0xff] }
 0x287   : > { %11573 = vmatmul.mubr.bf16.gmra.mrb[60].mxu1 %v3499_v44  ;;  %v4089_v44 = vpack.c.bf16 %v4066_v17, %v4065_v0  ;;  %v13424_v0 = vld [vmem:[%s15330_s4 + $0x170] sm:$0xff]  }
 0x288   : > { %11576 = vmatprep.mubr.bf16.mxu1 %v3500_v18  ;;  %v4068_v18 = vld [vmem:[#allocation2 + $0xda] sm:$0xff]  ;;  %v4720_v17 = vld [vmem:[#allocation2 + $0x8b] sm:$0xff] }
 0x289   : > { %v4090_v23 = vpack.c.bf16 %v4068_v18, %v4067_v46  ;;  %v4721_v18 = vld [vmem:[#allocation2 + $0x93] sm:$0xff]  ;;  %v13426_v46 = vld [vmem:[%s15330_s4 + $0x180] sm:$0xff]  }
 0x28f   : > { %11577 = vmatmul.mubr.bf16.gmra.mrb[64].mxu1 %v3501_v51  ;;  %v4091_v51 = vpack.c.bf16 %v4070_v2, %v4069_v35  ;;  %v13425_v35 = vld [vmem:[%s15330_s4 + $0x178] sm:$0xff]   ;;  %v4749_v2 = vpack.c.bf16 %v4722_v41, %v4721_v18 }
 0x290   : > { %11580 = vmatprep.mubr.bf16.mxu1 %v3502_v49  ;;  %v4072_v49 = vld [vmem:[#allocation2 + $0xfa] sm:$0xff] }
 0x291   : > { %v4092_v32 = vpack.c.bf16 %v4072_v49, %v4071_v54  ;;  %v4723_v49 = vld [vmem:[#allocation2 + $0xa3] sm:$0xff] }
 0x292   : > { %v5058_v41 = vld [vmem:[#allocation2 + $0xbc] sm:$0xff] }
 0x297   : > { %11581 = vmatmul.mubr.bf16.gmra.mrb[68].mxu1 %v3503_v58  ;;  %v4076_v58 = vld [vmem:[#allocation2 + $0x11a] sm:$0xff] }
 0x298   : > { %11600 = vmatprep.mubr.bf16.mxu1 %v4077_v56  ;;  %v4093_v56 = vpack.c.bf16 %v4074_v47, %v4073_v53  ;;  %v4094_v60 = vpack.c.bf16 %v4076_v58, %v4075_v59  ;;  %v4725_v47 = vld [vmem:[#allocation2 + $0xb3] sm:$0xff]  ;;  %v4727_v58 = vld [vmem:[#allocation2 + $0xc3] sm:$0xff] }
 0x29f   : > { %11601 = vmatmul.mubr.bf16.vlgmr.msra.gmra.mrb[36].mxu1 %v14562_v5 }
 0x2a0   : > { %11604 = vmatprep.mubr.bf16.mxu1 %v14567_v57  ;;  %11637 = vmatpush3.bf16.msra.mxu1 %v13402_v50  ;;  %v4058_v50 = vld [vmem:[#allocation2 + $0x8a] sm:$0xff] }
 0x2a1   : > { %11638 = vmatprep.subr.bf16.mxu1 %v13403_v42  ;;  %v14603_v30 = vpack.c.bf16 %v4058_v50, %v4057_v33  ;;  %v4714_v33 = vld [vmem:[#allocation2 + $0x5b] sm:$0xff]  ;;  %v4711_v50 = vld [vmem:[#allocation2 + $0x43] sm:$0xff] }
 0x2a2   : > { %v4744_v26 = vpack.c.bf16 %v4712_v7, %v4711_v50  ;;  %v5049_v7 = vld [vmem:[#allocation2 + $0x74] sm:$0xff]  ;;  %v5047_v50 = vld [vmem:[#allocation2 + $0x64] sm:$0xff] }
 0x2a4   : > { %11639 = vmatpush3.bf16.msra.mxu1 %v13403_v42  ;;  %v13414_v42 = vld [vmem:[%s15330_s4 + $0x120] sm:$0xff]  }
 0x2a5   : > { %11640 = vmatprep.subr.bf16.mxu1 %v13404_v6 }
 0x2a7   : > { %11605 = vmatmul.mubr.bf16.gmra.mrb[40].mxu1 %v14574_v12 }
 0x2a8   : > { %11608 = vmatprep.mubr.bf16.mxu1 %v14579_v14  ;;  %11641 = vmatpush3.bf16.msra.mxu1 %v13404_v6  ;;  %v13416_v6 = vld [vmem:[%s15330_s4 + $0x130] sm:$0xff]  }
 0x2a9   : > { %11642 = vmatprep.subr.bf16.mxu1 %v13405_v27 }
 0x2ac   : > { %11643 = vmatpush3.bf16.msra.mxu1 %v13405_v27  ;;  %v4426_v27 = vpack.c.bf16 %v4408_v63, %v4407_v45  ;;  %v5037_v63 = vld [vmem:[#allocation2 + $0x14] sm:$0xff] }
 0x2ad   : > { %11644 = vmatprep.subr.bf16.mxu1 %v13406_v62 }
 0x2af   : > { %11609 = vmatmul.mubr.bf16.gmra.mrb[44].mxu1 %v14586_v55 }
 0x2b0   : > { %11612 = vmatprep.mubr.bf16.mxu1 %v14591_v20  ;;  %11645 = vmatpush3.bf16.msra.mxu1 %v13406_v62 }
 0x2b1   : > { %11646 = vmatprep.subr.bf16.mxu1 %v13407_v19 }
 0x2b4   : > { %11647 = vmatpush3.bf16.msra.mxu1 %v13407_v19  ;;  %v13419_v19 = vld [vmem:[%s15330_s4 + $0x148] sm:$0xff]  }
 0x2b5   : > { %11648 = vmatprep.subr.bf16.mxu1 %v13408_v22 }
 0x2b7   : > { %11613 = vmatmul.mubr.bf16.gmra.mrb[48].mxu1 %v14598_v28 }
 0x2b8   : > { %11616 = vmatprep.mubr.bf16.mxu1 %v14603_v30  ;;  %11649 = vmatpush3.bf16.msra.mxu1 %v13408_v22  ;;  %v13420_v22 = vld [vmem:[%s15330_s4 + $0x150] sm:$0xff]  }
 0x2b9   : > { %11650 = vmatprep.subr.bf16.mxu1 %v13409_v29 }
 0x2bc   : > { %11651 = vmatpush3.bf16.msra.mxu1 %v13409_v29  ;;  %v13421_v29 = vld [vmem:[%s15330_s4 + $0x158] sm:$0xff]  }
 0x2bd   : > { %11688 = vmatprep.subr.bf16.mxu1 %v13410_v31 }
 0x2bf   : > { %11617 = vmatmul.mubr.bf16.gmra.mrb[52].mxu1 %v4086_v36 }
 0x2c0   : > { %11620 = vmatprep.mubr.bf16.mxu1 %v14610_v38 }
 0x2c7   : > { %11621 = vmatmul.mubr.bf16.gmra.mrb[56].mxu1 %v4088_v1 }
 0x2c8   : > { %11624 = vmatprep.mubr.bf16.mxu1 %v4089_v44 }
 0x2cf   : > { %11625 = vmatmul.mubr.bf16.gmra.mrb[60].mxu1 %v4090_v23 }
 0x2d0   : > { %11628 = vmatprep.mubr.bf16.mxu1 %v4091_v51 }
 0x2d7   : > { %11629 = vmatmul.mubr.bf16.gmra.mrb[64].mxu1 %v4092_v32 }
 0x2d8   : > { %11632 = vmatprep.mubr.bf16.mxu1 %v4093_v56 }
 0x2df   : > { %11633 = vmatmul.mubr.bf16.gmra.mrb[68].mxu1 %v4094_v60 }
 0x2e0   : > { %11652 = vmatprep.mubr.bf16.mxu1 %v14562_v5  ;;  %v13413_v5 = vld [vmem:[%s15330_s4 + $0x118] sm:$0xff]  }
 0x2e7   : > { %11653 = vmatmul.mubr.bf16.vlgmr.msra.gmra.mrb[36].mxu1 %v14567_v57  ;;  %v13415_v57 = vld [vmem:[%s15330_s4 + $0x128] sm:$0xff]  }
 0x2e8   : > { %11656 = vmatprep.mubr.bf16.mxu1 %v14574_v12  ;;  %11689 = vmatpush3.bf16.msra.mxu1 %v13410_v31  ;;  %v4706_v12 = vld [vmem:[#allocation2 + $0x1b] sm:$0xff] }
 0x2e9   : > { %11690 = vmatprep.subr.bf16.mxu1 %v13411_v4  ;;  %v13422_v31 = vld [vmem:[%s15330_s4 + $0x160] sm:$0xff]  }
 0x2ec   : > { %11691 = vmatpush3.bf16.msra.mxu1 %v13411_v4 }
 0x2ed   : > { %11692 = vmatprep.subr.bf16.mxu1 %v13412_v13 }
 0x2ef   : > { %11657 = vmatmul.mubr.bf16.gmra.mrb[40].mxu1 %v14579_v14  ;;  %v4705_v14 = vld [vmem:[#allocation2 + $0x13] sm:$0xff] }
 0x2f0   : > { %11660 = vmatprep.mubr.bf16.mxu1 %v14586_v55  ;;  %11693 = vmatpush3.bf16.msra.mxu1 %v13412_v13  ;;  %v4741_v62 = vpack.c.bf16 %v4706_v12, %v4705_v14  ;;  %v4709_v55 = vld [vmem:[#allocation2 + $0x33] sm:$0xff]  ;;  %v4732_v13 = vld [vmem:[#allocation2 + $0xeb] sm:$0xff]  ;;  %v5038_v12 = vld [vmem:[#allocation2 + $0x1c] sm:$0xff] }
 0x2f1   : > { %11694 = vmatprep.subr.bf16.mxu1 %v13413_v5  ;;  %v5040_v14 = vld [vmem:[#allocation2 + $0x2c] sm:$0xff] }
 0x2f4   : > { %11695 = vmatpush3.bf16.msra.mxu1 %v13413_v5  ;;  %v4733_v5 = vld [vmem:[#allocation2 + $0xf3] sm:$0xff] }
 0x2f5   : > { %11696 = vmatprep.subr.bf16.mxu1 %v13414_v42 }
 0x2f7   : > { %11661 = vmatmul.mubr.bf16.gmra.mrb[44].mxu1 %v14591_v20  ;;  %v4743_v20 = vpack.c.bf16 %v4710_v24, %v4709_v55  ;;  %v14677_v24 = vpack.c.bf16 %v5040_v14, %v5039_v40  ;;  %v13429_v55 = vld [vmem:[%s15330_s4 + $0x198] sm:$0xff]   ;;  %v13440_v14 = vld [vmem:[%s15330_s4 + $0x1f0] sm:$0xff]  }
 0x2f8   : > { %11664 = vmatprep.mubr.bf16.mxu1 %v14598_v28  ;;  %11697 = vmatpush3.bf16.msra.mxu1 %v13414_v42  ;;  %v4713_v28 = vld [vmem:[#allocation2 + $0x53] sm:$0xff]  ;;  %v4731_v42 = vld [vmem:[#allocation2 + $0xe3] sm:$0xff] }
 0x2f9   : > { %11698 = vmatprep.subr.bf16.mxu1 %v13415_v57  ;;  %v5403_v40 = vld [vmem:[#allocation2 + $0x134] sm:$0xff] }
 0x2fc   : > { %11699 = vmatpush3.bf16.msra.mxu1 %v13415_v57  ;;  %v4754_v57 = vpack.c.bf16 %v4732_v13, %v4731_v42  ;;  %v5067_v13 = vld [vmem:[#allocation2 + $0x104] sm:$0xff] }
 0x2fd   : > { %11700 = vmatprep.subr.bf16.mxu1 %v13416_v6 }
 0x2ff   : > { %11665 = vmatmul.mubr.bf16.gmra.mrb[48].mxu1 %v14603_v30  ;;  %v4745_v30 = vpack.c.bf16 %v4714_v33, %v4713_v28  ;;  %v5050_v33 = vld [vmem:[#allocation2 + $0x7c] sm:$0xff]  ;;  %v13431_v28 = vld [vmem:[%s15330_s4 + $0x1a8] sm:$0xff]  }
 0x300   : > { %11668 = vmatprep.mubr.bf16.mxu1 %v4086_v36  ;;  %11701 = vmatpush3.bf16.msra.mxu1 %v13416_v6  ;;  %v4717_v36 = vld [vmem:[#allocation2 + $0x73] sm:$0xff]  ;;  %v4755_v6 = vpack.c.bf16 %v14502_v15, %v4733_v5 }
 0x301   : > { %11702 = vmatprep.subr.bf16.mxu1 %v13417_v25  ;;  %v4747_v21 = vpack.c.bf16 %v4718_v34, %v4717_v36  ;;  %v5041_v15 = vld [vmem:[#allocation2 + $0x34] sm:$0xff]  ;;  %v5054_v34 = vld [vmem:[#allocation2 + $0x9c] sm:$0xff] }
 0x302   : > { %v13433_v36 = vld [vmem:[%s15330_s4 + $0x1b8] sm:$0xff]  }
 0x304   : > { %11703 = vmatpush3.bf16.msra.mxu1 %v13417_v25  ;;  %v4736_v25 = vld [vmem:[#allocation2 + $0x10b] sm:$0xff] }
 0x305   : > { %11740 = vmatprep.subr.bf16.mxu1 %v13418_v10 }
 0x307   : > { %11669 = vmatmul.mubr.bf16.gmra.mrb[52].mxu1 %v14610_v38  ;;  %v13423_v38 = vld [vmem:[%s15330_s4 + $0x168] sm:$0xff]  }
 0x308   : > { %11672 = vmatprep.mubr.bf16.mxu1 %v4088_v1  ;;  %v4719_v1 = vld [vmem:[#allocation2 + $0x83] sm:$0xff] }
 0x30f   : > { %11673 = vmatmul.mubr.bf16.gmra.mrb[56].mxu1 %v4089_v44  ;;  %v4748_v44 = vpack.c.bf16 %v4720_v17, %v4719_v1  ;;  %v5057_v17 = vld [vmem:[#allocation2 + $0xb4] sm:$0xff]  ;;  %v5055_v1 = vld [vmem:[#allocation2 + $0xa4] sm:$0xff] }
 0x310   : > { %11676 = vmatprep.mubr.bf16.mxu1 %v4090_v23  ;;  %v4724_v23 = vld [vmem:[#allocation2 + $0xab] sm:$0xff]  ;;  %v14725_v18 = vpack.c.bf16 %v5058_v41, %v5057_v17 }
 0x311   : > { %v4750_v53 = vpack.c.bf16 %v4724_v23, %v4723_v49  ;;  %v5059_v23 = vld [vmem:[#allocation2 + $0xc4] sm:$0xff] }
 0x312   : > { %v13447_v17 = vld [vmem:[%s15330_s4 + $0x228] sm:$0xff]  }
 0x317   : > { %11677 = vmatmul.mubr.bf16.gmra.mrb[60].mxu1 %v4091_v51  ;;  %v4726_v51 = vld [vmem:[#allocation2 + $0xbb] sm:$0xff] }
 0x318   : > { %11680 = vmatprep.mubr.bf16.mxu1 %v4092_v32  ;;  %v4751_v54 = vpack.c.bf16 %v4726_v51, %v4725_v47  ;;  %v4728_v32 = vld [vmem:[#allocation2 + $0xcb] sm:$0xff]  ;;  %v5065_v47 = vld [vmem:[#allocation2 + $0xf4] sm:$0xff] }
 0x319   : > { %v4752_v59 = vpack.c.bf16 %v4728_v32, %v4727_v58  ;;  %v5063_v32 = vld [vmem:[#allocation2 + $0xe4] sm:$0xff] }
 0x31f   : > { %11681 = vmatmul.mubr.bf16.gmra.mrb[64].mxu1 %v4093_v56  ;;  %v4730_v56 = vld [vmem:[#allocation2 + $0xdb] sm:$0xff] }
 0x320   : > { %11684 = vmatprep.mubr.bf16.mxu1 %v4094_v60  ;;  %v4729_v60 = vld [vmem:[#allocation2 + $0xd3] sm:$0xff] }
 0x321   : > { %v4753_v4 = vpack.c.bf16 %v4730_v56, %v4729_v60  ;;  %v5069_v60 = vld [vmem:[#allocation2 + $0x114] sm:$0xff] }
 0x327   : > { %11685 = vmatmul.mubr.bf16.gmra.mrb[68].mxu1 %v4426_v27  ;;  %v5073_v27 = vpack.c.bf16 %v5038_v12, %v5037_v63  ;;  %v13437_v63 = vld [vmem:[%s15330_s4 + $0x1d8] sm:$0xff]   ;;  %v13438_v12 = vld [vmem:[%s15330_s4 + $0x1e0] sm:$0xff]  }
 0x328   : > { %11704 = vmatprep.mubr.bf16.mxu1 %v4741_v62  ;;  %v5042_v62 = vld [vmem:[#allocation2 + $0x3c] sm:$0xff] }
 0x329   : > { %v14682_v61 = vpack.c.bf16 %v5042_v62, %v5041_v15  ;;  %v13441_v15 = vld [vmem:[%s15330_s4 + $0x1f8] sm:$0xff]   ;;  %v13442_v62 = vld [vmem:[%s15330_s4 + $0x200] sm:$0xff]  }
 0x32f   : > { %11705 = vmatmul.mubr.bf16.vlgmr.msra.gmra.mrb[36].mxu1 %v4742_v8 }
 0x330   : > { %11708 = vmatprep.mubr.bf16.mxu1 %v4743_v20  ;;  %11741 = vmatpush3.bf16.msra.mxu1 %v13418_v10  ;;  %v4735_v10 = vld [vmem:[#allocation2 + $0x103] sm:$0xff] }
 0x331   : > { %11742 = vmatprep.subr.bf16.mxu1 %v13419_v19  ;;  %v4756_v45 = vpack.c.bf16 %v4736_v25, %v4735_v10  ;;  %v13430_v20 = vld [vmem:[%s15330_s4 + $0x1a0] sm:$0xff]   ;;  %v13435_v10 = vld [vmem:[%s15330_s4 + $0x1c8] sm:$0xff]  }
 0x334   : > { %11743 = vmatpush3.bf16.msra.mxu1 %v13419_v19 }
 0x335   : > { %11744 = vmatprep.subr.bf16.mxu1 %v13420_v22 }
 0x337   : > { %11709 = vmatmul.mubr.bf16.gmra.mrb[40].mxu1 %v4744_v26 }
 0x338   : > { %11712 = vmatprep.mubr.bf16.mxu1 %v4745_v30  ;;  %11745 = vmatpush3.bf16.msra.mxu1 %v13420_v22  ;;  %v5048_v22 = vld [vmem:[#allocation2 + $0x6c] sm:$0xff] }
 0x339   : > { %11746 = vmatprep.subr.bf16.mxu1 %v13421_v29  ;;  %v14701_v26 = vpack.c.bf16 %v5048_v22, %v5047_v50  ;;  %v13432_v30 = vld [vmem:[%s15330_s4 + $0x1b0] sm:$0xff]  }
 0x33a   : > { %v13444_v22 = vld [vmem:[%s15330_s4 + $0x210] sm:$0xff]  }
 0x33b   : > { %v5710_v50 = vld [vmem:[#allocation2 + $0x6d] sm:$0xff] }
 0x33c   : > { %11747 = vmatpush3.bf16.msra.mxu1 %v13421_v29  ;;  %v14706_v29 = vpack.c.bf16 %v5050_v33, %v5049_v7  ;;  %v5707_v7 = vld [vmem:[#allocation2 + $0x55] sm:$0xff]  ;;  %v5708_v33 = vld [vmem:[#allocation2 + $0x5d] sm:$0xff] }
 0x33d   : > { %11748 = vmatprep.subr.bf16.mxu1 %v13422_v31 }
 0x33f   : > { %11713 = vmatmul.mubr.bf16.gmra.mrb[44].mxu1 %v4746_v11 }
 0x340   : > { %11716 = vmatprep.mubr.bf16.mxu1 %v4747_v21  ;;  %11749 = vmatpush3.bf16.msra.mxu1 %v13422_v31  ;;  %v5052_v31 = vld [vmem:[#allocation2 + $0x8c] sm:$0xff]  ;;  %v13434_v21 = vld [vmem:[%s15330_s4 + $0x1c0] sm:$0xff]  }
 0x341   : > { %11750 = vmatprep.subr.bf16.mxu1 %v13423_v38  ;;  %v14713_v11 = vpack.c.bf16 %v5052_v31, %v5051_v39  ;;  %v13450_v31 = vld [vmem:[%s15332_s6 + $0x40] sm:$0xff]   ;;  %v5711_v39 = vld [vmem:[#allocation2 + $0x75] sm:$0xff] }
 0x342   : > { %11948 = vmatprep.subr.bf16.mxu0 %v13450_v31 }
 0x343   : > { %11949 = vmatpush3.bf16.msra.mxu0 %v13450_v31  ;;  %v6043_v31 = vld [vmem:[#allocation2 + $0x76] sm:$0xff] }
 0x344   : > { %11751 = vmatpush3.bf16.msra.mxu1 %v13423_v38  ;;  %v14718_v38 = vpack.c.bf16 %v5054_v34, %v5053_v52  ;;  %v13451_v52 = vld [vmem:[%s15332_s6 + $0x48] sm:$0xff]   ;;  %v13446_v34 = vld [vmem:[%s15330_s4 + $0x220] sm:$0xff]  }
 0x345   : > { %11752 = vmatprep.subr.bf16.mxu1 %v13424_v0  ;;  %11950 = vmatprep.subr.bf16.mxu0 %v13451_v52 }
 0x347   : > { %11717 = vmatmul.mubr.bf16.gmra.mrb[48].mxu1 %v4748_v44  ;;  %11951 = vmatpush3.bf16.msra.mxu0 %v13451_v52  ;;  %v6044_v52 = vld [vmem:[#allocation2 + $0x7e] sm:$0xff] }
 0x348   : > { %11720 = vmatprep.mubr.bf16.mxu1 %v4749_v2  ;;  %11753 = vmatpush3.bf16.msra.mxu1 %v13424_v0  ;;  %v5056_v0 = vld [vmem:[#allocation2 + $0xac] sm:$0xff]  ;;  %v5061_v2 = vld [vmem:[#allocation2 + $0xd4] sm:$0xff] }
 0x349   : > { %11754 = vmatprep.subr.bf16.mxu1 %v13425_v35  ;;  %v5082_v44 = vpack.c.bf16 %v5056_v0, %v5055_v1  ;;  %v5713_v0 = vld [vmem:[#allocation2 + $0x85] sm:$0xff]  ;;  %v13453_v1 = vld [vmem:[%s15332_s6 + $0x58] sm:$0xff]  }
 0x34c   : > { %11755 = vmatpush3.bf16.msra.mxu1 %v13425_v35  ;;  %v5060_v35 = vld [vmem:[#allocation2 + $0xcc] sm:$0xff] }
 0x34d   : > { %11792 = vmatprep.subr.bf16.mxu1 %v13426_v46  ;;  %v5084_v51 = vpack.c.bf16 %v5060_v35, %v5059_v23  ;;  %v5716_v35 = vld [vmem:[#allocation2 + $0x9d] sm:$0xff] }
 0x34f   : > { %11721 = vmatmul.mubr.bf16.gmra.mrb[52].mxu1 %v4750_v53  ;;  %v5064_v53 = vld [vmem:[#allocation2 + $0xec] sm:$0xff] }
 0x350   : > { %11724 = vmatprep.mubr.bf16.mxu1 %v4751_v54  ;;  %v5066_v54 = vld [vmem:[#allocation2 + $0xfc] sm:$0xff]  ;;  %v5086_v56 = vpack.c.bf16 %v5064_v53, %v5063_v32 }
 0x351   : > { %v5087_v58 = vpack.c.bf16 %v5066_v54, %v5065_v47  ;;  %v13455_v47 = vld [vmem:[%s15332_s6 + $0x68] sm:$0xff]   ;;  %v5719_v54 = vld [vmem:[#allocation2 + $0xb5] sm:$0xff]  ;;  %v5720_v32 = vld [vmem:[#allocation2 + $0xbd] sm:$0xff] }
 0x357   : > { %11725 = vmatmul.mubr.bf16.gmra.mrb[56].mxu1 %v4752_v59  ;;  %v5068_v59 = vld [vmem:[#allocation2 + $0x10c] sm:$0xff] }
 0x358   : > { %11728 = vmatprep.mubr.bf16.mxu1 %v4753_v4  ;;  %v5070_v4 = vld [vmem:[#allocation2 + $0x11c] sm:$0xff]  ;;  %v5088_v5 = vpack.c.bf16 %v5068_v59, %v5067_v13  ;;  %v5721_v59 = vld [vmem:[#allocation2 + $0xc5] sm:$0xff] }
 0x359   : > { %v5089_v42 = vpack.c.bf16 %v5070_v4, %v5069_v60  ;;  %v5723_v4 = vld [vmem:[#allocation2 + $0xd5] sm:$0xff]  ;;  %v5724_v13 = vld [vmem:[#allocation2 + $0xdd] sm:$0xff] }
 0x35f   : > { %11729 = vmatmul.mubr.bf16.gmra.mrb[60].mxu1 %v4754_v57  ;;  %v5071_v57 = vld [vmem:[#allocation2 + $0x124] sm:$0xff] }
 0x360   : > { %11732 = vmatprep.mubr.bf16.mxu1 %v4755_v6  ;;  %v5072_v6 = vld [vmem:[#allocation2 + $0x12c] sm:$0xff] }
 0x361   : > { %v5090_v25 = vpack.c.bf16 %v5072_v6, %v5071_v57  ;;  %v5725_v57 = vld [vmem:[#allocation2 + $0xe5] sm:$0xff] }
 0x367   : > { %11733 = vmatmul.mubr.bf16.gmra.mrb[64].mxu1 %v4756_v45  ;;  %v13436_v45 = vld [vmem:[%s15330_s4 + $0x1d0] sm:$0xff]  }
 0x368   : > { %11736 = vmatprep.mubr.bf16.mxu1 %v4757_v48  ;;  %v5043_v48 = vld [vmem:[#allocation2 + $0x44] sm:$0xff] }
 0x369   : > { %v14689_v8 = vpack.c.bf16 %v5044_v43, %v5043_v48  ;;  %v5706_v48 = vld [vmem:[#allocation2 + $0x4d] sm:$0xff] }
 0x36f   : > { %11737 = vmatmul.mubr.bf16.gmra.mrb[68].mxu1 %v4758_v37  ;;  %v5046_v37 = vld [vmem:[#allocation2 + $0x5c] sm:$0xff] }
 0x370   : > { %11756 = vmatprep.mubr.bf16.mxu1 %v5073_v27  ;;  %v14694_v19 = vpack.c.bf16 %v5046_v37, %v5045_v16  ;;  %v13439_v27 = vld [vmem:[%s15330_s4 + $0x1e8] sm:$0xff]   ;;  %v5703_v16 = vld [vmem:[#allocation2 + $0x35] sm:$0xff]  ;;  %v5704_v37 = vld [vmem:[#allocation2 + $0x3d] sm:$0xff] }
 0x377   : > { %11757 = vmatmul.mubr.bf16.vlgmr.msra.gmra.mrb[36].mxu1 %v14677_v24 }
 0x378   : > { %11760 = vmatprep.mubr.bf16.mxu1 %v14682_v61  ;;  %11793 = vmatpush3.bf16.msra.mxu1 %v13426_v46  ;;  %v5062_v46 = vld [vmem:[#allocation2 + $0xdc] sm:$0xff] }
 0x379   : > { %11794 = vmatprep.subr.bf16.mxu1 %v13427_v9  ;;  %v5085_v49 = vpack.c.bf16 %v5062_v46, %v5061_v2  ;;  %v5718_v2 = vld [vmem:[#allocation2 + $0xad] sm:$0xff]  ;;  %v13454_v46 = vld [vmem:[%s15332_s6 + $0x60] sm:$0xff]  }
 0x37c   : > { %11795 = vmatpush3.bf16.msra.mxu1 %v13427_v9 }
 0x37d   : > { %11796 = vmatprep.subr.bf16.mxu1 %v13428_v3 }
 0x37f   : > { %11761 = vmatmul.mubr.bf16.gmra.mrb[40].mxu1 %v14689_v8 }
 0x380   : > { %11764 = vmatprep.mubr.bf16.mxu1 %v14694_v19  ;;  %11797 = vmatpush3.bf16.msra.mxu1 %v13428_v3  ;;  %v5701_v3 = vld [vmem:[#allocation2 + $0x25] sm:$0xff] }
 0x381   : > { %11798 = vmatprep.subr.bf16.mxu1 %v13429_v55 }
 0x384   : > { %11799 = vmatpush3.bf16.msra.mxu1 %v13429_v55  ;;  %v5705_v55 = vld [vmem:[#allocation2 + $0x45] sm:$0xff] }
 0x385   : > { %11800 = vmatprep.subr.bf16.mxu1 %v13430_v20 }
 0x387   : > { %11765 = vmatmul.mubr.bf16.gmra.mrb[44].mxu1 %v14701_v26 }
 0x388   : > { %11768 = vmatprep.mubr.bf16.mxu1 %v14706_v29  ;;  %11801 = vmatpush3.bf16.msra.mxu1 %v13430_v20  ;;  %v5739_v20 = vpack.c.bf16 %v5706_v48, %v5705_v55  ;;  %v6036_v55 = vld [vmem:[#allocation2 + $0x3e] sm:$0xff] }
 0x389   : > { %11802 = vmatprep.subr.bf16.mxu1 %v13431_v28 }
 0x38c   : > { %11803 = vmatpush3.bf16.msra.mxu1 %v13431_v28  ;;  %v5709_v28 = vld [vmem:[#allocation2 + $0x65] sm:$0xff] }
 0x38d   : > { %11804 = vmatprep.subr.bf16.mxu1 %v13432_v30 }
 0x38f   : > { %11769 = vmatmul.mubr.bf16.gmra.mrb[48].mxu1 %v14713_v11 }
 0x390   : > { %11772 = vmatprep.mubr.bf16.mxu1 %v14718_v38  ;;  %11805 = vmatpush3.bf16.msra.mxu1 %v13432_v30  ;;  %v5741_v30 = vpack.c.bf16 %v5710_v50, %v5709_v28  ;;  %v6040_v50 = vld [vmem:[#allocation2 + $0x5e] sm:$0xff] }
 0x391   : > { %11806 = vmatprep.subr.bf16.mxu1 %v13433_v36 }
 0x394   : > { %11807 = vmatpush3.bf16.msra.mxu1 %v13433_v36  ;;  %v5714_v36 = vld [vmem:[#allocation2 + $0x8d] sm:$0xff] }
 0x395   : > { %11844 = vmatprep.subr.bf16.mxu1 %v13434_v21  ;;  %v5743_v41 = vpack.c.bf16 %v5714_v36, %v5713_v0  ;;  %v6050_v0 = vld [vmem:[#allocation2 + $0xae] sm:$0xff] }
 0x397   : > { %11773 = vmatmul.mubr.bf16.gmra.mrb[52].mxu1 %v5082_v44 }
 0x398   : > { %11776 = vmatprep.mubr.bf16.mxu1 %v14725_v18 }
 0x39f   : > { %11777 = vmatmul.mubr.bf16.gmra.mrb[56].mxu1 %v5084_v51 }
 0x3a0   : > { %11780 = vmatprep.mubr.bf16.mxu1 %v5085_v49 }
 0x3a7   : > { %11781 = vmatmul.mubr.bf16.gmra.mrb[60].mxu1 %v5086_v56 }
 0x3a8   : > { %11784 = vmatprep.mubr.bf16.mxu1 %v5087_v58 }
 0x3af   : > { %11785 = vmatmul.mubr.bf16.gmra.mrb[64].mxu1 %v5088_v5 }
 0x3b0   : > { %11788 = vmatprep.mubr.bf16.mxu1 %v5089_v42 }
 0x3b7   : > { %11789 = vmatmul.mubr.bf16.gmra.mrb[68].mxu1 %v5090_v25 }
 0x3b8   : > { %11808 = vmatprep.mubr.bf16.mxu1 %v14677_v24  ;;  %v5404_v24 = vld [vmem:[#allocation2 + $0x13c] sm:$0xff] }
 0x3b9   : > { %v5422_v9 = vpack.c.bf16 %v5404_v24, %v5403_v40  ;;  %v5734_v40 = vld [vmem:[#allocation2 + $0x12d] sm:$0xff] }
 0x3bf   : > { %11809 = vmatmul.mubr.bf16.vlgmr.msra.gmra.mrb[36].mxu1 %v14682_v61  ;;  %v5702_v61 = vld [vmem:[#allocation2 + $0x2d] sm:$0xff] }
 0x3c0   : > { %11812 = vmatprep.mubr.bf16.mxu1 %v14689_v8  ;;  %11845 = vmatpush3.bf16.msra.mxu1 %v13434_v21  ;;  %v5737_v43 = vpack.c.bf16 %v5702_v61, %v5701_v3  ;;  %v5738_v8 = vpack.c.bf16 %v5704_v37, %v5703_v16  ;;  %v5735_v61 = vld [vmem:[#allocation2 + $0x135] sm:$0xff]  ;;  %v5736_v3 = vld [vmem:[#allocation2 + $0x13d] sm:$0xff]  ;;  %v6033_v37 = vld [vmem:[#allocation2 + $0x26] sm:$0xff] }
 0x3c1   : > { %11846 = vmatprep.subr.bf16.mxu1 %v13435_v10  ;;  %v6034_v16 = vld [vmem:[#allocation2 + $0x2e] sm:$0xff] }
 0x3c2   : > { %v6069_v48 = vpack.c.bf16 %v6034_v16, %v6033_v37 }
 0x3c4   : > { %11847 = vmatpush3.bf16.msra.mxu1 %v13435_v10  ;;  %v5728_v10 = vld [vmem:[#allocation2 + $0xfd] sm:$0xff] }
 0x3c5   : > { %11848 = vmatprep.subr.bf16.mxu1 %v13436_v45 }
 0x3c7   : > { %11813 = vmatmul.mubr.bf16.gmra.mrb[40].mxu1 %v14694_v19  ;;  %v13443_v19 = vld [vmem:[%s15330_s4 + $0x208] sm:$0xff]  }
 0x3c8   : > { %11816 = vmatprep.mubr.bf16.mxu1 %v14701_v26  ;;  %11849 = vmatpush3.bf16.msra.mxu1 %v13436_v45  ;;  %v5740_v26 = vpack.c.bf16 %v5708_v33, %v5707_v7  ;;  %v5730_v45 = vld [vmem:[#allocation2 + $0x10d] sm:$0xff]  ;;  %v6039_v33 = vld [vmem:[#allocation2 + $0x56] sm:$0xff] }
 0x3c9   : > { %11850 = vmatprep.subr.bf16.mxu1 %v13437_v63  ;;  %v6072_v28 = vpack.c.bf16 %v6040_v50, %v6039_v33  ;;  %v13531_v50 = vld [vmem:[%s15327_s1] sm:$0xff] }
 0x3cc   : > { %11851 = vmatpush3.bf16.msra.mxu1 %v13437_v63 }
 0x3cd   : > { %11852 = vmatprep.subr.bf16.mxu1 %v13438_v12 }
 0x3cf   : > { %11817 = vmatmul.mubr.bf16.gmra.mrb[44].mxu1 %v14706_v29  ;;  %v13445_v29 = vld [vmem:[%s15330_s4 + $0x218] sm:$0xff]  }
 0x3d0   : > { %11820 = vmatprep.mubr.bf16.mxu1 %v14713_v11  ;;  %11853 = vmatpush3.bf16.msra.mxu1 %v13438_v12  ;;  %v5712_v11 = vld [vmem:[#allocation2 + $0x7d] sm:$0xff]  ;;  %v5729_v12 = vld [vmem:[#allocation2 + $0x105] sm:$0xff] }
 0x3d1   : > { %11854 = vmatprep.subr.bf16.mxu1 %v13439_v27  ;;  %v5742_v21 = vpack.c.bf16 %v5712_v11, %v5711_v39  ;;  %v6074_v39 = vpack.c.bf16 %v6044_v52, %v6043_v31  ;;  %v6045_v11 = vld [vmem:[#allocation2 + $0x86] sm:$0xff] }
 0x3d2   : > { %v13533_v31 = vld [vmem:[%s15327_s1 + $0x8] sm:$0xff] }
 0x3d4   : > { %11855 = vmatpush3.bf16.msra.mxu1 %v13439_v27  ;;  %v5751_v27 = vpack.c.bf16 %v5730_v45, %v5729_v12  ;;  %v6067_v45 = vld [vmem:[#allocation2 + $0x136] sm:$0xff] }
 0x3d5   : > { %11856 = vmatprep.subr.bf16.mxu1 %v13440_v14 }
 0x3d7   : > { %11821 = vmatmul.mubr.bf16.gmra.mrb[48].mxu1 %v14718_v38  ;;  %v13452_v38 = vld [vmem:[%s15332_s6 + $0x50] sm:$0xff]  }
 0x3d8   : > { %11824 = vmatprep.mubr.bf16.mxu1 %v5082_v44  ;;  %11857 = vmatpush3.bf16.msra.mxu1 %v13440_v14  ;;  %v13448_v44 = vld [vmem:[%s15330_s4 + $0x230] sm:$0xff]  }
 0x3d9   : > { %11858 = vmatprep.subr.bf16.mxu1 %v13441_v15  ;;  %11952 = vmatprep.subr.bf16.mxu0 %v13452_v38  ;;  %v5731_v14 = vld [vmem:[#allocation2 + $0x115] sm:$0xff] }
 0x3da   : > { %11953 = vmatpush3.bf16.msra.mxu0 %v13452_v38  ;;  %v6047_v38 = vld [vmem:[#allocation2 + $0x96] sm:$0xff] }
 0x3db   : > { %11954 = vmatprep.subr.bf16.mxu0 %v13453_v1 }
 0x3dc   : > { %11859 = vmatpush3.bf16.msra.mxu1 %v13441_v15  ;;  %v5732_v15 = vld [vmem:[#allocation2 + $0x11d] sm:$0xff] }
 0x3dd   : > { %11896 = vmatprep.subr.bf16.mxu1 %v13442_v62  ;;  %v5752_v24 = vpack.c.bf16 %v5732_v15, %v5731_v14  ;;  %v13457_v14 = vld [vmem:[%s15332_s6 + $0x78] sm:$0xff]   ;;  %v6586_v15 = vld [vmem:[#allocation2 + $0x1] sm:$0xff] }
 0x3de   : > { %11955 = vmatpush3.bf16.msra.mxu0 %v13453_v1 }
 0x3df   : > { %11825 = vmatmul.mubr.bf16.gmra.mrb[52].mxu1 %v14725_v18  ;;  %v5715_v18 = vld [vmem:[#allocation2 + $0x95] sm:$0xff]  ;;  %11956 = vmatprep.subr.bf16.mxu0 %v13454_v46 }
 0x3e0   : > { %11828 = vmatprep.mubr.bf16.mxu1 %v5084_v51  ;;  %v5744_v23 = vpack.c.bf16 %v5716_v35, %v5715_v18  ;;  %v5717_v51 = vld [vmem:[#allocation2 + $0xa5] sm:$0xff]  ;;  %v6054_v35 = vld [vmem:[#allocation2 + $0xce] sm:$0xff] }
 0x3e1   : > { %v5745_v53 = vpack.c.bf16 %v5718_v2, %v5717_v51  ;;  %v6052_v18 = vld [vmem:[#allocation2 + $0xbe] sm:$0xff]  ;;  %v6055_v51 = vld [vmem:[#allocation2 + $0xd6] sm:$0xff] }
 0x3e2   : > { %11957 = vmatpush3.bf16.msra.mxu0 %v13454_v46  ;;  %v6053_v46 = vld [vmem:[#allocation2 + $0xc6] sm:$0xff] }
 0x3e3   : > { %11958 = vmatprep.subr.bf16.mxu0 %v13455_v47 }
 0x3e6   : > { %11959 = vmatpush3.bf16.msra.mxu0 %v13455_v47 }
 0x3e7   : > { %11829 = vmatmul.mubr.bf16.gmra.mrb[56].mxu1 %v5085_v49  ;;  %v13449_v49 = vld [vmem:[%s15330_s4 + $0x238] sm:$0xff]  }
 0x3e8   : > { %11832 = vmatprep.mubr.bf16.mxu1 %v5086_v56  ;;  %v5722_v56 = vld [vmem:[#allocation2 + $0xcd] sm:$0xff] }
 0x3e9   : > { %v5747_v60 = vpack.c.bf16 %v5722_v56, %v5721_v59  ;;  %v6059_v56 = vld [vmem:[#allocation2 + $0xf6] sm:$0xff]  ;;  %v6062_v59 = vld [vmem:[#allocation2 + $0x10e] sm:$0xff] }
 0x3ef   : > { %11833 = vmatmul.mubr.bf16.gmra.mrb[60].mxu1 %v5087_v58  ;;  %v5746_v58 = vpack.c.bf16 %v5720_v32, %v5719_v54  ;;  %v6057_v54 = vld [vmem:[#allocation2 + $0xe6] sm:$0xff] }
 0x3f0   : > { %11836 = vmatprep.mubr.bf16.mxu1 %v5088_v5  ;;  %v5726_v5 = vld [vmem:[#allocation2 + $0xed] sm:$0xff] }
 0x3f1   : > { %v5749_v6 = vpack.c.bf16 %v5726_v5, %v5725_v57  ;;  %v6063_v5 = vld [vmem:[#allocation2 + $0x116] sm:$0xff]  ;;  %v6065_v57 = vld [vmem:[#allocation2 + $0x126] sm:$0xff] }
 0x3f7   : > { %11837 = vmatmul.mubr.bf16.gmra.mrb[64].mxu1 %v5089_v42  ;;  %v5748_v42 = vpack.c.bf16 %v5724_v13, %v5723_v4  ;;  %v6061_v4 = vld [vmem:[#allocation2 + $0x106] sm:$0xff] }
 0x3f8   : > { %11840 = vmatprep.mubr.bf16.mxu1 %v5090_v25  ;;  %v5727_v25 = vld [vmem:[#allocation2 + $0xf5] sm:$0xff]  ;;  %v6083_v13 = vpack.c.bf16 %v6062_v59, %v6061_v4 }
 0x3f9   : > { %v5750_v63 = vpack.c.bf16 %v5728_v10, %v5727_v25 }
 0x3ff   : > { %11841 = vmatmul.mubr.bf16.gmra.mrb[68].mxu1 %v5422_v9 }
 0x400   : > { %11860 = vmatprep.mubr.bf16.mxu1 %v5737_v43  ;;  %v5754_v43 = vpack.c.bf16 %v5736_v3, %v5735_v61 }
 0x407   : > { %11861 = vmatmul.mubr.bf16.vlgmr.msra.gmra.mrb[36].mxu1 %v5738_v8  ;;  %v6035_v8 = vld [vmem:[#allocation2 + $0x36] sm:$0xff] }
 0x408   : > { %11864 = vmatprep.mubr.bf16.mxu1 %v5739_v20  ;;  %11897 = vmatpush3.bf16.msra.mxu1 %v13442_v62  ;;  %v5733_v62 = vld [vmem:[#allocation2 + $0x125] sm:$0xff]  ;;  %v6070_v20 = vpack.c.bf16 %v6036_v55, %v6035_v8 }
 0x409   : > { %11898 = vmatprep.subr.bf16.mxu1 %v13443_v19  ;;  %v5753_v9 = vpack.c.bf16 %v5734_v40, %v5733_v62  ;;  %v6587_v62 = vld [vmem:[#allocation2 + $0x9] sm:$0xff]  ;;  %v14809_v40 = vld [vmem:[%s15332_s6] sm:$0xff]  }
 0x40c   : > { %11899 = vmatpush3.bf16.msra.mxu1 %v13443_v19  ;;  %v6038_v19 = vld [vmem:[#allocation2 + $0x4e] sm:$0xff] }
 0x40d   : > { %11900 = vmatprep.subr.bf16.mxu1 %v13444_v22 }
 0x40f   : > { %11865 = vmatmul.mubr.bf16.gmra.mrb[40].mxu1 %v5740_v26  ;;  %v6042_v26 = vld [vmem:[#allocation2 + $0x6e] sm:$0xff] }
 0x410   : > { %11868 = vmatprep.mubr.bf16.mxu1 %v5741_v30  ;;  %11901 = vmatpush3.bf16.msra.mxu1 %v13444_v22  ;;  %v6037_v22 = vld [vmem:[#allocation2 + $0x46] sm:$0xff] }
 0x411   : > { %11902 = vmatprep.subr.bf16.mxu1 %v13445_v29  ;;  %v6071_v7 = vpack.c.bf16 %v6038_v19, %v6037_v22  ;;  %v13530_v22 = vld [vmem:[%s15327_s1 + $0x10] sm:$0xff] }
 0x414   : > { %11903 = vmatpush3.bf16.msra.mxu1 %v13445_v29  ;;  %v6041_v29 = vld [vmem:[#allocation2 + $0x66] sm:$0xff] }
 0x415   : > { %11904 = vmatprep.subr.bf16.mxu1 %v13446_v34  ;;  %v6073_v30 = vpack.c.bf16 %v6042_v26, %v6041_v29  ;;  %v13532_v29 = vld [vmem:[%s15327_s1 + $0x18] sm:$0xff] }
 0x417   : > { %11869 = vmatmul.mubr.bf16.gmra.mrb[44].mxu1 %v5742_v21  ;;  %v6048_v21 = vld [vmem:[#allocation2 + $0x9e] sm:$0xff] }
 0x418   : > { %11872 = vmatprep.mubr.bf16.mxu1 %v5743_v41  ;;  %11905 = vmatpush3.bf16.msra.mxu1 %v13446_v34  ;;  %v6046_v34 = vld [vmem:[#allocation2 + $0x8e] sm:$0xff]  ;;  %v6049_v41 = vld [vmem:[#allocation2 + $0xa6] sm:$0xff] }
 0x419   : > { %11906 = vmatprep.subr.bf16.mxu1 %v13447_v17  ;;  %v6075_v36 = vpack.c.bf16 %v6046_v34, %v6045_v11  ;;  %v6077_v1 = vpack.c.bf16 %v6050_v0, %v6049_v41 }
 0x41c   : > { %11907 = vmatpush3.bf16.msra.mxu1 %v13447_v17  ;;  %v6076_v17 = vpack.c.bf16 %v6048_v21, %v6047_v38 }
 0x41d   : > { %11908 = vmatprep.subr.bf16.mxu1 %v13448_v44 }
 0x41f   : > { %11873 = vmatmul.mubr.bf16.gmra.mrb[48].mxu1 %v5744_v23  ;;  %v6079_v23 = vpack.c.bf16 %v6054_v35, %v6053_v46 }
 0x420   : > { %11876 = vmatprep.mubr.bf16.mxu1 %v5745_v53  ;;  %11909 = vmatpush3.bf16.msra.mxu1 %v13448_v44  ;;  %v6051_v44 = vld [vmem:[#allocation2 + $0xb6] sm:$0xff]  ;;  %v6058_v53 = vld [vmem:[#allocation2 + $0xee] sm:$0xff] }
 0x421   : > { %11910 = vmatprep.subr.bf16.mxu1 %v13449_v49  ;;  %v6078_v2 = vpack.c.bf16 %v6052_v18, %v6051_v44  ;;  %v6081_v32 = vpack.c.bf16 %v6058_v53, %v6057_v54  ;;  %v13534_v44 = vld [vmem:[%s15327_s1 + $0x30] sm:$0xff]  ;;  %v13537_v53 = vld [vmem:[%s15327_s1 + $0x28] sm:$0xff] }
 0x424   : > { %11911 = vmatpush3.bf16.msra.mxu1 %v13449_v49  ;;  %v6056_v49 = vld [vmem:[#allocation2 + $0xde] sm:$0xff] }
 0x425   : > { %v6080_v47 = vpack.c.bf16 %v6056_v49, %v6055_v51  ;;  %v13536_v51 = vld [vmem:[%s15327_s1 + $0x38] sm:$0xff] }
 0x427   : > { %11877 = vmatmul.mubr.bf16.gmra.mrb[52].mxu1 %v5746_v58  ;;  %v6060_v58 = vld [vmem:[#allocation2 + $0xfe] sm:$0xff] }
 0x428   : > { %11880 = vmatprep.mubr.bf16.mxu1 %v5747_v60  ;;  %v6082_v60 = vpack.c.bf16 %v6060_v58, %v6059_v56 }
 0x42f   : > { %11881 = vmatmul.mubr.bf16.gmra.mrb[56].mxu1 %v5748_v42  ;;  %v6064_v42 = vld [vmem:[#allocation2 + $0x11e] sm:$0xff] }
 0x430   : > { %11884 = vmatprep.mubr.bf16.mxu1 %v5749_v6  ;;  %v6066_v6 = vld [vmem:[#allocation2 + $0x12e] sm:$0xff]  ;;  %v6084_v25 = vpack.c.bf16 %v6064_v42, %v6063_v5 }
 0x431   : > { %v6085_v10 = vpack.c.bf16 %v6066_v6, %v6065_v57  ;;  %v13459_v6 = vld [vmem:[%s15332_s6 + $0x8] sm:$0xff]  }
 0x437   : > { %11885 = vmatmul.mubr.bf16.gmra.mrb[60].mxu1 %v5750_v63  ;;  %v6068_v63 = vld [vmem:[#allocation2 + $0x13e] sm:$0xff] }
 0x438   : > { %11888 = vmatprep.mubr.bf16.mxu1 %v5751_v27  ;;  %v6086_v12 = vpack.c.bf16 %v6068_v63, %v6067_v45  ;;  %v13456_v27 = vld [vmem:[%s15332_s6 + $0x70] sm:$0xff]  }
 0x439   : > { %11960 = vmatprep.subr.bf16.mxu0 %v13456_v27 }
 0x43a   : > { %11961 = vmatpush3.bf16.msra.mxu0 %v13456_v27  ;;  %v13538_v27 = vld [vmem:[%s15327_s1 + $0x50] sm:$0xff] }
 0x43b   : > { %11962 = vmatprep.subr.bf16.mxu0 %v13457_v14 }
 0x43e   : > { %11963 = vmatpush3.bf16.msra.mxu0 %v13457_v14 }
 0x43f   : > { %11889 = vmatmul.mubr.bf16.gmra.mrb[64].mxu1 %v5752_v24  ;;  %v6622_v24 = vpack.c.bf16 %v6587_v62, %v6586_v15  ;;  %12000 = vmatprep.subr.bf16.mxu0 %v14809_v40  ;;  %v13539_v62 = vld [vmem:[%s15327_s1 + $0x40] sm:$0xff] }
 0x440   : > { %11892 = vmatprep.mubr.bf16.mxu1 %v5753_v9  ;;  %v14815_v9 = vld [vmem:[%s15331_s5] ss:$0 sm:$0xff] }
 0x441   : > { %11964 = vmatprep.mubr.bf16.mxu0 %v6622_v24 }
 0x447   : > { %11893 = vmatmul.mubr.bf16.gmra.mrb[68].mxu1 %v5754_v43 }
 0x448   : > { %11912 = vmatprep.mubr.bf16.mxu1 %v6069_v48 }
 0x44f   : > { %11913 = vmatmul.mubr.bf16.vlgmr.msra.gmra.mrb[36].mxu1 %v6070_v20 }
 0x450   : > { %11916 = vmatprep.mubr.bf16.mxu1 %v6071_v7 }
 0x457   : > { %11917 = vmatmul.mubr.bf16.gmra.mrb[40].mxu1 %v6072_v28 }
 0x458   : > { %11920 = vmatprep.mubr.bf16.mxu1 %v6073_v30 }
 0x45f   : > { %11921 = vmatmul.mubr.bf16.gmra.mrb[44].mxu1 %v6074_v39 }
 0x460   : > { %11924 = vmatprep.mubr.bf16.mxu1 %v6075_v36 }
 0x467   : > { %11925 = vmatmul.mubr.bf16.gmra.mrb[48].mxu1 %v6076_v17 }
 0x468   : > { %11928 = vmatprep.mubr.bf16.mxu1 %v6077_v1 }
 0x46f   : > { %11929 = vmatmul.mubr.bf16.gmra.mrb[52].mxu1 %v6078_v2  ;;  %v13535_v2 = vld [vmem:[%s15327_s1 + $0x20] sm:$0xff] }
 0x470   : > { %11932 = vmatprep.mubr.bf16.mxu1 %v6079_v23 }
 0x477   : > { %11933 = vmatmul.mubr.bf16.gmra.mrb[56].mxu1 %v6080_v47 }
 0x478   : > { %11936 = vmatprep.mubr.bf16.mxu1 %v6081_v32 }
 0x47f   : > { %11937 = vmatmul.mubr.bf16.gmra.mrb[60].mxu1 %v6082_v60 }
 0x480   : > { %11940 = vmatprep.mubr.bf16.mxu1 %v6083_v13 }
 0x487   : > { %11941 = vmatmul.mubr.bf16.gmra.mrb[64].mxu1 %v6084_v25 }
 0x488   : > { %11944 = vmatprep.mubr.bf16.mxu1 %v6085_v10 }
 0x48f   : > { %11945 = vmatmul.mubr.bf16.gmra.mrb[68].mxu1 %v6086_v12 }
 0x522   : > { %v11914_v61 = vpop.f32.mrb[36].mxu1 }
 0x523   : > { %v6374_v3 = vadd.f32 %v11914_v61, %v14815_v9  ;;  %v6186_v43 = vpop.f32.mrb[37].mxu1 }
 0x524   : > { %v6372_v16 = vadd.f32 %v14815_v9, %v6186_v43  ;;  %v11915_v37 = vpop.f32.mrb[38].mxu1  ;;  %v13540_v43 = vld [vmem:[%s15327_s1 + $0x58] sm:$0xff] }
 0x525   : > { %v6410_v48 = vmax.f32 %v6374_v3, 0.0  ;;  %v6375_v8 = vadd.f32 %v11915_v37, %v14815_v9  ;;  %v6189_v55 = vpop.f32.mrb[39].mxu1  ;;  %v13460_v3 = vld [vmem:[%s15332_s6 + $0x10] sm:$0xff]  }
 0x526   : > { %v6408_v19 = vmax.f32 %v6372_v16, 0.0  ;;  %v6373_v20 = vadd.f32 %v14815_v9, %v6189_v55 }
 0x527   : > { %v6446_v7 = vmul.f32 %v13530_v22, %v6410_v48  ;;  %v6411_v33 = vmax.f32 %v6375_v8, 0.0 }
 0x528   : > { %v6444_v26 = vmul.f32 %v13531_v50, %v6408_v19  ;;  %v6409_v28 = vmax.f32 %v6373_v20, 0.0 }
 0x529   : > { %6482 = vst [vmem:[#allocation2 + $0x23] sm:$0xff] %v6446_v7  ;;  %v6447_v30 = vmul.f32 %v13532_v29, %v6411_v33  ;;  %v13461_v29 = vld [vmem:[%s15332_s6 + $0x18] sm:$0xff]  }
 0x52a   : > { %6480 = vst [vmem:[#allocation2 + $0x13] sm:$0xff] %v6444_v26  ;;  %v6445_v52 = vmul.f32 %v13533_v31, %v6409_v28  ;;  %v11918_v34 = vpop.f32.mrb[40].mxu1 }
 0x52b   : > { %6483 = vst [vmem:[#allocation2 + $0x2b] sm:$0xff] %v6447_v30  ;;  %v6378_v39 = vadd.f32 %v11918_v34, %v14815_v9  ;;  %v6202_v11 = vpop.f32.mrb[41].mxu1 }
 0x52c   : > { %6481 = vst [vmem:[#allocation2 + $0x1b] sm:$0xff] %v6445_v52  ;;  %v6376_v36 = vadd.f32 %v14815_v9, %v6202_v11  ;;  %v11919_v38 = vpop.f32.mrb[42].mxu1  ;;  %v13542_v11 = vld [vmem:[%s15327_s1 + $0x70] sm:$0xff] }
 0x52d   : > { %v6414_v21 = vmax.f32 %v6378_v39, 0.0  ;;  %v6379_v0 = vadd.f32 %v11919_v38, %v14815_v9  ;;  %v6205_v17 = vpop.f32.mrb[43].mxu1 }
 0x52e   : > { %v6412_v41 = vmax.f32 %v6376_v36, 0.0  ;;  %v6377_v1 = vadd.f32 %v14815_v9, %v6205_v17 }
 0x52f   : > { %v6450_v18 = vmul.f32 %v13534_v44, %v6414_v21  ;;  %v6415_v35 = vmax.f32 %v6379_v0, 0.0  ;;  %v13543_v21 = vld [vmem:[%s15327_s1 + $0x60] sm:$0xff] }
 0x530   : > { %v6448_v46 = vmul.f32 %v13535_v2, %v6412_v41  ;;  %v6413_v23 = vmax.f32 %v6377_v1, 0.0  ;;  %v13462_v41 = vld [vmem:[%s15332_s6 + $0x20] sm:$0xff]   ;;  %v13544_v1 = vld [vmem:[%s15327_s1 + $0x78] sm:$0xff] }
 0x531   : > { %6486 = vst [vmem:[#allocation2 + $0x43] sm:$0xff] %v6450_v18  ;;  %v6451_v49 = vmul.f32 %v13536_v51, %v6415_v35  ;;  %v6588_v59 = vld [vmem:[#allocation2 + $0x11] sm:$0xff]  ;;  %v13545_v18 = vld [vmem:[%s15327_s1 + $0x68] sm:$0xff] }
 0x532   : > { %6484 = vst [vmem:[#allocation2 + $0x33] sm:$0xff] %v6448_v46  ;;  %v6449_v47 = vmul.f32 %v13537_v53, %v6413_v23  ;;  %v11922_v54 = vpop.f32.mrb[44].mxu1  ;;  %v6591_v32 = vld [vmem:[#allocation2 + $0x29] sm:$0xff] }
 0x533   : > { %6487 = vst [vmem:[#allocation2 + $0x4b] sm:$0xff] %v6451_v49  ;;  %v6382_v56 = vadd.f32 %v11922_v54, %v14815_v9  ;;  %v6218_v58 = vpop.f32.mrb[45].mxu1  ;;  %v6589_v60 = vld [vmem:[#allocation2 + $0x19] sm:$0xff]  ;;  %v6590_v4 = vld [vmem:[#allocation2 + $0x21] sm:$0xff] }
 0x534   : > { %6485 = vst [vmem:[#allocation2 + $0x3b] sm:$0xff] %v6449_v47  ;;  %v6380_v13 = vadd.f32 %v14815_v9, %v6218_v58  ;;  %v11923_v5 = vpop.f32.mrb[46].mxu1  ;;  %v6623_v42 = vpack.c.bf16 %v6589_v60, %v6588_v59  ;;  %v6624_v57 = vpack.c.bf16 %v6591_v32, %v6590_v4  ;;  %v13463_v59 = vld [vmem:[%s15332_s6 + $0x28] sm:$0xff]  }
 0x535   : > { %v6418_v25 = vmax.f32 %v6382_v56, 0.0  ;;  %v6383_v10 = vadd.f32 %v11923_v5, %v14815_v9  ;;  %v6221_v45 = vpop.f32.mrb[47].mxu1 }
 0x536   : > { %v6416_v63 = vmax.f32 %v6380_v13, 0.0  ;;  %v6381_v12 = vadd.f32 %v14815_v9, %v6221_v45  ;;  %11965 = vmatmul.mubr.bf16.vlgmr.msra.gmra.mrb[36].mxu0 %v6623_v42 }
 0x537   : > { %v6454_v14 = vmul.f32 %v13538_v27, %v6418_v25  ;;  %v6419_v15 = vmax.f32 %v6383_v10, 0.0  ;;  %11968 = vmatprep.mubr.bf16.mxu0 %v6624_v57  ;;  %12001 = vmatpush3.bf16.msra.mxu0 %v14809_v40  ;;  %v13541_v40 = vld [vmem:[%s15327_s1 + $0x48] sm:$0xff]  ;;  %v13546_v57 = vld [vmem:[%s15327_s1 + $0x90] sm:$0xff]  ;;  %v13547_v10 = vld [vmem:[%s15327_s1 + $0x80] sm:$0xff] }
 0x538   : > { %v6452_v24 = vmul.f32 %v13539_v62, %v6416_v63  ;;  %v6417_v61 = vmax.f32 %v6381_v12, 0.0  ;;  %12002 = vmatprep.subr.bf16.mxu0 %v13459_v6  ;;  %v13464_v12 = vld [vmem:[%s15332_s6 + $0x30] sm:$0xff]   ;;  %v13548_v27 = vld [vmem:[%s15327_s1 + $0x98] sm:$0xff] }
 0x539   : > { %6490 = vst [vmem:[#allocation2 + $0x63] sm:$0xff] %v6454_v14  ;;  %v6455_v16 = vmul.f32 %v13540_v43, %v6419_v15  ;;  %v6592_v20 = vld [vmem:[#allocation2 + $0x31] sm:$0xff]  ;;  %v13549_v15 = vld [vmem:[%s15327_s1 + $0x88] sm:$0xff] }
 0x53a   : > { %6488 = vst [vmem:[#allocation2 + $0x53] sm:$0xff] %v6452_v24  ;;  %v6453_v37 = vmul.f32 %v13541_v40, %v6417_v61  ;;  %v11926_v48 = vpop.f32.mrb[48].mxu1  ;;  %v6595_v8 = vld [vmem:[#allocation2 + $0x49] sm:$0xff] }
 0x53b   : > { %6491 = vst [vmem:[#allocation2 + $0x6b] sm:$0xff] %v6455_v16  ;;  %v6386_v55 = vadd.f32 %v11926_v48, %v14815_v9  ;;  %v6234_v19 = vpop.f32.mrb[49].mxu1  ;;  %v6593_v22 = vld [vmem:[#allocation2 + $0x39] sm:$0xff]  ;;  %v6594_v7 = vld [vmem:[#allocation2 + $0x41] sm:$0xff]  ;;  %12003 = vmatpush3.bf16.msra.mxu0 %v13459_v6 }
 0x53c   : > { %6489 = vst [vmem:[#allocation2 + $0x5b] sm:$0xff] %v6453_v37  ;;  %v6384_v33 = vadd.f32 %v14815_v9, %v6234_v19  ;;  %v11927_v50 = vpop.f32.mrb[50].mxu1  ;;  %v6625_v26 = vpack.c.bf16 %v6593_v22, %v6592_v20  ;;  %v6626_v28 = vpack.c.bf16 %v6595_v8, %v6594_v7  ;;  %12004 = vmatprep.subr.bf16.mxu0 %v13460_v3  ;;  %v13465_v20 = vld [vmem:[%s15332_s6 + $0x38] sm:$0xff]  }
 0x53d   : > { %v6422_v30 = vmax.f32 %v6386_v55, 0.0  ;;  %v6387_v31 = vadd.f32 %v11927_v50, %v14815_v9  ;;  %v6237_v52 = vpop.f32.mrb[51].mxu1 }
 0x53e   : > { %v6420_v34 = vmax.f32 %v6384_v33, 0.0  ;;  %v6385_v39 = vadd.f32 %v14815_v9, %v6237_v52  ;;  %11969 = vmatmul.mubr.bf16.gmra.mrb[40].mxu0 %v6625_v26 }
 0x53f   : > { %v6458_v36 = vmul.f32 %v13542_v11, %v6422_v30  ;;  %v6423_v38 = vmax.f32 %v6387_v31, 0.0  ;;  %11972 = vmatprep.mubr.bf16.mxu0 %v6626_v28  ;;  %12005 = vmatpush3.bf16.msra.mxu0 %v13460_v3  ;;  %v13550_v28 = vld [vmem:[%s15327_s1 + $0xb0] sm:$0xff]  ;;  %v13551_v31 = vld [vmem:[%s15327_s1 + $0xa0] sm:$0xff]  ;;  %v13552_v11 = vld [vmem:[%s15327_s1 + $0xb8] sm:$0xff] }
 0x540   : > { %v6456_v0 = vmul.f32 %v13543_v21, %v6420_v34  ;;  %v6421_v17 = vmax.f32 %v6385_v39, 0.0  ;;  %12006 = vmatprep.subr.bf16.mxu0 %v13461_v29  ;;  %v14932_v39 = vld [vmem:[%s15332_s6 + $0x80] sm:$0xff]  }
 0x541   : > { %6494 = vst [vmem:[#allocation2 + $0x83] sm:$0xff] %v6458_v36  ;;  %v6459_v44 = vmul.f32 %v13544_v1, %v6423_v38  ;;  %v6596_v49 = vld [vmem:[#allocation2 + $0x51] sm:$0xff]  ;;  %v13553_v38 = vld [vmem:[%s15327_s1 + $0xa8] sm:$0xff] }
 0x542   : > { %6492 = vst [vmem:[#allocation2 + $0x73] sm:$0xff] %v6456_v0  ;;  %v6457_v35 = vmul.f32 %v13545_v18, %v6421_v17  ;;  %v11930_v2 = vpop.f32.mrb[52].mxu1  ;;  %v6599_v46 = vld [vmem:[#allocation2 + $0x69] sm:$0xff] }
 0x543   : > { %6495 = vst [vmem:[#allocation2 + $0x8b] sm:$0xff] %v6459_v44  ;;  %v6390_v23 = vadd.f32 %v11930_v2, %v14815_v9  ;;  %v6250_v51 = vpop.f32.mrb[53].mxu1  ;;  %v6597_v53 = vld [vmem:[#allocation2 + $0x59] sm:$0xff]  ;;  %v6598_v47 = vld [vmem:[#allocation2 + $0x61] sm:$0xff]  ;;  %12007 = vmatpush3.bf16.msra.mxu0 %v13461_v29 }
 0x544   : > { %6493 = vst [vmem:[#allocation2 + $0x7b] sm:$0xff] %v6457_v35  ;;  %v6388_v54 = vadd.f32 %v14815_v9, %v6250_v51  ;;  %v11931_v32 = vpop.f32.mrb[54].mxu1  ;;  %v6627_v56 = vpack.c.bf16 %v6597_v53, %v6596_v49  ;;  %v6628_v58 = vpack.c.bf16 %v6599_v46, %v6598_v47  ;;  %12008 = vmatprep.subr.bf16.mxu0 %v13462_v41 }
 0x545   : > { %v6426_v60 = vmax.f32 %v6390_v23, 0.0  ;;  %v6391_v4 = vadd.f32 %v11931_v32, %v14815_v9  ;;  %v6253_v13 = vpop.f32.mrb[55].mxu1 }
 0x546   : > { %v6424_v5 = vmax.f32 %v6388_v54, 0.0  ;;  %v6389_v42 = vadd.f32 %v14815_v9, %v6253_v13  ;;  %11973 = vmatmul.mubr.bf16.gmra.mrb[44].mxu0 %v6627_v56  ;;  %v13554_v56 = vld [vmem:[%s15327_s1 + $0xd0] sm:$0xff] }
 0x547   : > { %v6462_v6 = vmul.f32 %v13546_v57, %v6426_v60  ;;  %v6427_v25 = vmax.f32 %v6391_v4, 0.0  ;;  %11976 = vmatprep.mubr.bf16.mxu0 %v6628_v58  ;;  %12009 = vmatpush3.bf16.msra.mxu0 %v13462_v41  ;;  %v13555_v60 = vld [vmem:[%s15327_s1 + $0xc0] sm:$0xff]  ;;  %v13557_v57 = vld [vmem:[%s15327_s1 + $0xc8] sm:$0xff] }
 0x548   : > { %v6460_v45 = vmul.f32 %v13547_v10, %v6424_v5  ;;  %v6425_v63 = vmax.f32 %v6389_v42, 0.0  ;;  %12010 = vmatprep.subr.bf16.mxu0 %v13463_v59  ;;  %v13556_v5 = vld [vmem:[%s15327_s1 + $0xd8] sm:$0xff] }
 0x549   : > { %6498 = vst [vmem:[#allocation2 + $0xa3] sm:$0xff] %v6462_v6  ;;  %v6463_v14 = vmul.f32 %v13548_v27, %v6427_v25  ;;  %v6600_v16 = vld [vmem:[#allocation2 + $0x71] sm:$0xff] }
 0x54a   : > { %6496 = vst [vmem:[#allocation2 + $0x93] sm:$0xff] %v6460_v45  ;;  %v6461_v62 = vmul.f32 %v13549_v15, %v6425_v63  ;;  %v11934_v24 = vpop.f32.mrb[56].mxu1  ;;  %v6603_v61 = vld [vmem:[#allocation2 + $0x89] sm:$0xff] }
 0x54b   : > { %6499 = vst [vmem:[#allocation2 + $0xab] sm:$0xff] %v6463_v14  ;;  %v6394_v3 = vadd.f32 %v11934_v24, %v14815_v9  ;;  %v6266_v43 = vpop.f32.mrb[57].mxu1  ;;  %v6601_v40 = vld [vmem:[#allocation2 + $0x79] sm:$0xff]  ;;  %v6602_v37 = vld [vmem:[#allocation2 + $0x81] sm:$0xff]  ;;  %12011 = vmatpush3.bf16.msra.mxu0 %v13463_v59 }
 0x54c   : > { %6497 = vst [vmem:[#allocation2 + $0x9b] sm:$0xff] %v6461_v62  ;;  %v6392_v48 = vadd.f32 %v14815_v9, %v6266_v43  ;;  %v11935_v8 = vpop.f32.mrb[58].mxu1  ;;  %v6629_v55 = vpack.c.bf16 %v6601_v40, %v6600_v16  ;;  %v6630_v19 = vpack.c.bf16 %v6603_v61, %v6602_v37  ;;  %12012 = vmatprep.subr.bf16.mxu0 %v13464_v12 }
 0x54d   : > { %v6430_v22 = vmax.f32 %v6394_v3, 0.0  ;;  %v6395_v7 = vadd.f32 %v11935_v8, %v14815_v9  ;;  %v6269_v33 = vpop.f32.mrb[59].mxu1 }
 0x54e   : > { %v6428_v50 = vmax.f32 %v6392_v48, 0.0  ;;  %v6393_v26 = vadd.f32 %v14815_v9, %v6269_v33  ;;  %11977 = vmatmul.mubr.bf16.gmra.mrb[48].mxu0 %v6629_v55  ;;  %v13558_v48 = vld [vmem:[%s15327_s1 + $0xf0] sm:$0xff] }
 0x54f   : > { %v6466_v29 = vmul.f32 %v13550_v28, %v6430_v22  ;;  %v6431_v30 = vmax.f32 %v6395_v7, 0.0  ;;  %11980 = vmatprep.mubr.bf16.mxu0 %v6630_v19  ;;  %12013 = vmatpush3.bf16.msra.mxu0 %v13464_v12  ;;  %v13559_v19 = vld [vmem:[%s15327_s1 + $0xe0] sm:$0xff]  ;;  %v13560_v7 = vld [vmem:[%s15327_s1 + $0xf8] sm:$0xff] }
 0x550   : > { %v6464_v52 = vmul.f32 %v13551_v31, %v6428_v50  ;;  %v6429_v34 = vmax.f32 %v6393_v26, 0.0  ;;  %12014 = vmatprep.subr.bf16.mxu0 %v13465_v20  ;;  %v13561_v50 = vld [vmem:[%s15327_s1 + $0xe8] sm:$0xff] }
 0x551   : > { %6502 = vst [vmem:[#allocation2 + $0xc3] sm:$0xff] %v6466_v29  ;;  %v6467_v36 = vmul.f32 %v13552_v11, %v6431_v30  ;;  %v6604_v44 = vld [vmem:[#allocation2 + $0x91] sm:$0xff] }
 0x552   : > { %6500 = vst [vmem:[#allocation2 + $0xb3] sm:$0xff] %v6464_v52  ;;  %v6465_v21 = vmul.f32 %v13553_v38, %v6429_v34  ;;  %v11938_v0 = vpop.f32.mrb[60].mxu1  ;;  %v6607_v17 = vld [vmem:[#allocation2 + $0xa9] sm:$0xff] }
 0x553   : > { %6503 = vst [vmem:[#allocation2 + $0xcb] sm:$0xff] %v6467_v36  ;;  %v6398_v41 = vadd.f32 %v11938_v0, %v14815_v9  ;;  %v6282_v1 = vpop.f32.mrb[61].mxu1  ;;  %v6605_v18 = vld [vmem:[#allocation2 + $0x99] sm:$0xff]  ;;  %v6606_v35 = vld [vmem:[#allocation2 + $0xa1] sm:$0xff]  ;;  %12015 = vmatpush3.bf16.msra.mxu0 %v13465_v20 }
 0x554   : > { %6501 = vst [vmem:[#allocation2 + $0xbb] sm:$0xff] %v6465_v21  ;;  %v6396_v2 = vadd.f32 %v14815_v9, %v6282_v1  ;;  %v11939_v46 = vpop.f32.mrb[62].mxu1  ;;  %v6631_v23 = vpack.c.bf16 %v6605_v18, %v6604_v44  ;;  %v6632_v51 = vpack.c.bf16 %v6607_v17, %v6606_v35  ;;  %12052 = vmatprep.subr.bf16.mxu0 %v14932_v39  ;;  %v13562_v35 = vld [vmem:[%s15327_s1 + $0x110] sm:$0xff] }
 0x555   : > { %v6434_v49 = vmax.f32 %v6398_v41, 0.0  ;;  %v6399_v53 = vadd.f32 %v11939_v46, %v14815_v9  ;;  %v6285_v47 = vpop.f32.mrb[63].mxu1 }
 0x556   : > { %v6432_v54 = vmax.f32 %v6396_v2, 0.0  ;;  %v6397_v32 = vadd.f32 %v14815_v9, %v6285_v47  ;;  %11981 = vmatmul.mubr.bf16.gmra.mrb[52].mxu0 %v6631_v23 }
 0x557   : > { %v6470_v58 = vmul.f32 %v13554_v56, %v6434_v49  ;;  %v6435_v59 = vmax.f32 %v6399_v53, 0.0  ;;  %11984 = vmatprep.mubr.bf16.mxu0 %v6632_v51  ;;  %v13563_v51 = vld [vmem:[%s15327_s1 + $0x100] sm:$0xff] }
 0x558   : > { %v6468_v4 = vmul.f32 %v13555_v60, %v6432_v54  ;;  %v6433_v13 = vmax.f32 %v6397_v32, 0.0  ;;  %v13565_v54 = vld [vmem:[%s15327_s1 + $0x108] sm:$0xff] }
 0x559   : > { %6506 = vst [vmem:[#allocation2 + $0xe3] sm:$0xff] %v6470_v58  ;;  %v6471_v42 = vmul.f32 %v13556_v5, %v6435_v59  ;;  %v6608_v12 = vld [vmem:[#allocation2 + $0xb1] sm:$0xff] }
 0x55a   : > { %6504 = vst [vmem:[#allocation2 + $0xd3] sm:$0xff] %v6468_v4  ;;  %v14957_v6 = vmul.f32 %v13557_v57, %v6433_v13  ;;  %v11942_v25 = vpop.f32.mrb[64].mxu1  ;;  %v6611_v10 = vld [vmem:[#allocation2 + $0xc9] sm:$0xff] }
 0x55b   : > { %6507 = vst [vmem:[#allocation2 + $0xeb] sm:$0xff] %v6471_v42  ;;  %v6402_v45 = vadd.f32 %v11942_v25, %v14815_v9  ;;  %v6298_v63 = vpop.f32.mrb[65].mxu1  ;;  %v6609_v27 = vld [vmem:[#allocation2 + $0xb9] sm:$0xff]  ;;  %v6610_v14 = vld [vmem:[#allocation2 + $0xc1] sm:$0xff] }
 0x55c   : > { %6505 = vst [vmem:[#allocation2 + $0xdb] sm:$0xff] %v14957_v6  ;;  %v6400_v15 = vadd.f32 %v14815_v9, %v6298_v63  ;;  %v11943_v62 = vpop.f32.mrb[66].mxu1  ;;  %v6633_v24 = vpack.c.bf16 %v6609_v27, %v6608_v12  ;;  %v6634_v61 = vpack.c.bf16 %v6611_v10, %v6610_v14  ;;  %v13566_v10 = vld [vmem:[#allocation2] sm:$0xff]  ;;  %v6519_v12 = vld [vmem:[#allocation2 + $0x18] sm:$0xff]  ;;  %v6521_v14 = vld [vmem:[#allocation2 + $0x28] sm:$0xff] }
 0x55d   : > { %v6438_v3 = vmax.f32 %v6402_v45, 0.0  ;;  %v6403_v43 = vadd.f32 %v11943_v62, %v14815_v9  ;;  %v6301_v16 = vpop.f32.mrb[67].mxu1  ;;  %v6552_v45 = vpack.c.bf16 %v13566_v10, %v13566_v10  ;;  %v6520_v27 = vld [vmem:[#allocation2 + $0x20] sm:$0xff] }
 0x55e   : > { %v6436_v40 = vmax.f32 %v6400_v15, 0.0  ;;  %v6401_v37 = vadd.f32 %v14815_v9, %v6301_v16  ;;  %11985 = vmatmul.mubr.bf16.gmra.mrb[56].mxu0 %v6633_v24  ;;  %v6518_v15 = vld [vmem:[#allocation2 + $0x10] sm:$0xff]  ;;  %v13467_v24 = vld [vmem:[%s15332_s6 + $0x88] sm:$0xff]   ;;  %v6524_v16 = vld [vmem:[#allocation2 + $0x40] sm:$0xff] }
 0x55f   : > { %v6474_v8 = vmul.f32 %v13558_v48, %v6438_v3  ;;  %v6439_v55 = vmax.f32 %v6403_v43, 0.0  ;;  %11988 = vmatprep.mubr.bf16.mxu0 %v6634_v61  ;;  %v6553_v62 = vpack.c.bf16 %v6519_v12, %v6518_v15  ;;  %v6554_v61 = vpack.c.bf16 %v6521_v14, %v6520_v27  ;;  %v13468_v3 = vld [vmem:[%s15332_s6 + $0x90] sm:$0xff]   ;;  %v6523_v43 = vld [vmem:[#allocation2 + $0x38] sm:$0xff]  ;;  %v7107_v15 = vld [vmem:[#allocation2 + $0x2] sm:$0xff] }
 0x560   : > { %v14970_v20 = vmul.f32 %v13559_v19, %v6436_v40  ;;  %v6437_v22 = vmax.f32 %v6401_v37, 0.0  ;;  %v6525_v40 = vld [vmem:[#allocation2 + $0x48] sm:$0xff]  ;;  %v6522_v37 = vld [vmem:[#allocation2 + $0x30] sm:$0xff]  ;;  %v6527_v19 = vld [vmem:[#allocation2 + $0x58] sm:$0xff] }
 0x561   : > { %6510 = vst [vmem:[#allocation2 + $0x103] sm:$0xff] %v6474_v8  ;;  %v14975_v33 = vmul.f32 %v13560_v7, %v6439_v55  ;;  %v6612_v52 = vld [vmem:[#allocation2 + $0xd1] sm:$0xff]  ;;  %v6555_v48 = vpack.c.bf16 %v6523_v43, %v6522_v37  ;;  %v6556_v55 = vpack.c.bf16 %v6525_v40, %v6524_v16  ;;  %v6529_v7 = vld [vmem:[#allocation2 + $0x68] sm:$0xff]  ;;  %v7110_v16 = vld [vmem:[#allocation2 + $0x1a] sm:$0xff] }
 0x562   : > { %6508 = vst [vmem:[#allocation2 + $0xf3] sm:$0xff] %v14970_v20  ;;  %v14981_v26 = vmul.f32 %v13561_v50, %v6437_v22  ;;  %v11946_v28 = vpop.f32.mrb[68].mxu1  ;;  %v6615_v29 = vld [vmem:[#allocation2 + $0xe9] sm:$0xff]  ;;  %v13469_v8 = vld [vmem:[%s15332_s6 + $0x98] sm:$0xff]   ;;  %v6528_v22 = vld [vmem:[#allocation2 + $0x60] sm:$0xff] }
 0x563   : > { %6511 = vst [vmem:[#allocation2 + $0x10b] sm:$0xff] %v14975_v33  ;;  %v6406_v30 = vadd.f32 %v11946_v28, %v14815_v9  ;;  %v6314_v31 = vpop.f32.mrb[69].mxu1  ;;  %v6613_v34 = vld [vmem:[#allocation2 + $0xd9] sm:$0xff]  ;;  %v6614_v11 = vld [vmem:[#allocation2 + $0xe1] sm:$0xff]  ;;  %v6526_v50 = vld [vmem:[#allocation2 + $0x50] sm:$0xff] }
 0x564   : > { %6509 = vst [vmem:[#allocation2 + $0xfb] sm:$0xff] %v14981_v26  ;;  %v6404_v36 = vadd.f32 %v14815_v9, %v6314_v31  ;;  %v11947_v38 = vpop.f32.mrb[70].mxu1  ;;  %v6635_v21 = vpack.c.bf16 %v6613_v34, %v6612_v52  ;;  %v6636_v0 = vpack.c.bf16 %v6615_v29, %v6614_v11  ;;  %v7821_v23 = vpack.c.bf16 %v14981_v26, %v14970_v20  ;;  %v13471_v29 = vld [vmem:[%s15332_s6 + $0xa8] sm:$0xff]   ;;  %v13472_v31 = vld [vmem:[%s15332_s6 + $0xb0] sm:$0xff]   ;;  %v6531_v52 = vld [vmem:[#allocation2 + $0x78] sm:$0xff] }
 0x565   : > { %v6442_v17 = vmax.f32 %v6406_v30, 0.0  ;;  %v6407_v41 = vadd.f32 %v11947_v38, %v14815_v9  ;;  %v6317_v1 = vpop.f32.mrb[71].mxu1  ;;  %v6557_v28 = vpack.c.bf16 %v6527_v19, %v6526_v50  ;;  %v6558_v30 = vpack.c.bf16 %v6529_v7, %v6528_v22  ;;  %v6532_v34 = vld [vmem:[#allocation2 + $0x80] sm:$0xff]  ;;  %v6533_v11 = vld [vmem:[#allocation2 + $0x88] sm:$0xff]  ;;  %v13476_v19 = vld [vmem:[%s15332_s6 + $0xd0] sm:$0xff]  }
 0x566   : > { %v6440_v44 = vmax.f32 %v6404_v36, 0.0  ;;  %v6405_v18 = vadd.f32 %v14815_v9, %v6317_v1  ;;  %11989 = vmatmul.mubr.bf16.gmra.mrb[60].mxu0 %v6635_v21  ;;  %v13564_v9 = vld [vmem:[%s15327_s1 + $0x118] sm:$0xff]  ;;  %v6530_v36 = vld [vmem:[#allocation2 + $0x70] sm:$0xff]  ;;  %v6536_v1 = vld [vmem:[#allocation2 + $0xa0] sm:$0xff] }
 0x567   : > { %v14992_v2 = vmul.f32 %v13562_v35, %v6442_v17  ;;  %v6443_v46 = vmax.f32 %v6407_v41, 0.0  ;;  %11992 = vmatprep.mubr.bf16.mxu0 %v6636_v0  ;;  %v6559_v38 = vpack.c.bf16 %v6531_v52, %v6530_v36  ;;  %v13473_v21 = vld [vmem:[%s15332_s6 + $0xb8] sm:$0xff]   ;;  %v6560_v0 = vpack.c.bf16 %v6533_v11, %v6532_v34  ;;  %v13474_v17 = vld [vmem:[%s15332_s6 + $0xc0] sm:$0xff]   ;;  %v7112_v37 = vld [vmem:[#allocation2 + $0x2a] sm:$0xff] }
 0x568   : > { %v14999_v49 = vmul.f32 %v13563_v51, %v6440_v44  ;;  %v6441_v53 = vmax.f32 %v6405_v18, 0.0  ;;  %v6535_v41 = vld [vmem:[#allocation2 + $0x98] sm:$0xff]  ;;  %v6537_v44 = vld [vmem:[#allocation2 + $0xa8] sm:$0xff]  ;;  %v6534_v18 = vld [vmem:[#allocation2 + $0x90] sm:$0xff] }
 0x569   : > { %6514 = vst [vmem:[#allocation2 + $0x123] sm:$0xff] %v14992_v2  ;;  %v15005_v47 = vmul.f32 %v13564_v9, %v6443_v46  ;;  %v6616_v58 = vld [vmem:[#allocation2 + $0xf1] sm:$0xff]  ;;  %v6561_v35 = vpack.c.bf16 %v6535_v41, %v6534_v18  ;;  %v6562_v46 = vpack.c.bf16 %v6537_v44, %v6536_v1  ;;  %v6541_v9 = vld [vmem:[#allocation2 + $0xc8] sm:$0xff]  ;;  %v7114_v22 = vld [vmem:[#allocation2 + $0x3a] sm:$0xff] }
 0x56a   : > { %6512 = vst [vmem:[#allocation2 + $0x113] sm:$0xff] %v14999_v49  ;;  %v15011_v32 = vmul.f32 %v13565_v54, %v6441_v53  ;;  %v6619_v56 = vld [vmem:[#allocation2 + $0x109] sm:$0xff]  ;;  %v6539_v51 = vld [vmem:[#allocation2 + $0xb8] sm:$0xff]  ;;  %v6540_v53 = vld [vmem:[#allocation2 + $0xc0] sm:$0xff] }
 0x56b   : > { %6515 = vst [vmem:[#allocation2 + $0x12b] sm:$0xff] %v15005_v47  ;;  %v6617_v59 = vld [vmem:[#allocation2 + $0xf9] sm:$0xff]  ;;  %v6618_v60 = vld [vmem:[#allocation2 + $0x101] sm:$0xff]  ;;  %v7824_v4 = vpack.c.bf16 %v15005_v47, %v14992_v2  ;;  %v6538_v54 = vld [vmem:[#allocation2 + $0xb0] sm:$0xff] }
 0x56c   : > { %6513 = vst [vmem:[#allocation2 + $0x11b] sm:$0xff] %v15011_v32  ;;  %v6637_v13 = vpack.c.bf16 %v6617_v59, %v6616_v58  ;;  %v6638_v5 = vpack.c.bf16 %v6619_v56, %v6618_v60  ;;  %v7823_v42 = vpack.c.bf16 %v15011_v32, %v14999_v49  ;;  %v6563_v56 = vpack.c.bf16 %v6539_v51, %v6538_v54  ;;  %v6543_v59 = vld [vmem:[#allocation2 + $0xd8] sm:$0xff]  ;;  %v6544_v60 = vld [vmem:[#allocation2 + $0xe0] sm:$0xff]  ;;  %v6546_v12 = vld [vmem:[#allocation2 + $0xf0] sm:$0xff] }
 0x56d   : > { %v6564_v58 = vpack.c.bf16 %v6541_v9, %v6540_v53  ;;  %v6547_v10 = vld [vmem:[#allocation2 + $0xf8] sm:$0xff]  ;;  %v7111_v40 = vld [vmem:[#allocation2 + $0x22] sm:$0xff]  ;;  %v7116_v50 = vld [vmem:[#allocation2 + $0x4a] sm:$0xff] }
 0x56e   : > { %11993 = vmatmul.mubr.bf16.gmra.mrb[64].mxu0 %v6637_v13  ;;  %v6545_v13 = vld [vmem:[#allocation2 + $0xe8] sm:$0xff]  ;;  %v6567_v27 = vpack.c.bf16 %v6547_v10, %v6546_v12  ;;  %v13478_v52 = vld [vmem:[%s15332_s6 + $0xe0] sm:$0xff]   ;;  %v13480_v41 = vld [vmem:[%s15332_s6 + $0xf0] sm:$0xff]  }
 0x56f   : > { %11996 = vmatprep.mubr.bf16.mxu0 %v6638_v5  ;;  %v6542_v5 = vld [vmem:[#allocation2 + $0xd0] sm:$0xff]  ;;  %v7115_v7 = vld [vmem:[#allocation2 + $0x42] sm:$0xff]  ;;  %v7118_v34 = vld [vmem:[#allocation2 + $0x5a] sm:$0xff] }
 0x570   : > { %v7119_v11 = vld [vmem:[#allocation2 + $0x62] sm:$0xff]  ;;  %v7120_v36 = vld [vmem:[#allocation2 + $0x6a] sm:$0xff]  ;;  %v7122_v1 = vld [vmem:[#allocation2 + $0x7a] sm:$0xff] }
 0x571   : > { %v6620_v57 = vld [vmem:[#allocation2 + $0x111] sm:$0xff]  ;;  %v7123_v44 = vld [vmem:[#allocation2 + $0x82] sm:$0xff]  ;;  %v7126_v54 = vld [vmem:[#allocation2 + $0x9a] sm:$0xff] }
 0x572   : > { %v7124_v18 = vld [vmem:[#allocation2 + $0x8a] sm:$0xff]  ;;  %v13481_v51 = vld [vmem:[%s15332_s6 + $0xf8] sm:$0xff]   ;;  %v13482_v9 = vld [vmem:[%s15332_s6 + $0x100] sm:$0xff]  }
 0x573   : > { %v6621_v25 = vld [vmem:[#allocation2 + $0x119] sm:$0xff]  ;;  %v15085_v53 = vpack.c.bf16 %v7124_v18, %v7123_v44  ;;  %v13491_v44 = vld [vmem:[%s15332_s6 + $0x148] sm:$0xff]   ;;  %v13500_v2 = vld [vmem:[%s15332_s6 + $0x190] sm:$0xff]  }
 0x574   : > { %v6639_v63 = vpack.c.bf16 %v6621_v25, %v6620_v57  ;;  %v6565_v57 = vpack.c.bf16 %v6543_v59, %v6542_v5  ;;  %v6566_v25 = vpack.c.bf16 %v6545_v13, %v6544_v60  ;;  %v7125_v59 = vld [vmem:[#allocation2 + $0x92] sm:$0xff]  ;;  %v7130_v5 = vld [vmem:[#allocation2 + $0xba] sm:$0xff]  ;;  %v8105_v26 = vld [vmem:[#allocation2 + $0x24] sm:$0xff] }
 0x575   : > { %v7152_v60 = vpack.c.bf16 %v7126_v54, %v7125_v59  ;;  %v7129_v10 = vld [vmem:[#allocation2 + $0xb2] sm:$0xff]  ;;  %v7134_v12 = vld [vmem:[#allocation2 + $0xda] sm:$0xff] }
 0x576   : > { %11997 = vmatmul.mubr.bf16.gmra.mrb[68].mxu0 %v6639_v63  ;;  %v6549_v63 = vld [vmem:[#allocation2 + $0x108] sm:$0xff]  ;;  %v7779_v54 = vld [vmem:[#allocation2 + $0x53] sm:$0xff]  ;;  %v13494_v59 = vld [vmem:[%s15332_s6 + $0x160] sm:$0xff]  }
 0x577   : > { %12016 = vmatprep.mubr.bf16.mxu0 %v6552_v45  ;;  %v6548_v45 = vld [vmem:[#allocation2 + $0x100] sm:$0xff]  ;;  %v8110_v47 = vld [vmem:[#allocation2 + $0x4c] sm:$0xff]  ;;  %v8111_v32 = vld [vmem:[#allocation2 + $0x54] sm:$0xff] }
 0x578   : > { %v6568_v14 = vpack.c.bf16 %v6549_v63, %v6548_v45  ;;  %v7154_v45 = vpack.c.bf16 %v7130_v5, %v7129_v10  ;;  %v7781_v5 = vld [vmem:[#allocation2 + $0x63] sm:$0xff] }
 0x579   : > { %v13495_v10 = vld [vmem:[%s15332_s6 + $0x168] sm:$0xff]   ;;  %v8108_v20 = vld [vmem:[#allocation2 + $0x3c] sm:$0xff] }
 0x57e   : > { %12017 = vmatmul.mubr.bf16.vlgmr.msra.gmra.mrb[36].mxu0 %v6553_v62  ;;  %v7108_v62 = vld [vmem:[#allocation2 + $0xa] sm:$0xff] }
 0x57f   : > { %12020 = vmatprep.mubr.bf16.mxu0 %v6554_v61  ;;  %12053 = vmatpush3.bf16.msra.mxu0 %v14932_v39  ;;  %v13470_v39 = vld [vmem:[%s15332_s6 + $0xa0] sm:$0xff]   ;;  %v6550_v61 = vld [vmem:[#allocation2 + $0x110] sm:$0xff] }
 0x580   : > { %12054 = vmatprep.subr.bf16.mxu0 %v13467_v24 }
 0x583   : > { %12055 = vmatpush3.bf16.msra.mxu0 %v13467_v24  ;;  %v6551_v24 = vld [vmem:[#allocation2 + $0x118] sm:$0xff] }
 0x584   : > { %12056 = vmatprep.subr.bf16.mxu0 %v13468_v3  ;;  %v6569_v43 = vpack.c.bf16 %v6551_v24, %v6550_v61  ;;  %v7138_v61 = vld [vmem:[#allocation2 + $0xfa] sm:$0xff] }
 0x586   : > { %12021 = vmatmul.mubr.bf16.gmra.mrb[40].mxu0 %v6555_v48  ;;  %v7109_v48 = vld [vmem:[#allocation2 + $0x12] sm:$0xff] }
 0x587   : > { %12024 = vmatprep.mubr.bf16.mxu0 %v6556_v55  ;;  %12057 = vmatpush3.bf16.msra.mxu0 %v13468_v3  ;;  %v7143_v3 = vpack.c.bf16 %v7108_v62, %v7107_v15  ;;  %v13475_v55 = vld [vmem:[%s15332_s6 + $0xc8] sm:$0xff]   ;;  %v7133_v15 = vld [vmem:[#allocation2 + $0xd2] sm:$0xff] }
 0x588   : > { %12058 = vmatprep.subr.bf16.mxu0 %v13469_v8  ;;  %v7156_v62 = vpack.c.bf16 %v7134_v12, %v7133_v15  ;;  %v7786_v12 = vld [vmem:[#allocation2 + $0x8b] sm:$0xff] }
 0x58b   : > { %12059 = vmatpush3.bf16.msra.mxu0 %v13469_v8  ;;  %v15044_v8 = vpack.c.bf16 %v7110_v16, %v7109_v48  ;;  %v7137_v16 = vld [vmem:[#allocation2 + $0xf2] sm:$0xff]  ;;  %v7142_v48 = vld [vmem:[#allocation2 + $0x11a] sm:$0xff] }
 0x58c   : > { %12060 = vmatprep.subr.bf16.mxu0 %v13470_v39 }
 0x58e   : > { %12025 = vmatmul.mubr.bf16.gmra.mrb[44].mxu0 %v6557_v28  ;;  %v7113_v28 = vld [vmem:[#allocation2 + $0x32] sm:$0xff] }
 0x58f   : > { %12028 = vmatprep.mubr.bf16.mxu0 %v6558_v30  ;;  %12061 = vmatpush3.bf16.msra.mxu0 %v13470_v39  ;;  %v15049_v39 = vpack.c.bf16 %v7112_v37, %v7111_v40  ;;  %v13477_v30 = vld [vmem:[%s15332_s6 + $0xd8] sm:$0xff]   ;;  %v7158_v40 = vpack.c.bf16 %v7138_v61, %v7137_v16 }
 0x590   : > { %12062 = vmatprep.subr.bf16.mxu0 %v13471_v29  ;;  %v7792_v16 = vld [vmem:[#allocation2 + $0xbb] sm:$0xff] }
 0x593   : > { %12063 = vmatpush3.bf16.msra.mxu0 %v13471_v29  ;;  %v15056_v29 = vpack.c.bf16 %v7114_v22, %v7113_v28  ;;  %v13483_v22 = vld [vmem:[%s15332_s6 + $0x108] sm:$0xff]   ;;  %v13488_v28 = vld [vmem:[%s15332_s6 + $0x130] sm:$0xff]  }
 0x594   : > { %12064 = vmatprep.subr.bf16.mxu0 %v13472_v31 }
 0x596   : > { %12029 = vmatmul.mubr.bf16.gmra.mrb[48].mxu0 %v6559_v38  ;;  %v7117_v38 = vld [vmem:[#allocation2 + $0x52] sm:$0xff] }
 0x597   : > { %12032 = vmatprep.mubr.bf16.mxu0 %v6560_v0  ;;  %12065 = vmatpush3.bf16.msra.mxu0 %v13472_v31  ;;  %v15061_v31 = vpack.c.bf16 %v7116_v50, %v7115_v7  ;;  %v13479_v0 = vld [vmem:[%s15332_s6 + $0xe8] sm:$0xff]   ;;  %v13484_v7 = vld [vmem:[%s15332_s6 + $0x110] sm:$0xff]  }
 0x598   : > { %12066 = vmatprep.subr.bf16.mxu0 %v13473_v21  ;;  %v13487_v50 = vld [vmem:[%s15332_s6 + $0x128] sm:$0xff]  }
 0x59b   : > { %12067 = vmatpush3.bf16.msra.mxu0 %v13473_v21  ;;  %v15068_v21 = vpack.c.bf16 %v7118_v34, %v7117_v38  ;;  %v7772_v34 = vld [vmem:[#allocation2 + $0x1b] sm:$0xff] }
 0x59c   : > { %12104 = vmatprep.subr.bf16.mxu0 %v13474_v17 }
 0x59e   : > { %12033 = vmatmul.mubr.bf16.gmra.mrb[52].mxu0 %v6561_v35  ;;  %v7121_v35 = vld [vmem:[#allocation2 + $0x72] sm:$0xff] }
 0x59f   : > { %12036 = vmatprep.mubr.bf16.mxu0 %v6562_v46  ;;  %v15080_v46 = vpack.c.bf16 %v7122_v1, %v7121_v35  ;;  %v7775_v1 = vld [vmem:[#allocation2 + $0x33] sm:$0xff] }
 0x5a0   : > { %v13492_v35 = vld [vmem:[%s15332_s6 + $0x150] sm:$0xff]  }
 0x5a6   : > { %12037 = vmatmul.mubr.bf16.gmra.mrb[56].mxu0 %v6563_v56  ;;  %v7127_v56 = vld [vmem:[#allocation2 + $0xa2] sm:$0xff] }
 0x5a7   : > { %12040 = vmatprep.mubr.bf16.mxu0 %v6564_v58  ;;  %v7128_v58 = vld [vmem:[#allocation2 + $0xaa] sm:$0xff] }
 0x5a8   : > { %v15092_v13 = vpack.c.bf16 %v7128_v58, %v7127_v56  ;;  %v13493_v56 = vld [vmem:[%s15332_s6 + $0x158] sm:$0xff]  }
 0x5ae   : > { %12041 = vmatmul.mubr.bf16.gmra.mrb[60].mxu0 %v6565_v57  ;;  %v7131_v57 = vld [vmem:[#allocation2 + $0xc2] sm:$0xff] }
 0x5af   : > { %12044 = vmatprep.mubr.bf16.mxu0 %v6566_v25  ;;  %v7132_v25 = vld [vmem:[#allocation2 + $0xca] sm:$0xff] }
 0x5b0   : > { %v7155_v63 = vpack.c.bf16 %v7132_v25, %v7131_v57  ;;  %v7783_v25 = vld [vmem:[#allocation2 + $0x73] sm:$0xff] }
 0x5b6   : > { %12045 = vmatmul.mubr.bf16.gmra.mrb[64].mxu0 %v6567_v27  ;;  %v7135_v27 = vld [vmem:[#allocation2 + $0xe2] sm:$0xff] }
 0x5b7   : > { %12048 = vmatprep.mubr.bf16.mxu0 %v6568_v14  ;;  %v7136_v14 = vld [vmem:[#allocation2 + $0xea] sm:$0xff] }
 0x5b8   : > { %v7157_v24 = vpack.c.bf16 %v7136_v14, %v7135_v27  ;;  %v7788_v27 = vld [vmem:[#allocation2 + $0x9b] sm:$0xff]  ;;  %v7785_v14 = vld [vmem:[#allocation2 + $0x83] sm:$0xff] }
 0x5b9   : > { %v7814_v15 = vpack.c.bf16 %v7786_v12, %v7785_v14  ;;  %v8127_v14 = vld [vmem:[#allocation2 + $0xd4] sm:$0xff] }
 0x5be   : > { %12049 = vmatmul.mubr.bf16.gmra.mrb[68].mxu0 %v6569_v43  ;;  %v7140_v43 = vld [vmem:[#allocation2 + $0x10a] sm:$0xff] }
 0x5bf   : > { %12068 = vmatprep.mubr.bf16.mxu0 %v7143_v3  ;;  %v7139_v3 = vld [vmem:[#allocation2 + $0x102] sm:$0xff] }
 0x5c0   : > { %v7159_v37 = vpack.c.bf16 %v7140_v43, %v7139_v3  ;;  %v13498_v3 = vld [vmem:[%s15332_s6 + $0x180] sm:$0xff]   ;;  %v7790_v43 = vld [vmem:[#allocation2 + $0xab] sm:$0xff] }
 0x5c6   : > { %12069 = vmatmul.mubr.bf16.vlgmr.msra.gmra.mrb[36].mxu0 %v15044_v8 }
 0x5c7   : > { %12072 = vmatprep.mubr.bf16.mxu0 %v15049_v39  ;;  %12105 = vmatpush3.bf16.msra.mxu0 %v13474_v17  ;;  %v15073_v17 = vpack.c.bf16 %v7120_v36, %v7119_v11  ;;  %v7771_v36 = vld [vmem:[#allocation2 + $0x13] sm:$0xff] }
 0x5c8   : > { %12106 = vmatprep.subr.bf16.mxu0 %v13475_v55  ;;  %v7807_v38 = vpack.c.bf16 %v7772_v34, %v7771_v36  ;;  %v8107_v36 = vld [vmem:[#allocation2 + $0x34] sm:$0xff] }
 0x5c9   : > { %v15168_v49 = vpack.c.bf16 %v8108_v20, %v8107_v36  ;;  %v13513_v36 = vld [vmem:[%s15332_s6 + $0x1f8] sm:$0xff]   ;;  %v13514_v20 = vld [vmem:[%s15332_s6 + $0x200] sm:$0xff]  }
 0x5cb   : > { %12107 = vmatpush3.bf16.msra.mxu0 %v13475_v55  ;;  %v7141_v55 = vld [vmem:[#allocation2 + $0x112] sm:$0xff] }
 0x5cc   : > { %12108 = vmatprep.subr.bf16.mxu0 %v13476_v19 }
 0x5ce   : > { %12073 = vmatmul.mubr.bf16.gmra.mrb[40].mxu0 %v15056_v29 }
 0x5cf   : > { %12076 = vmatprep.mubr.bf16.mxu0 %v15061_v31  ;;  %12109 = vmatpush3.bf16.msra.mxu0 %v13476_v19  ;;  %v7160_v19 = vpack.c.bf16 %v7142_v48, %v7141_v55  ;;  %v7791_v48 = vld [vmem:[#allocation2 + $0xb3] sm:$0xff] }
 0x5d0   : > { %12110 = vmatprep.subr.bf16.mxu0 %v13477_v30  ;;  %v7817_v55 = vpack.c.bf16 %v7792_v16, %v7791_v48  ;;  %v8132_v16 = vld [vmem:[#allocation2 + $0xfc] sm:$0xff] }
 0x5d3   : > { %12111 = vmatpush3.bf16.msra.mxu0 %v13477_v30  ;;  %v13490_v30 = vld [vmem:[%s15332_s6 + $0x140] sm:$0xff]  }
 0x5d4   : > { %12112 = vmatprep.subr.bf16.mxu0 %v13478_v52 }
 0x5d6   : > { %12077 = vmatmul.mubr.bf16.gmra.mrb[44].mxu0 %v15068_v21 }
 0x5d7   : > { %12080 = vmatprep.mubr.bf16.mxu0 %v15073_v17  ;;  %12113 = vmatpush3.bf16.msra.mxu0 %v13478_v52  ;;  %v7474_v52 = vld [vmem:[#allocation2 + $0x12a] sm:$0xff] }
 0x5d8   : > { %12114 = vmatprep.subr.bf16.mxu0 %v13479_v0 }
 0x5db   : > { %12115 = vmatpush3.bf16.msra.mxu0 %v13479_v0  ;;  %v7776_v0 = vld [vmem:[#allocation2 + $0x3b] sm:$0xff] }
 0x5dc   : > { %12116 = vmatprep.subr.bf16.mxu0 %v13480_v41  ;;  %v7809_v18 = vpack.c.bf16 %v7776_v0, %v7775_v1  ;;  %v8115_v1 = vld [vmem:[#allocation2 + $0x74] sm:$0xff] }
 0x5de   : > { %12081 = vmatmul.mubr.bf16.gmra.mrb[48].mxu0 %v15080_v46 }
 0x5df   : > { %12084 = vmatprep.mubr.bf16.mxu0 %v15085_v53  ;;  %12117 = vmatpush3.bf16.msra.mxu0 %v13480_v41 }
 0x5e0   : > { %12118 = vmatprep.subr.bf16.mxu0 %v13481_v51 }
 0x5e3   : > { %12119 = vmatpush3.bf16.msra.mxu0 %v13481_v51  ;;  %v7780_v51 = vld [vmem:[#allocation2 + $0x5b] sm:$0xff] }
 0x5e4   : > { %12156 = vmatprep.subr.bf16.mxu0 %v13482_v9  ;;  %v7811_v58 = vpack.c.bf16 %v7780_v51, %v7779_v54  ;;  %v8119_v54 = vld [vmem:[#allocation2 + $0x94] sm:$0xff] }
 0x5e6   : > { %12085 = vmatmul.mubr.bf16.gmra.mrb[52].mxu0 %v7152_v60 }
 0x5e7   : > { %12088 = vmatprep.mubr.bf16.mxu0 %v15092_v13 }
 0x5ee   : > { %12089 = vmatmul.mubr.bf16.gmra.mrb[56].mxu0 %v7154_v45 }
 0x5ef   : > { %12092 = vmatprep.mubr.bf16.mxu0 %v7155_v63 }
 0x5f6   : > { %12093 = vmatmul.mubr.bf16.gmra.mrb[60].mxu0 %v7156_v62 }
 0x5f7   : > { %12096 = vmatprep.mubr.bf16.mxu0 %v7157_v24 }
 0x5fe   : > { %12097 = vmatmul.mubr.bf16.gmra.mrb[64].mxu0 %v7158_v40 }
 0x5ff   : > { %12100 = vmatprep.mubr.bf16.mxu0 %v7159_v37 }
 0x606   : > { %12101 = vmatmul.mubr.bf16.gmra.mrb[68].mxu0 %v7160_v19 }
 0x607   : > { %12120 = vmatprep.mubr.bf16.mxu0 %v15044_v8  ;;  %v13485_v8 = vld [vmem:[%s15332_s6 + $0x118] sm:$0xff]  }
 0x60e   : > { %12121 = vmatmul.mubr.bf16.vlgmr.msra.gmra.mrb[36].mxu0 %v15049_v39  ;;  %v13486_v39 = vld [vmem:[%s15332_s6 + $0x120] sm:$0xff]  }
 0x60f   : > { %12124 = vmatprep.mubr.bf16.mxu0 %v15056_v29  ;;  %12157 = vmatpush3.bf16.msra.mxu0 %v13482_v9  ;;  %v13489_v29 = vld [vmem:[%s15332_s6 + $0x138] sm:$0xff]  }
 0x610   : > { %12158 = vmatprep.subr.bf16.mxu0 %v13483_v22 }
 0x613   : > { %12159 = vmatpush3.bf16.msra.mxu0 %v13483_v22  ;;  %v7795_v22 = vld [vmem:[#allocation2 + $0xd3] sm:$0xff] }
 0x614   : > { %12160 = vmatprep.subr.bf16.mxu0 %v13484_v7 }
 0x616   : > { %12125 = vmatmul.mubr.bf16.gmra.mrb[40].mxu0 %v15061_v31  ;;  %v7473_v31 = vld [vmem:[#allocation2 + $0x122] sm:$0xff] }
 0x617   : > { %12128 = vmatprep.mubr.bf16.mxu0 %v15068_v21  ;;  %12161 = vmatpush3.bf16.msra.mxu0 %v13484_v7  ;;  %v7492_v11 = vpack.c.bf16 %v7474_v52, %v7473_v31  ;;  %v7774_v21 = vld [vmem:[#allocation2 + $0x2b] sm:$0xff]  ;;  %v7793_v7 = vld [vmem:[#allocation2 + $0xc3] sm:$0xff]  ;;  %v8103_v52 = vld [vmem:[#allocation2 + $0x14] sm:$0xff] }
 0x618   : > { %12162 = vmatprep.subr.bf16.mxu0 %v13485_v8 }
 0x61b   : > { %12163 = vmatpush3.bf16.msra.mxu0 %v13485_v8 }
 0x61c   : > { %12164 = vmatprep.subr.bf16.mxu0 %v13486_v39 }
 0x61e   : > { %12129 = vmatmul.mubr.bf16.gmra.mrb[44].mxu0 %v15073_v17  ;;  %v7773_v17 = vld [vmem:[#allocation2 + $0x23] sm:$0xff] }
 0x61f   : > { %12132 = vmatprep.mubr.bf16.mxu0 %v15080_v46  ;;  %12165 = vmatpush3.bf16.msra.mxu0 %v13486_v39  ;;  %v7808_v41 = vpack.c.bf16 %v7774_v21, %v7773_v17  ;;  %v7778_v46 = vld [vmem:[#allocation2 + $0x4b] sm:$0xff]  ;;  %v7819_v39 = vpack.c.bf16 %v14957_v6, %v7795_v22  ;;  %v8104_v6 = vld [vmem:[#allocation2 + $0x1c] sm:$0xff] }
 0x620   : > { %12166 = vmatprep.subr.bf16.mxu0 %v13487_v50  ;;  %v8139_v34 = vpack.c.bf16 %v8104_v6, %v8103_v52  ;;  %v13501_v21 = vld [vmem:[%s15332_s6 + $0x198] sm:$0xff]   ;;  %v13502_v17 = vld [vmem:[%s15332_s6 + $0x1a0] sm:$0xff]  }
 0x621   : > { %v8136_v22 = vld [vmem:[#allocation2 + $0x11c] sm:$0xff] }
 0x622   : > { %v13509_v52 = vld [vmem:[%s15332_s6 + $0x1d8] sm:$0xff]   ;;  %v13510_v6 = vld [vmem:[%s15332_s6 + $0x1e0] sm:$0xff]  }
 0x623   : > { %12167 = vmatpush3.bf16.msra.mxu0 %v13487_v50  ;;  %v7798_v50 = vld [vmem:[#allocation2 + $0xeb] sm:$0xff] }
 0x624   : > { %12168 = vmatprep.subr.bf16.mxu0 %v13488_v28 }
 0x626   : > { %12133 = vmatmul.mubr.bf16.gmra.mrb[48].mxu0 %v15085_v53  ;;  %v7777_v53 = vld [vmem:[#allocation2 + $0x43] sm:$0xff] }
 0x627   : > { %12136 = vmatprep.mubr.bf16.mxu0 %v7152_v60  ;;  %12169 = vmatpush3.bf16.msra.mxu0 %v13488_v28  ;;  %v7810_v9 = vpack.c.bf16 %v7778_v46, %v7777_v53  ;;  %v7782_v60 = vld [vmem:[#allocation2 + $0x6b] sm:$0xff]  ;;  %v7797_v28 = vld [vmem:[#allocation2 + $0xe3] sm:$0xff] }
 0x628   : > { %12170 = vmatprep.subr.bf16.mxu0 %v13489_v29  ;;  %v7812_v57 = vpack.c.bf16 %v7782_v60, %v7781_v5  ;;  %v13503_v46 = vld [vmem:[%s15332_s6 + $0x1a8] sm:$0xff]   ;;  %v13504_v53 = vld [vmem:[%s15332_s6 + $0x1b0] sm:$0xff]   ;;  %v13505_v60 = vld [vmem:[%s15332_s6 + $0x1b8] sm:$0xff]  }
 0x629   : > { %v13506_v5 = vld [vmem:[%s15332_s6 + $0x1c0] sm:$0xff]  }
 0x62b   : > { %12171 = vmatpush3.bf16.msra.mxu0 %v13489_v29  ;;  %v7820_v29 = vpack.c.bf16 %v7798_v50, %v7797_v28  ;;  %v8137_v50 = vld [vmem:[#allocation2 + $0x124] sm:$0xff]  ;;  %v8138_v28 = vld [vmem:[#allocation2 + $0x12c] sm:$0xff] }
 0x62c   : > { %12208 = vmatprep.subr.bf16.mxu0 %v13490_v30 }
 0x62e   : > { %12137 = vmatmul.mubr.bf16.gmra.mrb[52].mxu0 %v15092_v13  ;;  %v7784_v13 = vld [vmem:[#allocation2 + $0x7b] sm:$0xff] }
 0x62f   : > { %12140 = vmatprep.mubr.bf16.mxu0 %v7154_v45  ;;  %v7813_v45 = vpack.c.bf16 %v7784_v13, %v7783_v25  ;;  %v8123_v25 = vld [vmem:[#allocation2 + $0xb4] sm:$0xff] }
 0x636   : > { %12141 = vmatmul.mubr.bf16.gmra.mrb[56].mxu0 %v7155_v63  ;;  %v13496_v63 = vld [vmem:[%s15332_s6 + $0x170] sm:$0xff]  }
 0x637   : > { %12144 = vmatprep.mubr.bf16.mxu0 %v7156_v62  ;;  %v7787_v62 = vld [vmem:[#allocation2 + $0x93] sm:$0xff] }
 0x638   : > { %v7815_v61 = vpack.c.bf16 %v7788_v27, %v7787_v62  ;;  %v8126_v27 = vld [vmem:[#allocation2 + $0xcc] sm:$0xff]  ;;  %v8125_v62 = vld [vmem:[#allocation2 + $0xc4] sm:$0xff] }
 0x63e   : > { %12145 = vmatmul.mubr.bf16.gmra.mrb[60].mxu0 %v7157_v24  ;;  %v13497_v24 = vld [vmem:[%s15332_s6 + $0x178] sm:$0xff]  }
 0x63f   : > { %12148 = vmatprep.mubr.bf16.mxu0 %v7158_v40  ;;  %v7789_v40 = vld [vmem:[#allocation2 + $0xa3] sm:$0xff] }
 0x646   : > { %12149 = vmatmul.mubr.bf16.gmra.mrb[64].mxu0 %v7159_v37  ;;  %v7816_v37 = vpack.c.bf16 %v7790_v43, %v7789_v40  ;;  %v8131_v43 = vld [vmem:[#allocation2 + $0xf4] sm:$0xff]  ;;  %v8129_v40 = vld [vmem:[#allocation2 + $0xe4] sm:$0xff] }
 0x647   : > { %12152 = vmatprep.mubr.bf16.mxu0 %v7160_v19  ;;  %v7794_v19 = vld [vmem:[#allocation2 + $0xcb] sm:$0xff]  ;;  %v8153_v48 = vpack.c.bf16 %v8132_v16, %v8131_v43  ;;  %v8789_v16 = vld [vmem:[#allocation2 + $0xd5] sm:$0xff] }
 0x648   : > { %v7818_v8 = vpack.c.bf16 %v7794_v19, %v7793_v7  ;;  %v8135_v19 = vld [vmem:[#allocation2 + $0x114] sm:$0xff]  ;;  %v8133_v7 = vld [vmem:[#allocation2 + $0x104] sm:$0xff] }
 0x64e   : > { %12153 = vmatmul.mubr.bf16.gmra.mrb[68].mxu0 %v7492_v11  ;;  %v8106_v11 = vld [vmem:[#allocation2 + $0x2c] sm:$0xff] }
 0x64f   : > { %12172 = vmatprep.mubr.bf16.mxu0 %v7807_v38 }
 0x656   : > { %12173 = vmatmul.mubr.bf16.vlgmr.msra.gmra.mrb[36].mxu0 %v7808_v41  ;;  %v8114_v41 = vld [vmem:[#allocation2 + $0x6c] sm:$0xff] }
 0x657   : > { %12176 = vmatprep.mubr.bf16.mxu0 %v7809_v18  ;;  %12209 = vmatpush3.bf16.msra.mxu0 %v13490_v30  ;;  %v7801_v30 = vld [vmem:[#allocation2 + $0x103] sm:$0xff] }
 0x658   : > { %12210 = vmatprep.subr.bf16.mxu0 %v13491_v44  ;;  %v7822_v31 = vpack.c.bf16 %v14975_v33, %v7801_v30  ;;  %v13499_v33 = vld [vmem:[%s15332_s6 + $0x188] sm:$0xff]  }
 0x659   : > { %v8113_v18 = vld [vmem:[#allocation2 + $0x64] sm:$0xff] }
 0x65a   : > { %v13507_v30 = vld [vmem:[%s15332_s6 + $0x1c8] sm:$0xff]  }
 0x65b   : > { %12211 = vmatpush3.bf16.msra.mxu0 %v13491_v44  ;;  %v8116_v44 = vld [vmem:[#allocation2 + $0x7c] sm:$0xff] }
 0x65c   : > { %12212 = vmatprep.subr.bf16.mxu0 %v13492_v35  ;;  %v15192_v51 = vpack.c.bf16 %v8116_v44, %v8115_v1  ;;  %v8773_v1 = vld [vmem:[#allocation2 + $0x55] sm:$0xff]  ;;  %v8774_v44 = vld [vmem:[#allocation2 + $0x5d] sm:$0xff] }
 0x65e   : > { %12177 = vmatmul.mubr.bf16.gmra.mrb[40].mxu0 %v7810_v9  ;;  %v8118_v9 = vld [vmem:[#allocation2 + $0x8c] sm:$0xff] }
 0x65f   : > { %12180 = vmatprep.mubr.bf16.mxu0 %v7811_v58  ;;  %12213 = vmatpush3.bf16.msra.mxu0 %v13492_v35  ;;  %v15187_v35 = vpack.c.bf16 %v8114_v41, %v8113_v18  ;;  %v8117_v58 = vld [vmem:[#allocation2 + $0x84] sm:$0xff]  ;;  %v13516_v41 = vld [vmem:[%s15332_s6 + $0x210] sm:$0xff]  }
 0x660   : > { %12214 = vmatprep.subr.bf16.mxu0 %v13493_v56  ;;  %v8776_v18 = vld [vmem:[#allocation2 + $0x6d] sm:$0xff] }
 0x663   : > { %12215 = vmatpush3.bf16.msra.mxu0 %v13493_v56  ;;  %v8120_v56 = vld [vmem:[#allocation2 + $0x9c] sm:$0xff] }
 0x664   : > { %12216 = vmatprep.subr.bf16.mxu0 %v13494_v59  ;;  %v15204_v13 = vpack.c.bf16 %v8120_v56, %v8119_v54  ;;  %v8777_v54 = vld [vmem:[#allocation2 + $0x75] sm:$0xff]  ;;  %v8778_v56 = vld [vmem:[#allocation2 + $0x7d] sm:$0xff] }
 0x666   : > { %12181 = vmatmul.mubr.bf16.gmra.mrb[44].mxu0 %v7812_v57  ;;  %v8122_v57 = vld [vmem:[#allocation2 + $0xac] sm:$0xff] }
 0x667   : > { %12184 = vmatprep.mubr.bf16.mxu0 %v7813_v45  ;;  %12217 = vmatpush3.bf16.msra.mxu0 %v13494_v59  ;;  %v15199_v59 = vpack.c.bf16 %v8118_v9, %v8117_v58  ;;  %v8121_v45 = vld [vmem:[#allocation2 + $0xa4] sm:$0xff]  ;;  %v8780_v58 = vld [vmem:[#allocation2 + $0x8d] sm:$0xff] }
 0x668   : > { %12218 = vmatprep.subr.bf16.mxu0 %v13495_v10  ;;  %v13518_v9 = vld [vmem:[%s15332_s6 + $0x220] sm:$0xff]  }
 0x66b   : > { %12219 = vmatpush3.bf16.msra.mxu0 %v13495_v10  ;;  %v8124_v10 = vld [vmem:[#allocation2 + $0xbc] sm:$0xff] }
 0x66c   : > { %12220 = vmatprep.subr.bf16.mxu0 %v13496_v63  ;;  %v15211_v12 = vpack.c.bf16 %v8124_v10, %v8123_v25  ;;  %v8781_v25 = vld [vmem:[#allocation2 + $0x95] sm:$0xff]  ;;  %v8782_v10 = vld [vmem:[#allocation2 + $0x9d] sm:$0xff] }
 0x66e   : > { %12185 = vmatmul.mubr.bf16.gmra.mrb[48].mxu0 %v7814_v15  ;;  %v8128_v15 = vld [vmem:[#allocation2 + $0xdc] sm:$0xff] }
 0x66f   : > { %12188 = vmatprep.mubr.bf16.mxu0 %v7815_v61  ;;  %12221 = vmatpush3.bf16.msra.mxu0 %v13496_v63  ;;  %v8148_v63 = vpack.c.bf16 %v8122_v57, %v8121_v45  ;;  %v8151_v61 = vpack.c.bf16 %v8128_v15, %v8127_v14  ;;  %v13520_v57 = vld [vmem:[%s15332_s6 + $0x230] sm:$0xff]  }
 0x670   : > { %12222 = vmatprep.subr.bf16.mxu0 %v13497_v24  ;;  %v8784_v45 = vld [vmem:[#allocation2 + $0xad] sm:$0xff]  ;;  %v8785_v15 = vld [vmem:[#allocation2 + $0xb5] sm:$0xff] }
 0x673   : > { %12223 = vmatpush3.bf16.msra.mxu0 %v13497_v24  ;;  %v8150_v24 = vpack.c.bf16 %v8126_v27, %v8125_v62  ;;  %v13521_v27 = vld [vmem:[%s15332_s6 + $0x238] sm:$0xff]  }
 0x674   : > { %12260 = vmatprep.subr.bf16.mxu0 %v13498_v3  ;;  %v8786_v62 = vld [vmem:[#allocation2 + $0xbd] sm:$0xff] }
 0x676   : > { %12189 = vmatmul.mubr.bf16.gmra.mrb[52].mxu0 %v7816_v37 }
 0x677   : > { %12192 = vmatprep.mubr.bf16.mxu0 %v7817_v55  ;;  %v8134_v55 = vld [vmem:[#allocation2 + $0x10c] sm:$0xff] }
 0x67e   : > { %12193 = vmatmul.mubr.bf16.gmra.mrb[56].mxu0 %v7818_v8  ;;  %v8154_v8 = vpack.c.bf16 %v8134_v55, %v8133_v7  ;;  %v8791_v55 = vld [vmem:[#allocation2 + $0xe5] sm:$0xff]  ;;  %v8794_v7 = vld [vmem:[#allocation2 + $0xfd] sm:$0xff] }
 0x67f   : > { %12196 = vmatprep.mubr.bf16.mxu0 %v7819_v39  ;;  %v8155_v39 = vpack.c.bf16 %v8136_v22, %v8135_v19  ;;  %v8793_v22 = vld [vmem:[#allocation2 + $0xf5] sm:$0xff] }
 0x686   : > { %12197 = vmatmul.mubr.bf16.gmra.mrb[60].mxu0 %v7820_v29  ;;  %v8156_v29 = vpack.c.bf16 %v8138_v28, %v8137_v50  ;;  %v8795_v50 = vld [vmem:[#allocation2 + $0x105] sm:$0xff] }
 0x687   : > { %12200 = vmatprep.mubr.bf16.mxu0 %v7821_v23  ;;  %v15163_v23 = vpack.c.bf16 %v8106_v11, %v8105_v26  ;;  %v13512_v11 = vld [vmem:[%s15332_s6 + $0x1f0] sm:$0xff]  }
 0x688   : > { %v8469_v26 = vld [vmem:[#allocation2 + $0x134] sm:$0xff] }
 0x68e   : > { %12201 = vmatmul.mubr.bf16.gmra.mrb[64].mxu0 %v7822_v31  ;;  %v13508_v31 = vld [vmem:[%s15332_s6 + $0x1d0] sm:$0xff]  }
 0x68f   : > { %12204 = vmatprep.mubr.bf16.mxu0 %v7823_v42  ;;  %v8109_v42 = vld [vmem:[#allocation2 + $0x44] sm:$0xff] }
 0x690   : > { %v15175_v38 = vpack.c.bf16 %v8110_v47, %v8109_v42  ;;  %v8772_v42 = vld [vmem:[#allocation2 + $0x4d] sm:$0xff] }
 0x696   : > { %12205 = vmatmul.mubr.bf16.gmra.mrb[68].mxu0 %v7824_v4  ;;  %v8112_v4 = vld [vmem:[#allocation2 + $0x5c] sm:$0xff] }
 0x697   : > { %12224 = vmatprep.mubr.bf16.mxu0 %v8139_v34  ;;  %v15180_v0 = vpack.c.bf16 %v8112_v4, %v8111_v32  ;;  %v13511_v34 = vld [vmem:[%s15332_s6 + $0x1e8] sm:$0xff]   ;;  %v8769_v32 = vld [vmem:[#allocation2 + $0x35] sm:$0xff]  ;;  %v8770_v4 = vld [vmem:[#allocation2 + $0x3d] sm:$0xff] }
 0x69e   : > { %12225 = vmatmul.mubr.bf16.vlgmr.msra.gmra.mrb[36].mxu0 %v15163_v23 }
 0x69f   : > { %12228 = vmatprep.mubr.bf16.mxu0 %v15168_v49  ;;  %12261 = vmatpush3.bf16.msra.mxu0 %v13498_v3  ;;  %v8130_v3 = vld [vmem:[#allocation2 + $0xec] sm:$0xff] }
 0x6a0   : > { %12262 = vmatprep.subr.bf16.mxu0 %v13499_v33  ;;  %v8152_v37 = vpack.c.bf16 %v8130_v3, %v8129_v40  ;;  %v8787_v3 = vld [vmem:[#allocation2 + $0xc5] sm:$0xff]  ;;  %v8790_v40 = vld [vmem:[#allocation2 + $0xdd] sm:$0xff] }
 0x6a3   : > { %12263 = vmatpush3.bf16.msra.mxu0 %v13499_v33 }
 0x6a4   : > { %12264 = vmatprep.subr.bf16.mxu0 %v13500_v2 }
 0x6a6   : > { %12229 = vmatmul.mubr.bf16.gmra.mrb[40].mxu0 %v15175_v38 }
 0x6a7   : > { %12232 = vmatprep.mubr.bf16.mxu0 %v15180_v0  ;;  %12265 = vmatpush3.bf16.msra.mxu0 %v13500_v2  ;;  %v8767_v2 = vld [vmem:[#allocation2 + $0x25] sm:$0xff] }
 0x6a8   : > { %12266 = vmatprep.subr.bf16.mxu0 %v13501_v21 }
 0x6ab   : > { %12267 = vmatpush3.bf16.msra.mxu0 %v13501_v21  ;;  %v8771_v21 = vld [vmem:[#allocation2 + $0x45] sm:$0xff] }
 0x6ac   : > { %12268 = vmatprep.subr.bf16.mxu0 %v13502_v17 }
 0x6ae   : > { %12233 = vmatmul.mubr.bf16.gmra.mrb[44].mxu0 %v15187_v35 }
 0x6af   : > { %12236 = vmatprep.mubr.bf16.mxu0 %v15192_v51  ;;  %12269 = vmatpush3.bf16.msra.mxu0 %v13502_v17  ;;  %v8805_v17 = vpack.c.bf16 %v8772_v42, %v8771_v21  ;;  %v9106_v21 = vld [vmem:[#allocation2 + $0x5e] sm:$0xff] }
 0x6b0   : > { %12270 = vmatprep.subr.bf16.mxu0 %v13503_v46 }
 0x6b3   : > { %12271 = vmatpush3.bf16.msra.mxu0 %v13503_v46  ;;  %v8775_v46 = vld [vmem:[#allocation2 + $0x65] sm:$0xff] }
 0x6b4   : > { %12272 = vmatprep.subr.bf16.mxu0 %v13504_v53 }
 0x6b6   : > { %12237 = vmatmul.mubr.bf16.gmra.mrb[48].mxu0 %v15199_v59 }
 0x6b7   : > { %12240 = vmatprep.mubr.bf16.mxu0 %v15204_v13  ;;  %12273 = vmatpush3.bf16.msra.mxu0 %v13504_v53  ;;  %v8807_v53 = vpack.c.bf16 %v8776_v18, %v8775_v46  ;;  %v9110_v18 = vld [vmem:[#allocation2 + $0x7e] sm:$0xff] }
 0x6b8   : > { %12274 = vmatprep.subr.bf16.mxu0 %v13505_v60 }
 0x6bb   : > { %12275 = vmatpush3.bf16.msra.mxu0 %v13505_v60  ;;  %v8779_v60 = vld [vmem:[#allocation2 + $0x85] sm:$0xff] }
 0x6bc   : > { %12312 = vmatprep.subr.bf16.mxu0 %v13506_v5 }
 0x6be   : > { %12241 = vmatmul.mubr.bf16.gmra.mrb[52].mxu0 %v8148_v63 }
 0x6bf   : > { %12244 = vmatprep.mubr.bf16.mxu0 %v15211_v12 }
 0x6c6   : > { %12245 = vmatmul.mubr.bf16.gmra.mrb[56].mxu0 %v8150_v24 }
 0x6c7   : > { %12248 = vmatprep.mubr.bf16.mxu0 %v8151_v61 }
 0x6ce   : > { %12249 = vmatmul.mubr.bf16.gmra.mrb[60].mxu0 %v8152_v37 }
 0x6cf   : > { %12252 = vmatprep.mubr.bf16.mxu0 %v8153_v48 }
 0x6d6   : > { %12253 = vmatmul.mubr.bf16.gmra.mrb[64].mxu0 %v8154_v8 }
 0x6d7   : > { %12256 = vmatprep.mubr.bf16.mxu0 %v8155_v39 }
 0x6de   : > { %12257 = vmatmul.mubr.bf16.gmra.mrb[68].mxu0 %v8156_v29 }
 0x6df   : > { %12276 = vmatprep.mubr.bf16.mxu0 %v15163_v23  ;;  %v8470_v23 = vld [vmem:[#allocation2 + $0x13c] sm:$0xff] }
 0x6e0   : > { %v8488_v33 = vpack.c.bf16 %v8470_v23, %v8469_v26  ;;  %v9100_v26 = vld [vmem:[#allocation2 + $0x2e] sm:$0xff]  ;;  %v9099_v23 = vld [vmem:[#allocation2 + $0x26] sm:$0xff] }
 0x6e6   : > { %12277 = vmatmul.mubr.bf16.vlgmr.msra.gmra.mrb[36].mxu0 %v15168_v49  ;;  %v8768_v49 = vld [vmem:[#allocation2 + $0x2d] sm:$0xff] }
 0x6e7   : > { %12280 = vmatprep.mubr.bf16.mxu0 %v15175_v38  ;;  %12313 = vmatpush3.bf16.msra.mxu0 %v13506_v5  ;;  %v8803_v47 = vpack.c.bf16 %v8768_v49, %v8767_v2  ;;  %v8804_v38 = vpack.c.bf16 %v8770_v4, %v8769_v32  ;;  %v8809_v5 = vpack.c.bf16 %v8780_v58, %v8779_v60  ;;  %v9101_v49 = vld [vmem:[#allocation2 + $0x36] sm:$0xff]  ;;  %v9102_v2 = vld [vmem:[#allocation2 + $0x3e] sm:$0xff]  ;;  %v9103_v4 = vld [vmem:[#allocation2 + $0x46] sm:$0xff] }
 0x6e8   : > { %12314 = vmatprep.subr.bf16.mxu0 %v13507_v30  ;;  %v9136_v32 = vpack.c.bf16 %v9102_v2, %v9101_v49 }
 0x6eb   : > { %12315 = vmatpush3.bf16.msra.mxu0 %v13507_v30  ;;  %v8798_v30 = vld [vmem:[#allocation2 + $0x11d] sm:$0xff] }
 0x6ec   : > { %12316 = vmatprep.subr.bf16.mxu0 %v13508_v31 }
 0x6ee   : > { %12281 = vmatmul.mubr.bf16.gmra.mrb[40].mxu0 %v15180_v0  ;;  %v13515_v0 = vld [vmem:[%s15332_s6 + $0x208] sm:$0xff]  }
 0x6ef   : > { %12284 = vmatprep.mubr.bf16.mxu0 %v15187_v35  ;;  %12317 = vmatpush3.bf16.msra.mxu0 %v13508_v31  ;;  %v8806_v35 = vpack.c.bf16 %v8774_v44, %v8773_v1  ;;  %v8799_v31 = vld [vmem:[#allocation2 + $0x125] sm:$0xff]  ;;  %v9109_v44 = vld [vmem:[#allocation2 + $0x76] sm:$0xff] }
 0x6f0   : > { %12318 = vmatprep.subr.bf16.mxu0 %v13509_v52  ;;  %v9140_v46 = vpack.c.bf16 %v9110_v18, %v9109_v44 }
 0x6f3   : > { %12319 = vmatpush3.bf16.msra.mxu0 %v13509_v52  ;;  %v8800_v52 = vld [vmem:[#allocation2 + $0x12d] sm:$0xff] }
 0x6f4   : > { %12320 = vmatprep.subr.bf16.mxu0 %v13510_v6 }
 0x6f6   : > { %12285 = vmatmul.mubr.bf16.gmra.mrb[44].mxu0 %v15192_v51  ;;  %v13517_v51 = vld [vmem:[%s15332_s6 + $0x218] sm:$0xff]  }
 0x6f7   : > { %12288 = vmatprep.mubr.bf16.mxu0 %v15199_v59  ;;  %12321 = vmatpush3.bf16.msra.mxu0 %v13510_v6  ;;  %v8808_v59 = vpack.c.bf16 %v8778_v56, %v8777_v54  ;;  %v9114_v54 = vld [vmem:[#allocation2 + $0x9e] sm:$0xff]  ;;  %v9116_v56 = vld [vmem:[#allocation2 + $0xae] sm:$0xff] }
 0x6f8   : > { %12322 = vmatprep.subr.bf16.mxu0 %v13511_v34 }
 0x6fb   : > { %12323 = vmatpush3.bf16.msra.mxu0 %v13511_v34  ;;  %v8819_v34 = vpack.c.bf16 %v8800_v52, %v8799_v31 }
 0x6fc   : > { %12324 = vmatprep.subr.bf16.mxu0 %v13512_v11 }
 0x6fe   : > { %12289 = vmatmul.mubr.bf16.gmra.mrb[48].mxu0 %v15204_v13  ;;  %v13519_v13 = vld [vmem:[%s15332_s6 + $0x228] sm:$0xff]  }
 0x6ff   : > { %12292 = vmatprep.mubr.bf16.mxu0 %v8148_v63  ;;  %12325 = vmatpush3.bf16.msra.mxu0 %v13512_v11  ;;  %v8810_v63 = vpack.c.bf16 %v8782_v10, %v8781_v25  ;;  %v8801_v11 = vld [vmem:[#allocation2 + $0x135] sm:$0xff]  ;;  %v9119_v10 = vld [vmem:[#allocation2 + $0xc6] sm:$0xff] }
 0x700   : > { %12326 = vmatprep.subr.bf16.mxu0 %v13513_v36 }
 0x703   : > { %12327 = vmatpush3.bf16.msra.mxu0 %v13513_v36  ;;  %v8802_v36 = vld [vmem:[#allocation2 + $0x13d] sm:$0xff] }
 0x704   : > { %12364 = vmatprep.subr.bf16.mxu0 %v13514_v20 }
 0x706   : > { %12293 = vmatmul.mubr.bf16.gmra.mrb[52].mxu0 %v15211_v12  ;;  %v8783_v12 = vld [vmem:[#allocation2 + $0xa5] sm:$0xff] }
 0x707   : > { %12296 = vmatprep.mubr.bf16.mxu0 %v8150_v24  ;;  %v8811_v14 = vpack.c.bf16 %v8784_v45, %v8783_v12  ;;  %v8788_v24 = vld [vmem:[#allocation2 + $0xcd] sm:$0xff]  ;;  %v9122_v12 = vld [vmem:[#allocation2 + $0xde] sm:$0xff] }
 0x708   : > { %v8813_v43 = vpack.c.bf16 %v8788_v24, %v8787_v3  ;;  %v9125_v24 = vld [vmem:[#allocation2 + $0xf6] sm:$0xff]  ;;  %v9128_v3 = vld [vmem:[#allocation2 + $0x10e] sm:$0xff] }
 0x70e   : > { %12297 = vmatmul.mubr.bf16.gmra.mrb[56].mxu0 %v8151_v61  ;;  %v8812_v61 = vpack.c.bf16 %v8786_v62, %v8785_v15  ;;  %v9123_v15 = vld [vmem:[#allocation2 + $0xe6] sm:$0xff] }
 0x70f   : > { %12300 = vmatprep.mubr.bf16.mxu0 %v8152_v37  ;;  %v8792_v37 = vld [vmem:[#allocation2 + $0xed] sm:$0xff] }
 0x710   : > { %v8815_v19 = vpack.c.bf16 %v8792_v37, %v8791_v55  ;;  %v9129_v37 = vld [vmem:[#allocation2 + $0x116] sm:$0xff]  ;;  %v9131_v55 = vld [vmem:[#allocation2 + $0x126] sm:$0xff] }
 0x716   : > { %12301 = vmatmul.mubr.bf16.gmra.mrb[60].mxu0 %v8153_v48  ;;  %v8814_v48 = vpack.c.bf16 %v8790_v40, %v8789_v16  ;;  %v9127_v16 = vld [vmem:[#allocation2 + $0x106] sm:$0xff] }
 0x717   : > { %12304 = vmatprep.mubr.bf16.mxu0 %v8154_v8  ;;  %v8796_v8 = vld [vmem:[#allocation2 + $0x10d] sm:$0xff]  ;;  %v9149_v40 = vpack.c.bf16 %v9128_v3, %v9127_v16 }
 0x718   : > { %v8817_v28 = vpack.c.bf16 %v8796_v8, %v8795_v50  ;;  %v9133_v8 = vld [vmem:[#allocation2 + $0x136] sm:$0xff] }
 0x71e   : > { %12305 = vmatmul.mubr.bf16.gmra.mrb[64].mxu0 %v8155_v39  ;;  %v8816_v39 = vpack.c.bf16 %v8794_v7, %v8793_v22 }
 0x71f   : > { %12308 = vmatprep.mubr.bf16.mxu0 %v8156_v29  ;;  %v8797_v29 = vld [vmem:[#allocation2 + $0x115] sm:$0xff] }
 0x720   : > { %v8818_v6 = vpack.c.bf16 %v8798_v30, %v8797_v29 }
 0x726   : > { %12309 = vmatmul.mubr.bf16.gmra.mrb[68].mxu0 %v8488_v33  ;;  %v9135_v33 = vpack.c.bf16 %v9100_v26, %v9099_v23 }
 0x727   : > { %12328 = vmatprep.mubr.bf16.mxu0 %v8803_v47  ;;  %v9104_v47 = vld [vmem:[#allocation2 + $0x4e] sm:$0xff] }
 0x728   : > { %v9137_v42 = vpack.c.bf16 %v9104_v47, %v9103_v4 }
 0x72e   : > { %12329 = vmatmul.mubr.bf16.vlgmr.msra.gmra.mrb[36].mxu0 %v8804_v38  ;;  %v9105_v38 = vld [vmem:[#allocation2 + $0x56] sm:$0xff] }
 0x72f   : > { %12332 = vmatprep.mubr.bf16.mxu0 %v8805_v17  ;;  %12365 = vmatpush3.bf16.msra.mxu0 %v13514_v20  ;;  %v8820_v20 = vpack.c.bf16 %v8802_v36, %v8801_v11  ;;  %v9138_v17 = vpack.c.bf16 %v9106_v21, %v9105_v38 }
 0x730   : > { %12366 = vmatprep.subr.bf16.mxu0 %v13515_v0 }
 0x733   : > { %12367 = vmatpush3.bf16.msra.mxu0 %v13515_v0  ;;  %v9108_v0 = vld [vmem:[#allocation2 + $0x6e] sm:$0xff] }
 0x734   : > { %12368 = vmatprep.subr.bf16.mxu0 %v13516_v41 }
 0x736   : > { %12333 = vmatmul.mubr.bf16.gmra.mrb[40].mxu0 %v8806_v35  ;;  %v9112_v35 = vld [vmem:[#allocation2 + $0x8e] sm:$0xff] }
 0x737   : > { %12336 = vmatprep.mubr.bf16.mxu0 %v8807_v53  ;;  %12369 = vmatpush3.bf16.msra.mxu0 %v13516_v41  ;;  %v9107_v41 = vld [vmem:[#allocation2 + $0x66] sm:$0xff] }
 0x738   : > { %12370 = vmatprep.subr.bf16.mxu0 %v13517_v51  ;;  %v9139_v1 = vpack.c.bf16 %v9108_v0, %v9107_v41 }
 0x73b   : > { %12371 = vmatpush3.bf16.msra.mxu0 %v13517_v51  ;;  %v9111_v51 = vld [vmem:[#allocation2 + $0x86] sm:$0xff] }
 0x73c   : > { %12372 = vmatprep.subr.bf16.mxu0 %v13518_v9  ;;  %v9141_v53 = vpack.c.bf16 %v9112_v35, %v9111_v51 }
 0x73e   : > { %12337 = vmatmul.mubr.bf16.gmra.mrb[44].mxu0 %v8808_v59  ;;  %v9115_v59 = vld [vmem:[#allocation2 + $0xa6] sm:$0xff] }
 0x73f   : > { %12340 = vmatprep.mubr.bf16.mxu0 %v8809_v5  ;;  %12373 = vmatpush3.bf16.msra.mxu0 %v13518_v9  ;;  %v9113_v9 = vld [vmem:[#allocation2 + $0x96] sm:$0xff]  ;;  %v9143_v60 = vpack.c.bf16 %v9116_v56, %v9115_v59  ;;  %v9118_v5 = vld [vmem:[#allocation2 + $0xbe] sm:$0xff] }
 0x740   : > { %12374 = vmatprep.subr.bf16.mxu0 %v13519_v13  ;;  %v9142_v58 = vpack.c.bf16 %v9114_v54, %v9113_v9 }
 0x743   : > { %12375 = vmatpush3.bf16.msra.mxu0 %v13519_v13  ;;  %v9117_v13 = vld [vmem:[#allocation2 + $0xb6] sm:$0xff] }
 0x744   : > { %12376 = vmatprep.subr.bf16.mxu0 %v13520_v57  ;;  %v9144_v25 = vpack.c.bf16 %v9118_v5, %v9117_v13 }
 0x746   : > { %12341 = vmatmul.mubr.bf16.gmra.mrb[48].mxu0 %v8810_v63  ;;  %v9121_v63 = vld [vmem:[#allocation2 + $0xd6] sm:$0xff] }
 0x747   : > { %12344 = vmatprep.mubr.bf16.mxu0 %v8811_v14  ;;  %12377 = vmatpush3.bf16.msra.mxu0 %v13520_v57  ;;  %v9120_v57 = vld [vmem:[#allocation2 + $0xce] sm:$0xff]  ;;  %v9146_v14 = vpack.c.bf16 %v9122_v12, %v9121_v63 }
 0x748   : > { %12378 = vmatprep.subr.bf16.mxu0 %v13521_v27  ;;  %v9145_v45 = vpack.c.bf16 %v9120_v57, %v9119_v10 }
 0x74b   : > { %12379 = vmatpush3.bf16.msra.mxu0 %v13521_v27  ;;  %v9124_v27 = vld [vmem:[#allocation2 + $0xee] sm:$0xff] }
 0x74c   : > { %v9147_v62 = vpack.c.bf16 %v9124_v27, %v9123_v15 }
 0x74e   : > { %12345 = vmatmul.mubr.bf16.gmra.mrb[52].mxu0 %v8812_v61  ;;  %v9126_v61 = vld [vmem:[#allocation2 + $0xfe] sm:$0xff] }
 0x74f   : > { %12348 = vmatprep.mubr.bf16.mxu0 %v8813_v43  ;;  %v9148_v43 = vpack.c.bf16 %v9126_v61, %v9125_v24 }
 0x756   : > { %12349 = vmatmul.mubr.bf16.gmra.mrb[56].mxu0 %v8814_v48  ;;  %v9130_v48 = vld [vmem:[#allocation2 + $0x11e] sm:$0xff] }
 0x757   : > { %12352 = vmatprep.mubr.bf16.mxu0 %v8815_v19  ;;  %v9132_v19 = vld [vmem:[#allocation2 + $0x12e] sm:$0xff]  ;;  %v9150_v22 = vpack.c.bf16 %v9130_v48, %v9129_v37 }
 0x758   : > { %v9151_v7 = vpack.c.bf16 %v9132_v19, %v9131_v55 }
 0x75e   : > { %12353 = vmatmul.mubr.bf16.gmra.mrb[60].mxu0 %v8816_v39  ;;  %v9134_v39 = vld [vmem:[#allocation2 + $0x13e] sm:$0xff] }
 0x75f   : > { %12356 = vmatprep.mubr.bf16.mxu0 %v8817_v28  ;;  %v9152_v50 = vpack.c.bf16 %v9134_v39, %v9133_v8  ;;  %v15271_v28 = vld [vmem:[%s15333_s7] ss:$0 sm:$0xff] }
 0x766   : > { %12357 = vmatmul.mubr.bf16.gmra.mrb[64].mxu0 %v8818_v6 }
 0x767   : > { %12360 = vmatprep.mubr.bf16.mxu0 %v8819_v34 }
 0x76e   : > { %12361 = vmatmul.mubr.bf16.gmra.mrb[68].mxu0 %v8820_v20 }
 0x76f   : > { %12380 = vmatprep.mubr.bf16.mxu0 %v9135_v33 }
 0x776   : > { %12381 = vmatmul.mubr.bf16.vlgmr.msra.gmra.mrb[36].mxu0 %v9136_v32 }
 0x777   : > { %12384 = vmatprep.mubr.bf16.mxu0 %v9137_v42 }
 0x77e   : > { %12385 = vmatmul.mubr.bf16.gmra.mrb[40].mxu0 %v9138_v17 }
 0x77f   : > { %12388 = vmatprep.mubr.bf16.mxu0 %v9139_v1 }
 0x786   : > { %12389 = vmatmul.mubr.bf16.gmra.mrb[44].mxu0 %v9140_v46 }
 0x787   : > { %12392 = vmatprep.mubr.bf16.mxu0 %v9141_v53 }
 0x78e   : > { %12393 = vmatmul.mubr.bf16.gmra.mrb[48].mxu0 %v9142_v58 }
 0x78f   : > { %12396 = vmatprep.mubr.bf16.mxu0 %v9143_v60 }
 0x796   : > { %12397 = vmatmul.mubr.bf16.gmra.mrb[52].mxu0 %v9144_v25 }
 0x797   : > { %12400 = vmatprep.mubr.bf16.mxu0 %v9145_v45 }
 0x79e   : > { %12401 = vmatmul.mubr.bf16.gmra.mrb[56].mxu0 %v9146_v14 }
 0x79f   : > { %12404 = vmatprep.mubr.bf16.mxu0 %v9147_v62 }
 0x7a6   : > { %12405 = vmatmul.mubr.bf16.gmra.mrb[60].mxu0 %v9148_v43 }
 0x7a7   : > { %12408 = vmatprep.mubr.bf16.mxu0 %v9149_v40 }
 0x7ae   : > { %12409 = vmatmul.mubr.bf16.gmra.mrb[64].mxu0 %v9150_v22 }
 0x7af   : > { %12412 = vmatprep.mubr.bf16.mxu0 %v9151_v7 }
 0x7b6   : > { %12413 = vmatmul.mubr.bf16.gmra.mrb[68].mxu0 %v9152_v50 }
 0x849   : > { %v12382_v29 = vpop.f32.mrb[36].mxu0 }
 0x84a   : > { %v9440_v30 = vadd.f32 %v12382_v29, %v15271_v28  ;;  %v9252_v31 = vpop.f32.mrb[37].mxu0 }
 0x84b   : > { %v9438_v52 = vadd.f32 %v15271_v28, %v9252_v31  ;;  %v12383_v6 = vpop.f32.mrb[38].mxu0 }
 0x84c   : > { %v9476_v34 = vmax.f32 %v9440_v30, 0.0  ;;  %v9441_v11 = vadd.f32 %v12383_v6, %v15271_v28  ;;  %v9255_v36 = vpop.f32.mrb[39].mxu0 }
 0x84d   : > { %v9474_v20 = vmax.f32 %v9438_v52, 0.0  ;;  %v9439_v26 = vadd.f32 %v15271_v28, %v9255_v36 }
 0x84e   : > { %9512 = vst [vmem:[#allocation2 + $0x10] sm:$0xff] %v9476_v34  ;;  %v9477_v23 = vmax.f32 %v9441_v11, 0.0 }
 0x84f   : > { %9510 = vst [vmem:[#allocation2] sm:$0xff] %v9474_v20  ;;  %v9475_v33 = vmax.f32 %v9439_v26, 0.0 }
 0x850   : > { %9513 = vst [vmem:[#allocation2 + $0x18] sm:$0xff] %v9477_v23 }
 0x851   : > { %9511 = vst [vmem:[#allocation2 + $0x8] sm:$0xff] %v9475_v33  ;;  %v12386_v49 = vpop.f32.mrb[40].mxu0 }
 0x852   : > { %v9444_v2 = vadd.f32 %v12386_v49, %v15271_v28  ;;  %v9268_v47 = vpop.f32.mrb[41].mxu0 }
 0x853   : > { %v9442_v32 = vadd.f32 %v15271_v28, %v9268_v47  ;;  %v12387_v4 = vpop.f32.mrb[42].mxu0 }
 0x854   : > { %v9480_v42 = vmax.f32 %v9444_v2, 0.0  ;;  %v9445_v38 = vadd.f32 %v12387_v4, %v15271_v28  ;;  %v9271_v21 = vpop.f32.mrb[43].mxu0 }
 0x855   : > { %v9478_v0 = vmax.f32 %v9442_v32, 0.0  ;;  %v9443_v17 = vadd.f32 %v15271_v28, %v9271_v21 }
 0x856   : > { %9516 = vst [vmem:[#allocation2 + $0x30] sm:$0xff] %v9480_v42  ;;  %v9481_v41 = vmax.f32 %v9445_v38, 0.0 }
 0x857   : > { %9514 = vst [vmem:[#allocation2 + $0x20] sm:$0xff] %v9478_v0  ;;  %v9479_v1 = vmax.f32 %v9443_v17, 0.0 }
 0x858   : > { %9517 = vst [vmem:[#allocation2 + $0x38] sm:$0xff] %v9481_v41  ;;  %v9546_v53 = vld [vmem:[#allocation2] ss:$2 sm:$0xff]  ;;  %v9548_v9 = vld [vmem:[#allocation2 + $0x1] ss:$2 sm:$0xff] }
 0x859   : > { %9515 = vst [vmem:[#allocation2 + $0x28] sm:$0xff] %v9479_v1  ;;  %v12390_v44 = vpop.f32.mrb[44].mxu0  ;;  %v9553_v25 = vmax.f32 %v9546_v53, %v9548_v9 }
 0x85a   : > { %v9448_v18 = vadd.f32 %v12390_v44, %v15271_v28  ;;  %v9284_v35 = vpop.f32.mrb[45].mxu0 }
 0x85b   : > { %v9446_v46 = vadd.f32 %v15271_v28, %v9284_v35  ;;  %v12391_v51 = vpop.f32.mrb[46].mxu0 }
 0x85c   : > { %v9484_v54 = vmax.f32 %v9448_v18, 0.0  ;;  %v9449_v56 = vadd.f32 %v12391_v51, %v15271_v28  ;;  %v9287_v58 = vpop.f32.mrb[47].mxu0 }
 0x85d   : > { %v9482_v59 = vmax.f32 %v9446_v46, 0.0  ;;  %v9447_v60 = vadd.f32 %v15271_v28, %v9287_v58 }
 0x85e   : > { %v9550_v13 = vld [vmem:[#allocation2 + $0x12] ss:$2 sm:$0xff]  ;;  %v9552_v5 = vld [vmem:[#allocation2 + $0x13] ss:$2 sm:$0xff]  ;;  %9520 = vst [vmem:[#allocation2 + $0x50] sm:$0xff] %v9484_v54  ;;  %v9485_v57 = vmax.f32 %v9449_v56, 0.0 }
 0x85f   : > { %v9554_v10 = vmax.f32 %v9550_v13, %v9552_v5  ;;  %9518 = vst [vmem:[#allocation2 + $0x40] sm:$0xff] %v9482_v59  ;;  %v9483_v45 = vmax.f32 %v9447_v60, 0.0 }
 0x860   : > { %9521 = vst [vmem:[#allocation2 + $0x58] sm:$0xff] %v9485_v57  ;;  %v9558_v24 = vld [vmem:[#allocation2 + $0x24] ss:$2 sm:$0xff]  ;;  %v9560_v61 = vld [vmem:[#allocation2 + $0x25] ss:$2 sm:$0xff] }
 0x861   : > { %v9555_v63 = vmax.f32 %v9553_v25, %v9554_v10  ;;  %9519 = vst [vmem:[#allocation2 + $0x48] sm:$0xff] %v9483_v45  ;;  %v12394_v12 = vpop.f32.mrb[48].mxu0  ;;  %v9565_v22 = vmax.f32 %v9558_v24, %v9560_v61 }
 0x862   : > { %v9452_v27 = vadd.f32 %v12394_v12, %v15271_v28  ;;  %v9300_v14 = vpop.f32.mrb[49].mxu0 }
 0x863   : > { %9556 = vst [vmem:[%s15289_s19] sm:$0xff] %v9555_v63  ;;  %v9450_v15 = vadd.f32 %v15271_v28, %v9300_v14  ;;  %v12395_v62 = vpop.f32.mrb[50].mxu0 }
 0x864   : > { %v9488_v3 = vmax.f32 %v9452_v27, 0.0  ;;  %v9453_v43 = vadd.f32 %v12395_v62, %v15271_v28  ;;  %v9303_v16 = vpop.f32.mrb[51].mxu0 }
 0x865   : > { %v9486_v40 = vmax.f32 %v9450_v15, 0.0  ;;  %v9451_v37 = vadd.f32 %v15271_v28, %v9303_v16 }
 0x866   : > { %v9562_v48 = vld [vmem:[#allocation2 + $0x36] ss:$2 sm:$0xff]  ;;  %v9564_v55 = vld [vmem:[#allocation2 + $0x37] ss:$2 sm:$0xff]  ;;  %9524 = vst [vmem:[#allocation2 + $0x70] sm:$0xff] %v9488_v3  ;;  %v9489_v19 = vmax.f32 %v9453_v43, 0.0 }
 0x867   : > { %v9566_v7 = vmax.f32 %v9562_v48, %v9564_v55  ;;  %9522 = vst [vmem:[#allocation2 + $0x60] sm:$0xff] %v9486_v40  ;;  %v9487_v8 = vmax.f32 %v9451_v37, 0.0 }
 0x868   : > { %9525 = vst [vmem:[#allocation2 + $0x78] sm:$0xff] %v9489_v19  ;;  %v9570_v26 = vld [vmem:[#allocation2 + $0x48] ss:$2 sm:$0xff]  ;;  %v9572_v23 = vld [vmem:[#allocation2 + $0x49] ss:$2 sm:$0xff] }
 0x869   : > { %v9567_v39 = vmax.f32 %v9565_v22, %v9566_v7  ;;  %9523 = vst [vmem:[#allocation2 + $0x68] sm:$0xff] %v9487_v8  ;;  %v12398_v50 = vpop.f32.mrb[52].mxu0  ;;  %v9577_v32 = vmax.f32 %v9570_v26, %v9572_v23 }
 0x86a   : > { %v9456_v29 = vadd.f32 %v12398_v50, %v15271_v28  ;;  %v9316_v30 = vpop.f32.mrb[53].mxu0 }
 0x86b   : > { %9568 = vst [vmem:[%s15289_s19 + $0x8] sm:$0xff] %v9567_v39  ;;  %v9454_v31 = vadd.f32 %v15271_v28, %v9316_v30  ;;  %v12399_v52 = vpop.f32.mrb[54].mxu0 }
 0x86c   : > { %v9492_v6 = vmax.f32 %v9456_v29, 0.0  ;;  %v9457_v34 = vadd.f32 %v12399_v52, %v15271_v28  ;;  %v9319_v11 = vpop.f32.mrb[55].mxu0 }
 0x86d   : > { %v9490_v36 = vmax.f32 %v9454_v31, 0.0  ;;  %v9455_v20 = vadd.f32 %v15271_v28, %v9319_v11 }
 0x86e   : > { %9528 = vst [vmem:[#allocation2 + $0x90] sm:$0xff] %v9492_v6  ;;  %v9493_v33 = vmax.f32 %v9457_v34, 0.0 }
 0x86f   : > { %9526 = vst [vmem:[#allocation2 + $0x80] sm:$0xff] %v9490_v36  ;;  %v9491_v49 = vmax.f32 %v9455_v20, 0.0 }
 0x870   : > { %v9574_v2 = vld [vmem:[#allocation2 + $0x5a] ss:$2 sm:$0xff]  ;;  %v9576_v47 = vld [vmem:[#allocation2 + $0x5b] ss:$2 sm:$0xff]  ;;  %9529 = vst [vmem:[#allocation2 + $0x98] sm:$0xff] %v9493_v33 }
 0x871   : > { %v9578_v4 = vmax.f32 %v9574_v2, %v9576_v47  ;;  %9527 = vst [vmem:[#allocation2 + $0x88] sm:$0xff] %v9491_v49  ;;  %v12402_v42 = vpop.f32.mrb[56].mxu0  ;;  %v9582_v51 = vld [vmem:[#allocation2 + $0x6c] ss:$2 sm:$0xff]  ;;  %v9584_v53 = vld [vmem:[#allocation2 + $0x6d] ss:$2 sm:$0xff] }
 0x872   : > { %v9460_v38 = vadd.f32 %v12402_v42, %v15271_v28  ;;  %v9332_v21 = vpop.f32.mrb[57].mxu0  ;;  %v9589_v59 = vmax.f32 %v9582_v51, %v9584_v53 }
 0x873   : > { %v9579_v0 = vmax.f32 %v9577_v32, %v9578_v4  ;;  %v9458_v17 = vadd.f32 %v15271_v28, %v9332_v21  ;;  %v12403_v41 = vpop.f32.mrb[58].mxu0 }
 0x874   : > { %v9496_v1 = vmax.f32 %v9460_v38, 0.0  ;;  %v9461_v44 = vadd.f32 %v12403_v41, %v15271_v28  ;;  %v9335_v18 = vpop.f32.mrb[59].mxu0 }
 0x875   : > { %9580 = vst [vmem:[%s15289_s19 + $0x10] sm:$0xff] %v9579_v0  ;;  %v9494_v35 = vmax.f32 %v9458_v17, 0.0  ;;  %v9459_v46 = vadd.f32 %v15271_v28, %v9335_v18 }
 0x876   : > { %9532 = vst [vmem:[#allocation2 + $0xb0] sm:$0xff] %v9496_v1  ;;  %v9497_v9 = vmax.f32 %v9461_v44, 0.0 }
 0x877   : > { %9530 = vst [vmem:[#allocation2 + $0xa0] sm:$0xff] %v9494_v35  ;;  %v9495_v54 = vmax.f32 %v9459_v46, 0.0  ;;  %v9594_v62 = vld [vmem:[#allocation2 + $0x90] ss:$2 sm:$0xff]  ;;  %v9596_v24 = vld [vmem:[#allocation2 + $0x91] ss:$2 sm:$0xff] }
 0x878   : > { %v9586_v56 = vld [vmem:[#allocation2 + $0x7e] ss:$2 sm:$0xff]  ;;  %v9588_v58 = vld [vmem:[#allocation2 + $0x7f] ss:$2 sm:$0xff]  ;;  %9533 = vst [vmem:[#allocation2 + $0xb8] sm:$0xff] %v9497_v9  ;;  %v9601_v40 = vmax.f32 %v9594_v62, %v9596_v24 }
 0x879   : > { %v9590_v60 = vmax.f32 %v9586_v56, %v9588_v58  ;;  %9531 = vst [vmem:[#allocation2 + $0xa8] sm:$0xff] %v9495_v54  ;;  %v12406_v13 = vpop.f32.mrb[60].mxu0 }
 0x87a   : > { %v9464_v5 = vadd.f32 %v12406_v13, %v15271_v28  ;;  %v9348_v57 = vpop.f32.mrb[61].mxu0 }
 0x87b   : > { %v9591_v25 = vmax.f32 %v9589_v59, %v9590_v60  ;;  %v9462_v10 = vadd.f32 %v15271_v28, %v9348_v57  ;;  %v12407_v45 = vpop.f32.mrb[62].mxu0 }
 0x87c   : > { %v9500_v63 = vmax.f32 %v9464_v5, 0.0  ;;  %v9465_v12 = vadd.f32 %v12407_v45, %v15271_v28  ;;  %v9351_v27 = vpop.f32.mrb[63].mxu0 }
 0x87d   : > { %9592 = vst [vmem:[%s15289_s19 + $0x18] sm:$0xff] %v9591_v25  ;;  %v9498_v14 = vmax.f32 %v9462_v10, 0.0  ;;  %v9463_v15 = vadd.f32 %v15271_v28, %v9351_v27 }
 0x87e   : > { %9536 = vst [vmem:[#allocation2 + $0xd0] sm:$0xff] %v9500_v63  ;;  %v9501_v61 = vmax.f32 %v9465_v12, 0.0 }
 0x87f   : > { %9534 = vst [vmem:[#allocation2 + $0xc0] sm:$0xff] %v9498_v14  ;;  %v9499_v3 = vmax.f32 %v9463_v15, 0.0 }
 0x880   : > { %v9598_v43 = vld [vmem:[#allocation2 + $0xa2] ss:$2 sm:$0xff]  ;;  %v9600_v16 = vld [vmem:[#allocation2 + $0xa3] ss:$2 sm:$0xff]  ;;  %9537 = vst [vmem:[#allocation2 + $0xd8] sm:$0xff] %v9501_v61 }
 0x881   : > { %v9602_v37 = vmax.f32 %v9598_v43, %v9600_v16  ;;  %9535 = vst [vmem:[#allocation2 + $0xc8] sm:$0xff] %v9499_v3  ;;  %v12410_v48 = vpop.f32.mrb[64].mxu0 }
 0x882   : > { %v9468_v55 = vadd.f32 %v12410_v48, %v15271_v28  ;;  %v9364_v19 = vpop.f32.mrb[65].mxu0 }
 0x883   : > { %v9603_v22 = vmax.f32 %v9601_v40, %v9602_v37  ;;  %v9466_v7 = vadd.f32 %v15271_v28, %v9364_v19  ;;  %v12411_v8 = vpop.f32.mrb[66].mxu0 }
 0x884   : > { %v9504_v39 = vmax.f32 %v9468_v55, 0.0  ;;  %v9469_v50 = vadd.f32 %v12411_v8, %v15271_v28  ;;  %v9367_v29 = vpop.f32.mrb[67].mxu0 }
 0x885   : > { %9604 = vst [vmem:[%s15289_s19 + $0x20] sm:$0xff] %v9603_v22  ;;  %v9502_v30 = vmax.f32 %v9466_v7, 0.0  ;;  %v9467_v31 = vadd.f32 %v15271_v28, %v9367_v29 }
 0x886   : > { %v9606_v52 = vld [vmem:[#allocation2 + $0xb4] ss:$2 sm:$0xff]  ;;  %v9608_v6 = vld [vmem:[#allocation2 + $0xb5] ss:$2 sm:$0xff]  ;;  %9540 = vst [vmem:[#allocation2 + $0xf0] sm:$0xff] %v9504_v39  ;;  %v9505_v34 = vmax.f32 %v9469_v50, 0.0 }
 0x887   : > { %9538 = vst [vmem:[#allocation2 + $0xe0] sm:$0xff] %v9502_v30  ;;  %v9503_v11 = vmax.f32 %v9467_v31, 0.0  ;;  %v9613_v26 = vmax.f32 %v9606_v52, %v9608_v6 }
 0x888   : > { %v9610_v36 = vld [vmem:[#allocation2 + $0xc6] ss:$2 sm:$0xff]  ;;  %v9612_v20 = vld [vmem:[#allocation2 + $0xc7] ss:$2 sm:$0xff]  ;;  %9541 = vst [vmem:[#allocation2 + $0xf8] sm:$0xff] %v9505_v34 }
 0x889   : > { %v9614_v23 = vmax.f32 %v9610_v36, %v9612_v20  ;;  %9539 = vst [vmem:[#allocation2 + $0xe8] sm:$0xff] %v9503_v11  ;;  %v12414_v33 = vpop.f32.mrb[68].mxu0 }
 0x88a   : > { %v9472_v49 = vadd.f32 %v12414_v33, %v15271_v28  ;;  %v9380_v2 = vpop.f32.mrb[69].mxu0 }
 0x88b   : > { %v9615_v47 = vmax.f32 %v9613_v26, %v9614_v23  ;;  %v9470_v32 = vadd.f32 %v15271_v28, %v9380_v2  ;;  %v12415_v4 = vpop.f32.mrb[70].mxu0 }
 0x88c   : > { %v9508_v42 = vmax.f32 %v9472_v49, 0.0  ;;  %v9473_v38 = vadd.f32 %v12415_v4, %v15271_v28  ;;  %v9383_v21 = vpop.f32.mrb[71].mxu0 }
 0x88d   : > { %9616 = vst [vmem:[%s15289_s19 + $0x28] sm:$0xff] %v9615_v47  ;;  %v9506_v0 = vmax.f32 %v9470_v32, 0.0  ;;  %v9471_v17 = vadd.f32 %v15271_v28, %v9383_v21 }
 0x88e   : > { %v9618_v41 = vld [vmem:[#allocation2 + $0xd8] ss:$2 sm:$0xff]  ;;  %v9620_v1 = vld [vmem:[#allocation2 + $0xd9] ss:$2 sm:$0xff]  ;;  %9544 = vst [vmem:[#allocation2 + $0x110] sm:$0xff] %v9508_v42  ;;  %v9509_v44 = vmax.f32 %v9473_v38, 0.0 }
 0x88f   : > { %9542 = vst [vmem:[#allocation2 + $0x100] sm:$0xff] %v9506_v0  ;;  %v9507_v18 = vmax.f32 %v9471_v17, 0.0  ;;  %v9625_v51 = vmax.f32 %v9618_v41, %v9620_v1 }
 0x890   : > { %v9622_v35 = vld [vmem:[#allocation2 + $0xea] ss:$2 sm:$0xff]  ;;  %v9624_v46 = vld [vmem:[#allocation2 + $0xeb] ss:$2 sm:$0xff]  ;;  %9545 = vst [vmem:[#allocation2 + $0x118] sm:$0xff] %v9509_v44 }
 0x891   : > { %v9626_v53 = vmax.f32 %v9622_v35, %v9624_v46  ;;  %9543 = vst [vmem:[#allocation2 + $0x108] sm:$0xff] %v9507_v18 }
 0x893   : > { %v9627_v9 = vmax.f32 %v9625_v51, %v9626_v53 }
 0x895   : > { %9628 = vst [vmem:[%s15289_s19 + $0x30] sm:$0xff] %v9627_v9 }
 0x898   : > { %v9630_v54 = vld [vmem:[#allocation2 + $0xfc] ss:$2 sm:$0xff]  ;;  %v9632_v56 = vld [vmem:[#allocation2 + $0xfd] ss:$2 sm:$0xff] }
 0x899   : > { %v9634_v58 = vld [vmem:[#allocation2 + $0x10e] ss:$2 sm:$0xff]  ;;  %v9636_v59 = vld [vmem:[#allocation2 + $0x10f] ss:$2 sm:$0xff]  ;;  %v9637_v28 = vmax.f32 %v9630_v54, %v9632_v56 }
 0x89a   : > { %v9638_v60 = vmax.f32 %v9634_v58, %v9636_v59 }
 0x89c   : > { %v9639_v13 = vmax.f32 %v9637_v28, %v9638_v60 }
 0x89e   : > { %9640 = vst [vmem:[%s15289_s19 + $0x38] sm:$0xff] %v9639_v13 }
 0x89f PF: > { %s18_s27 = sadd.s32 1, %s13573_s27  }
 0x8a0   : > { %p15_p4 = scmp.ge.s32.totalorder %s18_s27, 4  }
 0x8a2   :  { %17 = sbr.rel (!%p15_p4) target bundleno = 1 (0x1), region = 137 }

</bundles_post_ra>
